<compile_context>
chip_gen: v7x
topology: tpu7x:2x2x1
jax: 0.10.0
libtpu: 0.0.40
codegen_flags: <defaults>
</compile_context>

<pallas_src>
import jax
import jax.numpy as jnp
from jax.experimental import pallas as pl
from jax.experimental.pallas import tpu as pltpu

C1 = 64    # conv1 output channels (fixed by the module)
C2 = 128   # conv2 output channels (fixed by the module)
K = 3      # conv kernel size


def _silu(v):
    # divide -> EUP via approx reciprocal (free slot next to exp)
    return v * pl.reciprocal(1.0 + jnp.exp(-v), approx=True)


def _signal_encoder2_kernel(x_ref, w1b_ref, w2b_ref, wfc_ref, bfc_ref, out_ref,
                            y3_scr, y2_scr):
    TN = x_ref.shape[0]           # samples per grid step
    C = x_ref.shape[1]            # input channels (frame_step)
    Sp2 = x_ref.shape[2]          # S + 2 (padded by 1 on each side in the wrapper)
    S = Sp2 - 2
    P4 = out_ref.shape[2]

    w1b = w1b_ref[...]            # (64, K*C + 1); column k*C+c, last column = bias
    b1 = w1b[:, K * C:K * C + 1]  # (64, 1)
    zcol = jnp.zeros((C1, 1), jnp.float32)

    # ---- conv1 (VPU rank-1 updates) + im2col slab build, one sample at a time ----
    # y1[o, t] = SiLU(b1[o] + sum_{k,c} w1[o,c,k] * x_pad[c, t+k]),  t = 0..S-1
    for n in range(TN):
        xp = x_ref[n]                          # (C, S+2)
        acc = None
        for k in range(K):
            xk = xp[:, k:k + S]                # (C, S)
            for c in range(C):
                idx = k * C + c
                term = w1b[:, idx:idx + 1] * xk[c:c + 1, :]   # (64, S) rank-1 on VPU
                acc = term if acc is None else acc + term
        y1 = _silu(acc + b1)                   # (64, S)
        # conv2 im2col: zero edge columns implement conv2's padding=1
        y3_scr[0 * C1:1 * C1, n * S:(n + 1) * S] = jnp.concatenate(
            [zcol, y1[:, :S - 1]], axis=1)     # k = 0 slab
        y3_scr[1 * C1:2 * C1, n * S:(n + 1) * S] = y1                      # k = 1 slab
        y3_scr[2 * C1:3 * C1, n * S:(n + 1) * S] = jnp.concatenate(
            [y1[:, 1:], zcol], axis=1)         # k = 2 slab

    # ---- conv2: one fused MXU matmul across the whole block of samples ----
    w2b = w2b_ref[...]                         # (128, K*64 + 1); last column = bias
    y2_scr[...] = jnp.dot(w2b[:, :K * C1], y3_scr[...],
                          preferred_element_type=jnp.float32)   # (128, TN*S)

    # ---- bias + SiLU + fc, per sample (bounded live vregs, no big product) ----
    b2 = w2b[:, K * C1:K * C1 + 1]             # (128, 1)
    bfc = bfc_ref[...]                         # (1, P4)
    rows = []
    for n in range(TN):
        y2n = _silu(y2_scr[:, n * S:(n + 1) * S] + b2)          # (128, S)
        parts = []
        for o in range(P4):
            p = wfc_ref[o] * y2n                                # (128, S)
            parts.append(jnp.sum(p, axis=1, keepdims=True))     # (128, 1) lane reduce
        t = jnp.concatenate(parts, axis=1)                      # (128, P4)
        rows.append(jnp.sum(t, axis=0, keepdims=True))          # (1, P4) sublane reduce
    res = jnp.concatenate(rows, axis=0) + bfc                   # (TN, P4)
    out_ref[...] = res[None]                                    # single store per block


def _pick_tn(n, max_tn=8):
    """Largest divisor of n that is <= max_tn while keeping the grid length >= 2."""
    best = None
    for t in range(1, min(max_tn, n) + 1):
        if n % t == 0 and n // t >= 2:
            best = t
    return best if best is not None else n


def signal_encoder2(x, params, *, target_h=1, target_w=1, max_tn=8):
    B, F, C, S = x.shape
    N = B * F
    P4 = 4 * target_h * target_w
    TN = _pick_tn(N, max_tn)
    G = N // TN

    # zero-pad the signal axis by 1 so conv1 is pure static lane-offset slices in-kernel
    x_pad = jnp.pad(x.reshape(N, C, S), ((0, 0), (0, 0), (1, 1)))

    out = pl.pallas_call(
        _signal_encoder2_kernel,
        out_shape=jax.ShapeDtypeStruct((G, TN, P4), jnp.float32),
        grid_spec=pltpu.PrefetchScalarGridSpec(
            num_scalar_prefetch=0,
            grid=(G,),
            in_specs=[
                pl.BlockSpec((TN, C, S + 2), lambda g: (g, 0, 0)),   # TN samples of x
                pl.BlockSpec((C1, K * C + 1), lambda g: (0, 0)),     # conv1 w|b (pinned)
                pl.BlockSpec((C2, K * C1 + 1), lambda g: (0, 0)),    # conv2 w|b (pinned)
                pl.BlockSpec((P4, C2, S), lambda g: (0, 0, 0)),      # fc weight (pinned)
                pl.BlockSpec((1, P4), lambda g: (0, 0)),             # fc bias (pinned)
            ],
            out_specs=pl.BlockSpec((1, TN, P4), lambda g: (g, 0, 0)),
            scratch_shapes=[
                pltpu.VMEM((K * C1, TN * S), jnp.float32),           # im2col slab
                pltpu.VMEM((C2, TN * S), jnp.float32),               # conv2 output
            ],
        ),
        compiler_params=pltpu.CompilerParams(
            dimension_semantics=("parallel",),
            vmem_limit_bytes=32 * 1024 * 1024),
    )(x_pad, params["w1b"], params["w2b"], params["wfc_r"], params["bfc"])

    return out.reshape(B, F, 4, target_h, target_w)


def init_params(key, *, signal_data_dim=512, frame_step=2, target_h=1, target_w=1):
    """PyTorch-style uniform init, plus kernel-friendly packed layouts."""
    P4 = 4 * target_h * target_w
    ks = jax.random.split(key, 6)

    def u(k, shape, fan_in):
        bound = 1.0 / jnp.sqrt(jnp.float32(fan_in))
        return jax.random.uniform(k, shape, jnp.float32, -bound, bound)

    w1 = u(ks[0], (C1, frame_step, K), frame_step * K)            # Conv1d(C->64)
    b1 = u(ks[1], (C1,), frame_step * K)
    w2 = u(ks[2], (C2, C1, K), C1 * K)                            # Conv1d(64->128)
    b2 = u(ks[3], (C2,), C1 * K)
    wfc = u(ks[4], (P4, C2 * signal_data_dim), C2 * signal_data_dim)  # Linear
    bfc = u(ks[5], (P4,), C2 * signal_data_dim)

    # Pack: (o, c, k) -> (o, k*C + c), bias appended as last column.
    w1_kc = jnp.transpose(w1, (0, 2, 1)).reshape(C1, K * frame_step)
    w1b = jnp.concatenate([w1_kc, b1[:, None]], axis=1)           # (64, 3C+1)
    w2_kc = jnp.transpose(w2, (0, 2, 1)).reshape(C2, K * C1)
    w2b = jnp.concatenate([w2_kc, b2[:, None]], axis=1)           # (128, 193)
    wfc_r = wfc.reshape(P4, C2, signal_data_dim)                  # lane-dense (o, c, s)

    return dict(raw=dict(w1=w1, b1=b1, w2=w2, b2=b2, wfc=wfc, bfc=bfc),
                w1b=w1b, w2b=w2b, wfc_r=wfc_r, bfc=bfc.reshape(1, P4))


def reference_forward(x, raw, *, target_h=1, target_w=1):
    """Pure-JAX replica of the (intended) PyTorch forward, for validation."""
    B, F, C, S = x.shape
    xr = x.reshape(B * F, C, S)
    dn = ("NCH", "OIH", "NCH")
    y1 = jax.lax.conv_general_dilated(xr, raw["w1"], (1,), [(1, 1)],
                                      dimension_numbers=dn)
    y1 = y1 + raw["b1"][None, :, None]
    y1 = y1 * jax.nn.sigmoid(y1)
    y2 = jax.lax.conv_general_dilated(y1, raw["w2"], (1,), [(1, 1)],
                                      dimension_numbers=dn)
    y2 = y2 + raw["b2"][None, :, None]
    y2 = y2 * jax.nn.sigmoid(y2)
    flat = y2.reshape(B * F, -1)
    out = flat @ raw["wfc"].T + raw["bfc"]
    return out.reshape(B, F, 4, target_h, target_w)


if __name__ == "__main__":
    key = jax.random.PRNGKey(0)
    kx, kp = jax.random.split(key)

    # batch=2, frames=4, channels=frame_step=2, signal_data_dim=128 (small, lane-dense)
    B, F, C, S = 2, 4, 2, 128
    x = jax.random.normal(kx, (B, F, C, S), dtype=jnp.float32)
    params = init_params(kp, signal_data_dim=S, frame_step=C)

    out = signal_encoder2(x, params)
    out = jax.block_until_ready(out)

    assert out.shape == (B, F, 4, 1, 1), out.shape
    ref = reference_forward(x, params["raw"])
    if not jnp.allclose(out, ref, atol=1e-2, rtol=1e-2):
        err = jnp.max(jnp.abs(out - ref))
        raise AssertionError(f"Pallas kernel mismatches JAX reference (max abs err={err})")

    print("KERNEL_OK")
</pallas_src>

<mosaic_0001>
module attributes {stable_mosaic.version = 11 : i64} {
  func.func @_signal_encoder2_kernel(%arg0: i32, %arg1: memref<4x2x130xf32, #tpu.memory_space<vmem>>, %arg2: memref<64x7xf32, #tpu.memory_space<vmem>>, %arg3: memref<128x193xf32, #tpu.memory_space<vmem>>, %arg4: memref<4x128x128xf32, #tpu.memory_space<vmem>>, %arg5: memref<1x4xf32, #tpu.memory_space<vmem>>, %arg6: memref<1x4x4xf32, #tpu.memory_space<vmem>>, %arg7: memref<192x512xf32, #tpu.memory_space<vmem>>, %arg8: memref<128x512xf32, #tpu.memory_space<vmem>>) attributes {dimension_semantics = [#tpu.dimension_semantics<parallel>], iteration_bounds = array<i64: 2>, scalar_prefetch = 0 : i64, scratch_operands = 2 : i64, tpu.core_type = #tpu.core_type<tc>, window_params = [{transform_indices = @transform_0, window_bounds = array<i64: 4, 2, 130>}, {pipeline_mode = #tpu.pipeline_mode<synchronous>, transform_indices = @transform_1, window_bounds = array<i64: 64, 7>}, {pipeline_mode = #tpu.pipeline_mode<synchronous>, transform_indices = @transform_2, window_bounds = array<i64: 128, 193>}, {pipeline_mode = #tpu.pipeline_mode<synchronous>, transform_indices = @transform_3, window_bounds = array<i64: 4, 128, 128>}, {pipeline_mode = #tpu.pipeline_mode<synchronous>, transform_indices = @transform_4, window_bounds = array<i64: 1, 4>}, {transform_indices = @transform_5, window_bounds = array<i64: 1, 4, 4>}]} {
    %c0 = arith.constant 0 : index
    %c0_0 = arith.constant 0 : index
    %0 = vector.load %arg2[%c0, %c0_0] : memref<64x7xf32, #tpu.memory_space<vmem>>, vector<64x7xf32>
    %1 = vector.extract_strided_slice %0 {offsets = [0, 6], sizes = [64, 1], strides = [1, 1]} : vector<64x7xf32> to vector<64x1xf32>
    %cst = arith.constant 0.000000e+00 : f32
    %2 = vector.broadcast %cst : f32 to vector<64x1xf32>
    %c0_1 = arith.constant 0 : index
    %c0_2 = arith.constant 0 : index
    %c0_3 = arith.constant 0 : index
    %3 = vector.load %arg1[%c0_1, %c0_2, %c0_3] : memref<4x2x130xf32, #tpu.memory_space<vmem>>, vector<1x2x130xf32>
    %4 = vector.shape_cast %3 : vector<1x2x130xf32> to vector<2x130xf32>
    %5 = vector.extract_strided_slice %4 {offsets = [0, 0], sizes = [2, 128], strides = [1, 1]} : vector<2x130xf32> to vector<2x128xf32>
    %6 = vector.extract_strided_slice %0 {offsets = [0, 0], sizes = [64, 1], strides = [1, 1]} : vector<64x7xf32> to vector<64x1xf32>
    %7 = vector.extract_strided_slice %5 {offsets = [0, 0], sizes = [1, 128], strides = [1, 1]} : vector<2x128xf32> to vector<1x128xf32>
    %8 = vector.broadcast %6 : vector<64x1xf32> to vector<64x128xf32>
    %9 = vector.broadcast %7 : vector<1x128xf32> to vector<64x128xf32>
    %10 = arith.mulf %8, %9 : vector<64x128xf32>
    %11 = vector.extract_strided_slice %0 {offsets = [0, 1], sizes = [64, 1], strides = [1, 1]} : vector<64x7xf32> to vector<64x1xf32>
    %12 = vector.extract_strided_slice %5 {offsets = [1, 0], sizes = [1, 128], strides = [1, 1]} : vector<2x128xf32> to vector<1x128xf32>
    %13 = vector.broadcast %11 : vector<64x1xf32> to vector<64x128xf32>
    %14 = vector.broadcast %12 : vector<1x128xf32> to vector<64x128xf32>
    %15 = arith.mulf %13, %14 : vector<64x128xf32>
    %16 = arith.addf %10, %15 : vector<64x128xf32>
    %17 = vector.extract_strided_slice %4 {offsets = [0, 1], sizes = [2, 128], strides = [1, 1]} : vector<2x130xf32> to vector<2x128xf32>
    %18 = vector.extract_strided_slice %0 {offsets = [0, 2], sizes = [64, 1], strides = [1, 1]} : vector<64x7xf32> to vector<64x1xf32>
    %19 = vector.extract_strided_slice %17 {offsets = [0, 0], sizes = [1, 128], strides = [1, 1]} : vector<2x128xf32> to vector<1x128xf32>
    %20 = vector.broadcast %18 : vector<64x1xf32> to vector<64x128xf32>
    %21 = vector.broadcast %19 : vector<1x128xf32> to vector<64x128xf32>
    %22 = arith.mulf %20, %21 : vector<64x128xf32>
    %23 = arith.addf %16, %22 : vector<64x128xf32>
    %24 = vector.extract_strided_slice %0 {offsets = [0, 3], sizes = [64, 1], strides = [1, 1]} : vector<64x7xf32> to vector<64x1xf32>
    %25 = vector.extract_strided_slice %17 {offsets = [1, 0], sizes = [1, 128], strides = [1, 1]} : vector<2x128xf32> to vector<1x128xf32>
    %26 = vector.broadcast %24 : vector<64x1xf32> to vector<64x128xf32>
    %27 = vector.broadcast %25 : vector<1x128xf32> to vector<64x128xf32>
    %28 = arith.mulf %26, %27 : vector<64x128xf32>
    %29 = arith.addf %23, %28 : vector<64x128xf32>
    %30 = vector.extract_strided_slice %4 {offsets = [0, 2], sizes = [2, 128], strides = [1, 1]} : vector<2x130xf32> to vector<2x128xf32>
    %31 = vector.extract_strided_slice %0 {offsets = [0, 4], sizes = [64, 1], strides = [1, 1]} : vector<64x7xf32> to vector<64x1xf32>
    %32 = vector.extract_strided_slice %30 {offsets = [0, 0], sizes = [1, 128], strides = [1, 1]} : vector<2x128xf32> to vector<1x128xf32>
    %33 = vector.broadcast %31 : vector<64x1xf32> to vector<64x128xf32>
    %34 = vector.broadcast %32 : vector<1x128xf32> to vector<64x128xf32>
    %35 = arith.mulf %33, %34 : vector<64x128xf32>
    %36 = arith.addf %29, %35 : vector<64x128xf32>
    %37 = vector.extract_strided_slice %0 {offsets = [0, 5], sizes = [64, 1], strides = [1, 1]} : vector<64x7xf32> to vector<64x1xf32>
    %38 = vector.extract_strided_slice %30 {offsets = [1, 0], sizes = [1, 128], strides = [1, 1]} : vector<2x128xf32> to vector<1x128xf32>
    %39 = vector.broadcast %37 : vector<64x1xf32> to vector<64x128xf32>
    %40 = vector.broadcast %38 : vector<1x128xf32> to vector<64x128xf32>
    %41 = arith.mulf %39, %40 : vector<64x128xf32>
    %42 = arith.addf %36, %41 : vector<64x128xf32>
    %43 = vector.broadcast %1 : vector<64x1xf32> to vector<64x128xf32>
    %44 = arith.addf %42, %43 : vector<64x128xf32>
    %cst_4 = arith.constant 0.000000e+00 : f32
    %45 = vector.broadcast %cst_4 : f32 to vector<64x128xf32>
    %46 = arith.subf %45, %44 : vector<64x128xf32>
    %47 = math.exp %46 : vector<64x128xf32>
    %cst_5 = arith.constant 1.000000e+00 : f32
    %48 = vector.broadcast %cst_5 : f32 to vector<64x128xf32>
    %49 = arith.addf %48, %47 : vector<64x128xf32>
    %50 = tpu.reciprocal %49 {approx = true} : vector<64x128xf32> -> vector<64x128xf32>
    %51 = arith.mulf %44, %50 : vector<64x128xf32>
    %52 = vector.extract_strided_slice %51 {offsets = [0, 0], sizes = [64, 127], strides = [1, 1]} : vector<64x128xf32> to vector<64x127xf32>
    %53 = tpu.concatenate %2, %52 in 1 : vector<64x1xf32>, vector<64x127xf32> -> vector<64x128xf32>
    %c0_6 = arith.constant 0 : index
    %c0_7 = arith.constant 0 : index
    %54 = vector.load %arg7[%c0_6, %c0_7] : memref<192x512xf32, #tpu.memory_space<vmem>>, vector<64x128xf32>
    tpu.vector_store %arg7[%c0_6, %c0_7], %53 {strides = array<i32>} : memref<192x512xf32, #tpu.memory_space<vmem>>, vector<64x128xf32>,
    %c64 = arith.constant 64 : index
    %c0_8 = arith.constant 0 : index
    %55 = vector.load %arg7[%c64, %c0_8] : memref<192x512xf32, #tpu.memory_space<vmem>>, vector<64x128xf32>
    tpu.vector_store %arg7[%c64, %c0_8], %51 {strides = array<i32>} : memref<192x512xf32, #tpu.memory_space<vmem>>, vector<64x128xf32>,
    %56 = vector.extract_strided_slice %51 {offsets = [0, 1], sizes = [64, 127], strides = [1, 1]} : vector<64x128xf32> to vector<64x127xf32>
    %57 = tpu.concatenate %56, %2 in 1 : vector<64x127xf32>, vector<64x1xf32> -> vector<64x128xf32>
    %c128 = arith.constant 128 : index
    %c0_9 = arith.constant 0 : index
    %58 = vector.load %arg7[%c128, %c0_9] : memref<192x512xf32, #tpu.memory_space<vmem>>, vector<64x128xf32>
    tpu.vector_store %arg7[%c128, %c0_9], %57 {strides = array<i32>} : memref<192x512xf32, #tpu.memory_space<vmem>>, vector<64x128xf32>,
    %c1 = arith.constant 1 : index
    %c0_10 = arith.constant 0 : index
    %c0_11 = arith.constant 0 : index
    %59 = vector.load %arg1[%c1, %c0_10, %c0_11] : memref<4x2x130xf32, #tpu.memory_space<vmem>>, vector<1x2x130xf32>
    %60 = vector.shape_cast %59 : vector<1x2x130xf32> to vector<2x130xf32>
    %61 = vector.extract_strided_slice %60 {offsets = [0, 0], sizes = [2, 128], strides = [1, 1]} : vector<2x130xf32> to vector<2x128xf32>
    %62 = vector.extract_strided_slice %0 {offsets = [0, 0], sizes = [64, 1], strides = [1, 1]} : vector<64x7xf32> to vector<64x1xf32>
    %63 = vector.extract_strided_slice %61 {offsets = [0, 0], sizes = [1, 128], strides = [1, 1]} : vector<2x128xf32> to vector<1x128xf32>
    %64 = vector.broadcast %62 : vector<64x1xf32> to vector<64x128xf32>
    %65 = vector.broadcast %63 : vector<1x128xf32> to vector<64x128xf32>
    %66 = arith.mulf %64, %65 : vector<64x128xf32>
    %67 = vector.extract_strided_slice %0 {offsets = [0, 1], sizes = [64, 1], strides = [1, 1]} : vector<64x7xf32> to vector<64x1xf32>
    %68 = vector.extract_strided_slice %61 {offsets = [1, 0], sizes = [1, 128], strides = [1, 1]} : vector<2x128xf32> to vector<1x128xf32>
    %69 = vector.broadcast %67 : vector<64x1xf32> to vector<64x128xf32>
    %70 = vector.broadcast %68 : vector<1x128xf32> to vector<64x128xf32>
    %71 = arith.mulf %69, %70 : vector<64x128xf32>
    %72 = arith.addf %66, %71 : vector<64x128xf32>
    %73 = vector.extract_strided_slice %60 {offsets = [0, 1], sizes = [2, 128], strides = [1, 1]} : vector<2x130xf32> to vector<2x128xf32>
    %74 = vector.extract_strided_slice %0 {offsets = [0, 2], sizes = [64, 1], strides = [1, 1]} : vector<64x7xf32> to vector<64x1xf32>
    %75 = vector.extract_strided_slice %73 {offsets = [0, 0], sizes = [1, 128], strides = [1, 1]} : vector<2x128xf32> to vector<1x128xf32>
    %76 = vector.broadcast %74 : vector<64x1xf32> to vector<64x128xf32>
    %77 = vector.broadcast %75 : vector<1x128xf32> to vector<64x128xf32>
    %78 = arith.mulf %76, %77 : vector<64x128xf32>
    %79 = arith.addf %72, %78 : vector<64x128xf32>
    %80 = vector.extract_strided_slice %0 {offsets = [0, 3], sizes = [64, 1], strides = [1, 1]} : vector<64x7xf32> to vector<64x1xf32>
    %81 = vector.extract_strided_slice %73 {offsets = [1, 0], sizes = [1, 128], strides = [1, 1]} : vector<2x128xf32> to vector<1x128xf32>
    %82 = vector.broadcast %80 : vector<64x1xf32> to vector<64x128xf32>
    %83 = vector.broadcast %81 : vector<1x128xf32> to vector<64x128xf32>
    %84 = arith.mulf %82, %83 : vector<64x128xf32>
    %85 = arith.addf %79, %84 : vector<64x128xf32>
    %86 = vector.extract_strided_slice %60 {offsets = [0, 2], sizes = [2, 128], strides = [1, 1]} : vector<2x130xf32> to vector<2x128xf32>
    %87 = vector.extract_strided_slice %0 {offsets = [0, 4], sizes = [64, 1], strides = [1, 1]} : vector<64x7xf32> to vector<64x1xf32>
    %88 = vector.extract_strided_slice %86 {offsets = [0, 0], sizes = [1, 128], strides = [1, 1]} : vector<2x128xf32> to vector<1x128xf32>
    %89 = vector.broadcast %87 : vector<64x1xf32> to vector<64x128xf32>
    %90 = vector.broadcast %88 : vector<1x128xf32> to vector<64x128xf32>
    %91 = arith.mulf %89, %90 : vector<64x128xf32>
    %92 = arith.addf %85, %91 : vector<64x128xf32>
    %93 = vector.extract_strided_slice %0 {offsets = [0, 5], sizes = [64, 1], strides = [1, 1]} : vector<64x7xf32> to vector<64x1xf32>
    %94 = vector.extract_strided_slice %86 {offsets = [1, 0], sizes = [1, 128], strides = [1, 1]} : vector<2x128xf32> to vector<1x128xf32>
    %95 = vector.broadcast %93 : vector<64x1xf32> to vector<64x128xf32>
    %96 = vector.broadcast %94 : vector<1x128xf32> to vector<64x128xf32>
    %97 = arith.mulf %95, %96 : vector<64x128xf32>
    %98 = arith.addf %92, %97 : vector<64x128xf32>
    %99 = vector.broadcast %1 : vector<64x1xf32> to vector<64x128xf32>
    %100 = arith.addf %98, %99 : vector<64x128xf32>
    %cst_12 = arith.constant 0.000000e+00 : f32
    %101 = vector.broadcast %cst_12 : f32 to vector<64x128xf32>
    %102 = arith.subf %101, %100 : vector<64x128xf32>
    %103 = math.exp %102 : vector<64x128xf32>
    %cst_13 = arith.constant 1.000000e+00 : f32
    %104 = vector.broadcast %cst_13 : f32 to vector<64x128xf32>
    %105 = arith.addf %104, %103 : vector<64x128xf32>
    %106 = tpu.reciprocal %105 {approx = true} : vector<64x128xf32> -> vector<64x128xf32>
    %107 = arith.mulf %100, %106 : vector<64x128xf32>
    %108 = vector.extract_strided_slice %107 {offsets = [0, 0], sizes = [64, 127], strides = [1, 1]} : vector<64x128xf32> to vector<64x127xf32>
    %109 = tpu.concatenate %2, %108 in 1 : vector<64x1xf32>, vector<64x127xf32> -> vector<64x128xf32>
    %c0_14 = arith.constant 0 : index
    %c128_15 = arith.constant 128 : index
    %110 = vector.load %arg7[%c0_14, %c128_15] : memref<192x512xf32, #tpu.memory_space<vmem>>, vector<64x128xf32>
    tpu.vector_store %arg7[%c0_14, %c128_15], %109 {strides = array<i32>} : memref<192x512xf32, #tpu.memory_space<vmem>>, vector<64x128xf32>,
    %c64_16 = arith.constant 64 : index
    %c128_17 = arith.constant 128 : index
    %111 = vector.load %arg7[%c64_16, %c128_17] : memref<192x512xf32, #tpu.memory_space<vmem>>, vector<64x128xf32>
    tpu.vector_store %arg7[%c64_16, %c128_17], %107 {strides = array<i32>} : memref<192x512xf32, #tpu.memory_space<vmem>>, vector<64x128xf32>,
    %112 = vector.extract_strided_slice %107 {offsets = [0, 1], sizes = [64, 127], strides = [1, 1]} : vector<64x128xf32> to vector<64x127xf32>
    %113 = tpu.concatenate %112, %2 in 1 : vector<64x127xf32>, vector<64x1xf32> -> vector<64x128xf32>
    %c128_18 = arith.constant 128 : index
    %c128_19 = arith.constant 128 : index
    %114 = vector.load %arg7[%c128_18, %c128_19] : memref<192x512xf32, #tpu.memory_space<vmem>>, vector<64x128xf32>
    tpu.vector_store %arg7[%c128_18, %c128_19], %113 {strides = array<i32>} : memref<192x512xf32, #tpu.memory_space<vmem>>, vector<64x128xf32>,
    %c2 = arith.constant 2 : index
    %c0_20 = arith.constant 0 : index
    %c0_21 = arith.constant 0 : index
    %115 = vector.load %arg1[%c2, %c0_20, %c0_21] : memref<4x2x130xf32, #tpu.memory_space<vmem>>, vector<1x2x130xf32>
    %116 = vector.shape_cast %115 : vector<1x2x130xf32> to vector<2x130xf32>
    %117 = vector.extract_strided_slice %116 {offsets = [0, 0], sizes = [2, 128], strides = [1, 1]} : vector<2x130xf32> to vector<2x128xf32>
    %118 = vector.extract_strided_slice %0 {offsets = [0, 0], sizes = [64, 1], strides = [1, 1]} : vector<64x7xf32> to vector<64x1xf32>
    %119 = vector.extract_strided_slice %117 {offsets = [0, 0], sizes = [1, 128], strides = [1, 1]} : vector<2x128xf32> to vector<1x128xf32>
    %120 = vector.broadcast %118 : vector<64x1xf32> to vector<64x128xf32>
    %121 = vector.broadcast %119 : vector<1x128xf32> to vector<64x128xf32>
    %122 = arith.mulf %120, %121 : vector<64x128xf32>
    %123 = vector.extract_strided_slice %0 {offsets = [0, 1], sizes = [64, 1], strides = [1, 1]} : vector<64x7xf32> to vector<64x1xf32>
    %124 = vector.extract_strided_slice %117 {offsets = [1, 0], sizes = [1, 128], strides = [1, 1]} : vector<2x128xf32> to vector<1x128xf32>
    %125 = vector.broadcast %123 : vector<64x1xf32> to vector<64x128xf32>
    %126 = vector.broadcast %124 : vector<1x128xf32> to vector<64x128xf32>
    %127 = arith.mulf %125, %126 : vector<64x128xf32>
    %128 = arith.addf %122, %127 : vector<64x128xf32>
    %129 = vector.extract_strided_slice %116 {offsets = [0, 1], sizes = [2, 128], strides = [1, 1]} : vector<2x130xf32> to vector<2x128xf32>
    %130 = vector.extract_strided_slice %0 {offsets = [0, 2], sizes = [64, 1], strides = [1, 1]} : vector<64x7xf32> to vector<64x1xf32>
    %131 = vector.extract_strided_slice %129 {offsets = [0, 0], sizes = [1, 128], strides = [1, 1]} : vector<2x128xf32> to vector<1x128xf32>
    %132 = vector.broadcast %130 : vector<64x1xf32> to vector<64x128xf32>
    %133 = vector.broadcast %131 : vector<1x128xf32> to vector<64x128xf32>
    %134 = arith.mulf %132, %133 : vector<64x128xf32>
    %135 = arith.addf %128, %134 : vector<64x128xf32>
    %136 = vector.extract_strided_slice %0 {offsets = [0, 3], sizes = [64, 1], strides = [1, 1]} : vector<64x7xf32> to vector<64x1xf32>
    %137 = vector.extract_strided_slice %129 {offsets = [1, 0], sizes = [1, 128], strides = [1, 1]} : vector<2x128xf32> to vector<1x128xf32>
    %138 = vector.broadcast %136 : vector<64x1xf32> to vector<64x128xf32>
    %139 = vector.broadcast %137 : vector<1x128xf32> to vector<64x128xf32>
    %140 = arith.mulf %138, %139 : vector<64x128xf32>
    %141 = arith.addf %135, %140 : vector<64x128xf32>
    %142 = vector.extract_strided_slice %116 {offsets = [0, 2], sizes = [2, 128], strides = [1, 1]} : vector<2x130xf32> to vector<2x128xf32>
    %143 = vector.extract_strided_slice %0 {offsets = [0, 4], sizes = [64, 1], strides = [1, 1]} : vector<64x7xf32> to vector<64x1xf32>
    %144 = vector.extract_strided_slice %142 {offsets = [0, 0], sizes = [1, 128], strides = [1, 1]} : vector<2x128xf32> to vector<1x128xf32>
    %145 = vector.broadcast %143 : vector<64x1xf32> to vector<64x128xf32>
    %146 = vector.broadcast %144 : vector<1x128xf32> to vector<64x128xf32>
    %147 = arith.mulf %145, %146 : vector<64x128xf32>
    %148 = arith.addf %141, %147 : vector<64x128xf32>
    %149 = vector.extract_strided_slice %0 {offsets = [0, 5], sizes = [64, 1], strides = [1, 1]} : vector<64x7xf32> to vector<64x1xf32>
    %150 = vector.extract_strided_slice %142 {offsets = [1, 0], sizes = [1, 128], strides = [1, 1]} : vector<2x128xf32> to vector<1x128xf32>
    %151 = vector.broadcast %149 : vector<64x1xf32> to vector<64x128xf32>
    %152 = vector.broadcast %150 : vector<1x128xf32> to vector<64x128xf32>
    %153 = arith.mulf %151, %152 : vector<64x128xf32>
    %154 = arith.addf %148, %153 : vector<64x128xf32>
    %155 = vector.broadcast %1 : vector<64x1xf32> to vector<64x128xf32>
    %156 = arith.addf %154, %155 : vector<64x128xf32>
    %cst_22 = arith.constant 0.000000e+00 : f32
    %157 = vector.broadcast %cst_22 : f32 to vector<64x128xf32>
    %158 = arith.subf %157, %156 : vector<64x128xf32>
    %159 = math.exp %158 : vector<64x128xf32>
    %cst_23 = arith.constant 1.000000e+00 : f32
    %160 = vector.broadcast %cst_23 : f32 to vector<64x128xf32>
    %161 = arith.addf %160, %159 : vector<64x128xf32>
    %162 = tpu.reciprocal %161 {approx = true} : vector<64x128xf32> -> vector<64x128xf32>
    %163 = arith.mulf %156, %162 : vector<64x128xf32>
    %164 = vector.extract_strided_slice %163 {offsets = [0, 0], sizes = [64, 127], strides = [1, 1]} : vector<64x128xf32> to vector<64x127xf32>
    %165 = tpu.concatenate %2, %164 in 1 : vector<64x1xf32>, vector<64x127xf32> -> vector<64x128xf32>
    %c0_24 = arith.constant 0 : index
    %c256 = arith.constant 256 : index
    %166 = vector.load %arg7[%c0_24, %c256] : memref<192x512xf32, #tpu.memory_space<vmem>>, vector<64x128xf32>
    tpu.vector_store %arg7[%c0_24, %c256], %165 {strides = array<i32>} : memref<192x512xf32, #tpu.memory_space<vmem>>, vector<64x128xf32>,
    %c64_25 = arith.constant 64 : index
    %c256_26 = arith.constant 256 : index
    %167 = vector.load %arg7[%c64_25, %c256_26] : memref<192x512xf32, #tpu.memory_space<vmem>>, vector<64x128xf32>
    tpu.vector_store %arg7[%c64_25, %c256_26], %163 {strides = array<i32>} : memref<192x512xf32, #tpu.memory_space<vmem>>, vector<64x128xf32>,
    %168 = vector.extract_strided_slice %163 {offsets = [0, 1], sizes = [64, 127], strides = [1, 1]} : vector<64x128xf32> to vector<64x127xf32>
    %169 = tpu.concatenate %168, %2 in 1 : vector<64x127xf32>, vector<64x1xf32> -> vector<64x128xf32>
    %c128_27 = arith.constant 128 : index
    %c256_28 = arith.constant 256 : index
    %170 = vector.load %arg7[%c128_27, %c256_28] : memref<192x512xf32, #tpu.memory_space<vmem>>, vector<64x128xf32>
    tpu.vector_store %arg7[%c128_27, %c256_28], %169 {strides = array<i32>} : memref<192x512xf32, #tpu.memory_space<vmem>>, vector<64x128xf32>,
    %c3 = arith.constant 3 : index
    %c0_29 = arith.constant 0 : index
    %c0_30 = arith.constant 0 : index
    %171 = vector.load %arg1[%c3, %c0_29, %c0_30] : memref<4x2x130xf32, #tpu.memory_space<vmem>>, vector<1x2x130xf32>
    %172 = vector.shape_cast %171 : vector<1x2x130xf32> to vector<2x130xf32>
    %173 = vector.extract_strided_slice %172 {offsets = [0, 0], sizes = [2, 128], strides = [1, 1]} : vector<2x130xf32> to vector<2x128xf32>
    %174 = vector.extract_strided_slice %0 {offsets = [0, 0], sizes = [64, 1], strides = [1, 1]} : vector<64x7xf32> to vector<64x1xf32>
    %175 = vector.extract_strided_slice %173 {offsets = [0, 0], sizes = [1, 128], strides = [1, 1]} : vector<2x128xf32> to vector<1x128xf32>
    %176 = vector.broadcast %174 : vector<64x1xf32> to vector<64x128xf32>
    %177 = vector.broadcast %175 : vector<1x128xf32> to vector<64x128xf32>
    %178 = arith.mulf %176, %177 : vector<64x128xf32>
    %179 = vector.extract_strided_slice %0 {offsets = [0, 1], sizes = [64, 1], strides = [1, 1]} : vector<64x7xf32> to vector<64x1xf32>
    %180 = vector.extract_strided_slice %173 {offsets = [1, 0], sizes = [1, 128], strides = [1, 1]} : vector<2x128xf32> to vector<1x128xf32>
    %181 = vector.broadcast %179 : vector<64x1xf32> to vector<64x128xf32>
    %182 = vector.broadcast %180 : vector<1x128xf32> to vector<64x128xf32>
    %183 = arith.mulf %181, %182 : vector<64x128xf32>
    %184 = arith.addf %178, %183 : vector<64x128xf32>
    %185 = vector.extract_strided_slice %172 {offsets = [0, 1], sizes = [2, 128], strides = [1, 1]} : vector<2x130xf32> to vector<2x128xf32>
    %186 = vector.extract_strided_slice %0 {offsets = [0, 2], sizes = [64, 1], strides = [1, 1]} : vector<64x7xf32> to vector<64x1xf32>
    %187 = vector.extract_strided_slice %185 {offsets = [0, 0], sizes = [1, 128], strides = [1, 1]} : vector<2x128xf32> to vector<1x128xf32>
    %188 = vector.broadcast %186 : vector<64x1xf32> to vector<64x128xf32>
    %189 = vector.broadcast %187 : vector<1x128xf32> to vector<64x128xf32>
    %190 = arith.mulf %188, %189 : vector<64x128xf32>
    %191 = arith.addf %184, %190 : vector<64x128xf32>
    %192 = vector.extract_strided_slice %0 {offsets = [0, 3], sizes = [64, 1], strides = [1, 1]} : vector<64x7xf32> to vector<64x1xf32>
    %193 = vector.extract_strided_slice %185 {offsets = [1, 0], sizes = [1, 128], strides = [1, 1]} : vector<2x128xf32> to vector<1x128xf32>
    %194 = vector.broadcast %192 : vector<64x1xf32> to vector<64x128xf32>
    %195 = vector.broadcast %193 : vector<1x128xf32> to vector<64x128xf32>
    %196 = arith.mulf %194, %195 : vector<64x128xf32>
    %197 = arith.addf %191, %196 : vector<64x128xf32>
    %198 = vector.extract_strided_slice %172 {offsets = [0, 2], sizes = [2, 128], strides = [1, 1]} : vector<2x130xf32> to vector<2x128xf32>
    %199 = vector.extract_strided_slice %0 {offsets = [0, 4], sizes = [64, 1], strides = [1, 1]} : vector<64x7xf32> to vector<64x1xf32>
    %200 = vector.extract_strided_slice %198 {offsets = [0, 0], sizes = [1, 128], strides = [1, 1]} : vector<2x128xf32> to vector<1x128xf32>
    %201 = vector.broadcast %199 : vector<64x1xf32> to vector<64x128xf32>
    %202 = vector.broadcast %200 : vector<1x128xf32> to vector<64x128xf32>
    %203 = arith.mulf %201, %202 : vector<64x128xf32>
    %204 = arith.addf %197, %203 : vector<64x128xf32>
    %205 = vector.extract_strided_slice %0 {offsets = [0, 5], sizes = [64, 1], strides = [1, 1]} : vector<64x7xf32> to vector<64x1xf32>
    %206 = vector.extract_strided_slice %198 {offsets = [1, 0], sizes = [1, 128], strides = [1, 1]} : vector<2x128xf32> to vector<1x128xf32>
    %207 = vector.broadcast %205 : vector<64x1xf32> to vector<64x128xf32>
    %208 = vector.broadcast %206 : vector<1x128xf32> to vector<64x128xf32>
    %209 = arith.mulf %207, %208 : vector<64x128xf32>
    %210 = arith.addf %204, %209 : vector<64x128xf32>
    %211 = vector.broadcast %1 : vector<64x1xf32> to vector<64x128xf32>
    %212 = arith.addf %210, %211 : vector<64x128xf32>
    %cst_31 = arith.constant 0.000000e+00 : f32
    %213 = vector.broadcast %cst_31 : f32 to vector<64x128xf32>
    %214 = arith.subf %213, %212 : vector<64x128xf32>
    %215 = math.exp %214 : vector<64x128xf32>
    %cst_32 = arith.constant 1.000000e+00 : f32
    %216 = vector.broadcast %cst_32 : f32 to vector<64x128xf32>
    %217 = arith.addf %216, %215 : vector<64x128xf32>
    %218 = tpu.reciprocal %217 {approx = true} : vector<64x128xf32> -> vector<64x128xf32>
    %219 = arith.mulf %212, %218 : vector<64x128xf32>
    %220 = vector.extract_strided_slice %219 {offsets = [0, 0], sizes = [64, 127], strides = [1, 1]} : vector<64x128xf32> to vector<64x127xf32>
    %221 = tpu.concatenate %2, %220 in 1 : vector<64x1xf32>, vector<64x127xf32> -> vector<64x128xf32>
    %c0_33 = arith.constant 0 : index
    %c384 = arith.constant 384 : index
    %222 = vector.load %arg7[%c0_33, %c384] : memref<192x512xf32, #tpu.memory_space<vmem>>, vector<64x128xf32>
    tpu.vector_store %arg7[%c0_33, %c384], %221 {strides = array<i32>} : memref<192x512xf32, #tpu.memory_space<vmem>>, vector<64x128xf32>,
    %c64_34 = arith.constant 64 : index
    %c384_35 = arith.constant 384 : index
    %223 = vector.load %arg7[%c64_34, %c384_35] : memref<192x512xf32, #tpu.memory_space<vmem>>, vector<64x128xf32>
    tpu.vector_store %arg7[%c64_34, %c384_35], %219 {strides = array<i32>} : memref<192x512xf32, #tpu.memory_space<vmem>>, vector<64x128xf32>,
    %224 = vector.extract_strided_slice %219 {offsets = [0, 1], sizes = [64, 127], strides = [1, 1]} : vector<64x128xf32> to vector<64x127xf32>
    %225 = tpu.concatenate %224, %2 in 1 : vector<64x127xf32>, vector<64x1xf32> -> vector<64x128xf32>
    %c128_36 = arith.constant 128 : index
    %c384_37 = arith.constant 384 : index
    %226 = vector.load %arg7[%c128_36, %c384_37] : memref<192x512xf32, #tpu.memory_space<vmem>>, vector<64x128xf32>
    tpu.vector_store %arg7[%c128_36, %c384_37], %225 {strides = array<i32>} : memref<192x512xf32, #tpu.memory_space<vmem>>, vector<64x128xf32>,
    %c0_38 = arith.constant 0 : index
    %c0_39 = arith.constant 0 : index
    %227 = vector.load %arg3[%c0_38, %c0_39] : memref<128x193xf32, #tpu.memory_space<vmem>>, vector<128x193xf32>
    %228 = vector.extract_strided_slice %227 {offsets = [0, 0], sizes = [128, 192], strides = [1, 1]} : vector<128x193xf32> to vector<128x192xf32>
    %c0_40 = arith.constant 0 : index
    %c0_41 = arith.constant 0 : index
    %229 = vector.load %arg7[%c0_40, %c0_41] : memref<192x512xf32, #tpu.memory_space<vmem>>, vector<192x512xf32>
    %cst_42 = arith.constant dense<0.000000e+00> : vector<128x512xf32>
    %230 = tpu.matmul %228, %229, %cst_42 {dimension_numbers = #tpu.dot_dimension_numbers<[1], [0], [0], [1], [0, 0, 1, 1], [], []>} : vector<128x192xf32>, vector<192x512xf32>, vector<128x512xf32> -> vector<128x512xf32>
    %c0_43 = arith.constant 0 : index
    %c0_44 = arith.constant 0 : index
    %231 = vector.load %arg8[%c0_43, %c0_44] : memref<128x512xf32, #tpu.memory_space<vmem>>, vector<128x512xf32>
    tpu.vector_store %arg8[%c0_43, %c0_44], %230 {strides = array<i32>} : memref<128x512xf32, #tpu.memory_space<vmem>>, vector<128x512xf32>,
    %232 = vector.extract_strided_slice %227 {offsets = [0, 192], sizes = [128, 1], strides = [1, 1]} : vector<128x193xf32> to vector<128x1xf32>
    %c0_45 = arith.constant 0 : index
    %c0_46 = arith.constant 0 : index
    %233 = vector.load %arg5[%c0_45, %c0_46] : memref<1x4xf32, #tpu.memory_space<vmem>>, vector<1x4xf32>
    %c0_47 = arith.constant 0 : index
    %c0_48 = arith.constant 0 : index
    %234 = vector.load %arg8[%c0_47, %c0_48] : memref<128x512xf32, #tpu.memory_space<vmem>>, vector<128x128xf32>
    %235 = vector.broadcast %232 : vector<128x1xf32> to vector<128x128xf32>
    %236 = arith.addf %234, %235 : vector<128x128xf32>
    %cst_49 = arith.constant 0.000000e+00 : f32
    %237 = vector.broadcast %cst_49 : f32 to vector<128x128xf32>
    %238 = arith.subf %237, %236 : vector<128x128xf32>
    %239 = math.exp %238 : vector<128x128xf32>
    %cst_50 = arith.constant 1.000000e+00 : f32
    %240 = vector.broadcast %cst_50 : f32 to vector<128x128xf32>
    %241 = arith.addf %240, %239 : vector<128x128xf32>
    %242 = tpu.reciprocal %241 {approx = true} : vector<128x128xf32> -> vector<128x128xf32>
    %243 = arith.mulf %236, %242 : vector<128x128xf32>
    %c0_51 = arith.constant 0 : index
    %c0_52 = arith.constant 0 : index
    %c0_53 = arith.constant 0 : index
    %244 = vector.load %arg4[%c0_51, %c0_52, %c0_53] : memref<4x128x128xf32, #tpu.memory_space<vmem>>, vector<1x128x128xf32>
    %245 = vector.shape_cast %244 : vector<1x128x128xf32> to vector<128x128xf32>
    %246 = arith.mulf %245, %243 : vector<128x128xf32>
    %cst_54 = arith.constant dense<0.000000e+00> : vector<128xf32>
    %247 = vector.multi_reduction <add>, %246, %cst_54 [1] : vector<128x128xf32> to vector<128xf32>
    %248 = vector.shape_cast %247 : vector<128xf32> to vector<128x1xf32>
    %c1_55 = arith.constant 1 : index
    %c0_56 = arith.constant 0 : index
    %c0_57 = arith.constant 0 : index
    %249 = vector.load %arg4[%c1_55, %c0_56, %c0_57] : memref<4x128x128xf32, #tpu.memory_space<vmem>>, vector<1x128x128xf32>
    %250 = vector.shape_cast %249 : vector<1x128x128xf32> to vector<128x128xf32>
    %251 = arith.mulf %250, %243 : vector<128x128xf32>
    %cst_58 = arith.constant dense<0.000000e+00> : vector<128xf32>
    %252 = vector.multi_reduction <add>, %251, %cst_58 [1] : vector<128x128xf32> to vector<128xf32>
    %253 = vector.shape_cast %252 : vector<128xf32> to vector<128x1xf32>
    %c2_59 = arith.constant 2 : index
    %c0_60 = arith.constant 0 : index
    %c0_61 = arith.constant 0 : index
    %254 = vector.load %arg4[%c2_59, %c0_60, %c0_61] : memref<4x128x128xf32, #tpu.memory_space<vmem>>, vector<1x128x128xf32>
    %255 = vector.shape_cast %254 : vector<1x128x128xf32> to vector<128x128xf32>
    %256 = arith.mulf %255, %243 : vector<128x128xf32>
    %cst_62 = arith.constant dense<0.000000e+00> : vector<128xf32>
    %257 = vector.multi_reduction <add>, %256, %cst_62 [1] : vector<128x128xf32> to vector<128xf32>
    %258 = vector.shape_cast %257 : vector<128xf32> to vector<128x1xf32>
    %c3_63 = arith.constant 3 : index
    %c0_64 = arith.constant 0 : index
    %c0_65 = arith.constant 0 : index
    %259 = vector.load %arg4[%c3_63, %c0_64, %c0_65] : memref<4x128x128xf32, #tpu.memory_space<vmem>>, vector<1x128x128xf32>
    %260 = vector.shape_cast %259 : vector<1x128x128xf32> to vector<128x128xf32>
    %261 = arith.mulf %260, %243 : vector<128x128xf32>
    %cst_66 = arith.constant dense<0.000000e+00> : vector<128xf32>
    %262 = vector.multi_reduction <add>, %261, %cst_66 [1] : vector<128x128xf32> to vector<128xf32>
    %263 = vector.shape_cast %262 : vector<128xf32> to vector<128x1xf32>
    %264 = tpu.concatenate %248, %253, %258, %263 in 1 : vector<128x1xf32>, vector<128x1xf32>, vector<128x1xf32>, vector<128x1xf32> -> vector<128x4xf32>
    %cst_67 = arith.constant dense<0.000000e+00> : vector<4xf32>
    %265 = vector.multi_reduction <add>, %264, %cst_67 [0] : vector<128x4xf32> to vector<4xf32>
    %266 = vector.shape_cast %265 : vector<4xf32> to vector<1x4xf32>
    %c0_68 = arith.constant 0 : index
    %c128_69 = arith.constant 128 : index
    %267 = vector.load %arg8[%c0_68, %c128_69] : memref<128x512xf32, #tpu.memory_space<vmem>>, vector<128x128xf32>
    %268 = vector.broadcast %232 : vector<128x1xf32> to vector<128x128xf32>
    %269 = arith.addf %267, %268 : vector<128x128xf32>
    %cst_70 = arith.constant 0.000000e+00 : f32
    %270 = vector.broadcast %cst_70 : f32 to vector<128x128xf32>
    %271 = arith.subf %270, %269 : vector<128x128xf32>
    %272 = math.exp %271 : vector<128x128xf32>
    %cst_71 = arith.constant 1.000000e+00 : f32
    %273 = vector.broadcast %cst_71 : f32 to vector<128x128xf32>
    %274 = arith.addf %273, %272 : vector<128x128xf32>
    %275 = tpu.reciprocal %274 {approx = true} : vector<128x128xf32> -> vector<128x128xf32>
    %276 = arith.mulf %269, %275 : vector<128x128xf32>
    %c0_72 = arith.constant 0 : index
    %c0_73 = arith.constant 0 : index
    %c0_74 = arith.constant 0 : index
    %277 = vector.load %arg4[%c0_72, %c0_73, %c0_74] : memref<4x128x128xf32, #tpu.memory_space<vmem>>, vector<1x128x128xf32>
    %278 = vector.shape_cast %277 : vector<1x128x128xf32> to vector<128x128xf32>
    %279 = arith.mulf %278, %276 : vector<128x128xf32>
    %cst_75 = arith.constant dense<0.000000e+00> : vector<128xf32>
    %280 = vector.multi_reduction <add>, %279, %cst_75 [1] : vector<128x128xf32> to vector<128xf32>
    %281 = vector.shape_cast %280 : vector<128xf32> to vector<128x1xf32>
    %c1_76 = arith.constant 1 : index
    %c0_77 = arith.constant 0 : index
    %c0_78 = arith.constant 0 : index
    %282 = vector.load %arg4[%c1_76, %c0_77, %c0_78] : memref<4x128x128xf32, #tpu.memory_space<vmem>>, vector<1x128x128xf32>
    %283 = vector.shape_cast %282 : vector<1x128x128xf32> to vector<128x128xf32>
    %284 = arith.mulf %283, %276 : vector<128x128xf32>
    %cst_79 = arith.constant dense<0.000000e+00> : vector<128xf32>
    %285 = vector.multi_reduction <add>, %284, %cst_79 [1] : vector<128x128xf32> to vector<128xf32>
    %286 = vector.shape_cast %285 : vector<128xf32> to vector<128x1xf32>
    %c2_80 = arith.constant 2 : index
    %c0_81 = arith.constant 0 : index
    %c0_82 = arith.constant 0 : index
    %287 = vector.load %arg4[%c2_80, %c0_81, %c0_82] : memref<4x128x128xf32, #tpu.memory_space<vmem>>, vector<1x128x128xf32>
    %288 = vector.shape_cast %287 : vector<1x128x128xf32> to vector<128x128xf32>
    %289 = arith.mulf %288, %276 : vector<128x128xf32>
    %cst_83 = arith.constant dense<0.000000e+00> : vector<128xf32>
    %290 = vector.multi_reduction <add>, %289, %cst_83 [1] : vector<128x128xf32> to vector<128xf32>
    %291 = vector.shape_cast %290 : vector<128xf32> to vector<128x1xf32>
    %c3_84 = arith.constant 3 : index
    %c0_85 = arith.constant 0 : index
    %c0_86 = arith.constant 0 : index
    %292 = vector.load %arg4[%c3_84, %c0_85, %c0_86] : memref<4x128x128xf32, #tpu.memory_space<vmem>>, vector<1x128x128xf32>
    %293 = vector.shape_cast %292 : vector<1x128x128xf32> to vector<128x128xf32>
    %294 = arith.mulf %293, %276 : vector<128x128xf32>
    %cst_87 = arith.constant dense<0.000000e+00> : vector<128xf32>
    %295 = vector.multi_reduction <add>, %294, %cst_87 [1] : vector<128x128xf32> to vector<128xf32>
    %296 = vector.shape_cast %295 : vector<128xf32> to vector<128x1xf32>
    %297 = tpu.concatenate %281, %286, %291, %296 in 1 : vector<128x1xf32>, vector<128x1xf32>, vector<128x1xf32>, vector<128x1xf32> -> vector<128x4xf32>
    %cst_88 = arith.constant dense<0.000000e+00> : vector<4xf32>
    %298 = vector.multi_reduction <add>, %297, %cst_88 [0] : vector<128x4xf32> to vector<4xf32>
    %299 = vector.shape_cast %298 : vector<4xf32> to vector<1x4xf32>
    %c0_89 = arith.constant 0 : index
    %c256_90 = arith.constant 256 : index
    %300 = vector.load %arg8[%c0_89, %c256_90] : memref<128x512xf32, #tpu.memory_space<vmem>>, vector<128x128xf32>
    %301 = vector.broadcast %232 : vector<128x1xf32> to vector<128x128xf32>
    %302 = arith.addf %300, %301 : vector<128x128xf32>
    %cst_91 = arith.constant 0.000000e+00 : f32
    %303 = vector.broadcast %cst_91 : f32 to vector<128x128xf32>
    %304 = arith.subf %303, %302 : vector<128x128xf32>
    %305 = math.exp %304 : vector<128x128xf32>
    %cst_92 = arith.constant 1.000000e+00 : f32
    %306 = vector.broadcast %cst_92 : f32 to vector<128x128xf32>
    %307 = arith.addf %306, %305 : vector<128x128xf32>
    %308 = tpu.reciprocal %307 {approx = true} : vector<128x128xf32> -> vector<128x128xf32>
    %309 = arith.mulf %302, %308 : vector<128x128xf32>
    %c0_93 = arith.constant 0 : index
    %c0_94 = arith.constant 0 : index
    %c0_95 = arith.constant 0 : index
    %310 = vector.load %arg4[%c0_93, %c0_94, %c0_95] : memref<4x128x128xf32, #tpu.memory_space<vmem>>, vector<1x128x128xf32>
    %311 = vector.shape_cast %310 : vector<1x128x128xf32> to vector<128x128xf32>
    %312 = arith.mulf %311, %309 : vector<128x128xf32>
    %cst_96 = arith.constant dense<0.000000e+00> : vector<128xf32>
    %313 = vector.multi_reduction <add>, %312, %cst_96 [1] : vector<128x128xf32> to vector<128xf32>
    %314 = vector.shape_cast %313 : vector<128xf32> to vector<128x1xf32>
    %c1_97 = arith.constant 1 : index
    %c0_98 = arith.constant 0 : index
    %c0_99 = arith.constant 0 : index
    %315 = vector.load %arg4[%c1_97, %c0_98, %c0_99] : memref<4x128x128xf32, #tpu.memory_space<vmem>>, vector<1x128x128xf32>
    %316 = vector.shape_cast %315 : vector<1x128x128xf32> to vector<128x128xf32>
    %317 = arith.mulf %316, %309 : vector<128x128xf32>
    %cst_100 = arith.constant dense<0.000000e+00> : vector<128xf32>
    %318 = vector.multi_reduction <add>, %317, %cst_100 [1] : vector<128x128xf32> to vector<128xf32>
    %319 = vector.shape_cast %318 : vector<128xf32> to vector<128x1xf32>
    %c2_101 = arith.constant 2 : index
    %c0_102 = arith.constant 0 : index
    %c0_103 = arith.constant 0 : index
    %320 = vector.load %arg4[%c2_101, %c0_102, %c0_103] : memref<4x128x128xf32, #tpu.memory_space<vmem>>, vector<1x128x128xf32>
    %321 = vector.shape_cast %320 : vector<1x128x128xf32> to vector<128x128xf32>
    %322 = arith.mulf %321, %309 : vector<128x128xf32>
    %cst_104 = arith.constant dense<0.000000e+00> : vector<128xf32>
    %323 = vector.multi_reduction <add>, %322, %cst_104 [1] : vector<128x128xf32> to vector<128xf32>
    %324 = vector.shape_cast %323 : vector<128xf32> to vector<128x1xf32>
    %c3_105 = arith.constant 3 : index
    %c0_106 = arith.constant 0 : index
    %c0_107 = arith.constant 0 : index
    %325 = vector.load %arg4[%c3_105, %c0_106, %c0_107] : memref<4x128x128xf32, #tpu.memory_space<vmem>>, vector<1x128x128xf32>
    %326 = vector.shape_cast %325 : vector<1x128x128xf32> to vector<128x128xf32>
    %327 = arith.mulf %326, %309 : vector<128x128xf32>
    %cst_108 = arith.constant dense<0.000000e+00> : vector<128xf32>
    %328 = vector.multi_reduction <add>, %327, %cst_108 [1] : vector<128x128xf32> to vector<128xf32>
    %329 = vector.shape_cast %328 : vector<128xf32> to vector<128x1xf32>
    %330 = tpu.concatenate %314, %319, %324, %329 in 1 : vector<128x1xf32>, vector<128x1xf32>, vector<128x1xf32>, vector<128x1xf32> -> vector<128x4xf32>
    %cst_109 = arith.constant dense<0.000000e+00> : vector<4xf32>
    %331 = vector.multi_reduction <add>, %330, %cst_109 [0] : vector<128x4xf32> to vector<4xf32>
    %332 = vector.shape_cast %331 : vector<4xf32> to vector<1x4xf32>
    %c0_110 = arith.constant 0 : index
    %c384_111 = arith.constant 384 : index
    %333 = vector.load %arg8[%c0_110, %c384_111] : memref<128x512xf32, #tpu.memory_space<vmem>>, vector<128x128xf32>
    %334 = vector.broadcast %232 : vector<128x1xf32> to vector<128x128xf32>
    %335 = arith.addf %333, %334 : vector<128x128xf32>
    %cst_112 = arith.constant 0.000000e+00 : f32
    %336 = vector.broadcast %cst_112 : f32 to vector<128x128xf32>
    %337 = arith.subf %336, %335 : vector<128x128xf32>
    %338 = math.exp %337 : vector<128x128xf32>
    %cst_113 = arith.constant 1.000000e+00 : f32
    %339 = vector.broadcast %cst_113 : f32 to vector<128x128xf32>
    %340 = arith.addf %339, %338 : vector<128x128xf32>
    %341 = tpu.reciprocal %340 {approx = true} : vector<128x128xf32> -> vector<128x128xf32>
    %342 = arith.mulf %335, %341 : vector<128x128xf32>
    %c0_114 = arith.constant 0 : index
    %c0_115 = arith.constant 0 : index
    %c0_116 = arith.constant 0 : index
    %343 = vector.load %arg4[%c0_114, %c0_115, %c0_116] : memref<4x128x128xf32, #tpu.memory_space<vmem>>, vector<1x128x128xf32>
    %344 = vector.shape_cast %343 : vector<1x128x128xf32> to vector<128x128xf32>
    %345 = arith.mulf %344, %342 : vector<128x128xf32>
    %cst_117 = arith.constant dense<0.000000e+00> : vector<128xf32>
    %346 = vector.multi_reduction <add>, %345, %cst_117 [1] : vector<128x128xf32> to vector<128xf32>
    %347 = vector.shape_cast %346 : vector<128xf32> to vector<128x1xf32>
    %c1_118 = arith.constant 1 : index
    %c0_119 = arith.constant 0 : index
    %c0_120 = arith.constant 0 : index
    %348 = vector.load %arg4[%c1_118, %c0_119, %c0_120] : memref<4x128x128xf32, #tpu.memory_space<vmem>>, vector<1x128x128xf32>
    %349 = vector.shape_cast %348 : vector<1x128x128xf32> to vector<128x128xf32>
    %350 = arith.mulf %349, %342 : vector<128x128xf32>
    %cst_121 = arith.constant dense<0.000000e+00> : vector<128xf32>
    %351 = vector.multi_reduction <add>, %350, %cst_121 [1] : vector<128x128xf32> to vector<128xf32>
    %352 = vector.shape_cast %351 : vector<128xf32> to vector<128x1xf32>
    %c2_122 = arith.constant 2 : index
    %c0_123 = arith.constant 0 : index
    %c0_124 = arith.constant 0 : index
    %353 = vector.load %arg4[%c2_122, %c0_123, %c0_124] : memref<4x128x128xf32, #tpu.memory_space<vmem>>, vector<1x128x128xf32>
    %354 = vector.shape_cast %353 : vector<1x128x128xf32> to vector<128x128xf32>
    %355 = arith.mulf %354, %342 : vector<128x128xf32>
    %cst_125 = arith.constant dense<0.000000e+00> : vector<128xf32>
    %356 = vector.multi_reduction <add>, %355, %cst_125 [1] : vector<128x128xf32> to vector<128xf32>
    %357 = vector.shape_cast %356 : vector<128xf32> to vector<128x1xf32>
    %c3_126 = arith.constant 3 : index
    %c0_127 = arith.constant 0 : index
    %c0_128 = arith.constant 0 : index
    %358 = vector.load %arg4[%c3_126, %c0_127, %c0_128] : memref<4x128x128xf32, #tpu.memory_space<vmem>>, vector<1x128x128xf32>
    %359 = vector.shape_cast %358 : vector<1x128x128xf32> to vector<128x128xf32>
    %360 = arith.mulf %359, %342 : vector<128x128xf32>
    %cst_129 = arith.constant dense<0.000000e+00> : vector<128xf32>
    %361 = vector.multi_reduction <add>, %360, %cst_129 [1] : vector<128x128xf32> to vector<128xf32>
    %362 = vector.shape_cast %361 : vector<128xf32> to vector<128x1xf32>
    %363 = tpu.concatenate %347, %352, %357, %362 in 1 : vector<128x1xf32>, vector<128x1xf32>, vector<128x1xf32>, vector<128x1xf32> -> vector<128x4xf32>
    %cst_130 = arith.constant dense<0.000000e+00> : vector<4xf32>
    %364 = vector.multi_reduction <add>, %363, %cst_130 [0] : vector<128x4xf32> to vector<4xf32>
    %365 = vector.shape_cast %364 : vector<4xf32> to vector<1x4xf32>
    %366 = tpu.concatenate %266, %299, %332, %365 in 0 : vector<1x4xf32>, vector<1x4xf32>, vector<1x4xf32>, vector<1x4xf32> -> vector<4x4xf32>
    %367 = vector.broadcast %233 : vector<1x4xf32> to vector<4x4xf32>
    %368 = arith.addf %366, %367 : vector<4x4xf32>
    %369 = vector.shape_cast %368 : vector<4x4xf32> to vector<1x4x4xf32>
    %c0_131 = arith.constant 0 : index
    %c0_132 = arith.constant 0 : index
    %c0_133 = arith.constant 0 : index
    %370 = vector.load %arg6[%c0_131, %c0_132, %c0_133] : memref<1x4x4xf32, #tpu.memory_space<vmem>>, vector<1x4x4xf32>
    tpu.vector_store %arg6[%c0_131, %c0_132, %c0_133], %369 {strides = array<i32>} : memref<1x4x4xf32, #tpu.memory_space<vmem>>, vector<1x4x4xf32>,
    return
  }
  func.func @transform_0(%arg0: i32) -> (i32, i32, i32) {
    %c0_i32 = arith.constant 0 : i32
    %c0_i32_0 = arith.constant 0 : i32
    %c0_i32_1 = arith.constant 0 : i32
    return %arg0, %c0_i32, %c0_i32_0 : i32, i32, i32
  }
  func.func @transform_1(%arg0: i32) -> (i32, i32) {
    %c0_i32 = arith.constant 0 : i32
    %c0_i32_0 = arith.constant 0 : i32
    %c0_i32_1 = arith.constant 0 : i32
    return %c0_i32, %c0_i32_0 : i32, i32
  }
  func.func @transform_2(%arg0: i32) -> (i32, i32) {
    %c0_i32 = arith.constant 0 : i32
    %c0_i32_0 = arith.constant 0 : i32
    %c0_i32_1 = arith.constant 0 : i32
    return %c0_i32, %c0_i32_0 : i32, i32
  }
  func.func @transform_3(%arg0: i32) -> (i32, i32, i32) {
    %c0_i32 = arith.constant 0 : i32
    %c0_i32_0 = arith.constant 0 : i32
    %c0_i32_1 = arith.constant 0 : i32
    %c0_i32_2 = arith.constant 0 : i32
    return %c0_i32, %c0_i32_0, %c0_i32_1 : i32, i32, i32
  }
  func.func @transform_4(%arg0: i32) -> (i32, i32) {
    %c0_i32 = arith.constant 0 : i32
    %c0_i32_0 = arith.constant 0 : i32
    %c0_i32_1 = arith.constant 0 : i32
    return %c0_i32, %c0_i32_0 : i32, i32
  }
  func.func @transform_5(%arg0: i32) -> (i32, i32, i32) {
    %c0_i32 = arith.constant 0 : i32
    %c0_i32_0 = arith.constant 0 : i32
    %c0_i32_1 = arith.constant 0 : i32
    return %arg0, %c0_i32, %c0_i32_0 : i32, i32, i32
  }
}

</mosaic_0001>

<bundles_post_ra>
// kernel: tpu_custom_call.1
= control target key start
LH: loop header
LB: loop body
LE: loop exit
PB: predicated region body
PF: predicated region fallthrough
CT: control target
= control target key end

     0   :  { %10 = vsyncpa [#allocation5], 0  ;;  %s11606_s0 = inlined_call_operand.hbm [shape: f32[8,2,130], index: 0, kind: input, shape index: {}]   ;;  %s11607_s1 = inlined_call_operand.vmem [shape: f32[64,7], index: 1, kind: input, shape index: {}]   ;;  %s11608_s2 = inlined_call_operand.vmem [shape: f32[128,193], index: 2, kind: input, shape index: {}]   ;;  %s11609_s3 = inlined_call_operand.vmem [shape: f32[4,128,128], index: 3, kind: input, shape index: {}]   ;;  %s11610_s4 = inlined_call_operand.vmem [shape: f32[1,4], index: 4, kind: input, shape index: {}]   ;;  %s11611_s5 = inlined_call_operand.hbm [shape: f32[2,4,4], index: 5, kind: output, shape index: {}]  }
   0x1   :  { %12 = vsyncpa [#allocation5 + $0x1], 0 }
   0x2   :  { %13 = vsyncpa [#allocation6], 0 }
   0x3   :  { %15 = vsyncpa [#allocation6 + $0x1], 0  ;;  %s6396_s18 = smov 0   ;;  %s6398_s19 = smov 0  }
   0x4   :  { %s6400_s20 = smov 0   ;;  %s6402_s21 = smov 0  }
   0x5 LB: > { %s6417_s22 = sadd.s32 4294967295, %s6349_s21   ;;  %s5204_s23 = sadd.s32 4294967294, %s6349_s21   ;;  %s6349_s21 = sphi %s6402_s21, %s12648_s21   ;;  %s6345_s20 = sphi %s6400_s20, %s12647_s20   ;;  %s6341_s19 = sphi %s6398_s19, %s12646_s19   ;;  %s6337_s18 = sphi %s6396_s18, %s12645_s18  }
   0x6   : > { %s6421_s24 = sadd.s32 1, %s6349_s21   ;;  %s28_s25 = sadd.s32 1, %s6345_s20 }
   0x7   : > { %s25_s26 = ssub.s32 %s6349_s21, %s6421_s24  ;;  %p35_p0 = scmp.ne.s32.totalorder %s6345_s20, %s6341_s19 }
   0x8   : > { %p26_p1 = scmp.eq.s32.totalorder %s25_s26, 0  ;;  %p36_p2 = scmp.eq.s32.totalorder %s6349_s21, 0 }
   0x9   : > { %p41_p3 = scmp.ne.s32.totalorder %s6341_s19, %s6337_s18  ;;  %p42_p4 = scmp.eq.s32.totalorder %s6417_s22, 0 }
   0xa   : > { %s6433_s27 = scalar_select %p26_p1, %s6345_s20, %s28_s25  }
   0xb   : > { %p6435_p5 = por %p36_p2, %p35_p0  ;;  %p6439_p6 = por %p42_p4, %p41_p3 }
   0xc   : > { %p149_p7 = scmp.eq.s32.totalorder %s6417_s22, 1  ;;  %p155_p8 = scmp.eq.s32.totalorder %s5204_s23, 1 }
   0xd   : > { %p5540_p10 = scmp.lt.s32.totalorder %s6349_s21, 2  ;;  %s187_s7 = sand.u32 1, %s6345_s20  }
   0xe   : > { %p6446_p11 = por %p149_p7, %p35_p0  ;;  %p6450_p12 = por %p155_p8, %p41_p3 }
   0xf   : > { %s5303_s8 = sshll.u32 %s6349_s21, 8  ;;  %s5207_s9 = sshll.u32 %s187_s7, 4 }
  0x10   : > { %s11951_s30 = scalar_select %p6446_p11, 1, 0 }
  0x11   : > { %s11952_s6 = scalar_select %p6450_p12, 1, 0 }
  0x12   : > { %s6459_s12 = scalar_lea.hbm %s11606_s0, %s5303_s8  ;;  %s191_s13 = scalar_lea.vmem [#allocation4], %s5207_s9 }
  0x13   : > { %s199_s14 = sshll.u32 %s191_s13, 4  ;;  %p6463_p13 = pnand %p5540_p10, %p6435_p5  ;;  %s6467_s14 = int_to_ptr.vmem [resolvable:$true] %s199_s14 }
  0x14   : > { %s6469_s16 = scalar_lea.sflag [#allocation5], %s187_s7  ;;  %s6253_s17 = scalar_lea.hbm %s6459_s12, 256 }
  0x15   : > { %p6254_p0 = scmp.ne.s32.totalorder %s6459_s12, %s6253_s17  ;;  %p6255_p1 = pneg %p6463_p13 }
  0x16   : > { %s6258_s26 = scalar_lea.hbm %s11606_s0, 512  ;;  %p6259_p4 = scmp.lt.u32.totalorder %s6459_s12, %s11606_s0 }
  0x17   : > { %p6256_p2 = pnand %p6255_p1, %p6254_p0  ;;  %p6260_p5 = scmp.lt.u32.totalorder %s6258_s26, %s6253_s17 }
  0x18   : > { %p6262_p8 = scmp.lt.u32.totalorder %s6253_s17, %s6459_s12 }
  0x19   : > { %p6257_p3 = pneg %p6256_p2  ;;  %p6261_p7 = por %p6260_p5, %p6259_p4 }
  0x1b   : > { %p6263_p10 = por %p6262_p8, %p6261_p7 }
  0x1d   : > { %p6264_p9 = pnand %p6263_p10, %p6257_p3 }
  0x1f   : > { %6267 = shalt.err (!%p6264_p9)
}
  0x20   : > { %s6268_s7 = scalar_lea.vmem %s6467_s14, 256  ;;  %s6351_s9 = smov [#allocation4]  }
  0x21   : > { %p6269_p0 = scmp.ne.s32.totalorder %s6467_s14, %s6268_s7  ;;  %s6273_s10 = sshll.u32 %s6351_s9, 4  ;;  %s6274_s10 = int_to_ptr.vmem [resolvable:$false] %s6273_s10 }
  0x22   : > { %s6275_s11 = scalar_lea.vmem %s6274_s10, 512  ;;  %p6276_p11 = scmp.lt.s32.totalorder %s6467_s14, %s6274_s10 }
  0x23   : > { %p6271_p2 = pnand %p6269_p0, %p6255_p1  ;;  %p6277_p4 = scmp.lt.s32.totalorder %s6275_s11, %s6268_s7 }
  0x25   : > { %p6272_p12 = pneg %p6271_p2  ;;  %p6278_p5 = por %p6277_p4, %p6276_p11 }
  0x27   : > { %p6279_p7 = pnand %p6278_p5, %p6272_p12 }
  0x29   : > { %6282 = shalt.err (!%p6279_p7)
}
  0x2a   : > { %s6352_s13 = smov 64   ;;  %s6353_s17 = smov 4  }
  0x2b   : > { %5535 = dma.hbm_to_vmem [thread:$0]  (!%p6463_p13), %s6459_s12, 256, %s6467_s14, %s6469_s16, %s6352_s13, %s6352_s13, %s6353_s17  }
  0x2c   : > { %p5211_p9 = scmp.ge.s32.totalorder %s6349_s21, 1  ;;  %p207_p1 = scmp.lt.s32.totalorder %s6349_s21, 3 }
  0x2e   : > { %p208_p3 = pnand %p5211_p9, %p207_p1 }
  0x30   : > { %211 = sbr.rel (%p208_p3) target bundleno = 2503 (0x9c7), region = 40 }
  0x37   : > { %s6500_s23 = sand.u32 1, %s6341_s19  }
  0x38   : > { %s5212_s25 = sshll.u32 %s6500_s23, 4  ;;  %s214_s26 = scalar_lea.sflag [#allocation5], %s6500_s23 }
  0x39   : > { %s6504_s28 = scalar_lea.vmem [#allocation4], %s5212_s25 }
  0x3a   : > { %6328 = dma.done.wait (%p6439_p6), %s214_s26, 256  }
  0x3b   : > { %6330 = vsyncadd (%p6439_p6), %s214_s26, 4294967040  ;;  %v6354_v0 = vmov 0   ;;  %v6513_v1 = vld [vmem:[%s11607_s1 + $0x10] sm:$0xff]  ;;  %v6518_v2 = vld [vmem:[%s11607_s1] sm:$0xff]  ;;  %v294_v7 = vlaneseq  ;;  %v6355_v13 = vmov 1   ;;  %v6356_v21 = vmov 2  }
  0x3c   : > { %5588 = vset.pattern.permute.xlu1 %v6354_v0  ;;  %5587 = vset.pattern.permute.xlu0 %v6354_v0  ;;  %v6525_v3 = vld [vmem:[%s11607_s1 + $0x18] sm:$0xff]  ;;  %v6530_v4 = vld [vmem:[%s11607_s1 + $0x8] sm:$0xff]  ;;  %v6542_v6 = vld [vmem:[%s11607_s1 + $0x20] sm:$0xff]  ;;  %v6357_v26 = vmov 3   ;;  %v6358_v28 = vmov 4   ;;  %s6359_s15 = smov 127  }
  0x3d   : > { %266 = vperm.xlu1 %5588, %v6513_v1   ;;  %256 = vperm.xlu0 %5587, %v6518_v2   ;;  %v6537_v5 = vld [vmem:[%s11607_s1 + $0x28] sm:$0xff]  ;;  %v6549_v8 = vld [vmem:[%s11607_s1 + $0x38] sm:$0xff]  ;;  %v6554_v9 = vld [vmem:[%s11607_s1 + $0x30] sm:$0xff]  ;;  %v295_v10 = vshrl.u32 %v294_v7, 7  ;;  %s6360_s16 = smov 126   ;;  %vm473_vm0 = vcmask 1039360  }
  0x3e   : > { %v6561_v12 = vld [vmem:[%s6504_s28 + $0x4] sm:$0xf]  ;;  %v5215_v18 = vld [vmem:[%s6504_s28 + $0x8] sm:$0xf]  ;;  %v5216_v20 = vld [vmem:[%s6504_s28 + $0xc] sm:$0xf] }
  0x3f   : > { %v6558_v11 = vsub.s32 1, %v295_v10  ;;  %v6573_v15 = vsub.s32 2, %v295_v10  ;;  %v6577_v16 = vsub.s32 0, %v295_v10  ;;  %v6608_v27 = vsub.s32 3, %v295_v10  ;;  %v253_v49 = vld [vmem:[%s6504_s28] sm:$0xf]  ;;  %vm8020_vm5 = vmpackc.low %vm473_vm0, %vm473_vm0 }
  0x40   : > { %vm732_vm1 = vcmask 1031168   ;;  %s6363_s8 = smov 1   ;;  %vm997_vm2 = vcmask 7168   ;;  %vm2915_vm6 = vcmask 523264   ;;  %vm3818_vm7 = vcmask 15360   ;;  %s5213_s17 = sshll.u32 %s6500_s23, 2 }
  0x41   : > { %271 = vperm.xlu1 %5588, %v6525_v3   ;;  %261 = vperm.xlu0 %5587, %v6530_v4   ;;  %11954 = vst [vmem:[#allocation10_spill] sm:$0xff] %v6558_v11  ;;  %v6565_v14 = vrot.slane %v6561_v12, %v6558_v11  ;;  %11956 = vst [vmem:[#allocation12_spill] sm:$0xff] %v6577_v16  ;;  %v1104_v17 = vrot.slane %v6561_v12, %v6573_v15  ;;  %vm3835_vm8 = vcmask 23552   ;;  %vm3852_vm9 = vcmask 31744   ;;  %s5299_s12 = sshll.u32 %s6417_s22, 6  ;;  %s243_s14 = scalar_lea.vmem [#allocation7], %s5213_s17 }
  0x42   : > { %v1679_v19 = vrot.slane %v5215_v18, %v6573_v15  ;;  %v2254_v23 = vrot.slane %v5216_v20, %v6573_v15  ;;  %v1210_v29 = vrot.slane %v6561_v12, %v6608_v27  ;;  %v1785_v31 = vrot.slane %v5215_v18, %v6608_v27  ;;  %vm5304_vm3 = vmneg %vm997_vm2  ;;  %s11562_s7 = scalar_lea.hbm %s11611_s5, %s5299_s12  ;;  %p12642_p11 = scmp.ne.s32.totalorder %s11951_s30, 0 }
  0x43   : > { %11955 = vst [vmem:[#allocation11_spill] sm:$0xff] %v6565_v14  ;;  %v6585_v22 = vrot.slane %v1104_v17, %v6577_v16  ;;  %v2360_v33 = vrot.slane %v5216_v20, %v6608_v27  ;;  %v398_v50 = vrot.slane %v253_v49, %v6573_v15  ;;  %v6659_v52 = vrot.slane %v253_v49, %v6577_v16  ;;  %vm7892_vm4 = vmpackc.low %vm5304_vm3, %vm5304_vm3  ;;  %s6365_s22 = smov [#allocation7]  }
  0x44   : > { %v6591_v24 = vrot.slane %v1679_v19, %v6577_v16  ;;  %v6594_v25 = vrot.slane %v2254_v23, %v6577_v16  ;;  %v6614_v30 = vrot.slane %v1210_v29, %v6558_v11  ;;  %v6619_v32 = vrot.slane %v1785_v31, %v6558_v11  ;;  %s6287_s9 = sshll.u32 %s6365_s22, 4  ;;  %s6288_s9 = int_to_ptr.vmem [resolvable:$false] %s6287_s9 }
  0x45   : > { %281 = vperm.xlu1 %5588, %v6537_v5   ;;  %276 = vperm.xlu0 %5587, %v6542_v6   ;;  %v6624_v34 = vrot.slane %v2360_v33, %v6558_v11  ;;  %v6664_v54 = vrot.slane %v398_v50, %v6577_v16  ;;  %v6668_v55 = vrot.slane %v6659_v52, %v6577_v16  ;;  %vm5105_vm10 = vcmask 1040384   ;;  %s6289_s10 = scalar_lea.vmem %s6288_s9, 128 }
  0x46   : > { %11957 = vst [vmem:[#allocation13_spill] sm:$0xff] %v6591_v24  ;;  %11958 = vst [vmem:[#allocation14_spill] sm:$0xff] %v6594_v25  ;;  %vm5107_vm11 = vcmask 1041408   ;;  %vm5109_vm12 = vcmask 1042432   ;;  %vm5118_vm13 = vcmask 27648  }
  0x47   : > { %11959 = vst [vmem:[#allocation15_spill] sm:$0xff] %v6614_v30  ;;  %11960 = vst [vmem:[#allocation16_spill] sm:$0xff] %v6619_v32 }
  0x48   : > { %11961 = vst [vmem:[#allocation17_spill] sm:$0xff] %v6624_v34 }
  0x49   : > { %291 = vperm.xlu1 %5588, %v6549_v8   ;;  %286 = vperm.xlu0 %5587, %v6554_v9  }
  0x4d   : > { %5590 = vset.pattern.permute.xlu1 %v6355_v13  ;;  %5589 = vset.pattern.permute.xlu0 %v6355_v13 }
  0x4e   : > { %311 = vperm.xlu1 %5590, %v6530_v4   ;;  %307 = vperm.xlu0 %5589, %v6518_v2  }
  0x52   : > { %315 = vperm.xlu1 %5590, %v6513_v1   ;;  %319 = vperm.xlu0 %5589, %v6525_v3  }
  0x56   : > { %323 = vperm.xlu1 %5590, %v6542_v6   ;;  %327 = vperm.xlu0 %5589, %v6537_v5  }
  0x5a   : > { %331 = vperm.xlu1 %5590, %v6554_v9   ;;  %335 = vperm.xlu0 %5589, %v6549_v8  }
  0x5e   : > { %5591 = vset.pattern.permute.xlu1 %v6356_v21  ;;  %5592 = vset.pattern.permute.xlu0 %v6356_v21 }
  0x5f   : > { %359 = vperm.xlu1 %5591, %v6518_v2   ;;  %363 = vperm.xlu0 %5592, %v6530_v4  }
  0x63   : > { %367 = vperm.xlu1 %5591, %v6513_v1   ;;  %375 = vperm.xlu0 %5592, %v6542_v6  }
  0x67   : > { %371 = vperm.xlu1 %5591, %v6525_v3   ;;  %383 = vperm.xlu0 %5592, %v6554_v9  }
  0x6b   : > { %379 = vperm.xlu1 %5591, %v6537_v5   ;;  %5593 = vset.pattern.permute.xlu0 %v6357_v26 }
  0x6c   : > { %499 = vperm.xlu0 %5593, %v6518_v2  }
  0x6f   : > { %387 = vperm.xlu1 %5591, %v6549_v8  }
  0x70   : > { %511 = vperm.xlu0 %5593, %v6525_v3  }
  0x73   : > { %5594 = vset.pattern.permute.xlu1 %v6357_v26  ;;  %v537_v26 = vrot.slane %v253_v49, %v6608_v27 }
  0x74   : > { %503 = vperm.xlu1 %5594, %v6530_v4   ;;  %519 = vperm.xlu0 %5593, %v6537_v5  }
  0x75   : > { %v6733_v50 = vrot.slane %v537_v26, %v6558_v11 }
  0x78   : > { %507 = vperm.xlu1 %5594, %v6513_v1   ;;  %527 = vperm.xlu0 %5593, %v6549_v8  }
  0x7c   : > { %515 = vperm.xlu1 %5594, %v6542_v6   ;;  %5596 = vset.pattern.permute.xlu0 %v6358_v28 }
  0x80   : > { %523 = vperm.xlu1 %5594, %v6554_v9  }
  0x84   : > { %5595 = vset.pattern.permute.xlu1 %v6358_v28  ;;  %v6722_v28 = vrot.slane %v253_v49, %v6558_v11 }
  0x85   : > { %637 = vperm.xlu1 %5595, %v6518_v2  }
  0x86   : > { %v6737_v27 = vrot.slane %v6722_v28, %v6558_v11 }
  0xbc   : > { %v6626_v35 = vpop.permute.xlu1 %266  ;;  %v6628_v36 = vpop.permute.xlu0 %256 }
  0xbd   : > { %11962 = vst [vmem:[#allocation18_spill] sm:$0xff] %v6626_v35  ;;  %11963 = vst [vmem:[#allocation19_spill] sm:$0xff] %v6628_v36 }
  0xc0   : > { %v6630_v37 = vpop.permute.xlu1 %271  ;;  %v6632_v38 = vpop.permute.xlu0 %261 }
  0xc1   : > { %11964 = vst [vmem:[#allocation20_spill] sm:$0xff] %v6630_v37  ;;  %11965 = vst [vmem:[#allocation21_spill] sm:$0xff] %v6632_v38 }
  0xc4   : > { %v6634_v39 = vpop.permute.xlu1 %281  ;;  %v6636_v40 = vpop.permute.xlu0 %276 }
  0xc5   : > { %11966 = vst [vmem:[#allocation22_spill] sm:$0xff] %v6634_v39  ;;  %11967 = vst [vmem:[#allocation23_spill] sm:$0xff] %v6636_v40 }
  0xc8   : > { %v6638_v41 = vpop.permute.xlu1 %291  ;;  %v6640_v42 = vpop.permute.xlu0 %286 }
  0xc9   : > { %11968 = vst [vmem:[#allocation24_spill] sm:$0xff] %v6638_v41  ;;  %11969 = vst [vmem:[#allocation25_spill] sm:$0xff] %v6640_v42 }
  0xcd   : > { %v6642_v43 = vpop.permute.xlu1 %311  ;;  %v6644_v44 = vpop.permute.xlu0 %307 }
  0xce   : > { %11970 = vst [vmem:[#allocation26_spill] sm:$0xff] %v6642_v43  ;;  %11971 = vst [vmem:[#allocation27_spill] sm:$0xff] %v6644_v44 }
  0xd1   : > { %v6646_v45 = vpop.permute.xlu1 %315  ;;  %v6648_v46 = vpop.permute.xlu0 %319 }
  0xd2   : > { %11972 = vst [vmem:[#allocation28_spill] sm:$0xff] %v6646_v45  ;;  %11973 = vst [vmem:[#allocation29_spill] sm:$0xff] %v6648_v46 }
  0xd5   : > { %v6650_v47 = vpop.permute.xlu1 %323  ;;  %v6652_v48 = vpop.permute.xlu0 %327 }
  0xd6   : > { %11974 = vst [vmem:[#allocation30_spill] sm:$0xff] %v6650_v47  ;;  %11975 = vst [vmem:[#allocation31_spill] sm:$0xff] %v6652_v48 }
  0xd9   : > { %v6656_v51 = vpop.permute.xlu1 %331  ;;  %v6661_v53 = vpop.permute.xlu0 %335 }
  0xda   : > { %11976 = vst [vmem:[#allocation32_spill] sm:$0xff] %v6656_v51 }
  0xde   : > { %v6670_v56 = vpop.permute.xlu1 %359  ;;  %v6676_v59 = vpop.permute.xlu0 %363 }
  0xdf   : > { %11977 = vst [vmem:[#allocation33_spill] sm:$0xff] %v6670_v56  ;;  %v410_v57 = vmul.f32 %v6664_v54, %v6670_v56  ;;  %v409_v58 = vmul.f32 %v6668_v55, %v6670_v56  ;;  %11978 = vst [vmem:[#allocation34_spill] sm:$0xff] %v6676_v59  ;;  %v412_v60 = vmul.f32 %v6664_v54, %v6676_v59 }
  0xe0   : > { %v411_v61 = vmul.f32 %v6668_v55, %v6676_v59 }
  0xe1   : > { %443 = vrot.lane.b32.xlu1 %v410_v57, %s6359_s15  ;;  %441 = vrot.lane.b32.xlu0 %v409_v58, %s6359_s15 }
  0xe2   : > { %v6684_v62 = vpop.permute.xlu1 %367  ;;  %v6700_v15 = vpop.permute.xlu0 %375 }
  0xe3   : > { %11979 = vst [vmem:[#allocation35_spill] sm:$0xff] %v6684_v62  ;;  %v414_v63 = vmul.f32 %v6664_v54, %v6684_v62  ;;  %v413_v0 = vmul.f32 %v6668_v55, %v6684_v62  ;;  %11981 = vst [vmem:[#allocation37_spill] sm:$0xff] %v6700_v15  ;;  %v418_v17 = vmul.f32 %v6664_v54, %v6700_v15 }
  0xe4   : > { %v417_v18 = vmul.f32 %v6668_v55, %v6700_v15 }
  0xe5   : > { %447 = vrot.lane.b32.xlu1 %v412_v60, %s6359_s15  ;;  %445 = vrot.lane.b32.xlu0 %v411_v61, %s6359_s15 }
  0xe6   : > { %v6692_v7 = vpop.permute.xlu1 %371  ;;  %v6716_v23 = vpop.permute.xlu0 %383 }
  0xe7   : > { %11980 = vst [vmem:[#allocation36_spill] sm:$0xff] %v6692_v7  ;;  %v416_v10 = vmul.f32 %v6664_v54, %v6692_v7  ;;  %v415_v13 = vmul.f32 %v6668_v55, %v6692_v7  ;;  %11983 = vst [vmem:[#allocation39_spill] sm:$0xff] %v6716_v23  ;;  %v422_v29 = vmul.f32 %v6664_v54, %v6716_v23 }
  0xe8   : > { %v421_v31 = vmul.f32 %v6668_v55, %v6716_v23 }
  0xe9   : > { %451 = vrot.lane.b32.xlu1 %v414_v63, %s6359_s15  ;;  %449 = vrot.lane.b32.xlu0 %v413_v0, %s6359_s15 }
  0xea   : > { %v6708_v19 = vpop.permute.xlu1 %379 }
  0xeb   : > { %11982 = vst [vmem:[#allocation38_spill] sm:$0xff] %v6708_v19  ;;  %v420_v20 = vmul.f32 %v6664_v54, %v6708_v19  ;;  %v419_v21 = vmul.f32 %v6668_v55, %v6708_v19  ;;  %v6743_v58 = vpop.permute.xlu0 %499 }
  0xec   : > { %11985 = vst [vmem:[#allocation41_spill] sm:$0xff] %v6743_v58  ;;  %v549_v60 = vmul.f32 %v6733_v50, %v6743_v58  ;;  %v548_v61 = vmul.f32 %v6737_v27, %v6743_v58 }
  0xed   : > { %455 = vrot.lane.b32.xlu1 %v416_v10, %s6359_s15  ;;  %453 = vrot.lane.b32.xlu0 %v415_v13, %s6359_s15 }
  0xee   : > { %v6728_v33 = vpop.permute.xlu1 %387 }
  0xef   : > { %11984 = vst [vmem:[#allocation40_spill] sm:$0xff] %v6728_v33  ;;  %v424_v49 = vmul.f32 %v6664_v54, %v6728_v33  ;;  %v423_v57 = vmul.f32 %v6668_v55, %v6728_v33 }
  0xf1   : > { %459 = vrot.lane.b32.xlu1 %v418_v17, %s6359_s15  ;;  %457 = vrot.lane.b32.xlu0 %v417_v18, %s6359_s15 }
  0xf3   : > { %v6751_v63 = vpop.permute.xlu1 %503 }
  0xf4   : > { %11986 = vst [vmem:[#allocation42_spill] sm:$0xff] %v6751_v63  ;;  %v551_v0 = vmul.f32 %v6733_v50, %v6751_v63  ;;  %v550_v10 = vmul.f32 %v6737_v27, %v6751_v63 }
  0xf5   : > { %463 = vrot.lane.b32.xlu1 %v420_v20, %s6359_s15  ;;  %461 = vrot.lane.b32.xlu0 %v419_v21, %s6359_s15  ;;  %v6769_v20 = vpop.permute.xlu0 %511 }
  0xf6   : > { %11988 = vst [vmem:[#allocation44_spill] sm:$0xff] %v6769_v20  ;;  %v555_v21 = vmul.f32 %v6733_v50, %v6769_v20  ;;  %v554_v26 = vmul.f32 %v6737_v27, %v6769_v20 }
  0xf7   : > { %v6761_v13 = vpop.permute.xlu1 %507 }
  0xf8   : > { %11987 = vst [vmem:[#allocation43_spill] sm:$0xff] %v6761_v13  ;;  %v553_v17 = vmul.f32 %v6733_v50, %v6761_v13  ;;  %v552_v18 = vmul.f32 %v6737_v27, %v6761_v13 }
  0xf9   : > { %467 = vrot.lane.b32.xlu1 %v422_v29, %s6359_s15  ;;  %465 = vrot.lane.b32.xlu0 %v421_v31, %s6359_s15 }
  0xfb   : > { %v6777_v29 = vpop.permute.xlu1 %515 }
  0xfc   : > { %11989 = vst [vmem:[#allocation45_spill] sm:$0xff] %v6777_v29  ;;  %v557_v31 = vmul.f32 %v6733_v50, %v6777_v29 }
  0xfd   : > { %471 = vrot.lane.b32.xlu1 %v424_v49, %s6359_s15  ;;  %469 = vrot.lane.b32.xlu0 %v423_v57, %s6359_s15  ;;  %v556_v49 = vmul.f32 %v6737_v27, %v6777_v29  ;;  %v6785_v57 = vpop.permute.xlu0 %519 }
  0xfe   : > { %11990 = vst [vmem:[#allocation46_spill] sm:$0xff] %v6785_v57 }
 0x101   : > { %582 = vrot.lane.b32.xlu0 %v549_v60, %s6359_s15  ;;  %580 = vrot.lane.b32.xlu1 %v548_v61, %s6359_s15  ;;  %v559_v60 = vmul.f32 %v6733_v50, %v6785_v57  ;;  %v558_v61 = vmul.f32 %v6737_v27, %v6785_v57 }
 0x105   : > { %586 = vrot.lane.b32.xlu0 %v551_v0, %s6359_s15  ;;  %584 = vrot.lane.b32.xlu1 %v550_v10, %s6359_s15  ;;  %v6791_v0 = vpop.permute.xlu1 %523 }
 0x106   : > { %11991 = vst [vmem:[#allocation47_spill] sm:$0xff] %v6791_v0  ;;  %v561_v10 = vmul.f32 %v6733_v50, %v6791_v0 }
 0x109   : > { %590 = vrot.lane.b32.xlu0 %v553_v17, %s6359_s15  ;;  %588 = vrot.lane.b32.xlu1 %v552_v18, %s6359_s15  ;;  %v560_v17 = vmul.f32 %v6737_v27, %v6791_v0  ;;  %v6799_v18 = vpop.permute.xlu0 %527 }
 0x10a   : > { %11992 = vst [vmem:[#allocation48_spill] sm:$0xff] %v6799_v18 }
 0x10d   : > { %594 = vrot.lane.b32.xlu0 %v555_v21, %s6359_s15  ;;  %592 = vrot.lane.b32.xlu1 %v554_v26, %s6359_s15  ;;  %v563_v21 = vmul.f32 %v6733_v50, %v6799_v18  ;;  %v562_v26 = vmul.f32 %v6737_v27, %v6799_v18 }
 0x111   : > { %598 = vrot.lane.b32.xlu0 %v557_v31, %s6359_s15  ;;  %596 = vrot.lane.b32.xlu1 %v556_v49, %s6359_s15  ;;  %v6813_v31 = vpop.permute.xlu1 %637 }
 0x112   : > { %11993 = vst [vmem:[#allocation49_spill] sm:$0xff] %v6813_v31  ;;  %v668_v49 = vmul.f32 %v6813_v31, %v6668_v55 }
 0x115   : > { %602 = vrot.lane.b32.xlu0 %v559_v60, %s6359_s15  ;;  %600 = vrot.lane.b32.xlu1 %v558_v61, %s6359_s15  ;;  %v669_v60 = vmul.f32 %v6813_v31, %v6664_v54  ;;  %v6361_v61 = vmov 5  }
 0x119   : > { %606 = vrot.lane.b32.xlu0 %v561_v10, %s6359_s15  ;;  %604 = vrot.lane.b32.xlu1 %v560_v17, %s6359_s15 }
 0x11d   : > { %610 = vrot.lane.b32.xlu0 %v563_v21, %s6359_s15  ;;  %608 = vrot.lane.b32.xlu1 %v562_v26, %s6359_s15 }
 0x121   : > { %641 = vperm.xlu0 %5596, %v6530_v4   ;;  %645 = vperm.xlu1 %5595, %v6513_v1  }
 0x125   : > { %653 = vperm.xlu0 %5596, %v6542_v6   ;;  %649 = vperm.xlu1 %5595, %v6525_v3  }
 0x129   : > { %661 = vperm.xlu0 %5596, %v6554_v9   ;;  %657 = vperm.xlu1 %5595, %v6537_v5  }
 0x12d   : > { %665 = vperm.xlu1 %5595, %v6549_v8   ;;  %700 = vrot.lane.b32.xlu0 %v668_v49, %s6360_s16 }
 0x12e   : > { %5597 = vset.pattern.permute.xlu0 %v6361_v61 }
 0x131   : > { %702 = vrot.lane.b32.xlu1 %v669_v60, %s6360_s16 }
 0x132   : > { %5598 = vset.pattern.permute.xlu1 %v6361_v61 }
 0x153   : > { %v6824_v10 = vpop.permute.xlu1 %443  ;;  %v6826_v17 = vpop.permute.xlu0 %441 }
 0x157   : > { %v6828_v21 = vpop.permute.xlu1 %447  ;;  %v6830_v26 = vpop.permute.xlu0 %445 }
 0x15b   : > { %v6832_v34 = vpop.permute.xlu1 %451  ;;  %v6834_v25 = vpop.permute.xlu0 %449 }
 0x15f   : > { %v6836_v49 = vpop.permute.xlu1 %455  ;;  %v6838_v32 = vpop.permute.xlu0 %453 }
 0x163   : > { %v6840_v60 = vpop.permute.xlu1 %459  ;;  %v6842_v24 = vpop.permute.xlu0 %457 }
 0x164   : > { %11994 = vst [vmem:[#allocation50_spill] sm:$0xff] %v6842_v24 }
 0x167   : > { %v6844_v61 = vpop.permute.xlu1 %463  ;;  %v6846_v31 = vpop.permute.xlu0 %461 }
 0x168   : > { %11995 = vst [vmem:[#allocation51_spill] sm:$0xff] %v6844_v61  ;;  %11996 = vst [vmem:[#allocation52_spill] sm:$0xff] %v6846_v31 }
 0x16b   : > { %v6848_v18 = vpop.permute.xlu1 %467  ;;  %v6850_v0 = vpop.permute.xlu0 %465 }
 0x16c   : > { %11997 = vst [vmem:[#allocation53_spill] sm:$0xff] %v6848_v18  ;;  %11998 = vst [vmem:[#allocation54_spill] sm:$0xff] %v6850_v0 }
 0x16f   : > { %v6852_v57 = vpop.permute.xlu1 %471  ;;  %v6854_v29 = vpop.permute.xlu0 %469 }
 0x170   : > { %11999 = vst [vmem:[#allocation55_spill] sm:$0xff] %v6852_v57  ;;  %12000 = vst [vmem:[#allocation56_spill] sm:$0xff] %v6854_v29 }
 0x173   : > { %v6856_v20 = vpop.permute.xlu1 %580  ;;  %v6858_v13 = vpop.permute.xlu0 %582 }
 0x177   : > { %v6860_v30 = vpop.permute.xlu1 %584  ;;  %v6862_v63 = vpop.permute.xlu0 %586 }
 0x17b   : > { %v6864_v58 = vpop.permute.xlu1 %588  ;;  %v6866_v14 = vpop.permute.xlu0 %590 }
 0x17c   : > { %12001 = vst [vmem:[#allocation57_spill] sm:$0xff] %v6864_v58  ;;  %12002 = vst [vmem:[#allocation58_spill] sm:$0xff] %v6866_v14 }
 0x17f   : > { %v6868_v11 = vpop.permute.xlu1 %592  ;;  %v6870_v33 = vpop.permute.xlu0 %594 }
 0x180   : > { %12003 = vst [vmem:[#allocation59_spill] sm:$0xff] %v6868_v11  ;;  %12004 = vst [vmem:[#allocation60_spill] sm:$0xff] %v6870_v33 }
 0x183   : > { %v6872_v0 = vpop.permute.xlu1 %596  ;;  %v6874_v57 = vpop.permute.xlu0 %598 }
 0x184   : > { %12005 = vst [vmem:[#allocation61_spill] sm:$0xff] %v6872_v0  ;;  %12006 = vst [vmem:[#allocation62_spill] sm:$0xff] %v6874_v57 }
 0x187   : > { %v6876_v29 = vpop.permute.xlu1 %600  ;;  %v6878_v18 = vpop.permute.xlu0 %602 }
 0x188   : > { %12007 = vst [vmem:[#allocation63_spill] sm:$0xff] %v6876_v29  ;;  %12008 = vst [vmem:[#allocation64_spill] sm:$0xff] %v6878_v18 }
 0x18b   : > { %v6880_v31 = vpop.permute.xlu1 %604  ;;  %v6882_v61 = vpop.permute.xlu0 %606 }
 0x18c   : > { %12009 = vst [vmem:[#allocation65_spill] sm:$0xff] %v6880_v31  ;;  %12010 = vst [vmem:[#allocation66_spill] sm:$0xff] %v6882_v61 }
 0x18f   : > { %v6884_v24 = vpop.permute.xlu1 %608  ;;  %v6886_v58 = vpop.permute.xlu0 %610 }
 0x190   : > { %12011 = vst [vmem:[#allocation67_spill] sm:$0xff] %v6884_v24  ;;  %12012 = vst [vmem:[#allocation68_spill] sm:$0xff] %v6886_v58 }
 0x1a0   : > { %v6888_v14 = vpop.permute.xlu1 %645  ;;  %v6890_v11 = vpop.permute.xlu0 %641 }
 0x1a1   : > { %12013 = vst [vmem:[#allocation69_spill] sm:$0xff] %v6888_v14  ;;  %12014 = vst [vmem:[#allocation70_spill] sm:$0xff] %v6890_v11  ;;  %v671_v33 = vmul.f32 %v6890_v11, %v6664_v54  ;;  %v670_v29 = vmul.f32 %v6890_v11, %v6668_v55  ;;  %v673_v18 = vmul.f32 %v6888_v14, %v6664_v54 }
 0x1a2   : > { %v672_v24 = vmul.f32 %v6888_v14, %v6668_v55 }
 0x1a3   : > { %706 = vrot.lane.b32.xlu1 %v671_v33, %s6360_s16  ;;  %704 = vrot.lane.b32.xlu0 %v670_v29, %s6360_s16 }
 0x1a4   : > { %v6902_v58 = vpop.permute.xlu1 %649  ;;  %v6910_v11 = vpop.permute.xlu0 %653 }
 0x1a5   : > { %12015 = vst [vmem:[#allocation71_spill] sm:$0xff] %v6902_v58  ;;  %v675_v31 = vmul.f32 %v6902_v58, %v6664_v54  ;;  %v674_v33 = vmul.f32 %v6902_v58, %v6668_v55  ;;  %12016 = vst [vmem:[#allocation72_spill] sm:$0xff] %v6910_v11  ;;  %v677_v29 = vmul.f32 %v6910_v11, %v6664_v54 }
 0x1a7   : > { %710 = vrot.lane.b32.xlu1 %v673_v18, %s6360_s16  ;;  %708 = vrot.lane.b32.xlu0 %v672_v24, %s6360_s16  ;;  %v676_v18 = vmul.f32 %v6910_v11, %v6668_v55 }
 0x1a8   : > { %v6918_v14 = vpop.permute.xlu1 %657  ;;  %v6926_v58 = vpop.permute.xlu0 %661 }
 0x1a9   : > { %12017 = vst [vmem:[#allocation73_spill] sm:$0xff] %v6918_v14  ;;  %v679_v24 = vmul.f32 %v6918_v14, %v6664_v54  ;;  %12018 = vst [vmem:[#allocation74_spill] sm:$0xff] %v6926_v58 }
 0x1ab   : > { %714 = vrot.lane.b32.xlu1 %v675_v31, %s6360_s16  ;;  %712 = vrot.lane.b32.xlu0 %v674_v33, %s6360_s16  ;;  %v678_v31 = vmul.f32 %v6918_v14, %v6668_v55  ;;  %v681_v33 = vmul.f32 %v6926_v58, %v6664_v54 }
 0x1ac   : > { %v6934_v11 = vpop.permute.xlu1 %665 }
 0x1ad   : > { %12019 = vst [vmem:[#allocation75_spill] sm:$0xff] %v6934_v11 }
 0x1af   : > { %718 = vrot.lane.b32.xlu1 %v677_v29, %s6360_s16  ;;  %716 = vrot.lane.b32.xlu0 %v676_v18, %s6360_s16  ;;  %v680_v29 = vmul.f32 %v6926_v58, %v6668_v55  ;;  %v683_v18 = vmul.f32 %v6934_v11, %v6664_v54  ;;  %v6362_v54 = vmov 6  }
 0x1b3   : > { %722 = vrot.lane.b32.xlu1 %v679_v24, %s6360_s16  ;;  %720 = vrot.lane.b32.xlu0 %v678_v31, %s6360_s16  ;;  %v682_v24 = vmul.f32 %v6934_v11, %v6668_v55  ;;  %v6952_v55 = vpop.permute.xlu1 %702  ;;  %v6954_v31 = vpop.permute.xlu0 %700 }
 0x1b7   : > { %726 = vrot.lane.b32.xlu1 %v681_v33, %s6360_s16  ;;  %724 = vrot.lane.b32.xlu0 %v680_v29, %s6360_s16 }
 0x1bb   : > { %730 = vrot.lane.b32.xlu1 %v683_v18, %s6360_s16  ;;  %728 = vrot.lane.b32.xlu0 %v682_v24, %s6360_s16 }
 0x1bf   : > { %762 = vperm.xlu1 %5598, %v6530_v4   ;;  %758 = vperm.xlu0 %5597, %v6518_v2  }
 0x1c3   : > { %766 = vperm.xlu1 %5598, %v6513_v1   ;;  %770 = vperm.xlu0 %5597, %v6525_v3  }
 0x1c7   : > { %774 = vperm.xlu1 %5598, %v6542_v6   ;;  %778 = vperm.xlu0 %5597, %v6537_v5  }
 0x1cb   : > { %782 = vperm.xlu1 %5598, %v6554_v9   ;;  %786 = vperm.xlu0 %5597, %v6549_v8  }
 0x1cf   : > { %5599 = vset.pattern.permute.xlu1 %v6362_v54  ;;  %5600 = vset.pattern.permute.xlu0 %v6362_v54 }
 0x215   : > { %v6956_v33 = vpop.permute.xlu1 %706  ;;  %v6958_v29 = vpop.permute.xlu0 %704 }
 0x216   : > { %12020 = vst [vmem:[#allocation76_spill] sm:$0xff] %v6956_v33  ;;  %12021 = vst [vmem:[#allocation77_spill] sm:$0xff] %v6958_v29 }
 0x219   : > { %v6960_v18 = vpop.permute.xlu1 %710  ;;  %v6962_v24 = vpop.permute.xlu0 %708 }
 0x21a   : > { %12022 = vst [vmem:[#allocation78_spill] sm:$0xff] %v6960_v18  ;;  %12023 = vst [vmem:[#allocation79_spill] sm:$0xff] %v6962_v24 }
 0x21d   : > { %v6964_v11 = vpop.permute.xlu1 %714  ;;  %v6966_v58 = vpop.permute.xlu0 %712 }
 0x21e   : > { %12024 = vst [vmem:[#allocation80_spill] sm:$0xff] %v6964_v11  ;;  %12025 = vst [vmem:[#allocation81_spill] sm:$0xff] %v6966_v58 }
 0x221   : > { %v6968_v14 = vpop.permute.xlu1 %718  ;;  %v6970_v61 = vpop.permute.xlu0 %716 }
 0x225   : > { %v6972_v54 = vpop.permute.xlu1 %722  ;;  %v6974_v0 = vpop.permute.xlu0 %720 }
 0x226   : > { %12026 = vst [vmem:[#allocation82_spill] sm:$0xff] %v6972_v54  ;;  %12027 = vst [vmem:[#allocation83_spill] sm:$0xff] %v6974_v0 }
 0x229   : > { %v6976_v57 = vpop.permute.xlu1 %726  ;;  %v6978_v33 = vpop.permute.xlu0 %724 }
 0x22a   : > { %12028 = vst [vmem:[#allocation84_spill] sm:$0xff] %v6978_v33 }
 0x22d   : > { %v6980_v29 = vpop.permute.xlu1 %730  ;;  %v6982_v18 = vpop.permute.xlu0 %728 }
 0x22e   : > { %12029 = vst [vmem:[#allocation85_spill] sm:$0xff] %v6980_v29  ;;  %12030 = vst [vmem:[#allocation86_spill] sm:$0xff] %v6982_v18 }
 0x23e   : > { %v6984_v24 = vpop.permute.xlu1 %762  ;;  %v6986_v11 = vpop.permute.xlu0 %758 }
 0x23f   : > { %12031 = vst [vmem:[#allocation87_spill] sm:$0xff] %v6984_v24  ;;  %12032 = vst [vmem:[#allocation88_spill] sm:$0xff] %v6986_v11  ;;  %v790_v58 = vmul.f32 %v6986_v11, %v6733_v50  ;;  %v789_v54 = vmul.f32 %v6986_v11, %v6737_v27  ;;  %v792_v0 = vmul.f32 %v6984_v24, %v6733_v50 }
 0x240   : > { %v791_v18 = vmul.f32 %v6984_v24, %v6737_v27 }
 0x241   : > { %823 = vrot.lane.b32.xlu0 %v790_v58, %s6360_s16  ;;  %821 = vrot.lane.b32.xlu1 %v789_v54, %s6360_s16 }
 0x242   : > { %v6998_v29 = vpop.permute.xlu1 %766  ;;  %v7006_v11 = vpop.permute.xlu0 %770 }
 0x243   : > { %12033 = vst [vmem:[#allocation89_spill] sm:$0xff] %v6998_v29  ;;  %v794_v33 = vmul.f32 %v6998_v29, %v6733_v50  ;;  %v793_v58 = vmul.f32 %v6998_v29, %v6737_v27  ;;  %12034 = vst [vmem:[#allocation90_spill] sm:$0xff] %v7006_v11  ;;  %v796_v54 = vmul.f32 %v7006_v11, %v6733_v50 }
 0x245   : > { %827 = vrot.lane.b32.xlu0 %v792_v0, %s6360_s16  ;;  %825 = vrot.lane.b32.xlu1 %v791_v18, %s6360_s16  ;;  %v795_v0 = vmul.f32 %v7006_v11, %v6737_v27 }
 0x246   : > { %v7014_v24 = vpop.permute.xlu1 %774  ;;  %v7022_v29 = vpop.permute.xlu0 %778 }
 0x247   : > { %12035 = vst [vmem:[#allocation91_spill] sm:$0xff] %v7014_v24  ;;  %v798_v18 = vmul.f32 %v7014_v24, %v6733_v50  ;;  %12036 = vst [vmem:[#allocation92_spill] sm:$0xff] %v7022_v29 }
 0x249   : > { %831 = vrot.lane.b32.xlu0 %v794_v33, %s6360_s16  ;;  %829 = vrot.lane.b32.xlu1 %v793_v58, %s6360_s16  ;;  %v797_v33 = vmul.f32 %v7014_v24, %v6737_v27  ;;  %v800_v58 = vmul.f32 %v7022_v29, %v6733_v50 }
 0x24a   : > { %v7030_v11 = vpop.permute.xlu1 %782  ;;  %v7038_v24 = vpop.permute.xlu0 %786 }
 0x24b   : > { %12037 = vst [vmem:[#allocation93_spill] sm:$0xff] %v7030_v11  ;;  %12038 = vst [vmem:[#allocation94_spill] sm:$0xff] %v7038_v24 }
 0x24d   : > { %835 = vrot.lane.b32.xlu0 %v796_v54, %s6360_s16  ;;  %833 = vrot.lane.b32.xlu1 %v795_v0, %s6360_s16  ;;  %v799_v54 = vmul.f32 %v7022_v29, %v6737_v27  ;;  %v802_v0 = vmul.f32 %v7030_v11, %v6733_v50 }
 0x251   : > { %839 = vrot.lane.b32.xlu0 %v798_v18, %s6360_s16  ;;  %837 = vrot.lane.b32.xlu1 %v797_v33, %s6360_s16  ;;  %v801_v18 = vmul.f32 %v7030_v11, %v6737_v27  ;;  %v804_v33 = vmul.f32 %v7038_v24, %v6733_v50 }
 0x255   : > { %843 = vrot.lane.b32.xlu0 %v800_v58, %s6360_s16  ;;  %841 = vrot.lane.b32.xlu1 %v799_v54, %s6360_s16  ;;  %v803_v58 = vmul.f32 %v7038_v24, %v6737_v27  ;;  %v7054_v54 = vrot.slane %v6561_v12, %v6577_v16  ;;  %v1122_v27 = vmul.f32 %v6585_v22, %v6692_v7 }
 0x257   : > { %12039 = vst [vmem:[#allocation95_spill] sm:$0xff] %v7054_v54  ;;  %v7058_v50 = vrot.slane %v7054_v54, %v6577_v16  ;;  %v302_v16 = vmul.f32 %v6659_v52, %v6636_v40 }
 0x259   : > { %847 = vrot.lane.b32.xlu0 %v802_v0, %s6360_s16  ;;  %845 = vrot.lane.b32.xlu1 %v801_v18, %s6360_s16  ;;  %v1125_v12 = vmul.f32 %v7058_v50, %v6708_v19  ;;  %v1127_v0 = vmul.f32 %v7058_v50, %v6716_v23  ;;  %v1124_v18 = vmul.f32 %v6585_v22, %v6700_v15 }
 0x25d   : > { %851 = vrot.lane.b32.xlu0 %v804_v33, %s6360_s16  ;;  %849 = vrot.lane.b32.xlu1 %v803_v58, %s6360_s16  ;;  %v1126_v33 = vmul.f32 %v6585_v22, %v6708_v19  ;;  %v1128_v58 = vmul.f32 %v6585_v22, %v6716_v23  ;;  %v343_v23 = vmul.f32 %v6722_v28, %v6642_v43 }
 0x25e   : > { %v300_v19 = vmul.f32 %v6659_v52, %v6626_v35  ;;  %v347_v35 = vmul.f32 %v6722_v28, %v6652_v48  ;;  %v474_v48 = vsel %vm473_vm0, %v6826_v17, %v6824_v10 }
 0x261   : > { %882 = vperm.xlu0 %5600, %v6530_v4   ;;  %878 = vperm.xlu1 %5599, %v6518_v2   ;;  %v1115_v4 = vmul.f32 %v7058_v50, %v6670_v56  ;;  %v1119_v2 = vmul.f32 %v7058_v50, %v6684_v62 }
 0x265   : > { %894 = vperm.xlu0 %5600, %v6542_v6   ;;  %886 = vperm.xlu1 %5599, %v6513_v1   ;;  %v1117_v1 = vmul.f32 %v7058_v50, %v6676_v59  ;;  %v1118_v6 = vmul.f32 %v6585_v22, %v6676_v59  ;;  %v346_v59 = vmul.f32 %v6722_v28, %v6650_v47 }
 0x266   : > { %v305_v47 = vmul.f32 %v6659_v52, %v6638_v41 }
 0x269   : > { %902 = vperm.xlu0 %5600, %v6554_v9   ;;  %890 = vperm.xlu1 %5599, %v6525_v3   ;;  %v1116_v3 = vmul.f32 %v6585_v22, %v6670_v56  ;;  %v1120_v9 = vmul.f32 %v6585_v22, %v6684_v62  ;;  %v345_v62 = vmul.f32 %v6722_v28, %v6648_v46 }
 0x26a   : > { %v301_v56 = vmul.f32 %v6659_v52, %v6630_v37  ;;  %v304_v46 = vmul.f32 %v6659_v52, %v6640_v42  ;;  %v349_v37 = vmul.f32 %v6722_v28, %v6661_v53  ;;  %v476_v42 = vsel %vm473_vm0, %v6834_v25, %v6832_v34 }
 0x26b   : > { %v613_v25 = vsel %vm473_vm0, %v6860_v30, %v6862_v63  ;;  %v12045_v30 = vld [vmem:[#allocation76_spill] sm:$0xff] }
 0x26d   : > { %1147 = vrot.lane.b32.xlu0 %v1115_v4, %s6359_s15  ;;  %898 = vperm.xlu1 %5599, %v6537_v5   ;;  %v1121_v5 = vmul.f32 %v7058_v50, %v6692_v7  ;;  %v299_v7 = vmul.f32 %v6659_v52, %v6632_v38  ;;  %v303_v38 = vmul.f32 %v6659_v52, %v6634_v39 }
 0x26e   : > { %v353_v39 = vadd.f32 %v345_v62, %v301_v56  ;;  %v12040_v56 = vld [vmem:[#allocation50_spill] sm:$0xff] }
 0x26f   : > { %v351_v40 = vadd.f32 %v343_v23, %v299_v7  ;;  %v12047_v62 = vld [vmem:[#allocation58_spill] sm:$0xff]  ;;  %v12048_v23 = vld [vmem:[#allocation57_spill] sm:$0xff] }
 0x270   : > { %v614_v63 = vsel %vm473_vm0, %v12048_v23, %v12047_v62  ;;  %v12062_v62 = vld [vmem:[#allocation64_spill] sm:$0xff]  ;;  %v12063_v23 = vld [vmem:[#allocation63_spill] sm:$0xff] }
 0x271   : > { %1151 = vrot.lane.b32.xlu0 %v1117_v1, %s6359_s15  ;;  %906 = vperm.xlu1 %5599, %v6549_v8   ;;  %v1123_v8 = vmul.f32 %v7058_v50, %v6700_v15  ;;  %v344_v15 = vmul.f32 %v6722_v28, %v6646_v45  ;;  %v348_v45 = vmul.f32 %v6722_v28, %v6656_v51 }
 0x272   : > { %v475_v51 = vsel %vm473_vm0, %v6830_v26, %v6828_v21 }
 0x273   : > { %v352_v54 = vadd.f32 %v344_v15, %v300_v19  ;;  %v356_v10 = vadd.f32 %v348_v45, %v304_v46  ;;  %v357_v15 = vadd.f32 %v349_v37, %v305_v47  ;;  %v612_v19 = vsel %vm473_vm0, %v6856_v20, %v6858_v13  ;;  %v12043_v37 = vld [vmem:[#allocation53_spill] sm:$0xff]  ;;  %v12044_v45 = vld [vmem:[#allocation54_spill] sm:$0xff] }
 0x274   : > { %v480_v46 = vsel %vm473_vm0, %v12044_v45, %v12043_v37  ;;  %v733_v47 = vsel %vm732_vm1, %v6954_v31, %v6952_v55  ;;  %v12049_v13 = vld [vmem:[#allocation62_spill] sm:$0xff]  ;;  %v12059_v45 = vld [vmem:[#allocation80_spill] sm:$0xff] }
 0x275   : > { %1155 = vrot.lane.b32.xlu0 %v1119_v2, %s6359_s15  ;;  %1149 = vrot.lane.b32.xlu1 %v1116_v3, %s6359_s15  ;;  %v492_v34 = vadd.f32 %v476_v42, %v352_v54  ;;  %v496_v31 = vadd.f32 %v480_v46, %v356_v10  ;;  %v12060_v46 = vld [vmem:[#allocation81_spill] sm:$0xff] }
 0x279   : > { %1159 = vrot.lane.b32.xlu0 %v1121_v5, %s6359_s15  ;;  %1153 = vrot.lane.b32.xlu1 %v1118_v6, %s6359_s15 }
 0x27d   : > { %1163 = vrot.lane.b32.xlu0 %v1123_v8, %s6359_s15  ;;  %1157 = vrot.lane.b32.xlu1 %v1120_v9, %s6359_s15 }
 0x281   : > { %1167 = vrot.lane.b32.xlu0 %v1125_v12, %s6359_s15  ;;  %1161 = vrot.lane.b32.xlu1 %v1122_v27, %s6359_s15 }
 0x285   : > { %1171 = vrot.lane.b32.xlu0 %v1127_v0, %s6359_s15  ;;  %1165 = vrot.lane.b32.xlu1 %v1124_v18, %s6359_s15  ;;  %v298_v0 = vmul.f32 %v6659_v52, %v6628_v36  ;;  %v354_v52 = vadd.f32 %v346_v59, %v302_v16  ;;  %v491_v16 = vadd.f32 %v475_v51, %v351_v40  ;;  %v12046_v40 = vld [vmem:[#allocation77_spill] sm:$0xff] }
 0x286   : > { %v478_v59 = vsel %vm473_vm0, %v12040_v56, %v6840_v60  ;;  %v734_v42 = vsel %vm732_vm1, %v12046_v40, %v12045_v30  ;;  %v12054_v56 = vld [vmem:[#allocation59_spill] sm:$0xff] }
 0x287   : > { %v629_v51 = vadd.f32 %v613_v25, %v491_v16  ;;  %v494_v17 = vadd.f32 %v478_v59, %v354_v52  ;;  %v630_v25 = vadd.f32 %v614_v63, %v492_v34  ;;  %v12053_v16 = vld [vmem:[#allocation60_spill] sm:$0xff]  ;;  %v12057_v34 = vld [vmem:[#allocation55_spill] sm:$0xff] }
 0x288   : > { %v615_v52 = vsel %vm473_vm0, %v12054_v56, %v12053_v16  ;;  %v12067_v56 = vld [vmem:[#allocation68_spill] sm:$0xff] }
 0x289   : > { %1169 = vrot.lane.b32.xlu1 %v1126_v33, %s6359_s15 }
 0x28d   : > { %1173 = vrot.lane.b32.xlu1 %v1128_v58, %s6359_s15  ;;  %v342_v58 = vmul.f32 %v6722_v28, %v6644_v44  ;;  %v477_v28 = vsel %vm473_vm0, %v6838_v32, %v6836_v49  ;;  %v12041_v32 = vld [vmem:[#allocation51_spill] sm:$0xff] }
 0x28f   : > { %v350_v43 = vadd.f32 %v342_v58, %v298_v0  ;;  %v355_v0 = vadd.f32 %v347_v35, %v303_v38  ;;  %v12042_v35 = vld [vmem:[#allocation52_spill] sm:$0xff]  ;;  %v750_v58 = vadd.f32 %v734_v42, %v629_v51 }
 0x290   : > { %v479_v38 = vsel %vm473_vm0, %v12042_v35, %v12041_v32  ;;  %v12058_v35 = vld [vmem:[#allocation56_spill] sm:$0xff] }
 0x291   : > { %v490_v7 = vadd.f32 %v474_v48, %v350_v43  ;;  %v493_v43 = vadd.f32 %v477_v28, %v353_v39  ;;  %v12050_v39 = vld [vmem:[#allocation61_spill] sm:$0xff]  ;;  %v495_v21 = vadd.f32 %v479_v38, %v355_v0  ;;  %v12051_v28 = vld [vmem:[#allocation78_spill] sm:$0xff]  ;;  %v481_v38 = vsel %vm473_vm0, %v12058_v35, %v12057_v34 }
 0x292   : > { %v616_v20 = vsel %vm473_vm0, %v12050_v39, %v12049_v13 }
 0x293   : > { %v628_v48 = vadd.f32 %v612_v19, %v490_v7  ;;  %v12052_v7 = vld [vmem:[#allocation79_spill] sm:$0xff]  ;;  %v632_v0 = vadd.f32 %v616_v20, %v494_v17  ;;  %v631_v51 = vadd.f32 %v615_v52, %v493_v43 }
 0x294   : > { %v735_v19 = vsel %vm732_vm1, %v12052_v7, %v12051_v28  ;;  %v12068_v52 = vld [vmem:[#allocation67_spill] sm:$0xff] }
 0x295   : > { %v749_v54 = vadd.f32 %v733_v47, %v628_v48  ;;  %v751_v37 = vadd.f32 %v735_v19, %v630_v25  ;;  %v736_v47 = vsel %vm732_vm1, %v12060_v46, %v12059_v45  ;;  %v497_v25 = vadd.f32 %v481_v38, %v357_v15 }
 0x296   : > { %v752_v17 = vadd.f32 %v736_v47, %v631_v51 }
 0x2b3   : > { %v822_v4 = vpop.permute.xlu1 %821  ;;  %v824_v1 = vpop.permute.xlu0 %823 }
 0x2b4   : > { %v853_v26 = vsel %vm732_vm1, %v822_v4, %v824_v1  ;;  %v737_v4 = vsel %vm732_vm1, %v6970_v61, %v6968_v14  ;;  %v12055_v1 = vld [vmem:[#allocation66_spill] sm:$0xff] }
 0x2b5   : > { %v869_v10 = vadd.f32 %v853_v26, %v749_v54  ;;  %v753_v40 = vadd.f32 %v737_v4, %v632_v0  ;;  %v12064_v26 = vld [vmem:[#allocation82_spill] sm:$0xff]  ;;  %v619_v0 = vsel %vm473_vm0, %v12068_v52, %v12067_v56 }
 0x2b6   : > { %v635_v45 = vadd.f32 %v619_v0, %v497_v25 }
 0x2b7   : > { %v826_v2 = vpop.permute.xlu1 %825  ;;  %v828_v3 = vpop.permute.xlu0 %827 }
 0x2b8   : > { %v854_v49 = vsel %vm732_vm1, %v826_v2, %v828_v3  ;;  %v12056_v2 = vld [vmem:[#allocation65_spill] sm:$0xff] }
 0x2b9   : > { %v618_v3 = vsel %vm473_vm0, %v12056_v2, %v12055_v1  ;;  %v870_v59 = vadd.f32 %v854_v49, %v750_v58  ;;  %v12065_v49 = vld [vmem:[#allocation83_spill] sm:$0xff] }
 0x2ba   : > { %v738_v43 = vsel %vm732_vm1, %v12065_v49, %v12064_v26 }
 0x2bb   : > { %v7106_v5 = vpop.permute.xlu1 %829  ;;  %v7108_v6 = vpop.permute.xlu0 %831 }
 0x2bc   : > { %v855_v32 = vsel %vm732_vm1, %v7106_v5, %v7108_v6  ;;  %v12061_v5 = vld [vmem:[#allocation84_spill] sm:$0xff] }
 0x2bd   : > { %v739_v6 = vsel %vm732_vm1, %v12061_v5, %v6976_v57  ;;  %v871_v63 = vadd.f32 %v855_v32, %v751_v37 }
 0x2bf   : > { %v7110_v8 = vpop.permute.xlu1 %833  ;;  %v7112_v9 = vpop.permute.xlu0 %835 }
 0x2c0   : > { %v856_v13 = vsel %vm732_vm1, %v7110_v8, %v7112_v9 }
 0x2c1   : > { %v872_v4 = vadd.f32 %v856_v13, %v752_v17 }
 0x2c3   : > { %v7114_v12 = vpop.permute.xlu1 %837  ;;  %v7116_v27 = vpop.permute.xlu0 %839 }
 0x2c4   : > { %v857_v14 = vsel %vm732_vm1, %v7114_v12, %v7116_v27  ;;  %v617_v12 = vsel %vm473_vm0, %v12063_v23, %v12062_v62  ;;  %v634_v27 = vadd.f32 %v618_v3, %v496_v31  ;;  %v12069_v3 = vld [vmem:[#allocation85_spill] sm:$0xff] }
 0x2c5   : > { %v873_v39 = vadd.f32 %v857_v14, %v753_v40  ;;  %v633_v16 = vadd.f32 %v617_v12, %v495_v21 }
 0x2c6   : > { %v755_v54 = vadd.f32 %v739_v6, %v634_v27 }
 0x2c7   : > { %v7120_v18 = vpop.permute.xlu1 %841  ;;  %v7122_v33 = vpop.permute.xlu0 %843  ;;  %v754_v2 = vadd.f32 %v738_v43, %v633_v16 }
 0x2c8   : > { %v858_v15 = vsel %vm732_vm1, %v7120_v18, %v7122_v33 }
 0x2c9   : > { %v874_v46 = vadd.f32 %v858_v15, %v754_v2 }
 0x2cb   : > { %v846_v41 = vpop.permute.xlu1 %845  ;;  %v848_v36 = vpop.permute.xlu0 %847 }
 0x2cc   : > { %v859_v58 = vsel %vm732_vm1, %v846_v41, %v848_v36 }
 0x2cd   : > { %v875_v36 = vadd.f32 %v859_v58, %v755_v54 }
 0x2cf   : > { %v7195_v60 = vpop.permute.xlu1 %849  ;;  %v7197_v55 = vpop.permute.xlu0 %851 }
 0x2d0   : > { %v860_v18 = vsel %vm732_vm1, %v7195_v60, %v7197_v55 }
 0x2e0   : > { %v7223_v61 = vpop.permute.xlu1 %878  ;;  %v7225_v30 = vpop.permute.xlu0 %882 }
 0x2e1   : > { %v7231_v42 = vadd.f32 %v7223_v61, %v869_v10  ;;  %v7234_v48 = vadd.f32 %v7225_v30, %v870_v59  ;;  %v12070_v10 = vld [vmem:[#allocation86_spill] sm:$0xff] }
 0x2e2   : > { %v740_v59 = vsel %vm732_vm1, %v12070_v10, %v12069_v3 }
 0x2e3   : > { %v917_v57 = vsub.f32 0.0, %v7231_v42  ;;  %v918_v20 = vsub.f32 0.0, %v7234_v48  ;;  %v756_v40 = vadd.f32 %v740_v59, %v635_v45 }
 0x2e4   : > { %v7248_v28 = vpop.permute.xlu1 %886  ;;  %v7250_v31 = vpop.permute.xlu0 %894 }
 0x2e5   : > { %12066 = vst [vmem:[#allocation50_spill] sm:$0xff] %v7250_v31  ;;  %v925_v7 = vmul.f32 1.442695, %v917_v57  ;;  %v927_v19 = vmul.f32 1.442695, %v918_v20  ;;  %v7253_v8 = vadd.f32 %v7248_v28, %v871_v63  ;;  %v7256_v9 = vadd.f32 %v7250_v31, %v873_v39 }
 0x2e6   : > { %v876_v62 = vadd.f32 %v860_v18, %v756_v40 }
 0x2e7   : > { %5763 = vpow2.f32 %v925_v7  ;;  %v919_v41 = vsub.f32 0.0, %v7253_v8  ;;  %v921_v1 = vsub.f32 0.0, %v7256_v9 }
 0x2e8   : > { %5765 = vpow2.f32 %v927_v19  ;;  %v7269_v21 = vpop.permute.xlu1 %890  ;;  %v7271_v32 = vpop.permute.xlu0 %902 }
 0x2e9   : > { %12071 = vst [vmem:[#allocation51_spill] sm:$0xff] %v7269_v21  ;;  %12072 = vst [vmem:[#allocation52_spill] sm:$0xff] %v7271_v32  ;;  %v929_v34 = vmul.f32 1.442695, %v919_v41  ;;  %v933_v35 = vmul.f32 1.442695, %v921_v1  ;;  %v912_v38 = vadd.f32 %v7269_v21, %v872_v4  ;;  %v7275_v37 = vadd.f32 %v7271_v32, %v875_v36 }
 0x2eb   : > { %5767 = vpow2.f32 %v929_v34  ;;  %v920_v47 = vsub.f32 0.0, %v912_v38  ;;  %v923_v14 = vsub.f32 0.0, %v7275_v37 }
 0x2ec   : > { %v7281_v33 = vpop.permute.xlu1 %898  ;;  %5769 = vpow2.f32 %v933_v35 }
 0x2ed   : > { %12073 = vst [vmem:[#allocation53_spill] sm:$0xff] %v7281_v33  ;;  %v931_v5 = vmul.f32 1.442695, %v920_v47  ;;  %v937_v6 = vmul.f32 1.442695, %v923_v14  ;;  %v914_v51 = vadd.f32 %v7281_v33, %v874_v46 }
 0x2ef   : > { %5771 = vpow2.f32 %v931_v5  ;;  %v922_v23 = vsub.f32 0.0, %v914_v51 }
 0x2f0   : > { %v7284_v12 = vpop.permute.xlu1 %906  ;;  %5773 = vpow2.f32 %v937_v6 }
 0x2f1   : > { %12074 = vst [vmem:[#allocation54_spill] sm:$0xff] %v7284_v12  ;;  %v5764_v27 = vpop.eup %5763  ;;  %v935_v63 = vmul.f32 1.442695, %v922_v23  ;;  %v916_v13 = vadd.f32 %v7284_v12, %v876_v62  ;;  %v12085_v62 = vld [vmem:[#allocation11_spill] sm:$0xff]  ;;  %v12123_v12 = vld [vmem:[#allocation26_spill] sm:$0xff] }
 0x2f2   : > { %v5766_v39 = vpop.eup %5765  ;;  %v941_v57 = vadd.f32 1.0, %v5764_v27  ;;  %v12086_v27 = vld [vmem:[#allocation41_spill] sm:$0xff]  ;;  %v1081_v32 = vmul.f32 %v12085_v62, %v12123_v12 }
 0x2f3   : > { %v942_v60 = vadd.f32 1.0, %v5766_v39  ;;  %5775 = vpow2.f32 %v935_v63  ;;  %v924_v55 = vsub.f32 0.0, %v916_v13  ;;  %v12087_v39 = vld [vmem:[#allocation42_spill] sm:$0xff] }
 0x2f4   : > { %5777 = vrcp.f32 %v941_v57 }
 0x2f5   : > { %v5768_v20 = vpop.eup %5767  ;;  %5779 = vrcp.f32 %v942_v60  ;;  %v939_v17 = vmul.f32 1.442695, %v924_v55  ;;  %v12088_v60 = vld [vmem:[#allocation15_spill] sm:$0xff] }
 0x2f6   : > { %v943_v26 = vadd.f32 1.0, %v5768_v20  ;;  %v5770_v49 = vpop.eup %5769  ;;  %v1222_v55 = vmul.f32 %v12088_v60, %v12086_v27  ;;  %v12089_v20 = vld [vmem:[#allocation43_spill] sm:$0xff] }
 0x2f7   : > { %5781 = vpow2.f32 %v939_v17  ;;  %v945_v54 = vadd.f32 1.0, %v5770_v49  ;;  %v12090_v49 = vld [vmem:[#allocation44_spill] sm:$0xff] }
 0x2f8   : > { %5783 = vrcp.f32 %v943_v26  ;;  %v1224_v26 = vmul.f32 %v12088_v60, %v12087_v39 }
 0x2f9   : > { %v5772_v43 = vpop.eup %5771 }
 0x2fa   : > { %v944_v58 = vadd.f32 1.0, %v5772_v43  ;;  %v5774_v7 = vpop.eup %5773 }
 0x2fb   : > { %v947_v16 = vadd.f32 1.0, %v5774_v7 }
 0x2fc   : > { %5785 = vrcp.f32 %v944_v58  ;;  %v12091_v58 = vld [vmem:[#allocation45_spill] sm:$0xff] }
 0x2fd   : > { %v5776_v19 = vpop.eup %5775  ;;  %5787 = vrcp.f32 %v945_v54  ;;  %v1226_v54 = vmul.f32 %v12088_v60, %v12089_v20 }
 0x2fe   : > { %v5778_v25 = vpop.eup %5777  ;;  %v946_v56 = vadd.f32 1.0, %v5776_v19  ;;  %v1228_v19 = vmul.f32 %v12088_v60, %v12090_v49 }
 0x2ff   : > { %v5780_v52 = vpop.eup %5779  ;;  %v7288_v0 = vmul.f32 %v5778_v25, %v7231_v42  ;;  %v12092_v25 = vld [vmem:[#allocation46_spill] sm:$0xff] }
 0x300   : > { %v7291_v4 = vmul.f32 %v5780_v52, %v7234_v48  ;;  %5789 = vrcp.f32 %v946_v56  ;;  %v1230_v56 = vmul.f32 %v12088_v60, %v12091_v58  ;;  %v12093_v52 = vld [vmem:[#allocation47_spill] sm:$0xff] }
 0x301   : > { %12075 = vst [vmem:[#allocation76_spill] sm:$0xff] %v7288_v0  ;;  %v5782_v36 = vpop.eup %5781  ;;  %5791 = vrcp.f32 %v947_v16 }
 0x302   : > { %12076 = vst [vmem:[#allocation77_spill] sm:$0xff] %v7291_v4  ;;  %v948_v41 = vadd.f32 1.0, %v5782_v36  ;;  %v5601_v1 = vpack.i.bf16 %v7291_v4, %v7288_v0  ;;  %v5784_v3 = vpop.eup %5783 }
 0x303   : > { %v7299_v10 = vmul.f32 %v5784_v3, %v7253_v8 }
 0x304   : > { %5793 = vrcp.f32 %v948_v41  ;;  %5602 = vrot.lane.b32.xlu0 %v5601_v1, %s6363_s8  ;;  %v1232_v41 = vmul.f32 %v12088_v60, %v12092_v25 }
 0x305   : > { %12077 = vst [vmem:[#allocation58_spill] sm:$0xff] %v7299_v10 }
 0x306   : > { %v5786_v42 = vpop.eup %5785 }
 0x307   : > { %v7301_v48 = vmul.f32 %v5786_v42, %v912_v38  ;;  %v5788_v59 = vpop.eup %5787  ;;  %v1234_v42 = vmul.f32 %v12088_v60, %v12093_v52 }
 0x308   : > { %v7308_v45 = vmul.f32 %v5788_v59, %v7256_v9  ;;  %v12095_v59 = vld [vmem:[#allocation49_spill] sm:$0xff] }
 0x309   : > { %12078 = vst [vmem:[#allocation57_spill] sm:$0xff] %v7301_v48  ;;  %v5606_v15 = vpack.i.bf16 %v7301_v48, %v7299_v10 }
 0x30a   : > { %v5790_v35 = vpop.eup %5789  ;;  %12079 = vst [vmem:[#allocation62_spill] sm:$0xff] %v7308_v45 }
 0x30b   : > { %v7310_v46 = vmul.f32 %v5790_v35, %v914_v51  ;;  %5607 = vrot.lane.b32.xlu1 %v5606_v15, %s6363_s8  ;;  %v5792_v47 = vpop.eup %5791  ;;  %v12084_v51 = vld [vmem:[#allocation10_spill] sm:$0xff] }
 0x30c   : > { %v7318_v40 = vmul.f32 %v5792_v47, %v7275_v37  ;;  %v12083_v37 = vld [vmem:[#allocation40_spill] sm:$0xff]  ;;  %v7335_v23 = vrot.slane %v12085_v62, %v12084_v51  ;;  %v12096_v47 = vld [vmem:[#allocation70_spill] sm:$0xff] }
 0x30d   : > { %12080 = vst [vmem:[#allocation61_spill] sm:$0xff] %v7310_v46  ;;  %v5611_v8 = vpack.i.bf16 %v7310_v46, %v7308_v45  ;;  %v1129_v6 = vmul.f32 %v7058_v50, %v12083_v37 }
 0x30e   : > { %v5794_v14 = vpop.eup %5793  ;;  %12081 = vst [vmem:[#allocation78_spill] sm:$0xff] %v7318_v40  ;;  %v1221_v63 = vmul.f32 %v7335_v23, %v12086_v27  ;;  %v1223_v57 = vmul.f32 %v7335_v23, %v12087_v39  ;;  %v1225_v17 = vmul.f32 %v7335_v23, %v12089_v20  ;;  %v1227_v43 = vmul.f32 %v7335_v23, %v12090_v49  ;;  %v12120_v49 = vld [vmem:[#allocation95_spill] sm:$0xff] }
 0x30f   : > { %v7320_v18 = vmul.f32 %v5794_v14, %v916_v13  ;;  %5612 = vrot.lane.b32.xlu0 %v5611_v8, %s6363_s8  ;;  %v1130_v13 = vmul.f32 %v6585_v22, %v12083_v37  ;;  %v1229_v7 = vmul.f32 %v7335_v23, %v12091_v58  ;;  %v1231_v16 = vmul.f32 %v7335_v23, %v12092_v25  ;;  %v12119_v58 = vld [vmem:[#allocation19_spill] sm:$0xff] }
 0x310   : > { %v1233_v36 = vmul.f32 %v7335_v23, %v12093_v52  ;;  %v1310_v14 = vmul.f32 %v6585_v22, %v12095_v59  ;;  %v1407_v38 = vmul.f32 %v7335_v23, %v7022_v29  ;;  %v1409_v34 = vmul.f32 %v7335_v23, %v7030_v11 }
 0x311   : > { %12082 = vst [vmem:[#allocation79_spill] sm:$0xff] %v7320_v18  ;;  %v5616_v9 = vpack.i.bf16 %v7320_v18, %v7318_v40  ;;  %v1411_v40 = vmul.f32 %v7335_v23, %v7038_v24  ;;  %v1080_v25 = vmul.f32 %v12085_v62, %v6644_v44  ;;  %v1068_v20 = vmul.f32 %v12120_v49, %v12119_v58 }
 0x313   : > { %5622 = vrot.lane.b32.xlu0 %v5601_v1, %s6359_s15  ;;  %5617 = vrot.lane.b32.xlu1 %v5616_v9, %s6363_s8  ;;  %v12094_v1 = vld [vmem:[#allocation48_spill] sm:$0xff]  ;;  %v1088_v51 = vadd.f32 %v1080_v25, %v1068_v20 }
 0x314   : > { %v1235_v3 = vmul.f32 %v7335_v23, %v12094_v1  ;;  %v1236_v35 = vmul.f32 %v12088_v60, %v12094_v1  ;;  %v12126_v20 = vld [vmem:[#allocation28_spill] sm:$0xff] }
 0x315   : > { %v1082_v25 = vmul.f32 %v12085_v62, %v12126_v20 }
 0x317   : > { %5632 = vrot.lane.b32.xlu0 %v5611_v8, %s6359_s15  ;;  %5627 = vrot.lane.b32.xlu1 %v5606_v15, %s6359_s15  ;;  %v1309_v15 = vmul.f32 %v7058_v50, %v12095_v59  ;;  %v1311_v8 = vmul.f32 %v7058_v50, %v12096_v47 }
 0x31b   : > { %1175 = vrot.lane.b32.xlu0 %v1129_v6, %s6359_s15  ;;  %5637 = vrot.lane.b32.xlu1 %v5616_v9, %s6359_s15  ;;  %v12097_v9 = vld [vmem:[#allocation69_spill] sm:$0xff] }
 0x31c   : > { %v1313_v6 = vmul.f32 %v7058_v50, %v12097_v9 }
 0x31f   : > { %1253 = vrot.lane.b32.xlu0 %v1221_v63, %s6359_s15  ;;  %1177 = vrot.lane.b32.xlu1 %v1130_v13, %s6359_s15  ;;  %v1312_v63 = vmul.f32 %v6585_v22, %v12096_v47  ;;  %v12098_v13 = vld [vmem:[#allocation71_spill] sm:$0xff] }
 0x323   : > { %1257 = vrot.lane.b32.xlu0 %v1223_v57, %s6359_s15  ;;  %1255 = vrot.lane.b32.xlu1 %v1222_v55, %s6359_s15  ;;  %v1315_v57 = vmul.f32 %v7058_v50, %v12098_v13  ;;  %v1314_v55 = vmul.f32 %v6585_v22, %v12097_v9 }
 0x327   : > { %1261 = vrot.lane.b32.xlu0 %v1225_v17, %s6359_s15  ;;  %1259 = vrot.lane.b32.xlu1 %v1224_v26, %s6359_s15  ;;  %v12099_v17 = vld [vmem:[#allocation72_spill] sm:$0xff] }
 0x328   : > { %v1317_v26 = vmul.f32 %v7058_v50, %v12099_v17 }
 0x32b   : > { %1265 = vrot.lane.b32.xlu0 %v1227_v43, %s6359_s15  ;;  %1263 = vrot.lane.b32.xlu1 %v1226_v54, %s6359_s15  ;;  %v1316_v43 = vmul.f32 %v6585_v22, %v12098_v13  ;;  %v12100_v54 = vld [vmem:[#allocation73_spill] sm:$0xff] }
 0x32f   : > { %1269 = vrot.lane.b32.xlu0 %v1229_v7, %s6359_s15  ;;  %1267 = vrot.lane.b32.xlu1 %v1228_v19, %s6359_s15  ;;  %v1319_v7 = vmul.f32 %v7058_v50, %v12100_v54  ;;  %v1318_v19 = vmul.f32 %v6585_v22, %v12099_v17 }
 0x333   : > { %1273 = vrot.lane.b32.xlu0 %v1231_v16, %s6359_s15  ;;  %1271 = vrot.lane.b32.xlu1 %v1230_v56, %s6359_s15  ;;  %v7423_v16 = vpop.permute.xlu0 %1147  ;;  %v12101_v56 = vld [vmem:[#allocation74_spill] sm:$0xff] }
 0x337   : > { %1277 = vrot.lane.b32.xlu0 %v1233_v36, %s6359_s15  ;;  %1275 = vrot.lane.b32.xlu1 %v1232_v41, %s6359_s15  ;;  %v1321_v36 = vmul.f32 %v7058_v50, %v12101_v56  ;;  %v1320_v41 = vmul.f32 %v6585_v22, %v12100_v54 }
 0x33b   : > { %1281 = vrot.lane.b32.xlu0 %v1235_v3, %s6359_s15  ;;  %1279 = vrot.lane.b32.xlu1 %v1234_v42, %s6359_s15  ;;  %v7431_v3 = vpop.permute.xlu1 %1149  ;;  %v12102_v42 = vld [vmem:[#allocation75_spill] sm:$0xff] }
 0x33c   : > { %v1179_v37 = vsel %vm473_vm0, %v7423_v16, %v7431_v3 }
 0x33f   : > { %1341 = vrot.lane.b32.xlu0 %v1309_v15, %s6360_s16  ;;  %1283 = vrot.lane.b32.xlu1 %v1236_v35, %s6359_s15  ;;  %v1323_v15 = vmul.f32 %v7058_v50, %v12102_v42  ;;  %v1322_v35 = vmul.f32 %v6585_v22, %v12101_v56 }
 0x343   : > { %1345 = vrot.lane.b32.xlu0 %v1311_v8, %s6360_s16  ;;  %1343 = vrot.lane.b32.xlu1 %v1310_v14, %s6360_s16  ;;  %v7437_v8 = vpop.permute.xlu0 %1151  ;;  %v12103_v14 = vld [vmem:[#allocation88_spill] sm:$0xff] }
 0x347   : > { %1349 = vrot.lane.b32.xlu0 %v1313_v6, %s6360_s16  ;;  %1347 = vrot.lane.b32.xlu1 %v1312_v63, %s6360_s16  ;;  %v1397_v6 = vmul.f32 %v7335_v23, %v12103_v14  ;;  %v1324_v63 = vmul.f32 %v6585_v22, %v12102_v42  ;;  %v7449_v50 = vpop.permute.xlu0 %1155  ;;  %v12105_v22 = vld [vmem:[#allocation89_spill] sm:$0xff] }
 0x34b   : > { %1353 = vrot.lane.b32.xlu0 %v1315_v57, %s6360_s16  ;;  %1351 = vrot.lane.b32.xlu1 %v1314_v55, %s6360_s16  ;;  %v7445_v57 = vpop.permute.xlu1 %1153  ;;  %v12104_v55 = vld [vmem:[#allocation87_spill] sm:$0xff] }
 0x34f   : > { %1357 = vrot.lane.b32.xlu0 %v1317_v26, %s6360_s16  ;;  %1355 = vrot.lane.b32.xlu1 %v1316_v43, %s6360_s16  ;;  %v1399_v26 = vmul.f32 %v7335_v23, %v12104_v55  ;;  %v1398_v43 = vmul.f32 %v12088_v60, %v12103_v14 }
 0x353   : > { %1361 = vrot.lane.b32.xlu0 %v1319_v7, %s6360_s16  ;;  %1359 = vrot.lane.b32.xlu1 %v1318_v19, %s6360_s16  ;;  %v7457_v7 = vpop.permute.xlu1 %1157  ;;  %v1401_v19 = vmul.f32 %v7335_v23, %v12105_v22 }
 0x357   : > { %1365 = vrot.lane.b32.xlu0 %v1321_v36, %s6360_s16  ;;  %1363 = vrot.lane.b32.xlu1 %v1320_v41, %s6360_s16  ;;  %v1400_v36 = vmul.f32 %v12088_v60, %v12104_v55  ;;  %v7463_v41 = vpop.permute.xlu0 %1159 }
 0x35b   : > { %1369 = vrot.lane.b32.xlu0 %v1323_v15, %s6360_s16  ;;  %1367 = vrot.lane.b32.xlu1 %v1322_v35, %s6360_s16  ;;  %v12106_v15 = vld [vmem:[#allocation90_spill] sm:$0xff] }
 0x35c   : > { %v1403_v35 = vmul.f32 %v7335_v23, %v12106_v15 }
 0x35f   : > { %1429 = vrot.lane.b32.xlu0 %v1397_v6, %s6360_s16  ;;  %1371 = vrot.lane.b32.xlu1 %v1324_v63, %s6360_s16  ;;  %v1402_v6 = vmul.f32 %v12088_v60, %v12105_v22  ;;  %v7471_v63 = vpop.permute.xlu1 %1161 }
 0x363   : > { %1433 = vrot.lane.b32.xlu0 %v1399_v26, %s6360_s16  ;;  %1431 = vrot.lane.b32.xlu1 %v1398_v43, %s6360_s16  ;;  %v7475_v26 = vpop.permute.xlu0 %1163  ;;  %v12107_v43 = vld [vmem:[#allocation91_spill] sm:$0xff] }
 0x364   : > { %v1405_v5 = vmul.f32 %v7335_v23, %v12107_v43 }
 0x367   : > { %1437 = vrot.lane.b32.xlu0 %v1401_v19, %s6360_s16  ;;  %1435 = vrot.lane.b32.xlu1 %v1400_v36, %s6360_s16  ;;  %v1404_v19 = vmul.f32 %v12088_v60, %v12106_v15  ;;  %v7483_v36 = vpop.permute.xlu1 %1165 }
 0x36b   : > { %1441 = vrot.lane.b32.xlu0 %v1403_v35, %s6360_s16  ;;  %1439 = vrot.lane.b32.xlu1 %v1402_v6, %s6360_s16  ;;  %v1406_v35 = vmul.f32 %v12088_v60, %v12107_v43  ;;  %v7489_v6 = vpop.permute.xlu0 %1167 }
 0x36f   : > { %1445 = vrot.lane.b32.xlu0 %v1405_v5, %s6360_s16  ;;  %1443 = vrot.lane.b32.xlu1 %v1404_v19, %s6360_s16  ;;  %v1408_v5 = vmul.f32 %v12088_v60, %v7022_v29  ;;  %v7497_v19 = vpop.permute.xlu1 %1169  ;;  %v7501_v2 = vpop.permute.xlu0 %1171 }
 0x373   : > { %1449 = vrot.lane.b32.xlu0 %v1407_v38, %s6360_s16  ;;  %1447 = vrot.lane.b32.xlu1 %v1406_v35, %s6360_s16  ;;  %v1410_v38 = vmul.f32 %v12088_v60, %v7030_v11  ;;  %v7509_v35 = vpop.permute.xlu1 %1173 }
 0x376   : > { %v7511_v18 = vpop.permute.xlu0 %5602 }
 0x377   : > { %1453 = vrot.lane.b32.xlu0 %v1409_v34, %s6360_s16  ;;  %1451 = vrot.lane.b32.xlu1 %v1408_v5, %s6360_s16  ;;  %12108 = vst [vmem:[#allocation60_spill] sm:$0xff] %v7511_v18  ;;  %v1412_v34 = vmul.f32 %v12088_v60, %v7038_v24 }
 0x37b   : > { %1457 = vrot.lane.b32.xlu0 %v1411_v40, %s6360_s16  ;;  %1455 = vrot.lane.b32.xlu1 %v1410_v38, %s6360_s16 }
 0x37d   : > { %v7516_v5 = vpop.permute.xlu1 %5607 }
 0x37e   : > { %12109 = vst [vmem:[#allocation59_spill] sm:$0xff] %v7516_v5 }
 0x37f   : > { %1459 = vrot.lane.b32.xlu1 %v1412_v34, %s6360_s16 }
 0x381   : > { %v7518_v45 = vpop.permute.xlu0 %5612 }
 0x382   : > { %12110 = vst [vmem:[#allocation66_spill] sm:$0xff] %v7518_v45 }
 0x385   : > { %v7520_v23 = vpop.permute.xlu1 %5617  ;;  %v7522_v46 = vpop.permute.xlu0 %5622 }
 0x386   : > { %12111 = vst [vmem:[#allocation65_spill] sm:$0xff] %v7520_v23  ;;  %12112 = vst [vmem:[#allocation55_spill] sm:$0xff] %v7522_v46 }
 0x389   : > { %v7524_v40 = vpop.permute.xlu1 %5627  ;;  %v7526_v38 = vpop.permute.xlu0 %5632 }
 0x38a   : > { %12113 = vst [vmem:[#allocation56_spill] sm:$0xff] %v7524_v40  ;;  %12114 = vst [vmem:[#allocation80_spill] sm:$0xff] %v7526_v38 }
 0x38d   : > { %v7528_v10 = vpop.permute.xlu1 %5637  ;;  %v7530_v48 = vpop.permute.xlu0 %1175 }
 0x38e   : > { %12115 = vst [vmem:[#allocation81_spill] sm:$0xff] %v7528_v10 }
 0x391   : > { %v7532_v0 = vpop.permute.xlu1 %1177  ;;  %v1254_v60 = vpop.permute.xlu0 %1253 }
 0x395   : > { %v1256_v34 = vpop.permute.xlu1 %1255  ;;  %v1258_v24 = vpop.permute.xlu0 %1257 }
 0x396   : > { %v1285_v33 = vsel %vm473_vm0, %v1254_v60, %v1256_v34 }
 0x399   : > { %v1260_v4 = vpop.permute.xlu1 %1259  ;;  %v1262_v11 = vpop.permute.xlu0 %1261 }
 0x39a   : > { %v1286_v60 = vsel %vm473_vm0, %v1258_v24, %v1260_v4 }
 0x39d   : > { %v1264_v29 = vpop.permute.xlu1 %1263  ;;  %v7534_v43 = vpop.permute.xlu0 %1265 }
 0x3a1   : > { %v7536_v23 = vpop.permute.xlu1 %1267  ;;  %v7538_v46 = vpop.permute.xlu0 %1269 }
 0x3a5   : > { %v7540_v40 = vpop.permute.xlu1 %1271  ;;  %v7542_v38 = vpop.permute.xlu0 %1273 }
 0x3a9   : > { %v7544_v10 = vpop.permute.xlu1 %1275  ;;  %v7546_v15 = vpop.permute.xlu0 %1277 }
 0x3ad   : > { %v7548_v45 = vpop.permute.xlu1 %1279  ;;  %v7550_v22 = vpop.permute.xlu0 %1281 }
 0x3ae   : > { %12116 = vst [vmem:[#allocation84_spill] sm:$0xff] %v7550_v22  ;;  %v1195_v22 = vadd.f32 %v1179_v37, %v1088_v51  ;;  %v12127_v51 = vld [vmem:[#allocation18_spill] sm:$0xff] }
 0x3af   : > { %v1070_v34 = vmul.f32 %v12120_v49, %v12127_v51 }
 0x3b0   : > { %v1301_v3 = vadd.f32 %v1285_v33, %v1195_v22 }
 0x3b1   : > { %v7552_v55 = vpop.permute.xlu1 %1283  ;;  %v1342_v5 = vpop.permute.xlu0 %1341 }
 0x3b2   : > { %12117 = vst [vmem:[#allocation64_spill] sm:$0xff] %v7552_v55  ;;  %v12124_v55 = vld [vmem:[#allocation21_spill] sm:$0xff] }
 0x3b3   : > { %v1069_v44 = vmul.f32 %v12120_v49, %v12124_v55 }
 0x3b5   : > { %v1344_v14 = vpop.permute.xlu1 %1343  ;;  %v1346_v42 = vpop.permute.xlu0 %1345  ;;  %v1089_v16 = vadd.f32 %v1081_v32, %v1069_v44  ;;  %v1090_v32 = vadd.f32 %v1082_v25, %v1070_v34 }
 0x3b9   : > { %v1348_v18 = vpop.permute.xlu1 %1347  ;;  %v1350_v56 = vpop.permute.xlu0 %1349 }
 0x3bd   : > { %v1352_v54 = vpop.permute.xlu1 %1351  ;;  %v7554_v17 = vpop.permute.xlu0 %1353 }
 0x3c1   : > { %v7556_v13 = vpop.permute.xlu1 %1355  ;;  %v7558_v9 = vpop.permute.xlu0 %1357 }
 0x3c5   : > { %v7560_v47 = vpop.permute.xlu1 %1359  ;;  %v7562_v59 = vpop.permute.xlu0 %1361 }
 0x3c9   : > { %v7564_v1 = vpop.permute.xlu1 %1363  ;;  %v7566_v52 = vpop.permute.xlu0 %1365 }
 0x3ca   : > { %12118 = vst [vmem:[#allocation63_spill] sm:$0xff] %v7566_v52 }
 0x3cd   : > { %v7572_v39 = vpop.permute.xlu1 %1367  ;;  %v7574_v27 = vpop.permute.xlu0 %1369 }
 0x3ce   : > { %12121 = vst [vmem:[#allocation82_spill] sm:$0xff] %v7572_v39  ;;  %12122 = vst [vmem:[#allocation83_spill] sm:$0xff] %v7574_v27  ;;  %v1180_v27 = vsel %vm473_vm0, %v7437_v8, %v7445_v57  ;;  %v1373_v39 = vsel %vm732_vm1, %v1342_v5, %v1344_v14  ;;  %v1181_v8 = vsel %vm473_vm0, %v7449_v50, %v7457_v7  ;;  %v12128_v57 = vld [vmem:[#allocation29_spill] sm:$0xff] }
 0x3cf   : > { %v1196_v37 = vadd.f32 %v1180_v27, %v1089_v16  ;;  %v1389_v55 = vadd.f32 %v1373_v39, %v1301_v3  ;;  %v1374_v14 = vsel %vm732_vm1, %v1346_v42, %v1348_v18  ;;  %v1083_v33 = vmul.f32 %v12085_v62, %v12128_v57  ;;  %v12129_v39 = vld [vmem:[#allocation20_spill] sm:$0xff] }
 0x3d0   : > { %v1287_v27 = vsel %vm473_vm0, %v1262_v11, %v1264_v29  ;;  %v1197_v22 = vadd.f32 %v1181_v8, %v1090_v32  ;;  %v1071_v5 = vmul.f32 %v12120_v49, %v12129_v39  ;;  %v12132_v8 = vld [vmem:[#allocation22_spill] sm:$0xff] }
 0x3d1   : > { %v7584_v52 = vpop.permute.xlu1 %1371  ;;  %v1430_v58 = vpop.permute.xlu0 %1429  ;;  %v1302_v24 = vadd.f32 %v1286_v60, %v1196_v37  ;;  %v12131_v37 = vld [vmem:[#allocation23_spill] sm:$0xff] }
 0x3d2   : > { %12125 = vst [vmem:[#allocation68_spill] sm:$0xff] %v7584_v52  ;;  %v1091_v29 = vadd.f32 %v1083_v33, %v1071_v5  ;;  %v1303_v7 = vadd.f32 %v1287_v27, %v1197_v22  ;;  %v1072_v34 = vmul.f32 %v12120_v49, %v12131_v37  ;;  %v1183_v27 = vsel %vm473_vm0, %v7475_v26, %v7483_v36 }
 0x3d3   : > { %v1390_v16 = vadd.f32 %v1374_v14, %v1302_v24  ;;  %v1073_v14 = vmul.f32 %v12120_v49, %v12132_v8  ;;  %v1376_v22 = vsel %vm732_vm1, %v7554_v17, %v7556_v13  ;;  %v1184_v17 = vsel %vm473_vm0, %v7489_v6, %v7497_v19 }
 0x3d4   : > { %v1087_v19 = vmul.f32 %v12085_v62, %v6661_v53 }
 0x3d5   : > { %v1432_v12 = vpop.permute.xlu1 %1431  ;;  %v1434_v52 = vpop.permute.xlu0 %1433 }
 0x3d6   : > { %v1461_v44 = vsel %vm732_vm1, %v1430_v58, %v1432_v12  ;;  %v1182_v12 = vsel %vm473_vm0, %v7463_v41, %v7471_v63  ;;  %v12130_v58 = vld [vmem:[#allocation30_spill] sm:$0xff] }
 0x3d7   : > { %v1477_v4 = vadd.f32 %v1461_v44, %v1389_v55  ;;  %v1084_v42 = vmul.f32 %v12085_v62, %v12130_v58  ;;  %v1375_v55 = vsel %vm732_vm1, %v1350_v56, %v1352_v54  ;;  %v12133_v44 = vld [vmem:[#allocation31_spill] sm:$0xff]  ;;  %v1288_v54 = vsel %vm473_vm0, %v7534_v43, %v7536_v23 }
 0x3d8   : > { %v1085_v41 = vmul.f32 %v12085_v62, %v12133_v44  ;;  %v1198_v56 = vadd.f32 %v1182_v12, %v1091_v29  ;;  %v1289_v12 = vsel %vm473_vm0, %v7538_v46, %v7540_v40 }
 0x3d9   : > { %v7606_v3 = vadd.f32 %v1477_v4, %v7223_v61  ;;  %v1436_v50 = vpop.permute.xlu1 %1435  ;;  %v1438_v18 = vpop.permute.xlu0 %1437  ;;  %v1092_v4 = vadd.f32 %v1084_v42, %v1072_v34  ;;  %v12135_v34 = vld [vmem:[#allocation25_spill] sm:$0xff] }
 0x3da   : > { %v1462_v11 = vsel %vm732_vm1, %v1434_v52, %v1436_v50  ;;  %v1391_v52 = vadd.f32 %v1375_v55, %v1303_v7  ;;  %v1304_v43 = vadd.f32 %v1288_v54, %v1198_v56  ;;  %v1093_v50 = vadd.f32 %v1085_v41, %v1073_v14  ;;  %v12136_v41 = vld [vmem:[#allocation24_spill] sm:$0xff] }
 0x3db   : > { %v1493_v25 = vsub.f32 0.0, %v7606_v3  ;;  %v1478_v60 = vadd.f32 %v1462_v11, %v1390_v16  ;;  %v1199_v42 = vadd.f32 %v1183_v27, %v1092_v4  ;;  %v1377_v7 = vsel %vm732_vm1, %v7558_v9, %v7560_v47 }
 0x3dc   : > { %v1392_v55 = vadd.f32 %v1376_v22, %v1304_v43  ;;  %v1074_v14 = vmul.f32 %v12120_v49, %v12135_v34  ;;  %v1075_v6 = vmul.f32 %v12120_v49, %v12136_v41  ;;  %v1290_v47 = vsel %vm473_vm0, %v7542_v38, %v7544_v10 }
 0x3dd   : > { %v1501_v63 = vmul.f32 1.442695, %v1493_v25  ;;  %v7626_v32 = vadd.f32 %v1478_v60, %v7225_v30  ;;  %v1440_v33 = vpop.permute.xlu1 %1439  ;;  %v1442_v24 = vpop.permute.xlu0 %1441  ;;  %v1305_v40 = vadd.f32 %v1289_v12, %v1199_v42  ;;  %v1200_v9 = vadd.f32 %v1184_v17, %v1093_v50  ;;  %v12137_v50 = vld [vmem:[#allocation82_spill] sm:$0xff]  ;;  %v12138_v12 = vld [vmem:[#allocation63_spill] sm:$0xff]  ;;  %v12139_v17 = vld [vmem:[#allocation64_spill] sm:$0xff] }
 0x3de   : > { %v1463_v5 = vsel %vm732_vm1, %v1438_v18, %v1440_v33  ;;  %v12134_v18 = vld [vmem:[#allocation32_spill] sm:$0xff]  ;;  %v1185_v49 = vsel %vm473_vm0, %v7501_v2, %v7509_v35  ;;  %v1095_v22 = vadd.f32 %v1087_v19, %v1075_v6  ;;  %v1379_v42 = vsel %vm732_vm1, %v12138_v12, %v12137_v50  ;;  %v12143_v19 = vld [vmem:[#allocation83_spill] sm:$0xff] }
 0x3df   : > { %5795 = vpow2.f32 %v1501_v63  ;;  %v1494_v23 = vsub.f32 0.0, %v7626_v32  ;;  %v1479_v16 = vadd.f32 %v1463_v5, %v1391_v52  ;;  %v1086_v29 = vmul.f32 %v12085_v62, %v12134_v18  ;;  %v12142_v6 = vld [vmem:[#allocation68_spill] sm:$0xff] }
 0x3e0   : > { %v1393_v54 = vadd.f32 %v1377_v7, %v1305_v40  ;;  %v1378_v62 = vsel %vm732_vm1, %v7562_v59, %v7564_v1  ;;  %v1306_v10 = vadd.f32 %v1290_v47, %v1200_v9  ;;  %v1291_v5 = vsel %vm473_vm0, %v7546_v15, %v7548_v45 }
 0x3e1   : > { %v1503_v11 = vmul.f32 1.442695, %v1494_v23  ;;  %v7640_v26 = vadd.f32 %v1479_v16, %v7248_v28  ;;  %v1444_v36 = vpop.permute.xlu1 %1443  ;;  %v1446_v13 = vpop.permute.xlu0 %1445  ;;  %v1186_v59 = vsel %vm473_vm0, %v7530_v48, %v7532_v0  ;;  %v1380_v47 = vsel %vm732_vm1, %v12143_v19, %v12142_v6 }
 0x3e2   : > { %v1464_v46 = vsel %vm732_vm1, %v1442_v24, %v1444_v36  ;;  %v1094_v24 = vadd.f32 %v1086_v29, %v1074_v14  ;;  %v1394_v16 = vadd.f32 %v1378_v62, %v1306_v10  ;;  %v12140_v29 = vld [vmem:[#allocation84_spill] sm:$0xff]  ;;  %v1202_v40 = vadd.f32 %v1186_v59, %v1095_v22 }
 0x3e3   : > { %5797 = vpow2.f32 %v1503_v11  ;;  %v1495_v25 = vsub.f32 0.0, %v7640_v26  ;;  %v1480_v60 = vadd.f32 %v1464_v46, %v1392_v55  ;;  %v1292_v7 = vsel %vm473_vm0, %v12140_v29, %v12139_v17 }
 0x3e4   : > { %v1201_v23 = vadd.f32 %v1185_v49, %v1094_v24 }
 0x3e5   : > { %v1505_v56 = vmul.f32 1.442695, %v1495_v25  ;;  %v7662_v52 = vadd.f32 %v1480_v60, %v7269_v21  ;;  %v1448_v63 = vpop.permute.xlu1 %1447  ;;  %v1450_v33 = vpop.permute.xlu0 %1449  ;;  %v12141_v25 = vld [vmem:[#allocation53_spill] sm:$0xff] }
 0x3e6   : > { %v1465_v4 = vsel %vm732_vm1, %v1446_v13, %v1448_v63  ;;  %v1307_v45 = vadd.f32 %v1291_v5, %v1201_v23  ;;  %v12230_v21 = vld [vmem:[#allocation21_spill] sm:$0xff] }
 0x3e7   : > { %5799 = vpow2.f32 %v1505_v56  ;;  %v1496_v38 = vsub.f32 0.0, %v7662_v52  ;;  %v1481_v27 = vadd.f32 %v1465_v4, %v1393_v54  ;;  %v1308_v56 = vadd.f32 %v1292_v7, %v1202_v40  ;;  %v12144_v4 = vld [vmem:[#allocation52_spill] sm:$0xff] }
 0x3e8   : > { %v1395_v0 = vadd.f32 %v1379_v42, %v1307_v45 }
 0x3e9   : > { %v5796_v43 = vpop.eup %5795  ;;  %v1507_v2 = vmul.f32 1.442695, %v1496_v38  ;;  %v7676_v35 = vadd.f32 %v1481_v27, %v7250_v31  ;;  %v1452_v1 = vpop.permute.xlu1 %1451  ;;  %v1396_v49 = vadd.f32 %v1380_v47, %v1308_v56 }
 0x3ea   : > { %v1517_v55 = vadd.f32 1.0, %v5796_v43  ;;  %v1466_v11 = vsel %vm732_vm1, %v1450_v33, %v1452_v1  ;;  %v1454_v13 = vpop.permute.xlu0 %1453  ;;  %v12145_v1 = vld [vmem:[#allocation54_spill] sm:$0xff] }
 0x3eb   : > { %5801 = vpow2.f32 %v1507_v2  ;;  %v1497_v15 = vsub.f32 0.0, %v7676_v35  ;;  %v1482_v36 = vadd.f32 %v1466_v11, %v1394_v16 }
 0x3ec   : > { %5803 = vrcp.f32 %v1517_v55 }
 0x3ed   : > { %v5798_v46 = vpop.eup %5797  ;;  %v1509_v48 = vmul.f32 1.442695, %v1497_v15  ;;  %v1490_v60 = vadd.f32 %v1482_v36, %v12141_v25  ;;  %v1456_v14 = vpop.permute.xlu1 %1455 }
 0x3ee   : > { %v1518_v9 = vadd.f32 1.0, %v5798_v46  ;;  %v1467_v54 = vsel %vm732_vm1, %v1454_v13, %v1456_v14  ;;  %v1458_v38 = vpop.permute.xlu0 %1457 }
 0x3ef   : > { %5805 = vpow2.f32 %v1509_v48  ;;  %v1498_v63 = vsub.f32 0.0, %v1490_v60  ;;  %v1483_v33 = vadd.f32 %v1467_v54, %v1395_v0 }
 0x3f0   : > { %5807 = vrcp.f32 %v1518_v9 }
 0x3f1   : > { %v5800_v24 = vpop.eup %5799  ;;  %v1511_v62 = vmul.f32 1.442695, %v1498_v63  ;;  %v1491_v10 = vadd.f32 %v1483_v33, %v12144_v4  ;;  %v1460_v27 = vpop.permute.xlu1 %1459 }
 0x3f2   : > { %v1519_v22 = vadd.f32 1.0, %v5800_v24  ;;  %v1468_v5 = vsel %vm732_vm1, %v1458_v38, %v1460_v27  ;;  %v12146_v27 = vld [vmem:[#allocation12_spill] sm:$0xff] }
 0x3f3   : > { %5809 = vpow2.f32 %v1511_v62  ;;  %v1499_v43 = vsub.f32 0.0, %v1491_v10  ;;  %v1484_v23 = vadd.f32 %v1468_v5, %v1396_v49 }
 0x3f4   : > { %5811 = vrcp.f32 %v1519_v22 }
 0x3f5   : > { %v5802_v16 = vpop.eup %5801  ;;  %v1513_v2 = vmul.f32 1.442695, %v1499_v43  ;;  %v1492_v59 = vadd.f32 %v1484_v23, %v12145_v1 }
 0x3f6   : > { %v1520_v50 = vadd.f32 1.0, %v5802_v16  ;;  %v5804_v42 = vpop.eup %5803  ;;  %v12148_v16 = vld [vmem:[#allocation34_spill] sm:$0xff] }
 0x3f7   : > { %5813 = vpow2.f32 %v1513_v2  ;;  %v1500_v12 = vsub.f32 0.0, %v1492_v59  ;;  %v7698_v36 = vmul.f32 %v5804_v42, %v7606_v3 }
 0x3f8   : > { %5815 = vrcp.f32 %v1520_v50 }
 0x3f9   : > { %v5806_v55 = vpop.eup %5805  ;;  %v1515_v11 = vmul.f32 1.442695, %v1500_v12  ;;  %v12150_v12 = vld [vmem:[#allocation13_spill] sm:$0xff] }
 0x3fa   : > { %v5808_v45 = vpop.eup %5807  ;;  %v1521_v15 = vadd.f32 1.0, %v5806_v55  ;;  %v12151_v55 = vld [vmem:[#allocation36_spill] sm:$0xff] }
 0x3fb   : > { %v7701_v13 = vmul.f32 %v5808_v45, %v7626_v32  ;;  %5817 = vpow2.f32 %v1515_v11  ;;  %v1693_v45 = vmul.f32 %v12150_v12, %v12148_v16 }
 0x3fc   : > { %5819 = vrcp.f32 %v1521_v15  ;;  %v12152_v15 = vld [vmem:[#allocation37_spill] sm:$0xff] }
 0x3fd   : > { %v5810_v17 = vpop.eup %5809  ;;  %v5641_v29 = vpack.i.bf16 %v7701_v13, %v7698_v36 }
 0x3fe   : > { %v1522_v46 = vadd.f32 1.0, %v5810_v17  ;;  %v5812_v40 = vpop.eup %5811 }
 0x3ff   : > { %5642 = vrot.lane.b32.xlu0 %v5641_v29, %s6363_s8  ;;  %v7709_v32 = vmul.f32 %v5812_v40, %v7640_v26 }
 0x400   : > { %5821 = vrcp.f32 %v1522_v46  ;;  %v12153_v46 = vld [vmem:[#allocation38_spill] sm:$0xff] }
 0x401   : > { %v5814_v0 = vpop.eup %5813 }
 0x402   : > { %v5816_v3 = vpop.eup %5815  ;;  %v1523_v48 = vadd.f32 1.0, %v5814_v0  ;;  %v1697_v0 = vmul.f32 %v12150_v12, %v12151_v55 }
 0x403   : > { %v7712_v14 = vmul.f32 %v5816_v3, %v7662_v52  ;;  %v12154_v3 = vld [vmem:[#allocation39_spill] sm:$0xff] }
 0x404   : > { %5823 = vrcp.f32 %v1523_v48 }
 0x405   : > { %v5818_v6 = vpop.eup %5817  ;;  %v5646_v19 = vpack.i.bf16 %v7712_v14, %v7709_v32 }
 0x406   : > { %v1524_v9 = vadd.f32 1.0, %v5818_v6  ;;  %v5820_v54 = vpop.eup %5819  ;;  %v1699_v6 = vmul.f32 %v12150_v12, %v12152_v15 }
 0x407   : > { %5647 = vrot.lane.b32.xlu1 %v5646_v19, %s6363_s8  ;;  %v7720_v26 = vmul.f32 %v5820_v54, %v7676_v35  ;;  %v6147_v35 = vld [vmem:[%s6504_s28 + $0x8] sm:$0xf] }
 0x408   : > { %5825 = vrcp.f32 %v1524_v9  ;;  %v12156_v54 = vld [vmem:[#allocation40_spill] sm:$0xff] }
 0x40a   : > { %v5822_v56 = vpop.eup %5821 }
 0x40b   : > { %v7722_v52 = vmul.f32 %v5822_v56, %v1490_v60  ;;  %v7736_v60 = vrot.slane %v6147_v35, %v12146_v27 }
 0x40d   : > { %v5651_v63 = vpack.i.bf16 %v7722_v52, %v7720_v26  ;;  %v7742_v5 = vrot.slane %v7736_v60, %v12146_v27 }
 0x40e   : > { %v5824_v24 = vpop.eup %5823 }
 0x40f   : > { %5652 = vrot.lane.b32.xlu0 %v5651_v63, %s6363_s8  ;;  %v7729_v62 = vmul.f32 %v5824_v24, %v1491_v10  ;;  %v12147_v10 = vld [vmem:[#allocation33_spill] sm:$0xff]  ;;  %v1692_v2 = vmul.f32 %v7742_v5, %v12148_v16  ;;  %v1696_v11 = vmul.f32 %v7742_v5, %v12151_v55  ;;  %v1698_v17 = vmul.f32 %v7742_v5, %v12152_v15 }
 0x410   : > { %v1690_v23 = vmul.f32 %v7742_v5, %v12147_v10  ;;  %v1691_v42 = vmul.f32 %v12150_v12, %v12147_v10  ;;  %v1700_v40 = vmul.f32 %v7742_v5, %v12153_v46  ;;  %v1702_v48 = vmul.f32 %v7742_v5, %v12154_v3 }
 0x411   : > { %v1704_v56 = vmul.f32 %v7742_v5, %v12156_v54 }
 0x412   : > { %v5826_v49 = vpop.eup %5825 }
 0x413   : > { %v7731_v38 = vmul.f32 %v5826_v49, %v1492_v59  ;;  %5662 = vrot.lane.b32.xlu0 %v5641_v29, %s6359_s15  ;;  %v12149_v59 = vld [vmem:[#allocation35_spill] sm:$0xff]  ;;  %v12157_v49 = vld [vmem:[#allocation41_spill] sm:$0xff] }
 0x414   : > { %v1694_v50 = vmul.f32 %v7742_v5, %v12149_v59  ;;  %v1695_v29 = vmul.f32 %v12150_v12, %v12149_v59 }
 0x415   : > { %v5656_v22 = vpack.i.bf16 %v7731_v38, %v7729_v62 }
 0x417   : > { %5672 = vrot.lane.b32.xlu0 %v5651_v63, %s6359_s15  ;;  %5657 = vrot.lane.b32.xlu1 %v5656_v22, %s6363_s8  ;;  %v1701_v63 = vmul.f32 %v12150_v12, %v12153_v46 }
 0x41b   : > { %1722 = vrot.lane.b32.xlu0 %v1690_v23, %s6359_s15  ;;  %5667 = vrot.lane.b32.xlu1 %v5646_v19, %s6359_s15  ;;  %v12155_v19 = vld [vmem:[#allocation10_spill] sm:$0xff] }
 0x41c   : > { %v7787_v9 = vrot.slane %v6147_v35, %v12155_v19  ;;  %v1703_v35 = vmul.f32 %v12150_v12, %v12154_v3  ;;  %v12158_v23 = vld [vmem:[#allocation42_spill] sm:$0xff] }
 0x41e   : > { %v7795_v24 = vrot.slane %v7787_v9, %v12155_v19 }
 0x41f   : > { %1726 = vrot.lane.b32.xlu0 %v1692_v2, %s6359_s15  ;;  %5677 = vrot.lane.b32.xlu1 %v5656_v22, %s6359_s15 }
 0x420   : > { %v1796_v22 = vmul.f32 %v7795_v24, %v12157_v49  ;;  %v1798_v2 = vmul.f32 %v7795_v24, %v12158_v23 }
 0x423   : > { %1730 = vrot.lane.b32.xlu0 %v1694_v50, %s6359_s15  ;;  %1724 = vrot.lane.b32.xlu1 %v1691_v42, %s6359_s15  ;;  %v1705_v50 = vmul.f32 %v12150_v12, %v12156_v54  ;;  %v12159_v42 = vld [vmem:[#allocation43_spill] sm:$0xff] }
 0x427   : > { %1734 = vrot.lane.b32.xlu0 %v1696_v11, %s6359_s15  ;;  %1728 = vrot.lane.b32.xlu1 %v1693_v45, %s6359_s15  ;;  %v1800_v11 = vmul.f32 %v7795_v24, %v12159_v42  ;;  %v12160_v45 = vld [vmem:[#allocation16_spill] sm:$0xff] }
 0x42b   : > { %1738 = vrot.lane.b32.xlu0 %v1698_v17, %s6359_s15  ;;  %1732 = vrot.lane.b32.xlu1 %v1695_v29, %s6359_s15  ;;  %v1797_v17 = vmul.f32 %v12160_v45, %v12157_v49  ;;  %v12161_v29 = vld [vmem:[#allocation44_spill] sm:$0xff] }
 0x42f   : > { %1742 = vrot.lane.b32.xlu0 %v1700_v40, %s6359_s15  ;;  %1736 = vrot.lane.b32.xlu1 %v1697_v0, %s6359_s15  ;;  %v1802_v40 = vmul.f32 %v7795_v24, %v12161_v29  ;;  %v1799_v0 = vmul.f32 %v12160_v45, %v12158_v23 }
 0x433   : > { %1746 = vrot.lane.b32.xlu0 %v1702_v48, %s6359_s15  ;;  %1740 = vrot.lane.b32.xlu1 %v1699_v6, %s6359_s15  ;;  %v12162_v48 = vld [vmem:[#allocation45_spill] sm:$0xff] }
 0x434   : > { %v1804_v6 = vmul.f32 %v7795_v24, %v12162_v48 }
 0x437   : > { %1750 = vrot.lane.b32.xlu0 %v1704_v56, %s6359_s15  ;;  %1744 = vrot.lane.b32.xlu1 %v1701_v63, %s6359_s15  ;;  %v1801_v56 = vmul.f32 %v12160_v45, %v12159_v42  ;;  %v12163_v63 = vld [vmem:[#allocation46_spill] sm:$0xff] }
 0x43b   : > { %1828 = vrot.lane.b32.xlu0 %v1796_v22, %s6359_s15  ;;  %1748 = vrot.lane.b32.xlu1 %v1703_v35, %s6359_s15  ;;  %v1806_v22 = vmul.f32 %v7795_v24, %v12163_v63  ;;  %v1803_v35 = vmul.f32 %v12160_v45, %v12161_v29 }
 0x43f   : > { %1832 = vrot.lane.b32.xlu0 %v1798_v2, %s6359_s15  ;;  %1752 = vrot.lane.b32.xlu1 %v1705_v50, %s6359_s15  ;;  %v12164_v2 = vld [vmem:[#allocation47_spill] sm:$0xff] }
 0x440   : > { %v1808_v50 = vmul.f32 %v7795_v24, %v12164_v2 }
 0x443   : > { %1836 = vrot.lane.b32.xlu0 %v1800_v11, %s6359_s15  ;;  %1830 = vrot.lane.b32.xlu1 %v1797_v17, %s6359_s15  ;;  %v1805_v11 = vmul.f32 %v12160_v45, %v12162_v48  ;;  %v12165_v17 = vld [vmem:[#allocation48_spill] sm:$0xff] }
 0x447   : > { %1840 = vrot.lane.b32.xlu0 %v1802_v40, %s6359_s15  ;;  %1834 = vrot.lane.b32.xlu1 %v1799_v0, %s6359_s15  ;;  %v1810_v40 = vmul.f32 %v7795_v24, %v12165_v17  ;;  %v1807_v0 = vmul.f32 %v12160_v45, %v12163_v63 }
 0x44b   : > { %1844 = vrot.lane.b32.xlu0 %v1804_v6, %s6359_s15  ;;  %1838 = vrot.lane.b32.xlu1 %v1801_v56, %s6359_s15  ;;  %v12166_v6 = vld [vmem:[#allocation49_spill] sm:$0xff] }
 0x44c   : > { %v1884_v56 = vmul.f32 %v7742_v5, %v12166_v6  ;;  %v1885_v43 = vmul.f32 %v12150_v12, %v12166_v6 }
 0x44f   : > { %1848 = vrot.lane.b32.xlu0 %v1806_v22, %s6359_s15  ;;  %1842 = vrot.lane.b32.xlu1 %v1803_v35, %s6359_s15  ;;  %v1809_v22 = vmul.f32 %v12160_v45, %v12164_v2  ;;  %v12167_v35 = vld [vmem:[#allocation70_spill] sm:$0xff]  ;;  %v12177_v2 = vld [vmem:[#allocation75_spill] sm:$0xff] }
 0x450   : > { %v1887_v33 = vmul.f32 %v12150_v12, %v12167_v35  ;;  %v1898_v63 = vmul.f32 %v7742_v5, %v12177_v2 }
 0x453   : > { %1852 = vrot.lane.b32.xlu0 %v1808_v50, %s6359_s15  ;;  %1846 = vrot.lane.b32.xlu1 %v1805_v11, %s6359_s15  ;;  %v1886_v50 = vmul.f32 %v7742_v5, %v12167_v35  ;;  %v1811_v11 = vmul.f32 %v12160_v45, %v12165_v17 }
 0x457   : > { %1856 = vrot.lane.b32.xlu0 %v1810_v40, %s6359_s15  ;;  %1850 = vrot.lane.b32.xlu1 %v1807_v0, %s6359_s15  ;;  %v12168_v40 = vld [vmem:[#allocation69_spill] sm:$0xff] }
 0x458   : > { %v1888_v0 = vmul.f32 %v7742_v5, %v12168_v40  ;;  %v1889_v47 = vmul.f32 %v12150_v12, %v12168_v40 }
 0x45b   : > { %1916 = vrot.lane.b32.xlu0 %v1884_v56, %s6360_s16  ;;  %1854 = vrot.lane.b32.xlu1 %v1809_v22, %s6359_s15  ;;  %v12169_v56 = vld [vmem:[#allocation71_spill] sm:$0xff] }
 0x45c   : > { %v1890_v22 = vmul.f32 %v7742_v5, %v12169_v56  ;;  %v1891_v7 = vmul.f32 %v12150_v12, %v12169_v56 }
 0x45f   : > { %1920 = vrot.lane.b32.xlu0 %v1886_v50, %s6360_s16  ;;  %1858 = vrot.lane.b32.xlu1 %v1811_v11, %s6359_s15  ;;  %v12170_v50 = vld [vmem:[#allocation72_spill] sm:$0xff] }
 0x460   : > { %v1892_v11 = vmul.f32 %v7742_v5, %v12170_v50 }
 0x463   : > { %1924 = vrot.lane.b32.xlu0 %v1888_v0, %s6360_s16  ;;  %1918 = vrot.lane.b32.xlu1 %v1885_v43, %s6360_s16  ;;  %v12171_v43 = vld [vmem:[#allocation73_spill] sm:$0xff] }
 0x464   : > { %v1894_v0 = vmul.f32 %v7742_v5, %v12171_v43 }
 0x467   : > { %1928 = vrot.lane.b32.xlu0 %v1890_v22, %s6360_s16  ;;  %1922 = vrot.lane.b32.xlu1 %v1887_v33, %s6360_s16  ;;  %v12172_v22 = vld [vmem:[#allocation74_spill] sm:$0xff] }
 0x468   : > { %v1896_v40 = vmul.f32 %v7742_v5, %v12172_v22  ;;  %v1897_v5 = vmul.f32 %v12150_v12, %v12172_v22 }
 0x46b   : > { %1932 = vrot.lane.b32.xlu0 %v1892_v11, %s6360_s16  ;;  %1926 = vrot.lane.b32.xlu1 %v1889_v47, %s6360_s16  ;;  %v1893_v47 = vmul.f32 %v12150_v12, %v12170_v50  ;;  %v12173_v11 = vld [vmem:[#allocation60_spill] sm:$0xff]  ;;  %v1895_v50 = vmul.f32 %v12150_v12, %v12171_v43 }
 0x46c   : > { %v5605_v35 = vunpack.i.h.bf16 %v12173_v11  ;;  %v5604_v6 = vunpack.i.l.bf16 %v12173_v11 }
 0x46e   : > { %v5403_v11 = vpack.c.bf16 %v5605_v35, %v5604_v6  ;;  %v12180_v35 = vld [vmem:[#allocation87_spill] sm:$0xff] }
 0x46f   : > { %1936 = vrot.lane.b32.xlu0 %v1894_v0, %s6360_s16  ;;  %1930 = vrot.lane.b32.xlu1 %v1891_v7, %s6360_s16  ;;  %v12174_v7 = vmov 0 }
 0x470   : > { %v12175_v7 = vsel %vm7892_vm4, 4294967295, %v12174_v7 }
 0x471   : > { %v5643_v33 = vpop.permute.xlu0 %5642  ;;  %12176 = vst [vmem:[#allocation67_spill] sm:$0xff] %v12175_v7 }
 0x472   : > { %v5645_v17 = vunpack.i.h.bf16 %v5643_v33  ;;  %v5644_v56 = vunpack.i.l.bf16 %v5643_v33  ;;  %v12178_v33 = vld [vmem:[#allocation88_spill] sm:$0xff] }
 0x473   : > { %1940 = vrot.lane.b32.xlu0 %v1896_v40, %s6360_s16  ;;  %1934 = vrot.lane.b32.xlu1 %v1893_v47, %s6360_s16 }
 0x474   : > { %v5400_v0 = vpack.c.bf16 %v5645_v17, %v5644_v56  ;;  %v1972_v17 = vmul.f32 %v7795_v24, %v12178_v33  ;;  %v12179_v56 = vld [vmem:[#allocation59_spill] sm:$0xff] }
 0x475   : > { %v5610_v47 = vunpack.i.h.bf16 %v12179_v56  ;;  %v5609_v43 = vunpack.i.l.bf16 %v12179_v56  ;;  %v1973_v56 = vmul.f32 %v12160_v45, %v12178_v33  ;;  %v12186_v33 = vld [vmem:[#allocation92_spill] sm:$0xff] }
 0x476   : > { %5402 = vmatprep.subr.msk.bf16.mxu0 %vm7892_vm4, %v5400_v0  ;;  %v1982_v29 = vmul.f32 %v7795_v24, %v12186_v33 }
 0x477   : > { %1944 = vrot.lane.b32.xlu0 %v1898_v63, %s6360_s16  ;;  %1938 = vrot.lane.b32.xlu1 %v1895_v50, %s6360_s16  ;;  %v1974_v50 = vmul.f32 %v7795_v24, %v12180_v35  ;;  %v5409_v48 = vpack.c.bf16 %v5610_v47, %v5609_v43 }
 0x478   : > { %5405 = vmatpush1.bf16.msk.msra.mxu0 %vm7892_vm4, %v5403_v11  ;;  %v1899_v11 = vmul.f32 %v12150_v12, %v12177_v2  ;;  %v1975_v2 = vmul.f32 %v12160_v45, %v12180_v35 }
 0x479   : > { %v5648_v40 = vpop.permute.xlu1 %5647 }
 0x47a   : > { %v5650_v0 = vunpack.i.h.bf16 %v5648_v40  ;;  %v5649_v6 = vunpack.i.l.bf16 %v5648_v40 }
 0x47b   : > { %2004 = vrot.lane.b32.xlu0 %v1972_v17, %s6360_s16  ;;  %1942 = vrot.lane.b32.xlu1 %v1897_v5, %s6360_s16  ;;  %v12181_v17 = vld [vmem:[#allocation89_spill] sm:$0xff] }
 0x47c   : > { %v5406_v63 = vpack.c.bf16 %v5650_v0, %v5649_v6  ;;  %v1976_v5 = vmul.f32 %v7795_v24, %v12181_v17  ;;  %v12182_v0 = vld [vmem:[#allocation66_spill] sm:$0xff] }
 0x47d   : > { %v5615_v12 = vunpack.i.h.bf16 %v12182_v0  ;;  %v5614_v43 = vunpack.i.l.bf16 %v12182_v0 }
 0x47e   : > { %5408 = vmatprep.subr.msk.bf16.mxu0 %vm7892_vm4, %v5406_v63 }
 0x47f   : > { %2008 = vrot.lane.b32.xlu0 %v1974_v50, %s6360_s16  ;;  %1946 = vrot.lane.b32.xlu1 %v1899_v11, %s6360_s16  ;;  %v5415_v22 = vpack.c.bf16 %v5615_v12, %v5614_v43  ;;  %v12185_v12 = vld [vmem:[#allocation65_spill] sm:$0xff] }
 0x480   : > { %5411 = vmatpush1.bf16.msk.msra.mxu0 %vm7892_vm4, %v5409_v48  ;;  %v12183_v48 = vld [vmem:[#allocation90_spill] sm:$0xff]  ;;  %v5620_v43 = vunpack.i.h.bf16 %v12185_v12 }
 0x481   : > { %v5653_v40 = vpop.permute.xlu0 %5652  ;;  %v1978_v11 = vmul.f32 %v7795_v24, %v12183_v48 }
 0x482   : > { %v5655_v47 = vunpack.i.h.bf16 %v5653_v40  ;;  %v5654_v6 = vunpack.i.l.bf16 %v5653_v40 }
 0x483   : > { %2012 = vrot.lane.b32.xlu0 %v1976_v5, %s6360_s16  ;;  %2006 = vrot.lane.b32.xlu1 %v1973_v56, %s6360_s16  ;;  %v12184_v56 = vld [vmem:[#allocation91_spill] sm:$0xff] }
 0x484   : > { %v5412_v63 = vpack.c.bf16 %v5655_v47, %v5654_v6  ;;  %v1980_v0 = vmul.f32 %v7795_v24, %v12184_v56  ;;  %v1977_v47 = vmul.f32 %v12160_v45, %v12181_v17  ;;  %v5619_v6 = vunpack.i.l.bf16 %v12185_v12  ;;  %v12188_v12 = vld [vmem:[#allocation93_spill] sm:$0xff] }
 0x485   : > { %v5663_v50 = vpop.permute.xlu0 %5662  ;;  %v1979_v17 = vmul.f32 %v12160_v45, %v12183_v48 }
 0x486   : > { %5414 = vmatprep.subr.msk.bf16.mxu0 %vm7892_vm4, %v5412_v63  ;;  %v5421_v42 = vpack.c.bf16 %v5620_v43, %v5619_v6  ;;  %v1984_v43 = vmul.f32 %v7795_v24, %v12188_v12  ;;  %v1981_v6 = vmul.f32 %v12160_v45, %v12184_v56 }
 0x487   : > { %2016 = vrot.lane.b32.xlu0 %v1978_v11, %s6360_s16  ;;  %2010 = vrot.lane.b32.xlu1 %v1975_v2, %s6360_s16 }
 0x488   : > { %5417 = vmatpush1.bf16.msk.msra.mxu0 %vm7892_vm4, %v5415_v22 }
 0x489   : > { %v5658_v40 = vpop.permute.xlu1 %5657  ;;  %v7942_v5 = vpop.permute.xlu0 %5672 }
 0x48a   : > { %v5660_v63 = vunpack.i.h.bf16 %v5658_v40  ;;  %v5659_v11 = vunpack.i.l.bf16 %v5658_v40  ;;  %v12187_v40 = vpack.c.bf16 %v7701_v13, %v7698_v36  ;;  %v12192_v36 = vpack.c.bf16 %v7712_v14, %v7709_v32 }
 0x48b   : > { %2020 = vrot.lane.b32.xlu0 %v1980_v0, %s6360_s16  ;;  %2014 = vrot.lane.b32.xlu1 %v1977_v47, %s6360_s16  ;;  %v12197_v32 = vpack.c.bf16 %v7722_v52, %v7720_v26 }
 0x48c   : > { %v5418_v2 = vpack.c.bf16 %v5660_v63, %v5659_v11  ;;  %v12193_v11 = vld [vmem:[#allocation94_spill] sm:$0xff] }
 0x48d   : > { %v5668_v22 = vpop.permute.xlu1 %5667  ;;  %v7952_v35 = vpop.permute.xlu0 %1722 }
 0x48e   : > { %5420 = vmatprep.subr.msk.bf16.mxu0 %vm7892_vm4, %v5418_v2  ;;  %v1986_v2 = vmul.f32 %v7795_v24, %v12193_v11  ;;  %v1985_v24 = vmul.f32 %v12160_v45, %v12188_v12  ;;  %v12209_v12 = vld [vmem:[#allocation56_spill] sm:$0xff] }
 0x48f   : > { %2024 = vrot.lane.b32.xlu0 %v1982_v29, %s6360_s16  ;;  %2018 = vrot.lane.b32.xlu1 %v1979_v17, %s6360_s16  ;;  %v12189_v29 = vld [vmem:[#allocation77_spill] sm:$0xff]  ;;  %v12190_v17 = vld [vmem:[#allocation76_spill] sm:$0xff] }
 0x490   : > { %5423 = vmatpush1.bf16.msk.msra.mxu0 %vm7892_vm4, %v5421_v42  ;;  %v12191_v42 = vpack.c.bf16 %v12189_v29, %v12190_v17 }
 0x491   : > { %5425 = vmatprep.subr.bf16.mxu0 %v12187_v40  ;;  %v5678_v0 = vpop.permute.xlu1 %5677  ;;  %v7967_v47 = vpop.permute.xlu0 %1726  ;;  %v1983_v40 = vmul.f32 %v12160_v45, %v12186_v33  ;;  %v5630_v33 = vunpack.i.h.bf16 %v12209_v12 }
 0x492   : > { %v5680_v56 = vunpack.i.h.bf16 %v5678_v0  ;;  %v5679_v48 = vunpack.i.l.bf16 %v5678_v0 }
 0x493   : > { %2028 = vrot.lane.b32.xlu0 %v1984_v43, %s6360_s16  ;;  %2022 = vrot.lane.b32.xlu1 %v1981_v6, %s6360_s16  ;;  %v12194_v43 = vld [vmem:[#allocation57_spill] sm:$0xff]  ;;  %v12195_v6 = vld [vmem:[#allocation58_spill] sm:$0xff] }
 0x494   : > { %5427 = vmatpush1.bf16.msra.mxu0 %v12191_v42  ;;  %v12196_v29 = vpack.c.bf16 %v12194_v43, %v12195_v6  ;;  %v5665_v42 = vunpack.i.h.bf16 %v5663_v50  ;;  %v12201_v43 = vpack.c.bf16 %v7731_v38, %v7729_v62  ;;  %v1987_v6 = vmul.f32 %v12160_v45, %v12193_v11 }
 0x495   : > { %5429 = vmatprep.subr.bf16.mxu0 %v12192_v36  ;;  %v7981_v13 = vpop.permute.xlu1 %1724  ;;  %v7983_v63 = vpop.permute.xlu0 %1730  ;;  %v5664_v36 = vunpack.i.l.bf16 %v5663_v50  ;;  %v5670_v62 = vunpack.i.h.bf16 %v5668_v22  ;;  %v5669_v38 = vunpack.i.l.bf16 %v5668_v22  ;;  %v5675_v22 = vunpack.i.h.bf16 %v7942_v5 }
 0x497   : > { %2032 = vrot.lane.b32.xlu0 %v1986_v2, %s6360_s16  ;;  %2026 = vrot.lane.b32.xlu1 %v1983_v40, %s6360_s16  ;;  %v12198_v2 = vld [vmem:[#allocation61_spill] sm:$0xff]  ;;  %v12199_v40 = vld [vmem:[#allocation62_spill] sm:$0xff] }
 0x498   : > { %5431 = vmatpush1.bf16.msra.mxu0 %v12196_v29  ;;  %v12200_v7 = vpack.c.bf16 %v12198_v2, %v12199_v40  ;;  %v12202_v29 = vld [vmem:[#allocation55_spill] sm:$0xff]  ;;  %v12207_v40 = vld [vmem:[#allocation78_spill] sm:$0xff] }
 0x499   : > { %5433 = vmatprep.subr.bf16.mxu0 %v12197_v32  ;;  %v7997_v14 = vpop.permute.xlu1 %1728  ;;  %v7999_v17 = vpop.permute.xlu0 %1734  ;;  %v5625_v32 = vunpack.i.h.bf16 %v12202_v29  ;;  %v5624_v50 = vunpack.i.l.bf16 %v12202_v29  ;;  %v12206_v2 = vld [vmem:[#allocation79_spill] sm:$0xff] }
 0x49b   : > { %2030 = vrot.lane.b32.xlu1 %v1985_v24, %s6360_s16  ;;  %v12203_v24 = vmov 0  ;;  %v5443_v11 = vpack.c.bf16 %v5625_v32, %v5624_v50  ;;  %v12211_v50 = vld [vmem:[#allocation80_spill] sm:$0xff] }
 0x49c   : > { %5435 = vmatpush1.bf16.msra.mxu0 %v12200_v7  ;;  %v12204_v24 = vsel %vm8020_vm5, 4294967295, %v12203_v24  ;;  %v5440_v7 = vpack.c.bf16 %v5665_v42, %v5664_v36  ;;  %v5629_v42 = vunpack.i.l.bf16 %v12209_v12  ;;  %v5674_v36 = vunpack.i.l.bf16 %v7942_v5 }
 0x49d   : > { %5437 = vmatprep.subr.bf16.mxu0 %v12201_v43  ;;  %v8010_v26 = vpop.permute.xlu1 %1732  ;;  %v8012_v52 = vpop.permute.xlu0 %1738  ;;  %12205 = vst [vmem:[#allocation85_spill] sm:$0xff] %v12204_v24  ;;  %v12208_v43 = vpack.c.bf16 %v12206_v2, %v12207_v40  ;;  %v5635_v40 = vunpack.i.h.bf16 %v12211_v50  ;;  %v5634_v12 = vunpack.i.l.bf16 %v12211_v50 }
 0x49e   : > { %v5449_v32 = vpack.c.bf16 %v5630_v33, %v5629_v42 }
 0x49f   : > { %2034 = vrot.lane.b32.xlu1 %v1987_v6, %s6360_s16  ;;  %v5446_v6 = vpack.c.bf16 %v5670_v62, %v5669_v38  ;;  %v5455_v62 = vpack.c.bf16 %v5635_v40, %v5634_v12  ;;  %v12213_v38 = vld [vmem:[#allocation81_spill] sm:$0xff] }
 0x4a0   : > { %5439 = vmatpush1.bf16.msra.mxu0 %v12208_v43  ;;  %v5452_v43 = vpack.c.bf16 %v5675_v22, %v5674_v36  ;;  %v5640_v33 = vunpack.i.h.bf16 %v12213_v38  ;;  %v5639_v42 = vunpack.i.l.bf16 %v12213_v38 }
 0x4a1   : > { %5442 = vmatprep.subr.msk.bf16.mxu0 %vm8020_vm5, %v5440_v7  ;;  %v8030_v45 = vpop.permute.xlu1 %1736  ;;  %v8032_v29 = vpop.permute.xlu0 %1742 }
 0x4a2   : > { %v5461_v36 = vpack.c.bf16 %v5640_v33, %v5639_v42 }
 0x4a4   : > { %5445 = vmatpush1.bf16.msk.msra.mxu0 %vm8020_vm5, %v5443_v11 }
 0x4a5   : > { %5448 = vmatprep.subr.msk.bf16.mxu0 %vm8020_vm5, %v5446_v6  ;;  %v8042_v7 = vpop.permute.xlu1 %1740  ;;  %v8044_v2 = vpop.permute.xlu0 %1746  ;;  %v5458_v6 = vpack.c.bf16 %v5680_v56, %v5679_v48 }
 0x4a6   : > { %12210 = vst [vmem:[#allocation86_spill] sm:$0xff] %v8044_v2 }
 0x4a8   : > { %5451 = vmatpush1.bf16.msk.msra.mxu0 %vm8020_vm5, %v5449_v32 }
 0x4a9   : > { %5454 = vmatprep.subr.msk.bf16.mxu0 %vm8020_vm5, %v5452_v43  ;;  %v8052_v5 = vpop.permute.xlu1 %1744  ;;  %v8054_v11 = vpop.permute.xlu0 %1750 }
 0x4aa   : > { %12212 = vst [vmem:[#allocation11_spill] sm:$0xff] %v8054_v11 }
 0x4ac   : > { %5457 = vmatpush1.bf16.msk.msra.mxu0 %vm8020_vm5, %v5455_v62 }
 0x4ad   : > { %5460 = vmatprep.subr.msk.bf16.mxu0 %vm8020_vm5, %v5458_v6  ;;  %v8062_v0 = vpop.permute.xlu1 %1748  ;;  %v1829_v22 = vpop.permute.xlu0 %1828 }
 0x4ae   : > { %12214 = vst [vmem:[#allocation15_spill] sm:$0xff] %v8062_v0  ;;  %v12229_v0 = vld [vmem:[#allocation26_spill] sm:$0xff] }
 0x4b0   : > { %5463 = vmatpush1.bf16.msk.msra.mxu0 %vm8020_vm5, %v5461_v36 }
 0x4b1   : > { %v8066_v32 = vpop.permute.xlu1 %1752  ;;  %v1833_v50 = vpop.permute.xlu0 %1832 }
 0x4b2   : > { %12215 = vst [vmem:[#allocation95_spill] sm:$0xff] %v8066_v32  ;;  %v12227_v32 = vld [vmem:[#allocation19_spill] sm:$0xff] }
 0x4b3   : > { %v1643_v31 = vmul.f32 %v7736_v60, %v12227_v32 }
 0x4b5   : > { %v1831_v40 = vpop.permute.xlu1 %1830  ;;  %v1837_v12 = vpop.permute.xlu0 %1836 }
 0x4b9   : > { %v1835_v43 = vpop.permute.xlu1 %1834  ;;  %v8068_v48 = vpop.permute.xlu0 %1840 }
 0x4bd   : > { %v1839_v56 = vpop.permute.xlu1 %1838  ;;  %v8070_v62 = vpop.permute.xlu0 %1844 }
 0x4c1   : > { %v8072_v38 = vpop.permute.xlu1 %1842  ;;  %v8074_v6 = vpop.permute.xlu0 %1848 }
 0x4c2   : > { %12216 = vst [vmem:[#allocation28_spill] sm:$0xff] %v8074_v6 }
 0x4c5   : > { %v8076_v23 = vpop.permute.xlu1 %1846  ;;  %v8078_v33 = vpop.permute.xlu0 %1852 }
 0x4c6   : > { %12217 = vst [vmem:[#allocation18_spill] sm:$0xff] %v8078_v33 }
 0x4c9   : > { %v8080_v42 = vpop.permute.xlu1 %1850  ;;  %v8082_v36 = vpop.permute.xlu0 %1856 }
 0x4ca   : > { %12218 = vst [vmem:[#allocation29_spill] sm:$0xff] %v8080_v42  ;;  %12219 = vst [vmem:[#allocation20_spill] sm:$0xff] %v8082_v36 }
 0x4cd   : > { %v8084_v24 = vpop.permute.xlu1 %1854  ;;  %v1917_v49 = vpop.permute.xlu0 %1916 }
 0x4ce   : > { %12220 = vst [vmem:[#allocation30_spill] sm:$0xff] %v8084_v24 }
 0x4d1   : > { %v8086_v54 = vpop.permute.xlu1 %1858  ;;  %v1921_v19 = vpop.permute.xlu0 %1920 }
 0x4d2   : > { %12221 = vst [vmem:[#allocation23_spill] sm:$0xff] %v8086_v54  ;;  %v12226_v54 = vld [vmem:[#allocation27_spill] sm:$0xff] }
 0x4d3   : > { %v1655_v11 = vmul.f32 %v7787_v9, %v12226_v54  ;;  %v1644_v54 = vmul.f32 %v7736_v60, %v12230_v21 }
 0x4d5   : > { %v1919_v3 = vpop.permute.xlu1 %1918  ;;  %v1925_v46 = vpop.permute.xlu0 %1924  ;;  %v1663_v2 = vadd.f32 %v1655_v11, %v1643_v31  ;;  %v1657_v31 = vmul.f32 %v7787_v9, %v12126_v20  ;;  %v1861_v11 = vsel %vm473_vm0, %v1833_v50, %v1835_v43  ;;  %v1862_v50 = vsel %vm473_vm0, %v1837_v12, %v1839_v56 }
 0x4d6   : > { %v1948_v42 = vsel %vm732_vm1, %v1917_v49, %v1919_v3 }
 0x4d9   : > { %v1923_v15 = vpop.permute.xlu1 %1922  ;;  %v8088_v55 = vpop.permute.xlu0 %1928 }
 0x4da   : > { %v1949_v3 = vsel %vm732_vm1, %v1921_v19, %v1923_v15  ;;  %v1757_v19 = vsel %vm473_vm0, %v7999_v17, %v8030_v45  ;;  %v1660_v17 = vmul.f32 %v7787_v9, %v12133_v44 }
 0x4dd   : > { %v1927_v59 = vpop.permute.xlu1 %1926  ;;  %v8090_v16 = vpop.permute.xlu0 %1932 }
 0x4e1   : > { %v8092_v10 = vpop.permute.xlu1 %1930  ;;  %v8094_v27 = vpop.permute.xlu0 %1936 }
 0x4e2   : > { %12222 = vst [vmem:[#allocation22_spill] sm:$0xff] %v8094_v27  ;;  %v1754_v27 = vsel %vm473_vm0, %v7952_v35, %v7981_v13 }
 0x4e5   : > { %v8096_v1 = vpop.permute.xlu1 %1934  ;;  %v8098_v4 = vpop.permute.xlu0 %1940 }
 0x4e6   : > { %12223 = vst [vmem:[#allocation31_spill] sm:$0xff] %v8098_v4  ;;  %v1656_v4 = vmul.f32 %v7787_v9, %v12229_v0 }
 0x4e8   : > { %v1664_v35 = vadd.f32 %v1656_v4, %v1644_v54 }
 0x4e9   : > { %v8100_v25 = vpop.permute.xlu1 %1938  ;;  %v8102_v36 = vpop.permute.xlu0 %1944 }
 0x4ea   : > { %12224 = vst [vmem:[#allocation32_spill] sm:$0xff] %v8100_v25  ;;  %12225 = vst [vmem:[#allocation25_spill] sm:$0xff] %v8102_v36  ;;  %v1860_v25 = vsel %vm473_vm0, %v1829_v22, %v1831_v40  ;;  %v1770_v36 = vadd.f32 %v1754_v27, %v1663_v2  ;;  %v1645_v2 = vmul.f32 %v7736_v60, %v12127_v51 }
 0x4ec   : > { %v1876_v13 = vadd.f32 %v1860_v25, %v1770_v36  ;;  %v1665_v54 = vadd.f32 %v1657_v31, %v1645_v2  ;;  %v1658_v25 = vmul.f32 %v7787_v9, %v12128_v57 }
 0x4ed   : > { %v8108_v33 = vpop.permute.xlu1 %1942  ;;  %v2005_v24 = vpop.permute.xlu0 %2004 }
 0x4ee   : > { %12228 = vst [vmem:[#allocation24_spill] sm:$0xff] %v8108_v33  ;;  %v1755_v33 = vsel %vm473_vm0, %v7967_v47, %v7997_v14  ;;  %v1964_v22 = vadd.f32 %v1948_v42, %v1876_v13  ;;  %v1756_v47 = vsel %vm473_vm0, %v7983_v63, %v8010_v26  ;;  %v1659_v26 = vmul.f32 %v7787_v9, %v12130_v58 }
 0x4ef   : > { %v1771_v27 = vadd.f32 %v1755_v33, %v1664_v35  ;;  %v1772_v43 = vadd.f32 %v1756_v47, %v1665_v54  ;;  %v1646_v33 = vmul.f32 %v7736_v60, %v12129_v39  ;;  %v1758_v47 = vsel %vm473_vm0, %v8012_v52, %v8042_v7 }
 0x4f1   : > { %v8118_v6 = vpop.permute.xlu1 %1946  ;;  %v2009_v32 = vpop.permute.xlu0 %2008  ;;  %v1877_v49 = vadd.f32 %v1861_v11, %v1771_v27  ;;  %v1666_v56 = vadd.f32 %v1658_v25, %v1646_v33  ;;  %v1878_v35 = vadd.f32 %v1862_v50, %v1772_v43  ;;  %v1647_v11 = vmul.f32 %v7736_v60, %v12131_v37 }
 0x4f2   : > { %v1648_v27 = vmul.f32 %v7736_v60, %v12132_v8  ;;  %v1952_v33 = vsel %vm732_vm1, %v8090_v16, %v8096_v1 }
 0x4f3   : > { %v1965_v42 = vadd.f32 %v1949_v3, %v1877_v49  ;;  %v1951_v3 = vsel %vm732_vm1, %v8088_v55, %v8092_v10  ;;  %v1661_v55 = vmul.f32 %v7787_v9, %v12134_v18 }
 0x4f4   : > { %v1668_v49 = vadd.f32 %v1660_v17, %v1648_v27  ;;  %v12234_v27 = vld [vmem:[#allocation15_spill] sm:$0xff]  ;;  %v12235_v17 = vld [vmem:[#allocation86_spill] sm:$0xff] }
 0x4f5   : > { %v2007_v40 = vpop.permute.xlu1 %2006  ;;  %v2013_v21 = vpop.permute.xlu0 %2012 }
 0x4f6   : > { %v2036_v4 = vsel %vm732_vm1, %v2005_v24, %v2007_v40  ;;  %v1950_v24 = vsel %vm732_vm1, %v1925_v46, %v1927_v59  ;;  %v1863_v59 = vsel %vm473_vm0, %v8068_v48, %v8072_v38  ;;  %v1773_v46 = vadd.f32 %v1757_v19, %v1666_v56  ;;  %v12233_v56 = vld [vmem:[#allocation51_spill] sm:$0xff] }
 0x4f7   : > { %v2052_v14 = vadd.f32 %v2036_v4, %v1964_v22  ;;  %v1966_v45 = vadd.f32 %v1950_v24, %v1878_v35  ;;  %v1667_v40 = vadd.f32 %v1659_v26, %v1647_v11  ;;  %v1649_v19 = vmul.f32 %v7736_v60, %v12135_v34  ;;  %v12231_v26 = vld [vmem:[#allocation29_spill] sm:$0xff]  ;;  %v12232_v24 = vld [vmem:[#allocation28_spill] sm:$0xff] }
 0x4f8   : > { %v1879_v54 = vadd.f32 %v1863_v59, %v1773_v46  ;;  %v1865_v1 = vsel %vm473_vm0, %v12232_v24, %v12231_v26  ;;  %v12236_v59 = vld [vmem:[#allocation32_spill] sm:$0xff]  ;;  %v12237_v46 = vld [vmem:[#allocation22_spill] sm:$0xff]  ;;  %v12245_v26 = vld [vmem:[#allocation23_spill] sm:$0xff] }
 0x4f9   : > { %v8140_v36 = vadd.f32 %v2052_v14, %v7223_v61  ;;  %v2011_v63 = vpop.permute.xlu1 %2010  ;;  %v2017_v15 = vpop.permute.xlu0 %2016  ;;  %v1864_v14 = vsel %vm473_vm0, %v8070_v62, %v8076_v23  ;;  %v1774_v50 = vadd.f32 %v1758_v47, %v1667_v40  ;;  %v1669_v11 = vadd.f32 %v1661_v55, %v1649_v19  ;;  %v12243_v55 = vld [vmem:[#allocation24_spill] sm:$0xff] }
 0x4fa   : > { %v2037_v12 = vsel %vm732_vm1, %v2009_v32, %v2011_v63  ;;  %v1967_v43 = vadd.f32 %v1951_v3, %v1879_v54  ;;  %v12238_v3 = vld [vmem:[#allocation30_spill] sm:$0xff]  ;;  %v12246_v24 = vld [vmem:[#allocation20_spill] sm:$0xff] }
 0x4fb   : > { %v2068_v31 = vsub.f32 0.0, %v8140_v36  ;;  %v2053_v13 = vadd.f32 %v2037_v12, %v1965_v42  ;;  %v1880_v62 = vadd.f32 %v1864_v14, %v1774_v50  ;;  %v12240_v50 = vld [vmem:[#allocation50_spill] sm:$0xff] }
 0x4fd   : > { %v2076_v32 = vmul.f32 1.442695, %v2068_v31  ;;  %v8160_v2 = vadd.f32 %v2053_v13, %v7225_v30  ;;  %v2015_v22 = vpop.permute.xlu1 %2014  ;;  %v2021_v25 = vpop.permute.xlu0 %2020 }
 0x4fe   : > { %v2038_v4 = vsel %vm732_vm1, %v2013_v21, %v2015_v22  ;;  %v1759_v21 = vsel %vm473_vm0, %v8032_v29, %v8052_v5  ;;  %v1650_v29 = vmul.f32 %v7736_v60, %v12136_v41  ;;  %v1662_v5 = vmul.f32 %v7787_v9, %v6661_v53 }
 0x4ff   : > { %5827 = vpow2.f32 %v2076_v32  ;;  %v2069_v48 = vsub.f32 0.0, %v8160_v2  ;;  %v2054_v38 = vadd.f32 %v2038_v4, %v1966_v45  ;;  %v1775_v16 = vadd.f32 %v1759_v21, %v1668_v49  ;;  %v12239_v4 = vld [vmem:[#allocation18_spill] sm:$0xff] }
 0x500   : > { %v1760_v60 = vsel %vm473_vm0, %v12235_v17, %v12234_v27  ;;  %v1953_v9 = vsel %vm732_vm1, %v12237_v46, %v12236_v59  ;;  %v1670_v47 = vadd.f32 %v1662_v5, %v1650_v29  ;;  %v1866_v54 = vsel %vm473_vm0, %v12239_v4, %v12238_v3  ;;  %v12249_v4 = vld [vmem:[#allocation52_spill] sm:$0xff] }
 0x501   : > { %v2078_v52 = vmul.f32 1.442695, %v2069_v48  ;;  %v8174_v7 = vadd.f32 %v2054_v38, %v7248_v28  ;;  %v2019_v10 = vpop.permute.xlu1 %2018  ;;  %v2025_v31 = vpop.permute.xlu0 %2024  ;;  %v1881_v32 = vadd.f32 %v1865_v1, %v1775_v16  ;;  %v1776_v38 = vadd.f32 %v1760_v60, %v1669_v11  ;;  %v12247_v11 = vld [vmem:[#allocation53_spill] sm:$0xff] }
 0x502   : > { %v2039_v23 = vsel %vm732_vm1, %v2017_v15, %v2019_v10  ;;  %v1968_v15 = vadd.f32 %v1952_v33, %v1880_v62  ;;  %v12241_v10 = vld [vmem:[#allocation95_spill] sm:$0xff]  ;;  %v1867_v1 = vsel %vm473_vm0, %v12246_v24, %v12245_v26  ;;  %v12248_v60 = vld [vmem:[#allocation25_spill] sm:$0xff] }
 0x503   : > { %5829 = vpow2.f32 %v2078_v52  ;;  %v2070_v42 = vsub.f32 0.0, %v8174_v7  ;;  %v2055_v63 = vadd.f32 %v2039_v23, %v1967_v43  ;;  %v1969_v49 = vadd.f32 %v1953_v9, %v1881_v32  ;;  %v12244_v33 = vld [vmem:[#allocation31_spill] sm:$0xff] }
 0x504   : > { %v1954_v23 = vsel %vm732_vm1, %v12244_v33, %v12243_v55 }
 0x505   : > { %v2080_v12 = vmul.f32 1.442695, %v2070_v42  ;;  %v8196_v35 = vadd.f32 %v2055_v63, %v12233_v56  ;;  %v2023_v13 = vpop.permute.xlu1 %2022  ;;  %v1882_v63 = vadd.f32 %v1866_v54, %v1776_v38  ;;  %v2029_v29 = vpop.permute.xlu0 %2028  ;;  %v12336_v56 = vld [vmem:[#allocation21_spill] sm:$0xff] }
 0x506   : > { %v2040_v45 = vsel %vm732_vm1, %v2021_v25, %v2023_v13  ;;  %v12242_v25 = vld [vmem:[#allocation11_spill] sm:$0xff] }
 0x507   : > { %5831 = vpow2.f32 %v2080_v12  ;;  %v2071_v22 = vsub.f32 0.0, %v8196_v35  ;;  %v2056_v40 = vadd.f32 %v2040_v45, %v1968_v15  ;;  %v1761_v21 = vsel %vm473_vm0, %v12242_v25, %v12241_v10  ;;  %v12250_v25 = vld [vmem:[#allocation54_spill] sm:$0xff] }
 0x508   : > { %v1777_v15 = vadd.f32 %v1761_v21, %v1670_v47  ;;  %v1970_v12 = vadd.f32 %v1954_v23, %v1882_v63 }
 0x509   : > { %v5828_v48 = vpop.eup %5827  ;;  %v2082_v14 = vmul.f32 1.442695, %v2071_v22  ;;  %v8210_v43 = vadd.f32 %v2056_v40, %v12240_v50  ;;  %v2027_v52 = vpop.permute.xlu1 %2026  ;;  %v12334_v50 = vld [vmem:[#allocation19_spill] sm:$0xff] }
 0x50a   : > { %v2092_v62 = vadd.f32 1.0, %v5828_v48  ;;  %v2041_v42 = vsel %vm732_vm1, %v2025_v31, %v2027_v52  ;;  %v1955_v31 = vsel %vm732_vm1, %v12248_v60, %v8118_v6  ;;  %v1883_v9 = vadd.f32 %v1867_v1, %v1777_v15  ;;  %v2033_v3 = vpop.permute.xlu0 %2032 }
 0x50b   : > { %5833 = vpow2.f32 %v2082_v14  ;;  %v2072_v19 = vsub.f32 0.0, %v8210_v43  ;;  %v2057_v5 = vadd.f32 %v2041_v42, %v1969_v49 }
 0x50c   : > { %5835 = vrcp.f32 %v2092_v62  ;;  %v1971_v40 = vadd.f32 %v1955_v31, %v1883_v9 }
 0x50d   : > { %v5830_v16 = vpop.eup %5829  ;;  %v2084_v13 = vmul.f32 1.442695, %v2072_v19  ;;  %v2065_v27 = vadd.f32 %v2057_v5, %v12247_v11  ;;  %v2031_v17 = vpop.permute.xlu1 %2030 }
 0x50e   : > { %v2093_v59 = vadd.f32 1.0, %v5830_v16  ;;  %v2042_v46 = vsel %vm732_vm1, %v2029_v29, %v2031_v17 }
 0x50f   : > { %5837 = vpow2.f32 %v2084_v13  ;;  %v2073_v45 = vsub.f32 0.0, %v2065_v27  ;;  %v2058_v32 = vadd.f32 %v2042_v46, %v1970_v12 }
 0x510   : > { %5839 = vrcp.f32 %v2093_v59 }
 0x511   : > { %v5832_v22 = vpop.eup %5831  ;;  %v2086_v47 = vmul.f32 1.442695, %v2073_v45  ;;  %v2066_v54 = vadd.f32 %v2058_v32, %v12249_v4  ;;  %v2035_v48 = vpop.permute.xlu1 %2034 }
 0x512   : > { %v2094_v38 = vadd.f32 1.0, %v5832_v22  ;;  %v2043_v49 = vsel %vm732_vm1, %v2033_v3, %v2035_v48 }
 0x513   : > { %5841 = vpow2.f32 %v2086_v47  ;;  %v2074_v6 = vsub.f32 0.0, %v2066_v54  ;;  %v2059_v14 = vadd.f32 %v2043_v49, %v1971_v40 }
 0x514   : > { %5843 = vrcp.f32 %v2094_v38  ;;  %v12259_v38 = vld [vmem:[#allocation12_spill] sm:$0xff] }
 0x515   : > { %v5834_v52 = vpop.eup %5833  ;;  %v2088_v10 = vmul.f32 1.442695, %v2074_v6  ;;  %v2067_v21 = vadd.f32 %v2059_v14, %v12250_v25 }
 0x516   : > { %v2095_v55 = vadd.f32 1.0, %v5834_v52  ;;  %v5836_v23 = vpop.eup %5835 }
 0x517   : > { %5845 = vpow2.f32 %v2088_v10  ;;  %v2075_v33 = vsub.f32 0.0, %v2067_v21  ;;  %v8232_v29 = vmul.f32 %v5836_v23, %v8140_v36  ;;  %v12261_v10 = vld [vmem:[#allocation34_spill] sm:$0xff] }
 0x518   : > { %5847 = vrcp.f32 %v2095_v55  ;;  %v12262_v55 = vld [vmem:[#allocation35_spill] sm:$0xff]  ;;  %v12263_v23 = vld [vmem:[#allocation14_spill] sm:$0xff] }
 0x519   : > { %v5838_v62 = vpop.eup %5837  ;;  %v2090_v42 = vmul.f32 1.442695, %v2075_v33  ;;  %12251 = vst [vmem:[#allocation82_spill] sm:$0xff] %v8232_v29 }
 0x51a   : > { %v5840_v63 = vpop.eup %5839  ;;  %v2096_v19 = vadd.f32 1.0, %v5838_v62 }
 0x51b   : > { %v8235_v5 = vmul.f32 %v5840_v63, %v8160_v2  ;;  %5849 = vpow2.f32 %v2090_v42  ;;  %v12264_v42 = vld [vmem:[#allocation36_spill] sm:$0xff] }
 0x51c   : > { %5851 = vrcp.f32 %v2096_v19  ;;  %v2268_v19 = vmul.f32 %v12263_v23, %v12261_v10 }
 0x51d   : > { %12252 = vst [vmem:[#allocation63_spill] sm:$0xff] %v8235_v5  ;;  %v5842_v26 = vpop.eup %5841  ;;  %v5681_v24 = vpack.i.bf16 %v8235_v5, %v8232_v29 }
 0x51e   : > { %v2097_v16 = vadd.f32 1.0, %v5842_v26  ;;  %v5844_v15 = vpop.eup %5843  ;;  %v12265_v26 = vld [vmem:[#allocation37_spill] sm:$0xff] }
 0x51f   : > { %5682 = vrot.lane.b32.xlu0 %v5681_v24, %s6363_s8  ;;  %v8243_v2 = vmul.f32 %v5844_v15, %v8174_v7  ;;  %v12266_v15 = vld [vmem:[#allocation38_spill] sm:$0xff] }
 0x520   : > { %5853 = vrcp.f32 %v2097_v16  ;;  %v2270_v16 = vmul.f32 %v12263_v23, %v12262_v55 }
 0x521   : > { %v5846_v12 = vpop.eup %5845  ;;  %12253 = vst [vmem:[#allocation64_spill] sm:$0xff] %v8243_v2 }
 0x522   : > { %v5848_v36 = vpop.eup %5847  ;;  %v2098_v13 = vadd.f32 1.0, %v5846_v12 }
 0x523   : > { %v8246_v17 = vmul.f32 %v5848_v36, %v8196_v35  ;;  %v2272_v36 = vmul.f32 %v12263_v23, %v12264_v42 }
 0x524   : > { %5855 = vrcp.f32 %v2098_v13  ;;  %v12267_v13 = vld [vmem:[#allocation39_spill] sm:$0xff] }
 0x525   : > { %12254 = vst [vmem:[#allocation84_spill] sm:$0xff] %v8246_v17  ;;  %v5850_v60 = vpop.eup %5849  ;;  %v5686_v31 = vpack.i.bf16 %v8246_v17, %v8243_v2 }
 0x526   : > { %v2099_v46 = vadd.f32 1.0, %v5850_v60  ;;  %v5852_v9 = vpop.eup %5851 }
 0x527   : > { %5687 = vrot.lane.b32.xlu1 %v5686_v31, %s6363_s8  ;;  %v8254_v7 = vmul.f32 %v5852_v9, %v8210_v43  ;;  %v6148_v43 = vld [vmem:[%s6504_s28 + $0xc] sm:$0xf]  ;;  %s5134_s28 = sshll.u32 %s243_s14, 4  ;;  %s11564_s28 = int_to_ptr.vmem [resolvable:$true] %s5134_s28 }
 0x528   : > { %5857 = vrcp.f32 %v2099_v46  ;;  %v12268_v46 = vld [vmem:[#allocation10_spill] sm:$0xff]  ;;  %p6290_p8 = scmp.lt.s32.totalorder %s11564_s28, %s6288_s9 }
 0x529   : > { %12255 = vst [vmem:[#allocation68_spill] sm:$0xff] %v8254_v7  ;;  %v8321_v9 = vrot.slane %v6148_v43, %v12268_v46 }
 0x52a   : > { %v5854_v45 = vpop.eup %5853 }
 0x52b   : > { %v8256_v35 = vmul.f32 %v5854_v45, %v2065_v27  ;;  %v8270_v27 = vrot.slane %v6148_v43, %v12259_v38  ;;  %v12269_v45 = vld [vmem:[#allocation40_spill] sm:$0xff]  ;;  %v2278_v43 = vmul.f32 %v12263_v23, %v12267_v13 }
 0x52d   : > { %12256 = vst [vmem:[#allocation83_spill] sm:$0xff] %v8256_v35  ;;  %v5691_v32 = vpack.i.bf16 %v8256_v35, %v8254_v7  ;;  %v8276_v6 = vrot.slane %v8270_v27, %v12259_v38  ;;  %v12270_v38 = vld [vmem:[#allocation41_spill] sm:$0xff] }
 0x52e   : > { %v5856_v40 = vpop.eup %5855 }
 0x52f   : > { %5692 = vrot.lane.b32.xlu0 %v5691_v32, %s6363_s8  ;;  %v8263_v3 = vmul.f32 %v5856_v40, %v2066_v54  ;;  %v12260_v54 = vld [vmem:[#allocation33_spill] sm:$0xff]  ;;  %v2269_v33 = vmul.f32 %v8276_v6, %v12262_v55  ;;  %v2271_v63 = vmul.f32 %v8276_v6, %v12264_v42  ;;  %v2275_v12 = vmul.f32 %v8276_v6, %v12266_v15  ;;  %v8354_v42 = vld [vmem:[%s11608_s2 + $0x8] sm:$0xff] }
 0x530   : > { %v2265_v52 = vmul.f32 %v8276_v6, %v12260_v54  ;;  %v2266_v62 = vmul.f32 %v12263_v23, %v12260_v54  ;;  %v2277_v60 = vmul.f32 %v8276_v6, %v12267_v13  ;;  %v2276_v40 = vmul.f32 %v12263_v23, %v12266_v15  ;;  %v12271_v54 = vld [vmem:[#allocation42_spill] sm:$0xff]  ;;  %12274 = vst [vmem:[#allocation60_spill] sm:$0xff] %v8354_v42  ;;  %v2789_v13 = vld [vmem:[%s11608_s2 + $0x10] sm:$0xff] }
 0x531   : > { %12257 = vst [vmem:[#allocation13_spill] sm:$0xff] %v8263_v3  ;;  %5217 = vmatprep.mubr.msk.f32.mxu0 %vm2915_vm6, %v8354_v42  ;;  %5233 = vmatprep.mubr.msk.f32.mxu1 %vm2915_vm6, %v8354_v42 }
 0x532   : > { %v5858_v47 = vpop.eup %5857 }
 0x533   : > { %v8265_v48 = vmul.f32 %v5858_v47, %v2067_v21  ;;  %5702 = vrot.lane.b32.xlu0 %v5681_v24, %s6359_s15  ;;  %v2267_v21 = vmul.f32 %v8276_v6, %v12261_v10  ;;  %v2273_v24 = vmul.f32 %v8276_v6, %v12265_v26  ;;  %v8329_v47 = vrot.slane %v8321_v9, %v12268_v46 }
 0x534   : > { %v2280_v10 = vmul.f32 %v12263_v23, %v12269_v45 }
 0x535   : > { %12258 = vst [vmem:[#allocation16_spill] sm:$0xff] %v8265_v48  ;;  %v5696_v49 = vpack.i.bf16 %v8265_v48, %v8263_v3 }
 0x537   : > { %5712 = vrot.lane.b32.xlu0 %v5691_v32, %s6359_s15  ;;  %5697 = vrot.lane.b32.xlu1 %v5696_v49, %s6363_s8  ;;  %v2279_v32 = vmul.f32 %v8276_v6, %v12269_v45  ;;  %v8394_v45 = vld [vmem:[%s11608_s2 + $0x28] sm:$0xff] }
 0x538   : > { %12279 = vst [vmem:[#allocation66_spill] sm:$0xff] %v8394_v45 }
 0x53b   : > { %2297 = vrot.lane.b32.xlu0 %v2265_v52, %s6359_s15  ;;  %5707 = vrot.lane.b32.xlu1 %v5686_v31, %s6359_s15  ;;  %v2274_v31 = vmul.f32 %v12263_v23, %v12265_v26  ;;  %v2373_v52 = vmul.f32 %v8329_v47, %v12271_v54 }
 0x53f   : > { %2301 = vrot.lane.b32.xlu0 %v2267_v21, %s6359_s15  ;;  %5717 = vrot.lane.b32.xlu1 %v5696_v49, %s6359_s15  ;;  %v2371_v49 = vmul.f32 %v8329_v47, %v12270_v38  ;;  %v12272_v21 = vld [vmem:[#allocation43_spill] sm:$0xff] }
 0x540   : > { %v2375_v55 = vmul.f32 %v8329_v47, %v12272_v21 }
 0x543   : > { %2305 = vrot.lane.b32.xlu0 %v2269_v33, %s6359_s15  ;;  %2299 = vrot.lane.b32.xlu1 %v2266_v62, %s6359_s15  ;;  %v12273_v33 = vld [vmem:[#allocation17_spill] sm:$0xff] }
 0x544   : > { %v2372_v62 = vmul.f32 %v12273_v33, %v12270_v38  ;;  %v2374_v26 = vmul.f32 %v12273_v33, %v12271_v54  ;;  %v2793_v54 = vld [vmem:[%s11608_s2 + $0x30] sm:$0xff] }
 0x547   : > { %2309 = vrot.lane.b32.xlu0 %v2271_v63, %s6359_s15  ;;  %2303 = vrot.lane.b32.xlu1 %v2268_v19, %s6359_s15  ;;  %v12275_v63 = vld [vmem:[#allocation44_spill] sm:$0xff] }
 0x548   : > { %v2377_v19 = vmul.f32 %v8329_v47, %v12275_v63  ;;  %v2378_v46 = vmul.f32 %v12273_v33, %v12275_v63  ;;  %v12284_v63 = vld [vmem:[#allocation49_spill] sm:$0xff] }
 0x54b   : > { %2313 = vrot.lane.b32.xlu0 %v2273_v24, %s6359_s15  ;;  %2307 = vrot.lane.b32.xlu1 %v2270_v16, %s6359_s15  ;;  %v2787_v24 = vld [vmem:[%s11608_s2] sm:$0xff] }
 0x54c   : > { %3029 = vmatmul.mubr.f32.vlgmr.msra.gmra.mrb[0].mxu0 %v2787_v24  ;;  %v12276_v16 = vld [vmem:[#allocation45_spill] sm:$0xff]  ;;  %v8442_v24 = vld [vmem:[%s11608_s2 + $0x58] sm:$0xff] }
 0x54d   : > { %v2379_v15 = vmul.f32 %v8329_v47, %v12276_v16  ;;  %12285 = vst [vmem:[#allocation76_spill] sm:$0xff] %v8442_v24 }
 0x54f   : > { %2317 = vrot.lane.b32.xlu0 %v2275_v12, %s6359_s15  ;;  %2311 = vrot.lane.b32.xlu1 %v2272_v36, %s6359_s15  ;;  %v2376_v12 = vmul.f32 %v12273_v33, %v12272_v21  ;;  %v8378_v36 = vld [vmem:[%s11608_s2 + $0x18] sm:$0xff] }
 0x550   : > { %12277 = vst [vmem:[#allocation59_spill] sm:$0xff] %v8378_v36  ;;  %5218 = vmatprep.mubr.msk.f32.mxu0 %vm2915_vm6, %v8378_v36 }
 0x551   : > { %3035 = vmatmul.mubr.f32.gmra.mrb[2].mxu0 %v2789_v13 }
 0x552   : > { %5219 = vmatprep.mubr.msk.f32.mxu0 %vm2915_vm6, %v8394_v45 }
 0x553   : > { %2321 = vrot.lane.b32.xlu0 %v2277_v60, %s6359_s15  ;;  %2315 = vrot.lane.b32.xlu1 %v2274_v31, %s6359_s15  ;;  %v12278_v60 = vld [vmem:[#allocation46_spill] sm:$0xff] }
 0x554   : > { %v2381_v31 = vmul.f32 %v8329_v47, %v12278_v60  ;;  %v2382_v21 = vmul.f32 %v12273_v33, %v12278_v60  ;;  %v8458_v60 = vld [vmem:[%s11608_s2 + $0x68] sm:$0xff] }
 0x555   : > { %12287 = vst [vmem:[#allocation57_spill] sm:$0xff] %v8458_v60 }
 0x557   : > { %2325 = vrot.lane.b32.xlu0 %v2279_v32, %s6359_s15  ;;  %2319 = vrot.lane.b32.xlu1 %v2276_v40, %s6359_s15  ;;  %v2791_v32 = vld [vmem:[%s11608_s2 + $0x20] sm:$0xff]  ;;  %v12280_v40 = vld [vmem:[#allocation47_spill] sm:$0xff] }
 0x558   : > { %v2383_v38 = vmul.f32 %v8329_v47, %v12280_v40  ;;  %3041 = vmatmul.mubr.f32.gmra.mrb[4].mxu0 %v2791_v32 }
 0x55b   : > { %2403 = vrot.lane.b32.xlu0 %v2371_v49, %s6359_s15  ;;  %2323 = vrot.lane.b32.xlu1 %v2278_v43, %s6359_s15  ;;  %v2380_v49 = vmul.f32 %v12273_v33, %v12276_v16  ;;  %v8410_v43 = vld [vmem:[%s11608_s2 + $0x38] sm:$0xff]  ;;  %v2797_v16 = vld [vmem:[%s11608_s2 + $0x50] sm:$0xff] }
 0x55c   : > { %12281 = vst [vmem:[#allocation65_spill] sm:$0xff] %v8410_v43  ;;  %5220 = vmatprep.mubr.msk.f32.mxu0 %vm2915_vm6, %v8410_v43 }
 0x55d   : > { %3047 = vmatmul.mubr.f32.gmra.mrb[6].mxu0 %v2793_v54  ;;  %v12290_v54 = vld [vmem:[#allocation71_spill] sm:$0xff] }
 0x55f   : > { %2407 = vrot.lane.b32.xlu0 %v2373_v52, %s6359_s15  ;;  %2327 = vrot.lane.b32.xlu1 %v2280_v10, %s6359_s15  ;;  %v12282_v52 = vld [vmem:[#allocation48_spill] sm:$0xff] }
 0x560   : > { %v2385_v10 = vmul.f32 %v8329_v47, %v12282_v52  ;;  %v2386_v13 = vmul.f32 %v12273_v33, %v12282_v52  ;;  %v2465_v52 = vmul.f32 %v8276_v6, %v12290_v54 }
 0x563   : > { %2411 = vrot.lane.b32.xlu0 %v2375_v55, %s6359_s15  ;;  %2405 = vrot.lane.b32.xlu1 %v2372_v62, %s6359_s15  ;;  %v8426_v55 = vld [vmem:[%s11608_s2 + $0x48] sm:$0xff]  ;;  %v2795_v62 = vld [vmem:[%s11608_s2 + $0x40] sm:$0xff] }
 0x564   : > { %12283 = vst [vmem:[#allocation77_spill] sm:$0xff] %v8426_v55  ;;  %5221 = vmatprep.mubr.msk.f32.mxu0 %vm2915_vm6, %v8426_v55 }
 0x565   : > { %3053 = vmatmul.mubr.f32.gmra.mrb[8].mxu0 %v2795_v62  ;;  %v2803_v62 = vld [vmem:[%s11608_s2 + $0x80] sm:$0xff] }
 0x566   : > { %5222 = vmatprep.mubr.msk.f32.mxu0 %vm2915_vm6, %v8442_v24 }
 0x567   : > { %2415 = vrot.lane.b32.xlu0 %v2377_v19, %s6359_s15  ;;  %2409 = vrot.lane.b32.xlu1 %v2374_v26, %s6359_s15  ;;  %v2459_v19 = vmul.f32 %v8276_v6, %v12284_v63  ;;  %v2384_v26 = vmul.f32 %v12273_v33, %v12280_v40  ;;  %v2460_v40 = vmul.f32 %v12263_v23, %v12284_v63  ;;  %v12292_v63 = vld [vmem:[#allocation72_spill] sm:$0xff] }
 0x569   : > { %3059 = vmatmul.mubr.f32.gmra.mrb[10].mxu0 %v2797_v16  ;;  %v8506_v16 = vld [vmem:[%s11608_s2 + $0x98] sm:$0xff] }
 0x56a   : > { %5223 = vmatprep.mubr.msk.f32.mxu0 %vm2915_vm6, %v8458_v60  ;;  %12293 = vst [vmem:[#allocation62_spill] sm:$0xff] %v8506_v16 }
 0x56b   : > { %2419 = vrot.lane.b32.xlu0 %v2379_v15, %s6359_s15  ;;  %2413 = vrot.lane.b32.xlu1 %v2376_v12, %s6359_s15  ;;  %v12286_v15 = vld [vmem:[#allocation70_spill] sm:$0xff] }
 0x56c   : > { %v2461_v12 = vmul.f32 %v8276_v6, %v12286_v15 }
 0x56f   : > { %2423 = vrot.lane.b32.xlu0 %v2381_v31, %s6359_s15  ;;  %2417 = vrot.lane.b32.xlu1 %v2378_v46, %s6359_s15  ;;  %v2799_v31 = vld [vmem:[%s11608_s2 + $0x60] sm:$0xff] }
 0x570   : > { %v12288_v46 = vld [vmem:[#allocation69_spill] sm:$0xff]  ;;  %3065 = vmatmul.mubr.f32.gmra.mrb[12].mxu0 %v2799_v31  ;;  %v2466_v31 = vmul.f32 %v12263_v23, %v12290_v54  ;;  %v2468_v54 = vmul.f32 %v12263_v23, %v12292_v63 }
 0x571   : > { %v2463_v32 = vmul.f32 %v8276_v6, %v12288_v46 }
 0x573   : > { %2427 = vrot.lane.b32.xlu0 %v2383_v38, %s6359_s15  ;;  %2421 = vrot.lane.b32.xlu1 %v2380_v49, %s6359_s15  ;;  %v8474_v38 = vld [vmem:[%s11608_s2 + $0x78] sm:$0xff]  ;;  %v2801_v49 = vld [vmem:[%s11608_s2 + $0x70] sm:$0xff] }
 0x574   : > { %12289 = vst [vmem:[#allocation58_spill] sm:$0xff] %v8474_v38  ;;  %5224 = vmatprep.mubr.msk.f32.mxu0 %vm2915_vm6, %v8474_v38 }
 0x575   : > { %3071 = vmatmul.mubr.f32.gmra.mrb[14].mxu0 %v2801_v49 }
 0x577   : > { %2431 = vrot.lane.b32.xlu0 %v2385_v10, %s6359_s15  ;;  %2425 = vrot.lane.b32.xlu1 %v2382_v21, %s6359_s15  ;;  %v2462_v10 = vmul.f32 %v12263_v23, %v12286_v15  ;;  %v8490_v21 = vld [vmem:[%s11608_s2 + $0x88] sm:$0xff]  ;;  %v2805_v15 = vld [vmem:[%s11608_s2 + $0x90] sm:$0xff] }
 0x578   : > { %12291 = vst [vmem:[#allocation61_spill] sm:$0xff] %v8490_v21  ;;  %5225 = vmatprep.mubr.msk.f32.mxu0 %vm2915_vm6, %v8490_v21 }
 0x579   : > { %3077 = vmatmul.mubr.f32.gmra.mrb[16].mxu0 %v2803_v62  ;;  %v12298_v62 = vld [vmem:[#allocation75_spill] sm:$0xff] }
 0x57a   : > { %5226 = vmatprep.mubr.msk.f32.mxu0 %vm2915_vm6, %v8506_v16 }
 0x57b   : > { %2491 = vrot.lane.b32.xlu0 %v2459_v19, %s6360_s16  ;;  %2429 = vrot.lane.b32.xlu1 %v2384_v26, %s6359_s15  ;;  %v2467_v19 = vmul.f32 %v8276_v6, %v12292_v63  ;;  %v2464_v26 = vmul.f32 %v12263_v23, %v12288_v46  ;;  %v8522_v46 = vld [vmem:[%s11608_s2 + $0xa8] sm:$0xff]  ;;  %v2473_v63 = vmul.f32 %v8276_v6, %v12298_v62 }
 0x57c   : > { %12295 = vst [vmem:[#allocation55_spill] sm:$0xff] %v8522_v46 }
 0x57d   : > { %3083 = vmatmul.mubr.f32.gmra.mrb[18].mxu0 %v2805_v15 }
 0x57e   : > { %5227 = vmatprep.mubr.msk.f32.mxu0 %vm2915_vm6, %v8522_v46 }
 0x57f   : > { %2495 = vrot.lane.b32.xlu0 %v2461_v12, %s6360_s16  ;;  %2433 = vrot.lane.b32.xlu1 %v2386_v13, %s6359_s15  ;;  %v12294_v12 = vld [vmem:[#allocation73_spill] sm:$0xff] }
 0x580   : > { %v2469_v13 = vmul.f32 %v8276_v6, %v12294_v12 }
 0x583   : > { %2499 = vrot.lane.b32.xlu0 %v2463_v32, %s6360_s16  ;;  %2493 = vrot.lane.b32.xlu1 %v2460_v40, %s6360_s16  ;;  %v2807_v32 = vld [vmem:[%s11608_s2 + $0xa0] sm:$0xff]  ;;  %v12296_v40 = vld [vmem:[#allocation74_spill] sm:$0xff] }
 0x584   : > { %v2471_v49 = vmul.f32 %v8276_v6, %v12296_v40  ;;  %3089 = vmatmul.mubr.f32.gmra.mrb[20].mxu0 %v2807_v32  ;;  %v12301_v6 = vld [vmem:[#allocation87_spill] sm:$0xff]  ;;  %v2474_v32 = vmul.f32 %v12263_v23, %v12298_v62 }
 0x587   : > { %2503 = vrot.lane.b32.xlu0 %v2465_v52, %s6360_s16  ;;  %2497 = vrot.lane.b32.xlu1 %v2462_v10, %s6360_s16  ;;  %v8538_v52 = vld [vmem:[%s11608_s2 + $0xb8] sm:$0xff]  ;;  %v2809_v10 = vld [vmem:[%s11608_s2 + $0xb0] sm:$0xff] }
 0x588   : > { %12297 = vst [vmem:[#allocation79_spill] sm:$0xff] %v8538_v52  ;;  %5228 = vmatprep.mubr.msk.f32.mxu0 %vm2915_vm6, %v8538_v52 }
 0x589   : > { %3095 = vmatmul.mubr.f32.gmra.mrb[22].mxu0 %v2809_v10 }
 0x58b   : > { %2507 = vrot.lane.b32.xlu0 %v2467_v19, %s6360_s16  ;;  %2501 = vrot.lane.b32.xlu1 %v2464_v26, %s6360_s16  ;;  %v2470_v19 = vmul.f32 %v12263_v23, %v12294_v12  ;;  %v12299_v26 = vld [vmem:[#allocation88_spill] sm:$0xff]  ;;  %v2549_v12 = vmul.f32 %v8329_v47, %v12301_v6 }
 0x58c   : > { %v2547_v15 = vmul.f32 %v8329_v47, %v12299_v26  ;;  %v2548_v10 = vmul.f32 %v12273_v33, %v12299_v26 }
 0x58f   : > { %2511 = vrot.lane.b32.xlu0 %v2469_v13, %s6360_s16  ;;  %2505 = vrot.lane.b32.xlu1 %v2466_v31, %s6360_s16  ;;  %v2472_v13 = vmul.f32 %v12263_v23, %v12296_v40  ;;  %v12306_v23 = vld [vmem:[#allocation90_spill] sm:$0xff] }
 0x590   : > { %v2553_v62 = vmul.f32 %v8329_v47, %v12306_v23  ;;  %v2554_v14 = vmul.f32 %v12273_v33, %v12306_v23 }
 0x591   : > { %v8557_v31 = vpop.permute.xlu0 %5682 }
 0x592   : > { %12300 = vst [vmem:[#allocation78_spill] sm:$0xff] %v8557_v31 }
 0x593   : > { %2515 = vrot.lane.b32.xlu0 %v2471_v49, %s6360_s16  ;;  %2509 = vrot.lane.b32.xlu1 %v2468_v54, %s6360_s16  ;;  %v12303_v54 = vld [vmem:[#allocation89_spill] sm:$0xff] }
 0x594   : > { %v2551_v40 = vmul.f32 %v8329_v47, %v12303_v54 }
 0x597   : > { %2519 = vrot.lane.b32.xlu0 %v2473_v63, %s6360_s16  ;;  %2513 = vrot.lane.b32.xlu1 %v2470_v19, %s6360_s16 }
 0x599   : > { %v8573_v63 = vpop.permute.xlu1 %5687 }
 0x59a   : > { %12304 = vst [vmem:[#allocation80_spill] sm:$0xff] %v8573_v63 }
 0x59b   : > { %2579 = vrot.lane.b32.xlu0 %v2547_v15, %s6360_s16  ;;  %2517 = vrot.lane.b32.xlu1 %v2472_v13, %s6360_s16  ;;  %v2550_v15 = vmul.f32 %v12273_v33, %v12301_v6 }
 0x59f   : > { %2583 = vrot.lane.b32.xlu0 %v2549_v12, %s6360_s16  ;;  %2521 = vrot.lane.b32.xlu1 %v2474_v32, %s6360_s16  ;;  %v12309_v12 = vld [vmem:[#allocation91_spill] sm:$0xff] }
 0x5a0   : > { %v2555_v32 = vmul.f32 %v8329_v47, %v12309_v12  ;;  %v2556_v59 = vmul.f32 %v12273_v33, %v12309_v12  ;;  %v8626_v12 = vld [vmem:[%s11608_s2 + $0xc8] sm:$0xff] }
 0x5a1   : > { %v8565_v49 = vpop.permute.xlu0 %5692  ;;  %12315 = vst [vmem:[#allocation86_spill] sm:$0xff] %v8626_v12  ;;  %5229 = vmatprep.mubr.msk.f32.mxu0 %vm2915_vm6, %v8626_v12 }
 0x5a2   : > { %12302 = vst [vmem:[#allocation56_spill] sm:$0xff] %v8565_v49 }
 0x5a3   : > { %2587 = vrot.lane.b32.xlu0 %v2551_v40, %s6360_s16  ;;  %2581 = vrot.lane.b32.xlu1 %v2548_v10, %s6360_s16  ;;  %v2552_v40 = vmul.f32 %v12273_v33, %v12303_v54 }
 0x5a5   : > { %v8575_v19 = vpop.permute.xlu0 %5702 }
 0x5a6   : > { %12305 = vst [vmem:[#allocation81_spill] sm:$0xff] %v8575_v19 }
 0x5a7   : > { %2591 = vrot.lane.b32.xlu0 %v2553_v62, %s6360_s16  ;;  %2585 = vrot.lane.b32.xlu1 %v2550_v15, %s6360_s16  ;;  %v12311_v62 = vld [vmem:[#allocation92_spill] sm:$0xff] }
 0x5a8   : > { %v2557_v15 = vmul.f32 %v8329_v47, %v12311_v62 }
 0x5a9   : > { %v8583_v13 = vpop.permute.xlu1 %5697  ;;  %v8585_v26 = vpop.permute.xlu0 %5712 }
 0x5aa   : > { %12307 = vst [vmem:[#allocation26_spill] sm:$0xff] %v8583_v13  ;;  %12308 = vst [vmem:[#allocation29_spill] sm:$0xff] %v8585_v26  ;;  %v6364_v13 = vmov 64  }
 0x5ab   : > { %2595 = vrot.lane.b32.xlu0 %v2555_v32, %s6360_s16  ;;  %2589 = vrot.lane.b32.xlu1 %v2552_v40, %s6360_s16  ;;  %v12313_v32 = vld [vmem:[#allocation93_spill] sm:$0xff] }
 0x5ac   : > { %v2559_v40 = vmul.f32 %v8329_v47, %v12313_v32  ;;  %5761 = vset.pattern.permute.xlu0 %v6364_v13  ;;  %5762 = vset.pattern.permute.xlu1 %v6364_v13 }
 0x5ad   : > { %v8593_v10 = vpop.permute.xlu1 %5707  ;;  %v8595_v6 = vpop.permute.xlu0 %2297 }
 0x5ae   : > { %12310 = vst [vmem:[#allocation28_spill] sm:$0xff] %v8593_v10 }
 0x5af   : > { %2599 = vrot.lane.b32.xlu0 %v2557_v15, %s6360_s16  ;;  %2593 = vrot.lane.b32.xlu1 %v2554_v14, %s6360_s16  ;;  %v12314_v15 = vld [vmem:[#allocation94_spill] sm:$0xff] }
 0x5b0   : > { %v2561_v14 = vmul.f32 %v8329_v47, %v12314_v15 }
 0x5b1   : > { %v8603_v22 = vpop.permute.xlu1 %5717  ;;  %v8605_v54 = vpop.permute.xlu0 %2301 }
 0x5b2   : > { %12312 = vst [vmem:[#allocation15_spill] sm:$0xff] %v8603_v22  ;;  %v2558_v22 = vmul.f32 %v12273_v33, %v12311_v62  ;;  %v2560_v62 = vmul.f32 %v12273_v33, %v12313_v32  ;;  %v2562_v32 = vmul.f32 %v12273_v33, %v12314_v15  ;;  %v8674_v33 = vld [vmem:[%s11608_s2 + $0xf8] sm:$0xff]  ;;  %v2817_v15 = vld [vmem:[%s11608_s2 + $0xf0] sm:$0xff] }
 0x5b3   : > { %2603 = vrot.lane.b32.xlu0 %v2559_v40, %s6360_s16  ;;  %2597 = vrot.lane.b32.xlu1 %v2556_v59, %s6360_s16  ;;  %v2811_v59 = vld [vmem:[%s11608_s2 + $0xc0] sm:$0xff]  ;;  %12318 = vst [vmem:[#allocation30_spill] sm:$0xff] %v8674_v33 }
 0x5b4   : > { %3101 = vmatmul.mubr.f32.gmra.mrb[24].mxu0 %v2811_v59  ;;  %v8660_v59 = vld [vmem:[%s11608_s2 + $0xe8] sm:$0xff] }
 0x5b5   : > { %v8613_v1 = vpop.permute.xlu1 %2299  ;;  %v8615_v23 = vpop.permute.xlu0 %2305  ;;  %12317 = vst [vmem:[#allocation22_spill] sm:$0xff] %v8660_v59 }
 0x5b7   : > { %2607 = vrot.lane.b32.xlu0 %v2561_v14, %s6360_s16  ;;  %2601 = vrot.lane.b32.xlu1 %v2558_v22, %s6360_s16  ;;  %v8643_v22 = vld [vmem:[%s11608_s2 + $0xd8] sm:$0xff]  ;;  %v2813_v14 = vld [vmem:[%s11608_s2 + $0xd0] sm:$0xff] }
 0x5b8   : > { %12316 = vst [vmem:[#allocation32_spill] sm:$0xff] %v8643_v22  ;;  %5230 = vmatprep.mubr.msk.f32.mxu0 %vm2915_vm6, %v8643_v22 }
 0x5b9   : > { %v8633_v47 = vpop.permute.xlu1 %2303  ;;  %v8635_v40 = vpop.permute.xlu0 %2309  ;;  %3107 = vmatmul.mubr.f32.gmra.mrb[26].mxu0 %v2813_v14 }
 0x5ba   : > { %5231 = vmatprep.mubr.msk.f32.mxu0 %vm2915_vm6, %v8660_v59 }
 0x5bb   : > { %2605 = vrot.lane.b32.xlu1 %v2560_v62, %s6360_s16  ;;  %v2815_v62 = vld [vmem:[%s11608_s2 + $0xe0] sm:$0xff] }
 0x5bd   : > { %v8650_v26 = vpop.permute.xlu1 %2307  ;;  %v8652_v10 = vpop.permute.xlu0 %2313  ;;  %3113 = vmatmul.mubr.f32.gmra.mrb[28].mxu0 %v2815_v62 }
 0x5be   : > { %5232 = vmatprep.mubr.msk.f32.mxu0 %vm2915_vm6, %v8674_v33 }
 0x5bf   : > { %2609 = vrot.lane.b32.xlu1 %v2562_v32, %s6360_s16 }
 0x5c1   : > { %v8667_v3 = vpop.permute.xlu1 %2311  ;;  %v8669_v48 = vpop.permute.xlu0 %2317  ;;  %3119 = vmatmul.mubr.f32.gmra.mrb[30].mxu0 %v2817_v15 }
 0x5c5   : > { %v8681_v14 = vpop.permute.xlu1 %2315  ;;  %v8683_v32 = vpop.permute.xlu0 %2321 }
 0x5c6   : > { %12319 = vst [vmem:[#allocation18_spill] sm:$0xff] %v8683_v32 }
 0x5c9   : > { %v8685_v19 = vpop.permute.xlu1 %2319  ;;  %v8687_v62 = vpop.permute.xlu0 %2325 }
 0x5ca   : > { %12320 = vst [vmem:[#allocation95_spill] sm:$0xff] %v8687_v62  ;;  %v12333_v62 = vld [vmem:[#allocation27_spill] sm:$0xff] }
 0x5cd   : > { %v8689_v7 = vpop.permute.xlu1 %2323  ;;  %v2404_v35 = vpop.permute.xlu0 %2403 }
 0x5ce   : > { %12321 = vst [vmem:[#allocation11_spill] sm:$0xff] %v8689_v7 }
 0x5d1   : > { %v8691_v2 = vpop.permute.xlu1 %2327  ;;  %v2408_v17 = vpop.permute.xlu0 %2407 }
 0x5d2   : > { %12322 = vst [vmem:[#allocation24_spill] sm:$0xff] %v8691_v2  ;;  %v2230_v2 = vmul.f32 %v8321_v9, %v12333_v62  ;;  %v2219_v62 = vmul.f32 %v8270_v27, %v12336_v56  ;;  %v2220_v56 = vmul.f32 %v8270_v27, %v12127_v51 }
 0x5d5   : > { %v2406_v29 = vpop.permute.xlu1 %2405  ;;  %v2412_v5 = vpop.permute.xlu0 %2411 }
 0x5d9   : > { %v2410_v49 = vpop.permute.xlu1 %2409  ;;  %v8693_v63 = vpop.permute.xlu0 %2415 }
 0x5dd   : > { %v2414_v31 = vpop.permute.xlu1 %2413  ;;  %v8695_v15 = vpop.permute.xlu0 %2419 }
 0x5e1   : > { %v8697_v59 = vpop.permute.xlu1 %2417  ;;  %v8699_v12 = vpop.permute.xlu0 %2423 }
 0x5e2   : > { %12323 = vst [vmem:[#allocation31_spill] sm:$0xff] %v8699_v12 }
 0x5e5   : > { %v8701_v46 = vpop.permute.xlu1 %2421  ;;  %v8703_v33 = vpop.permute.xlu0 %2427 }
 0x5e6   : > { %12324 = vst [vmem:[#allocation23_spill] sm:$0xff] %v8703_v33  ;;  %v2218_v33 = vmul.f32 %v8270_v27, %v12334_v50 }
 0x5e8   : > { %v2238_v7 = vadd.f32 %v2230_v2, %v2218_v33  ;;  %v2232_v2 = vmul.f32 %v8321_v9, %v12126_v20  ;;  %v2233_v20 = vmul.f32 %v8321_v9, %v12128_v57  ;;  %v2234_v57 = vmul.f32 %v8321_v9, %v12130_v58 }
 0x5e9   : > { %v8705_v21 = vpop.permute.xlu1 %2425  ;;  %v8707_v22 = vpop.permute.xlu0 %2431  ;;  %v2438_v58 = vsel %vm473_vm0, %v8693_v63, %v8697_v59 }
 0x5ea   : > { %12325 = vst [vmem:[#allocation20_spill] sm:$0xff] %v8705_v21  ;;  %12326 = vst [vmem:[#allocation25_spill] sm:$0xff] %v8707_v22 }
 0x5ed   : > { %v8709_v60 = vpop.permute.xlu1 %2429  ;;  %v2492_v13 = vpop.permute.xlu0 %2491 }
 0x5ee   : > { %12327 = vst [vmem:[#allocation12_spill] sm:$0xff] %v8709_v60 }
 0x5f1   : > { %v8711_v52 = vpop.permute.xlu1 %2433  ;;  %v2496_v55 = vpop.permute.xlu0 %2495 }
 0x5f2   : > { %12328 = vst [vmem:[#allocation33_spill] sm:$0xff] %v8711_v52 }
 0x5f5   : > { %v2494_v16 = vpop.permute.xlu1 %2493  ;;  %v2500_v45 = vpop.permute.xlu0 %2499 }
 0x5f6   : > { %v2523_v21 = vsel %vm732_vm1, %v2492_v13, %v2494_v16  ;;  %v2223_v13 = vmul.f32 %v8270_v27, %v12132_v8 }
 0x5f9   : > { %v2498_v38 = vpop.permute.xlu1 %2497  ;;  %v8713_v36 = vpop.permute.xlu0 %2503 }
 0x5fa   : > { %v2524_v16 = vsel %vm732_vm1, %v2496_v55, %v2498_v38  ;;  %v2332_v38 = vsel %vm473_vm0, %v8635_v40, %v8667_v3  ;;  %v2235_v3 = vmul.f32 %v8321_v9, %v12133_v44 }
 0x5fd   : > { %v2502_v24 = vpop.permute.xlu1 %2501  ;;  %v8715_v43 = vpop.permute.xlu0 %2507 }
 0x601   : > { %v8717_v42 = vpop.permute.xlu1 %2505  ;;  %v8719_v25 = vpop.permute.xlu0 %2511 }
 0x602   : > { %12329 = vst [vmem:[#allocation34_spill] sm:$0xff] %v8719_v25  ;;  %v2329_v25 = vsel %vm473_vm0, %v8595_v6, %v8613_v1  ;;  %v2526_v8 = vsel %vm732_vm1, %v8713_v36, %v8717_v42  ;;  %v2334_v36 = vsel %vm473_vm0, %v8669_v48, %v8685_v19  ;;  %v2225_v48 = vmul.f32 %v8270_v27, %v12136_v41  ;;  %v12337_v19 = vld [vmem:[#allocation20_spill] sm:$0xff] }
 0x605   : > { %v8721_v4 = vpop.permute.xlu1 %2509  ;;  %v8723_v11 = vpop.permute.xlu0 %2515 }
 0x606   : > { %12330 = vst [vmem:[#allocation35_spill] sm:$0xff] %v8723_v11  ;;  %v2231_v11 = vmul.f32 %v8321_v9, %v12229_v0 }
 0x608   : > { %v2239_v1 = vadd.f32 %v2231_v11, %v2219_v62 }
 0x609   : > { %v8725_v22 = vpop.permute.xlu1 %2513  ;;  %v8727_v52 = vpop.permute.xlu0 %2519 }
 0x60a   : > { %12331 = vst [vmem:[#allocation14_spill] sm:$0xff] %v8725_v22  ;;  %12332 = vst [vmem:[#allocation36_spill] sm:$0xff] %v8727_v52  ;;  %v2435_v22 = vsel %vm473_vm0, %v2404_v35, %v2406_v29  ;;  %v2345_v52 = vadd.f32 %v2329_v25, %v2238_v7  ;;  %v2436_v29 = vsel %vm473_vm0, %v2408_v17, %v2410_v49 }
 0x60c   : > { %v2451_v0 = vadd.f32 %v2435_v22, %v2345_v52  ;;  %v2437_v52 = vsel %vm473_vm0, %v2412_v5, %v2414_v31 }
 0x60d   : > { %v8733_v60 = vpop.permute.xlu1 %2517  ;;  %v2580_v32 = vpop.permute.xlu0 %2579 }
 0x60e   : > { %12335 = vst [vmem:[#allocation37_spill] sm:$0xff] %v8733_v60  ;;  %v2330_v60 = vsel %vm473_vm0, %v8605_v54, %v8633_v47  ;;  %v2539_v7 = vadd.f32 %v2523_v21, %v2451_v0  ;;  %v2331_v54 = vsel %vm473_vm0, %v8615_v23, %v8650_v26  ;;  %v2240_v47 = vadd.f32 %v2232_v2, %v2220_v56 }
 0x60f   : > { %v2346_v25 = vadd.f32 %v2330_v60, %v2239_v1  ;;  %v2221_v21 = vmul.f32 %v8270_v27, %v12129_v39  ;;  %v2525_v23 = vsel %vm732_vm1, %v2500_v45, %v2502_v24 }
 0x610   : > { %v2347_v51 = vadd.f32 %v2331_v54, %v2240_v47  ;;  %v2224_v54 = vmul.f32 %v8270_v27, %v12135_v34  ;;  %v12340_v34 = vld [vmem:[#allocation11_spill] sm:$0xff] }
 0x611   : > { %v8743_v12 = vpop.permute.xlu1 %2521  ;;  %v2584_v50 = vpop.permute.xlu0 %2583  ;;  %v2452_v17 = vadd.f32 %v2436_v29, %v2346_v25  ;;  %v2241_v31 = vadd.f32 %v2233_v20, %v2221_v21  ;;  %v2439_v29 = vsel %vm473_vm0, %v8695_v15, %v8701_v46  ;;  %v12339_v20 = vld [vmem:[#allocation51_spill] sm:$0xff]  ;;  %v12341_v21 = vld [vmem:[#allocation18_spill] sm:$0xff] }
 0x612   : > { %v2453_v33 = vadd.f32 %v2437_v52, %v2347_v51  ;;  %v2335_v41 = vsel %vm473_vm0, %v12341_v21, %v12340_v34 }
 0x613   : > { %v2540_v49 = vadd.f32 %v2524_v16, %v2452_v17  ;;  %v2348_v45 = vadd.f32 %v2332_v38, %v2241_v31  ;;  %v12338_v16 = vld [vmem:[#allocation31_spill] sm:$0xff] }
 0x614   : > { %v2541_v24 = vadd.f32 %v2525_v23, %v2453_v33  ;;  %v12344_v23 = vld [vmem:[#allocation12_spill] sm:$0xff] }
 0x615   : > { %v2582_v35 = vpop.permute.xlu1 %2581  ;;  %v2588_v6 = vpop.permute.xlu0 %2587  ;;  %v2454_v2 = vadd.f32 %v2438_v58, %v2348_v45  ;;  %v12347_v45 = vld [vmem:[#allocation24_spill] sm:$0xff] }
 0x616   : > { %v2611_v11 = vsel %vm732_vm1, %v2580_v32, %v2582_v35  ;;  %v2527_v35 = vsel %vm732_vm1, %v8715_v43, %v8721_v4  ;;  %v2440_v4 = vsel %vm473_vm0, %v12338_v16, %v12337_v19 }
 0x617   : > { %v2627_v60 = vadd.f32 %v2611_v11, %v2539_v7  ;;  %v2542_v56 = vadd.f32 %v2526_v8, %v2454_v2  ;;  %v2236_v7 = vmul.f32 %v8321_v9, %v12134_v18  ;;  %v2237_v18 = vmul.f32 %v8321_v9, %v6661_v53 }
 0x619   : > { %v8765_v22 = vadd.f32 %v2627_v60, %v7223_v61  ;;  %v2586_v26 = vpop.permute.xlu1 %2585  ;;  %v2592_v55 = vpop.permute.xlu0 %2591  ;;  %v2222_v61 = vmul.f32 %v8270_v27, %v12131_v37  ;;  %v2333_v37 = vsel %vm473_vm0, %v8652_v10, %v8681_v14  ;;  %v2244_v51 = vadd.f32 %v2236_v7, %v2224_v54  ;;  %v12342_v27 = vld [vmem:[#allocation14_spill] sm:$0xff]  ;;  %v12353_v7 = vld [vmem:[#allocation53_spill] sm:$0xff] }
 0x61a   : > { %v2612_v5 = vsel %vm732_vm1, %v2584_v50, %v2586_v26 }
 0x61b   : > { %v2643_v39 = vsub.f32 0.0, %v8765_v22  ;;  %v2628_v32 = vadd.f32 %v2612_v5, %v2540_v49  ;;  %v2242_v1 = vadd.f32 %v2234_v57, %v2222_v61  ;;  %v12343_v49 = vld [vmem:[#allocation34_spill] sm:$0xff]  ;;  %v2245_v57 = vadd.f32 %v2237_v18, %v2225_v48  ;;  %v12345_v5 = vld [vmem:[#allocation23_spill] sm:$0xff] }
 0x61c   : > { %v2528_v53 = vsel %vm732_vm1, %v12343_v49, %v12342_v27  ;;  %v2441_v31 = vsel %vm473_vm0, %v12345_v5, %v12344_v23  ;;  %v12356_v27 = vld [vmem:[#allocation54_spill] sm:$0xff] }
 0x61d   : > { %v2651_v40 = vmul.f32 1.442695, %v2643_v39  ;;  %v8785_v62 = vadd.f32 %v2628_v32, %v7225_v30  ;;  %v2590_v50 = vpop.permute.xlu1 %2589  ;;  %v2596_v0 = vpop.permute.xlu0 %2595  ;;  %v2243_v30 = vadd.f32 %v2235_v3, %v2223_v13  ;;  %v2349_v25 = vadd.f32 %v2333_v37, %v2242_v1  ;;  %v12346_v13 = vld [vmem:[#allocation50_spill] sm:$0xff]  ;;  %v12350_v1 = vld [vmem:[#allocation35_spill] sm:$0xff] }
 0x61e   : > { %v2613_v44 = vsel %vm732_vm1, %v2588_v6, %v2590_v50  ;;  %v2351_v39 = vadd.f32 %v2335_v41, %v2244_v51  ;;  %v12349_v50 = vld [vmem:[#allocation37_spill] sm:$0xff] }
 0x61f   : > { %5859 = vpow2.f32 %v2651_v40  ;;  %v2644_v63 = vsub.f32 0.0, %v8785_v62  ;;  %v2629_v59 = vadd.f32 %v2613_v44, %v2541_v24  ;;  %v2455_v15 = vadd.f32 %v2439_v29, %v2349_v25  ;;  %v12348_v24 = vld [vmem:[#allocation95_spill] sm:$0xff]  ;;  %v12352_v29 = vld [vmem:[#allocation25_spill] sm:$0xff] }
 0x620   : > { %v2350_v43 = vadd.f32 %v2334_v36, %v2243_v30  ;;  %v2336_v40 = vsel %vm473_vm0, %v12348_v24, %v12347_v45  ;;  %v2529_v37 = vsel %vm732_vm1, %v12350_v1, %v12349_v50  ;;  %v2457_v2 = vadd.f32 %v2441_v31, %v2351_v39  ;;  %v12351_v30 = vld [vmem:[#allocation33_spill] sm:$0xff] }
 0x621   : > { %v2653_v10 = vmul.f32 1.442695, %v2644_v63  ;;  %v8799_v14 = vadd.f32 %v2629_v59, %v7248_v28  ;;  %v2594_v42 = vpop.permute.xlu1 %2593  ;;  %v2543_v11 = vadd.f32 %v2527_v35, %v2455_v15  ;;  %v2600_v60 = vpop.permute.xlu0 %2599  ;;  %v2442_v25 = vsel %vm473_vm0, %v12352_v29, %v12351_v30  ;;  %v12354_v15 = vld [vmem:[#allocation36_spill] sm:$0xff] }
 0x622   : > { %v2614_v46 = vsel %vm732_vm1, %v2592_v55, %v2594_v42  ;;  %v2456_v26 = vadd.f32 %v2440_v4, %v2350_v43  ;;  %v2545_v42 = vadd.f32 %v2529_v37, %v2457_v2 }
 0x623   : > { %5861 = vpow2.f32 %v2653_v10  ;;  %v2645_v6 = vsub.f32 0.0, %v8799_v14  ;;  %v2630_v28 = vadd.f32 %v2614_v46, %v2542_v56  ;;  %v2352_v10 = vadd.f32 %v2336_v40, %v2245_v57  ;;  %v8876_v40 = vpop.f32.mrb[0].mxu0 }
 0x624   : > { %v2544_v32 = vadd.f32 %v2528_v53, %v2456_v26 }
 0x625   : > { %v2655_v47 = vmul.f32 1.442695, %v2645_v6  ;;  %v8821_v17 = vadd.f32 %v2630_v28, %v12339_v20  ;;  %v2598_v52 = vpop.permute.xlu1 %2597  ;;  %v2604_v59 = vpop.permute.xlu0 %2603  ;;  %v2530_v6 = vsel %vm732_vm1, %v12354_v15, %v8743_v12  ;;  %v2458_v48 = vadd.f32 %v2442_v25, %v2352_v10 }
 0x626   : > { %v2615_v9 = vsel %vm732_vm1, %v2596_v0, %v2598_v52 }
 0x627   : > { %5863 = vpow2.f32 %v2655_v47  ;;  %v2646_v55 = vsub.f32 0.0, %v8821_v17  ;;  %v2631_v38 = vadd.f32 %v2615_v9, %v2543_v11  ;;  %v2546_v4 = vadd.f32 %v2530_v6, %v2458_v48  ;;  %v12355_v47 = vld [vmem:[#allocation52_spill] sm:$0xff] }
 0x629   : > { %v5860_v33 = vpop.eup %5859  ;;  %v2657_v61 = vmul.f32 1.442695, %v2646_v55  ;;  %v8835_v3 = vadd.f32 %v2631_v38, %v12346_v13  ;;  %v2602_v58 = vpop.permute.xlu1 %2601 }
 0x62a   : > { %v2667_v8 = vadd.f32 1.0, %v5860_v33  ;;  %v2616_v44 = vsel %vm732_vm1, %v2600_v60, %v2602_v58  ;;  %v2608_v11 = vpop.permute.xlu0 %2607 }
 0x62b   : > { %5865 = vpow2.f32 %v2657_v61  ;;  %v2647_v63 = vsub.f32 0.0, %v8835_v3  ;;  %v2632_v0 = vadd.f32 %v2616_v44, %v2544_v32 }
 0x62c   : > { %5867 = vrcp.f32 %v2667_v8 }
 0x62d   : > { %v5862_v56 = vpop.eup %5861  ;;  %v2659_v36 = vmul.f32 1.442695, %v2647_v63  ;;  %v8849_v35 = vadd.f32 %v2632_v0, %v12353_v7  ;;  %v2606_v46 = vpop.permute.xlu1 %2605 }
 0x62e   : > { %v2668_v28 = vadd.f32 1.0, %v5862_v56  ;;  %v2617_v54 = vsel %vm732_vm1, %v2604_v59, %v2606_v46 }
 0x62f   : > { %5869 = vpow2.f32 %v2659_v36  ;;  %v2648_v18 = vsub.f32 0.0, %v8849_v35  ;;  %v2633_v19 = vadd.f32 %v2617_v54, %v2545_v42 }
 0x630   : > { %5871 = vrcp.f32 %v2668_v28 }
 0x631   : > { %v5864_v16 = vpop.eup %5863  ;;  %v2661_v43 = vmul.f32 1.442695, %v2648_v18  ;;  %v2641_v20 = vadd.f32 %v2633_v19, %v12355_v47  ;;  %v2610_v60 = vpop.permute.xlu1 %2609  ;;  %v12357_v18 = vld [vmem:[#allocation60_spill] sm:$0xff]  ;;  %v12358_v19 = vld [vmem:[#allocation65_spill] sm:$0xff]  ;;  %v12363_v47 = vld [vmem:[#allocation62_spill] sm:$0xff] }
 0x632   : > { %v2669_v52 = vadd.f32 1.0, %v5864_v16  ;;  %v2618_v12 = vsel %vm732_vm1, %v2608_v11, %v2610_v60  ;;  %v12359_v16 = vld [vmem:[#allocation76_spill] sm:$0xff]  ;;  %v12362_v11 = vld [vmem:[#allocation66_spill] sm:$0xff]  ;;  %v12365_v60 = vld [vmem:[#allocation79_spill] sm:$0xff] }
 0x633   : > { %5873 = vpow2.f32 %v2661_v43  ;;  %v2649_v51 = vsub.f32 0.0, %v2641_v20  ;;  %v2634_v34 = vadd.f32 %v2618_v12, %v2546_v4  ;;  %v12360_v4 = vld [vmem:[#allocation59_spill] sm:$0xff]  ;;  %v12361_v43 = vld [vmem:[#allocation58_spill] sm:$0xff]  ;;  %v12367_v12 = vld [vmem:[#allocation32_spill] sm:$0xff] }
 0x634   : > { %5875 = vrcp.f32 %v2669_v52  ;;  %v12366_v52 = vld [vmem:[#allocation57_spill] sm:$0xff] }
 0x635   : > { %v5866_v21 = vpop.eup %5865  ;;  %v2663_v41 = vmul.f32 1.442695, %v2649_v51  ;;  %v2642_v49 = vadd.f32 %v2634_v34, %v12356_v27  ;;  %v12368_v51 = vld [vmem:[#allocation61_spill] sm:$0xff]  ;;  %v12369_v34 = vld [vmem:[#allocation30_spill] sm:$0xff] }
 0x636   : > { %v2670_v53 = vadd.f32 1.0, %v5866_v21  ;;  %v5868_v26 = vpop.eup %5867  ;;  %v12370_v21 = vld [vmem:[#allocation55_spill] sm:$0xff]  ;;  %v12371_v27 = vld [vmem:[#allocation86_spill] sm:$0xff] }
 0x637   : > { %5877 = vpow2.f32 %v2663_v41  ;;  %v2650_v9 = vsub.f32 0.0, %v2642_v49  ;;  %v8860_v5 = vmul.f32 %v5868_v26, %v8765_v22 }
 0x638   : > { %5879 = vrcp.f32 %v2670_v53 }
 0x639   : > { %v5870_v55 = vpop.eup %5869  ;;  %v2665_v38 = vmul.f32 1.442695, %v2650_v9  ;;  %v12372_v9 = vld [vmem:[#allocation22_spill] sm:$0xff] }
 0x63a   : > { %v5872_v57 = vpop.eup %5871  ;;  %v2671_v23 = vadd.f32 1.0, %v5870_v55 }
 0x63b   : > { %v8863_v31 = vmul.f32 %v5872_v57, %v8785_v62  ;;  %5881 = vpow2.f32 %v2665_v38 }
 0x63c   : > { %5883 = vrcp.f32 %v2671_v23 }
 0x63d   : > { %v5874_v33 = vpop.eup %5873  ;;  %v5721_v39 = vpack.i.bf16 %v8863_v31, %v8860_v5  ;;  %v5488_v32 = vpack.c.bf16 %v8863_v31, %v8860_v5 }
 0x63e   : > { %v2672_v61 = vadd.f32 1.0, %v5874_v33  ;;  %v5876_v13 = vpop.eup %5875 }
 0x63f   : > { %5722 = vrot.lane.b32.xlu0 %v5721_v39, %s6363_s8  ;;  %v8871_v62 = vmul.f32 %v5876_v13, %v8799_v14  ;;  %v8883_v14 = vpop.f32.mrb[1].mxu0 }
 0x640   : > { %5885 = vrcp.f32 %v2672_v61  ;;  %v8885_v2 = vpop.f32.mrb[2].mxu0 }
 0x641   : > { %v5878_v58 = vpop.eup %5877  ;;  %v8893_v0 = vpop.f32.mrb[3].mxu0 }
 0x642   : > { %v5880_v22 = vpop.eup %5879  ;;  %v2673_v45 = vadd.f32 1.0, %v5878_v58  ;;  %v8897_v29 = vpop.f32.mrb[4].mxu0 }
 0x643   : > { %v8874_v24 = vmul.f32 %v5880_v22, %v8821_v17  ;;  %v8902_v10 = vpop.f32.mrb[5].mxu0 }
 0x644   : > { %5887 = vrcp.f32 %v2673_v45 }
 0x645   : > { %v5882_v50 = vpop.eup %5881  ;;  %v5726_v1 = vpack.i.bf16 %v8874_v24, %v8871_v62  ;;  %v5492_v37 = vpack.c.bf16 %v8874_v24, %v8871_v62  ;;  %v12385_v62 = vld [vmem:[#allocation83_spill] sm:$0xff]  ;;  %v12386_v24 = vld [vmem:[#allocation68_spill] sm:$0xff] }
 0x646   : > { %v2674_v8 = vadd.f32 1.0, %v5882_v50  ;;  %v5884_v44 = vpop.eup %5883 }
 0x647   : > { %5727 = vrot.lane.b32.xlu1 %v5726_v1, %s6363_s8  ;;  %v8888_v63 = vmul.f32 %v5884_v44, %v8835_v3  ;;  %v8904_v3 = vpop.f32.mrb[6].mxu0 }
 0x648   : > { %5889 = vrcp.f32 %v2674_v8 }
 0x64a   : > { %v5886_v17 = vpop.eup %5885 }
 0x64b   : > { %v8891_v59 = vmul.f32 %v5886_v17, %v8849_v35  ;;  %v8911_v35 = vpop.f32.mrb[7].mxu0 }
 0x64c   : > { %v8915_v15 = vpop.f32.mrb[8].mxu0 }
 0x64d   : > { %v5731_v30 = vpack.i.bf16 %v8891_v59, %v8888_v63  ;;  %v5496_v25 = vpack.c.bf16 %v8891_v59, %v8888_v63  ;;  %v8919_v28 = vpop.f32.mrb[9].mxu0 }
 0x64e   : > { %v5888_v56 = vpop.eup %5887  ;;  %v8923_v54 = vpop.f32.mrb[10].mxu0 }
 0x64f   : > { %5732 = vrot.lane.b32.xlu0 %v5731_v30, %s6363_s8  ;;  %v8906_v36 = vmul.f32 %v5888_v56, %v2641_v20  ;;  %v8925_v48 = vpop.f32.mrb[11].mxu0  ;;  %v12364_v20 = vld [vmem:[#allocation77_spill] sm:$0xff] }
 0x650   : > { %v8943_v41 = vpop.f32.mrb[12].mxu0 }
 0x652   : > { %v5890_v42 = vpop.eup %5889 }
 0x653   : > { %v8908_v7 = vmul.f32 %v5890_v42, %v2642_v49  ;;  %5742 = vrot.lane.b32.xlu0 %v5721_v39, %s6359_s15  ;;  %v8946_v49 = vpop.f32.mrb[13].mxu0 }
 0x654   : > { %v8948_v53 = vpop.f32.mrb[14].mxu0 }
 0x655   : > { %v5736_v46 = vpack.i.bf16 %v8908_v7, %v8906_v36  ;;  %v5500_v6 = vpack.c.bf16 %v8908_v7, %v8906_v36  ;;  %v8951_v26 = vpop.f32.mrb[15].mxu0  ;;  %v12391_v36 = vld [vmem:[#allocation13_spill] sm:$0xff] }
 0x656   : > { %v8953_v55 = vpop.f32.mrb[16].mxu0 }
 0x657   : > { %5752 = vrot.lane.b32.xlu0 %v5731_v30, %s6359_s15  ;;  %5737 = vrot.lane.b32.xlu1 %v5736_v46, %s6363_s8  ;;  %v8955_v38 = vpop.f32.mrb[17].mxu0  ;;  %v12373_v30 = vld [vmem:[#allocation78_spill] sm:$0xff]  ;;  %s6283_s8 = scalar_lea.vmem %s11564_s28, 64 }
 0x658   : > { %v8957_v57 = vpop.f32.mrb[18].mxu0  ;;  %v5685_v56 = vunpack.i.h.bf16 %v12373_v30  ;;  %v5684_v42 = vunpack.i.l.bf16 %v12373_v30  ;;  %p6284_p6 = scmp.ne.s32.totalorder %s11564_s28, %s6283_s8  ;;  %p6291_p10 = scmp.lt.s32.totalorder %s6289_s10, %s6283_s8 }
 0x659   : > { %v8959_v23 = vpop.f32.mrb[19].mxu0 }
 0x65a   : > { %v8961_v33 = vpop.f32.mrb[20].mxu0  ;;  %p6285_p12 = pnand %p6284_p6, %p12642_p11  ;;  %p6292_p0 = por %p6291_p10, %p6290_p8 }
 0x65b   : > { %3368 = vperm.xlu0 %5761, %v12357_v18   ;;  %5747 = vrot.lane.b32.xlu1 %v5726_v1, %s6359_s15  ;;  %v8963_v39 = vpop.f32.mrb[21].mxu0 }
 0x65c   : > { %v8965_v61 = vpop.f32.mrb[22].mxu0  ;;  %p6286_p13 = pneg %p6285_p12 }
 0x65d   : > { %v8967_v13 = vpop.f32.mrb[23].mxu0 }
 0x65e   : > { %p6293_p2 = pnand %p6292_p0, %p6286_p13 }
 0x65f   : > { %3380 = vperm.xlu0 %5761, %v12358_v19   ;;  %5757 = vrot.lane.b32.xlu1 %v5736_v46, %s6359_s15  ;;  %s5121_s15 = scalar_lea.sflag [#allocation6], %s6500_s23 }
 0x663   : > { %3388 = vperm.xlu0 %5761, %v12359_v16   ;;  %3372 = vperm.xlu1 %5762, %v12360_v4   ;;  %v5467_v4 = vpack.c.bf16 %v5685_v56, %v5684_v42 }
 0x667   : > { %3396 = vperm.xlu0 %5761, %v12361_v43   ;;  %3376 = vperm.xlu1 %5762, %v12362_v11   ;;  %v12375_v11 = vld [vmem:[#allocation80_spill] sm:$0xff] }
 0x66b   : > { %3404 = vperm.xlu0 %5761, %v12363_v47   ;;  %3384 = vperm.xlu1 %5762, %v12364_v20   ;;  %v5690_v47 = vunpack.i.h.bf16 %v12375_v11  ;;  %v5689_v20 = vunpack.i.l.bf16 %v12375_v11 }
 0x66f   : > { %3412 = vperm.xlu0 %5761, %v12365_v60   ;;  %3392 = vperm.xlu1 %5762, %v12366_v52  }
 0x673   : > { %3420 = vperm.xlu0 %5761, %v12367_v12   ;;  %3400 = vperm.xlu1 %5762, %v12368_v51  }
 0x677   : > { %3428 = vperm.xlu0 %5761, %v12369_v34   ;;  %3408 = vperm.xlu1 %5762, %v12370_v21   ;;  %v5473_v34 = vpack.c.bf16 %v5690_v47, %v5689_v20  ;;  %v12376_v21 = vld [vmem:[#allocation56_spill] sm:$0xff] }
 0x67b   : > { %3416 = vperm.xlu1 %5762, %v12371_v27   ;;  %v5695_v27 = vunpack.i.h.bf16 %v12376_v21 }
 0x67f   : > { %3424 = vperm.xlu1 %5762, %v12372_v9   ;;  %v5694_v9 = vunpack.i.l.bf16 %v12376_v21 }
 0x687   : > { %v8969_v58 = vpop.f32.mrb[24].mxu0 }
 0x688   : > { %v8971_v22 = vpop.f32.mrb[25].mxu0 }
 0x68c   : > { %v8973_v45 = vpop.f32.mrb[26].mxu0 }
 0x68d   : > { %v8975_v50 = vpop.f32.mrb[27].mxu0 }
 0x690   : > { %v8977_v1 = vpop.f32.mrb[28].mxu0 }
 0x691   : > { %v8979_v8 = vpop.f32.mrb[29].mxu0 }
 0x694   : > { %v8981_v44 = vpop.f32.mrb[30].mxu0 }
 0x695   : > { %v8983_v17 = vpop.f32.mrb[31].mxu0 }
 0x6b1   : > { %v5723_v46 = vpop.permute.xlu0 %5722 }
 0x6b2   : > { %v5725_v18 = vunpack.i.h.bf16 %v5723_v46  ;;  %v5724_v19 = vunpack.i.l.bf16 %v5723_v46 }
 0x6b4   : > { %v5464_v16 = vpack.c.bf16 %v5725_v18, %v5724_v19  ;;  %v5479_v18 = vpack.c.bf16 %v5695_v27, %v5694_v9  ;;  %v12377_v19 = vld [vmem:[#allocation26_spill] sm:$0xff]  ;;  %v12381_v9 = vld [vmem:[#allocation84_spill] sm:$0xff] }
 0x6b6   : > { %5466 = vmatprep.subr.msk.bf16.mxu1 %vm7892_vm4, %v5464_v16  ;;  %v5700_v16 = vunpack.i.h.bf16 %v12377_v19 }
 0x6b7   : > { %5469 = vmatpush1.bf16.msk.msra.mxu1 %vm7892_vm4, %v5467_v4  ;;  %v5699_v4 = vunpack.i.l.bf16 %v12377_v19 }
 0x6b9   : > { %v5728_v60 = vpop.permute.xlu1 %5727 }
 0x6ba   : > { %v5730_v52 = vunpack.i.h.bf16 %v5728_v60  ;;  %v5729_v12 = vunpack.i.l.bf16 %v5728_v60 }
 0x6bc   : > { %v5470_v51 = vpack.c.bf16 %v5730_v52, %v5729_v12  ;;  %v5485_v52 = vpack.c.bf16 %v5700_v16, %v5699_v4 }
 0x6be   : > { %5472 = vmatprep.subr.msk.bf16.mxu1 %vm7892_vm4, %v5470_v51  ;;  %v12378_v51 = vld [vmem:[#allocation63_spill] sm:$0xff] }
 0x6bf   : > { %5475 = vmatpush1.bf16.msk.msra.mxu1 %vm7892_vm4, %v5473_v34  ;;  %v12379_v34 = vld [vmem:[#allocation82_spill] sm:$0xff] }
 0x6c0   : > { %v12380_v21 = vpack.c.bf16 %v12378_v51, %v12379_v34 }
 0x6c1   : > { %v5733_v30 = vpop.permute.xlu0 %5732 }
 0x6c2   : > { %v5735_v56 = vunpack.i.h.bf16 %v5733_v30  ;;  %v5734_v42 = vunpack.i.l.bf16 %v5733_v30  ;;  %v12382_v30 = vld [vmem:[#allocation64_spill] sm:$0xff] }
 0x6c4   : > { %v5476_v46 = vpack.c.bf16 %v5735_v56, %v5734_v42  ;;  %v12383_v56 = vpack.c.bf16 %v12381_v9, %v12382_v30 }
 0x6c5   : > { %v5743_v12 = vpop.permute.xlu0 %5742 }
 0x6c6   : > { %5478 = vmatprep.subr.msk.bf16.mxu1 %vm7892_vm4, %v5476_v46  ;;  %v5745_v5 = vunpack.i.h.bf16 %v5743_v12  ;;  %v5744_v31 = vunpack.i.l.bf16 %v5743_v12  ;;  %v12388_v46 = vld [vmem:[#allocation81_spill] sm:$0xff] }
 0x6c7   : > { %5481 = vmatpush1.bf16.msk.msra.mxu1 %vm7892_vm4, %v5479_v18  ;;  %v5705_v18 = vunpack.i.h.bf16 %v12388_v46  ;;  %v5704_v63 = vunpack.i.l.bf16 %v12388_v46 }
 0x6c9   : > { %v5738_v11 = vpop.permute.xlu1 %5737  ;;  %v5753_v27 = vpop.permute.xlu0 %5752 }
 0x6ca   : > { %v5740_v47 = vunpack.i.h.bf16 %v5738_v11  ;;  %v5739_v20 = vunpack.i.l.bf16 %v5738_v11  ;;  %v5754_v9 = vunpack.i.l.bf16 %v5753_v27 }
 0x6cc   : > { %v5482_v60 = vpack.c.bf16 %v5740_v47, %v5739_v20  ;;  %v12390_v20 = vld [vmem:[#allocation16_spill] sm:$0xff] }
 0x6cd   : > { %v5748_v43 = vpop.permute.xlu1 %5747  ;;  %v12392_v7 = vpack.c.bf16 %v12390_v20, %v12391_v36 }
 0x6ce   : > { %5484 = vmatprep.subr.msk.bf16.mxu1 %vm7892_vm4, %v5482_v60  ;;  %v5750_v19 = vunpack.i.h.bf16 %v5748_v43  ;;  %v5749_v16 = vunpack.i.l.bf16 %v5748_v43  ;;  %v5507_v60 = vpack.c.bf16 %v5705_v18, %v5704_v63 }
 0x6cf   : > { %5487 = vmatpush1.bf16.msk.msra.mxu1 %vm7892_vm4, %v5485_v52  ;;  %v12394_v52 = vld [vmem:[#allocation28_spill] sm:$0xff] }
 0x6d0   : > { %5489 = vmatprep.subr.bf16.mxu1 %v5488_v32  ;;  %v5710_v12 = vunpack.i.h.bf16 %v12394_v52  ;;  %v5709_v51 = vunpack.i.l.bf16 %v12394_v52  ;;  %v5510_v30 = vpack.c.bf16 %v5750_v19, %v5749_v16 }
 0x6d1   : > { %v5758_v4 = vpop.permute.xlu1 %5757 }
 0x6d2   : > { %v5760_v18 = vunpack.i.h.bf16 %v5758_v4  ;;  %v5759_v63 = vunpack.i.l.bf16 %v5758_v4  ;;  %v12399_v4 = vld [vmem:[#allocation15_spill] sm:$0xff] }
 0x6d3   : > { %5491 = vmatpush1.bf16.msra.mxu1 %v12380_v21  ;;  %v5755_v21 = vunpack.i.h.bf16 %v5753_v27 }
 0x6d4   : > { %5493 = vmatprep.subr.bf16.mxu1 %v5492_v37  ;;  %v12387_v37 = vpack.c.bf16 %v12385_v62, %v12386_v24  ;;  %v5522_v52 = vpack.c.bf16 %v5760_v18, %v5759_v63  ;;  %v6149_v18 = vld [vmem:[%s11608_s2] sm:$0xff] }
 0x6d7   : > { %5495 = vmatpush1.bf16.msra.mxu1 %v12383_v56 }
 0x6d8   : > { %5497 = vmatprep.subr.bf16.mxu1 %v5496_v25  ;;  %v5504_v25 = vpack.c.bf16 %v5745_v5, %v5744_v31  ;;  %v12397_v31 = vld [vmem:[#allocation29_spill] sm:$0xff] }
 0x6d9   : > { %v5715_v62 = vunpack.i.h.bf16 %v12397_v31  ;;  %v5714_v24 = vunpack.i.l.bf16 %v12397_v31 }
 0x6da   : > { %v9024_v32 = vpop.permute.xlu0 %3368 }
 0x6db   : > { %12384 = vst [vmem:[#allocation38_spill] sm:$0xff] %v9024_v32  ;;  %v9028_v42 = vadd.f32 %v9024_v32, %v8876_v40  ;;  %5499 = vmatpush1.bf16.msra.mxu1 %v12387_v37  ;;  %v5513_v37 = vpack.c.bf16 %v5710_v12, %v5709_v51 }
 0x6dc   : > { %5501 = vmatprep.subr.bf16.mxu1 %v5500_v6 }
 0x6dd   : > { %v3447_v59 = vsub.f32 0.0, %v9028_v42 }
 0x6de   : > { %v9039_v40 = vpop.permute.xlu0 %3380 }
 0x6df   : > { %12389 = vst [vmem:[#allocation39_spill] sm:$0xff] %v9039_v40  ;;  %v3463_v11 = vmul.f32 1.442695, %v3447_v59  ;;  %v9043_v47 = vadd.f32 %v9039_v40, %v8904_v3  ;;  %5503 = vmatpush1.bf16.msra.mxu1 %v12392_v7  ;;  %v5720_v7 = vunpack.i.h.bf16 %v12399_v4 }
 0x6e0   : > { %5506 = vmatprep.subr.msk.bf16.mxu1 %vm8020_vm5, %v5504_v25 }
 0x6e1   : > { %v3450_v34 = vsub.f32 0.0, %v9043_v47  ;;  %5891 = vpow2.f32 %v3463_v11  ;;  %v5519_v11 = vpack.c.bf16 %v5715_v62, %v5714_v24 }
 0x6e2   : > { %v9053_v56 = vpop.permute.xlu1 %3372  ;;  %v9055_v3 = vpop.permute.xlu0 %3388 }
 0x6e3   : > { %12395 = vst [vmem:[#allocation10_spill] sm:$0xff] %v9053_v56  ;;  %12396 = vst [vmem:[#allocation40_spill] sm:$0xff] %v9055_v3  ;;  %v3469_v43 = vmul.f32 1.442695, %v3450_v34  ;;  %v9059_v5 = vadd.f32 %v9053_v56, %v8885_v2  ;;  %5509 = vmatpush1.bf16.msk.msra.mxu1 %vm8020_vm5, %v5507_v60  ;;  %v9067_v27 = vadd.f32 %v9055_v3, %v8923_v54  ;;  %v5719_v60 = vunpack.i.l.bf16 %v12399_v4 }
 0x6e4   : > { %5512 = vmatprep.subr.msk.bf16.mxu1 %vm8020_vm5, %v5510_v30  ;;  %v5516_v2 = vpack.c.bf16 %v5755_v21, %v5754_v9 }
 0x6e5   : > { %5893 = vpow2.f32 %v3469_v43  ;;  %v3448_v46 = vsub.f32 0.0, %v9059_v5  ;;  %v3452_v59 = vsub.f32 0.0, %v9067_v27  ;;  %v5525_v9 = vpack.c.bf16 %v5720_v7, %v5719_v60 }
 0x6e6   : > { %v9073_v25 = vpop.permute.xlu1 %3376  ;;  %v9075_v19 = vpop.permute.xlu0 %3396 }
 0x6e7   : > { %12398 = vst [vmem:[#allocation41_spill] sm:$0xff] %v9073_v25  ;;  %v3465_v16 = vmul.f32 1.442695, %v3448_v46  ;;  %v9079_v54 = vadd.f32 %v9073_v25, %v8897_v29  ;;  %5515 = vmatpush1.bf16.msk.msra.mxu1 %vm8020_vm5, %v5513_v37  ;;  %v3473_v20 = vmul.f32 1.442695, %v3452_v59  ;;  %v9085_v36 = vadd.f32 %v9075_v19, %v8948_v53 }
 0x6e8   : > { %5518 = vmatprep.subr.msk.bf16.mxu1 %vm8020_vm5, %v5516_v2 }
 0x6e9   : > { %5895 = vpow2.f32 %v3465_v16  ;;  %v3449_v29 = vsub.f32 0.0, %v9079_v54  ;;  %v3454_v12 = vsub.f32 0.0, %v9085_v36 }
 0x6ea   : > { %v9093_v51 = vpop.permute.xlu1 %3384  ;;  %5897 = vpow2.f32 %v3473_v20  ;;  %v9104_v31 = vpop.permute.xlu0 %3404 }
 0x6eb   : > { %v3467_v34 = vmul.f32 1.442695, %v3449_v29  ;;  %v9097_v53 = vadd.f32 %v9093_v51, %v8915_v15  ;;  %5521 = vmatpush1.bf16.msk.msra.mxu1 %vm8020_vm5, %v5519_v11  ;;  %v5892_v21 = vpop.eup %5891  ;;  %v3477_v30 = vmul.f32 1.442695, %v3454_v12  ;;  %12400 = vst [vmem:[#allocation42_spill] sm:$0xff] %v9104_v31  ;;  %v9110_v24 = vadd.f32 %v9104_v31, %v8957_v57  ;;  %v6150_v57 = vld [vmem:[%s11608_s2 + $0x18] sm:$0xff] }
 0x6ec   : > { %5524 = vmatprep.subr.msk.bf16.mxu1 %vm8020_vm5, %v5522_v52  ;;  %v3495_v15 = vadd.f32 1.0, %v5892_v21  ;;  %v6152_v52 = vld [vmem:[%s11608_s2 + $0x28] sm:$0xff] }
 0x6ed   : > { %5899 = vpow2.f32 %v3467_v34  ;;  %v3451_v43 = vsub.f32 0.0, %v9097_v53  ;;  %v3456_v16 = vsub.f32 0.0, %v9110_v24 }
 0x6ee   : > { %v9112_v37 = vpop.permute.xlu1 %3392  ;;  %5901 = vpow2.f32 %v3477_v30  ;;  %v9126_v20 = vpop.permute.xlu0 %3412  ;;  %v6153_v30 = vld [vmem:[%s11608_s2 + $0x20] sm:$0xff] }
 0x6ef   : > { %v5894_v62 = vpop.eup %5893  ;;  %5527 = vmatpush1.bf16.msk.msra.mxu1 %vm8020_vm5, %v5525_v9  ;;  %v3471_v46 = vmul.f32 1.442695, %v3451_v43  ;;  %v9119_v6 = vadd.f32 %v9112_v37, %v8943_v41  ;;  %5903 = vrcp.f32 %v3495_v15  ;;  %12401 = vst [vmem:[#allocation43_spill] sm:$0xff] %v9126_v20  ;;  %v6151_v41 = vld [vmem:[%s11608_s2 + $0x10] sm:$0xff]  ;;  %v3481_v34 = vmul.f32 1.442695, %v3456_v16 }
 0x6f0   : > { %v3498_v2 = vadd.f32 1.0, %v5894_v62  ;;  %v9140_v21 = vadd.f32 %v9126_v20, %v8965_v61  ;;  %v6154_v15 = vld [vmem:[%s11608_s2 + $0x38] sm:$0xff] }
 0x6f1   : > { %5905 = vpow2.f32 %v3471_v46  ;;  %v3453_v60 = vsub.f32 0.0, %v9119_v6 }
 0x6f2   : > { %3190 = vmatmul.mubr.f32.vlgmr.msra.gmra.mrb[0].mxu1 %v6149_v18  ;;  %5907 = vrcp.f32 %v3498_v2  ;;  %v9132_v29 = vpop.permute.xlu1 %3400  ;;  %v9149_v62 = vpop.permute.xlu0 %3420 }
 0x6f3   : > { %v5896_v63 = vpop.eup %5895  ;;  %5234 = vmatprep.mubr.msk.f32.mxu1 %vm2915_vm6, %v6150_v57  ;;  %12402 = vst [vmem:[#allocation17_spill] sm:$0xff] %v9132_v29  ;;  %v9144_v9 = vadd.f32 %v9132_v29, %v8953_v55  ;;  %12403 = vst [vmem:[#allocation44_spill] sm:$0xff] %v9149_v62  ;;  %v3475_v46 = vmul.f32 1.442695, %v3453_v60  ;;  %v3458_v55 = vsub.f32 0.0, %v9140_v21  ;;  %v6155_v57 = vld [vmem:[%s11608_s2 + $0x30] sm:$0xff] }
 0x6f4   : > { %v3496_v59 = vadd.f32 1.0, %v5896_v63  ;;  %v5898_v11 = vpop.eup %5897  ;;  %v9159_v63 = vadd.f32 %v9149_v62, %v8973_v45 }
 0x6f5   : > { %v3500_v4 = vadd.f32 1.0, %v5898_v11  ;;  %v3455_v18 = vsub.f32 0.0, %v9144_v9  ;;  %v6156_v11 = vld [vmem:[%s11608_s2 + $0x48] sm:$0xff] }
 0x6f6   : > { %3196 = vmatmul.mubr.f32.gmra.mrb[2].mxu1 %v6151_v41  ;;  %5909 = vrcp.f32 %v3496_v59  ;;  %v9164_v16 = vpop.permute.xlu1 %3408 }
 0x6f7   : > { %v5900_v7 = vpop.eup %5899  ;;  %5235 = vmatprep.mubr.msk.f32.mxu1 %vm2915_vm6, %v6152_v52  ;;  %5911 = vrcp.f32 %v3500_v4  ;;  %12404 = vst [vmem:[#allocation45_spill] sm:$0xff] %v9164_v16  ;;  %v3479_v52 = vmul.f32 1.442695, %v3455_v18 }
 0x6f8   : > { %v3497_v12 = vadd.f32 1.0, %v5900_v7  ;;  %v5902_v43 = vpop.eup %5901  ;;  %v3485_v7 = vmul.f32 1.442695, %v3458_v55 }
 0x6f9   : > { %v3502_v61 = vadd.f32 1.0, %v5902_v43  ;;  %v5904_v2 = vpop.eup %5903  ;;  %v6157_v43 = vld [vmem:[%s11608_s2 + $0x40] sm:$0xff] }
 0x6fa   : > { %5913 = vrcp.f32 %v3497_v12  ;;  %3202 = vmatmul.mubr.f32.gmra.mrb[4].mxu1 %v6153_v30  ;;  %v9171_v45 = vmul.f32 %v5904_v2, %v9028_v42  ;;  %v3460_v12 = vsub.f32 0.0, %v9159_v63  ;;  %v9181_v30 = vld [vmem:[%s11609_s3] sm:$0xff] }
 0x6fb   : > { %5236 = vmatprep.mubr.msk.f32.mxu1 %vm2915_vm6, %v6154_v15  ;;  %5915 = vpow2.f32 %v3481_v34  ;;  %v5906_v59 = vpop.eup %5905  ;;  %v9176_v34 = vadd.f32 %v9164_v16, %v8961_v33  ;;  %12405 = vst [vmem:[#allocation46_spill] sm:$0xff] %v9181_v30 }
 0x6fc   : > { %5917 = vrcp.f32 %v3502_v61  ;;  %v5908_v4 = vpop.eup %5907  ;;  %v3499_v41 = vadd.f32 1.0, %v5906_v59  ;;  %v6158_v61 = vld [vmem:[%s11608_s2 + $0x58] sm:$0xff]  ;;  %v3489_v18 = vmul.f32 1.442695, %v3460_v12  ;;  %v9204_v59 = vpop.permute.xlu0 %3428 }
 0x6fd   : > { %5919 = vpow2.f32 %v3475_v46  ;;  %v9187_v15 = vmul.f32 %v5908_v4, %v9043_v47  ;;  %v9196_v46 = vld [vmem:[%s11609_s3 + $0x18] sm:$0xff]  ;;  %v3559_v47 = vmul.f32 %v9181_v30, %v9171_v45  ;;  %12406 = vst [vmem:[#allocation47_spill] sm:$0xff] %v9204_v59 }
 0x6fe   : > { %3208 = vmatmul.mubr.f32.gmra.mrb[6].mxu1 %v6155_v57  ;;  %5921 = vrcp.f32 %v3499_v41  ;;  %v3457_v57 = vsub.f32 0.0, %v9176_v34 }
 0x6ff   : > { %5237 = vmatprep.mubr.msk.f32.mxu1 %vm2915_vm6, %v6156_v11  ;;  %5923 = vpow2.f32 %v3485_v7  ;;  %v9209_v11 = vld [vmem:[%s11609_s3 + $0x8] sm:$0xff]  ;;  %3575 = vadd.xlane.f32.xlu1 %v3559_v47 }
 0x700   : > { %v5910_v60 = vpop.eup %5909  ;;  %5925 = vpow2.f32 %v3479_v52  ;;  %v6160_v52 = vld [vmem:[%s11608_s2 + $0x68] sm:$0xff]  ;;  %v3483_v47 = vmul.f32 1.442695, %v3457_v57  ;;  %v9261_v57 = vld [vmem:[%s11609_s3 + $0x38] sm:$0xff] }
 0x701   : > { %v5912_v42 = vpop.eup %5911  ;;  %v9199_v55 = vmul.f32 %v5910_v60, %v9059_v5  ;;  %v6159_v5 = vld [vmem:[%s11608_s2 + $0x50] sm:$0xff]  ;;  %v3562_v60 = vmul.f32 %v9196_v46, %v9187_v15  ;;  %12409 = vst [vmem:[#allocation70_spill] sm:$0xff] %v9261_v57 }
 0x702   : > { %3214 = vmatmul.mubr.f32.gmra.mrb[8].mxu1 %v6157_v43  ;;  %v9215_v4 = vmul.f32 %v5912_v42, %v9067_v27  ;;  %v9226_v43 = vpop.permute.xlu1 %3416  ;;  %v9231_v27 = vld [vmem:[%s11609_s3 + $0x28] sm:$0xff]  ;;  %v9240_v42 = vadd.f32 %v9204_v59, %v8981_v44 }
 0x703   : > { %5238 = vmatprep.mubr.msk.f32.mxu1 %vm2915_vm6, %v6158_v61  ;;  %12407 = vst [vmem:[#allocation48_spill] sm:$0xff] %v9226_v43  ;;  %v3560_v61 = vmul.f32 %v9209_v11, %v9199_v55  ;;  %3581 = vadd.xlane.f32.xlu1 %v3562_v60  ;;  %v9270_v60 = vld [vmem:[%s11609_s3 + $0x20] sm:$0xff] }
 0x704   : > { %v5914_v33 = vpop.eup %5913  ;;  %v3564_v44 = vmul.f32 %v9231_v27, %v9215_v4  ;;  %12410 = vst [vmem:[#allocation69_spill] sm:$0xff] %v9270_v60 }
 0x705   : > { %v5916_v2 = vpop.eup %5915  ;;  %v9218_v41 = vmul.f32 %v5914_v33, %v9079_v54  ;;  %v9236_v54 = vld [vmem:[%s11609_s3 + $0x10] sm:$0xff]  ;;  %3577 = vadd.xlane.f32.xlu0 %v3560_v61 }
 0x706   : > { %3220 = vmatmul.mubr.f32.gmra.mrb[10].mxu1 %v6159_v5  ;;  %v3504_v7 = vadd.f32 1.0, %v5916_v2  ;;  %v5918_v12 = vpop.eup %5917  ;;  %12408 = vst [vmem:[#allocation49_spill] sm:$0xff] %v9236_v54  ;;  %v6161_v2 = vld [vmem:[%s11608_s2 + $0x60] sm:$0xff] }
 0x707   : > { %5239 = vmatprep.mubr.msk.f32.mxu1 %vm2915_vm6, %v6160_v52  ;;  %v5920_v33 = vpop.eup %5919  ;;  %v9248_v5 = vmul.f32 %v5918_v12, %v9085_v36  ;;  %v6162_v36 = vld [vmem:[%s11608_s2 + $0x78] sm:$0xff]  ;;  %3585 = vadd.xlane.f32.xlu1 %v3564_v44 }
 0x708   : > { %5927 = vrcp.f32 %v3504_v7  ;;  %v3501_v52 = vadd.f32 1.0, %v5920_v33  ;;  %v3561_v7 = vmul.f32 %v9236_v54, %v9218_v41  ;;  %v5922_v30 = vpop.eup %5921  ;;  %v9276_v33 = vpop.permute.xlu1 %3424 }
 0x709   : > { %5929 = vpow2.f32 %v3489_v18  ;;  %v9256_v18 = vadd.f32 %v9226_v43, %v8969_v58  ;;  %v9273_v12 = vmul.f32 %v5922_v30, %v9097_v53  ;;  %v3462_v58 = vsub.f32 0.0, %v9240_v42  ;;  %v5924_v61 = vpop.eup %5923  ;;  %12411 = vst [vmem:[#allocation71_spill] sm:$0xff] %v9276_v33 }
 0x70a   : > { %3226 = vmatmul.mubr.f32.gmra.mrb[12].mxu1 %v6161_v2  ;;  %5931 = vrcp.f32 %v3501_v52  ;;  %v6163_v2 = vld [vmem:[%s11608_s2 + $0x70] sm:$0xff]  ;;  %3579 = vadd.xlane.f32.xlu0 %v3561_v7  ;;  %v3566_v54 = vmul.f32 %v9261_v57, %v9248_v5  ;;  %v5926_v30 = vpop.eup %5925  ;;  %v9292_v44 = vadd.f32 %v9276_v33, %v8977_v1  ;;  %v6165_v7 = vld [vmem:[%s11608_s2 + $0x80] sm:$0xff]  ;;  %v6166_v1 = vld [vmem:[%s11608_s2 + $0x98] sm:$0xff] }
 0x70b   : > { %5240 = vmatprep.mubr.msk.f32.mxu1 %vm2915_vm6, %v6162_v36  ;;  %5933 = vpow2.f32 %v3483_v47  ;;  %v3506_v36 = vadd.f32 1.0, %v5924_v61  ;;  %v3563_v53 = vmul.f32 %v9270_v60, %v9273_v12  ;;  %v3459_v52 = vsub.f32 0.0, %v9256_v18  ;;  %v6164_v47 = vld [vmem:[%s11608_s2 + $0x88] sm:$0xff] }
 0x70c   : > { %v3493_v61 = vmul.f32 1.442695, %v3462_v58  ;;  %3589 = vadd.xlane.f32.xlu1 %v3566_v54  ;;  %v3461_v54 = vsub.f32 0.0, %v9292_v44 }
 0x70d   : > { %5935 = vrcp.f32 %v3506_v36 }
 0x70e   : > { %3232 = vmatmul.mubr.f32.gmra.mrb[14].mxu1 %v6163_v2  ;;  %v3503_v2 = vadd.f32 1.0, %v5926_v30  ;;  %3583 = vadd.xlane.f32.xlu0 %v3563_v53 }
 0x70f   : > { %5241 = vmatprep.mubr.msk.f32.mxu1 %vm2915_vm6, %v6164_v47  ;;  %v9300_v47 = vld [vmem:[%s11609_s3 + $0x48] sm:$0xff] }
 0x710   : > { %5937 = vrcp.f32 %v3503_v2  ;;  %12412 = vst [vmem:[#allocation72_spill] sm:$0xff] %v9300_v47  ;;  %v3487_v2 = vmul.f32 1.442695, %v3459_v52  ;;  %v6168_v52 = vld [vmem:[%s11608_s2 + $0xa8] sm:$0xff] }
 0x711   : > { %5939 = vpow2.f32 %v3493_v61 }
 0x712   : > { %3238 = vmatmul.mubr.f32.gmra.mrb[16].mxu1 %v6165_v7  ;;  %v5928_v60 = vpop.eup %5927  ;;  %v6167_v7 = vld [vmem:[%s11608_s2 + $0x90] sm:$0xff] }
 0x713   : > { %v5930_v36 = vpop.eup %5929  ;;  %v9303_v58 = vmul.f32 %v5928_v60, %v9110_v24  ;;  %5242 = vmatprep.mubr.msk.f32.mxu1 %vm2915_vm6, %v6166_v1  ;;  %v9318_v60 = vld [vmem:[%s11609_s3 + $0x30] sm:$0xff] }
 0x714   : > { %v3508_v30 = vadd.f32 1.0, %v5930_v36  ;;  %v5932_v24 = vpop.eup %5931 }
 0x715   : > { %v3568_v53 = vmul.f32 %v9300_v47, %v9303_v58  ;;  %v5934_v61 = vpop.eup %5933  ;;  %v9325_v36 = vmul.f32 %v5932_v24, %v9119_v6  ;;  %v6169_v47 = vld [vmem:[%s11608_s2 + $0xa0] sm:$0xff]  ;;  %v6170_v6 = vld [vmem:[%s11608_s2 + $0xb8] sm:$0xff] }
 0x716   : > { %3244 = vmatmul.mubr.f32.gmra.mrb[18].mxu1 %v6167_v7  ;;  %5941 = vrcp.f32 %v3508_v30  ;;  %v3505_v1 = vadd.f32 1.0, %v5934_v61  ;;  %v3491_v7 = vmul.f32 1.442695, %v3461_v54  ;;  %v6171_v61 = vld [vmem:[%s11608_s2 + $0xb0] sm:$0xff] }
 0x717   : > { %5243 = vmatprep.mubr.msk.f32.mxu1 %vm2915_vm6, %v6168_v52  ;;  %3593 = vadd.xlane.f32.xlu1 %v3568_v53  ;;  %5943 = vpow2.f32 %v3487_v2  ;;  %v3565_v30 = vmul.f32 %v9318_v60, %v9325_v36  ;;  %v5936_v57 = vpop.eup %5935  ;;  %v9335_v52 = vld [vmem:[%s11609_s3 + $0x58] sm:$0xff] }
 0x718   : > { %5945 = vrcp.f32 %v3505_v1  ;;  %v9342_v2 = vmul.f32 %v5936_v57, %v9140_v21  ;;  %v6172_v57 = vld [vmem:[%s11608_s2 + $0xc8] sm:$0xff] }
 0x719   : > { %3587 = vadd.xlane.f32.xlu0 %v3565_v30  ;;  %5947 = vpow2.f32 %v3491_v7  ;;  %v9366_v30 = vld [vmem:[%s11609_s3 + $0x68] sm:$0xff] }
 0x71a   : > { %3250 = vmatmul.mubr.f32.gmra.mrb[20].mxu1 %v6169_v47  ;;  %v5938_v54 = vpop.eup %5937  ;;  %v9347_v47 = vld [vmem:[%s11609_s3 + $0x40] sm:$0xff]  ;;  %v3570_v24 = vmul.f32 %v9335_v52, %v9342_v2  ;;  %12413 = vst [vmem:[#allocation73_spill] sm:$0xff] %v9366_v30 }
 0x71b   : > { %5244 = vmatprep.mubr.msk.f32.mxu1 %vm2915_vm6, %v6170_v6  ;;  %v9350_v53 = vmul.f32 %v5938_v54, %v9144_v9  ;;  %v5940_v21 = vpop.eup %5939  ;;  %v6173_v54 = vld [vmem:[%s11608_s2 + $0xc0] sm:$0xff] }
 0x71c   : > { %v3510_v1 = vadd.f32 1.0, %v5940_v21  ;;  %3597 = vadd.xlane.f32.xlu1 %v3570_v24 }
 0x71d   : > { %v3567_v9 = vmul.f32 %v9347_v47, %v9350_v53 }
 0x71e   : > { %3256 = vmatmul.mubr.f32.gmra.mrb[22].mxu1 %v6171_v61  ;;  %5949 = vrcp.f32 %v3510_v1  ;;  %v6174_v61 = vld [vmem:[%s11608_s2 + $0xd8] sm:$0xff]  ;;  %v9383_v1 = vld [vmem:[%s11609_s3 + $0x50] sm:$0xff] }
 0x71f   : > { %5245 = vmatprep.mubr.msk.f32.mxu1 %vm2915_vm6, %v6172_v57  ;;  %3591 = vadd.xlane.f32.xlu0 %v3567_v9  ;;  %12414 = vst [vmem:[#allocation74_spill] sm:$0xff] %v9383_v1 }
 0x720   : > { %v5942_v7 = vpop.eup %5941 }
 0x721   : > { %v9369_v6 = vmul.f32 %v5942_v7, %v9159_v63  ;;  %v5944_v24 = vpop.eup %5943  ;;  %v6175_v7 = vld [vmem:[%s11608_s2 + $0xd0] sm:$0xff] }
 0x722   : > { %3262 = vmatmul.mubr.f32.gmra.mrb[24].mxu1 %v6173_v54  ;;  %v3507_v21 = vadd.f32 1.0, %v5944_v24  ;;  %v5946_v63 = vpop.eup %5945  ;;  %v6176_v24 = vld [vmem:[%s11608_s2 + $0xe8] sm:$0xff] }
 0x723   : > { %5246 = vmatprep.mubr.msk.f32.mxu1 %vm2915_vm6, %v6174_v61  ;;  %v3572_v57 = vmul.f32 %v9366_v30, %v9369_v6  ;;  %v9386_v9 = vmul.f32 %v5946_v63, %v9176_v34  ;;  %v5948_v54 = vpop.eup %5947  ;;  %v6177_v34 = vld [vmem:[%s11608_s2 + $0xe0] sm:$0xff]  ;;  %v9407_v63 = vld [vmem:[%s11609_s3 + $0x78] sm:$0xff] }
 0x724   : > { %5951 = vrcp.f32 %v3507_v21  ;;  %v3509_v61 = vadd.f32 1.0, %v5948_v54  ;;  %v6178_v21 = vld [vmem:[%s11608_s2 + $0xf8] sm:$0xff]  ;;  %12415 = vst [vmem:[#allocation75_spill] sm:$0xff] %v9407_v63 }
 0x725   : > { %3601 = vadd.xlane.f32.xlu1 %v3572_v57  ;;  %v3569_v30 = vmul.f32 %v9383_v1, %v9386_v9  ;;  %v9442_v1 = vld [vmem:[%s11609_s3 + $0x98] sm:$0xff] }
 0x726   : > { %3268 = vmatmul.mubr.f32.gmra.mrb[26].mxu1 %v6175_v7  ;;  %5953 = vrcp.f32 %v3509_v61  ;;  %v9420_v61 = vld [vmem:[%s11609_s3 + $0x60] sm:$0xff]  ;;  %12418 = vst [vmem:[#allocation89_spill] sm:$0xff] %v9442_v1 }
 0x727   : > { %5247 = vmatprep.mubr.msk.f32.mxu1 %vm2915_vm6, %v6176_v24  ;;  %3595 = vadd.xlane.f32.xlu0 %v3569_v30  ;;  %v6179_v30 = vld [vmem:[%s11608_s2 + $0xf0] sm:$0xff]  ;;  %12416 = vst [vmem:[#allocation88_spill] sm:$0xff] %v9420_v61 }
 0x728   : > { %v5950_v57 = vpop.eup %5949 }
 0x729   : > { %v9410_v7 = vmul.f32 %v5950_v57, %v9240_v42 }
 0x72a   : > { %3274 = vmatmul.mubr.f32.gmra.mrb[28].mxu1 %v6177_v34  ;;  %v9425_v34 = vld [vmem:[%s11609_s3 + $0x88] sm:$0xff] }
 0x72b   : > { %5248 = vmatprep.mubr.msk.f32.mxu1 %vm2915_vm6, %v6178_v21  ;;  %v3574_v54 = vmul.f32 %v9407_v63, %v9410_v7  ;;  %12417 = vst [vmem:[#allocation87_spill] sm:$0xff] %v9425_v34  ;;  %v3625_v57 = vmul.f32 %v9425_v34, %v9199_v55  ;;  %v9437_v63 = vld [vmem:[%s11609_s3 + $0x70] sm:$0xff]  ;;  %v9454_v34 = vld [vmem:[%s11609_s3 + $0x80] sm:$0xff] }
 0x72c   : > { %12419 = vst [vmem:[#allocation90_spill] sm:$0xff] %v9454_v34 }
 0x72d   : > { %3605 = vadd.xlane.f32.xlu1 %v3574_v54 }
 0x72e   : > { %3280 = vmatmul.mubr.f32.gmra.mrb[30].mxu1 %v6179_v30  ;;  %v5952_v24 = vpop.eup %5951 }
 0x72f   : > { %v9428_v42 = vmul.f32 %v5952_v24, %v9256_v18  ;;  %v3627_v24 = vmul.f32 %v9442_v1, %v9187_v15  ;;  %v9631_v1 = vld [vmem:[%s11609_s3 + $0x168] sm:$0xff] }
 0x730   : > { %v5954_v30 = vpop.eup %5953  ;;  %12444 = vst [vmem:[#allocation36_spill] sm:$0xff] %v9631_v1 }
 0x731   : > { %v3571_v21 = vmul.f32 %v9420_v61, %v9428_v42  ;;  %v9445_v18 = vmul.f32 %v5954_v30, %v9292_v44  ;;  %3642 = vadd.xlane.f32.xlu1 %v3625_v57  ;;  %v9459_v61 = vld [vmem:[%s11609_s3 + $0xa8] sm:$0xff]  ;;  %v3624_v44 = vmul.f32 %v9454_v34, %v9171_v45  ;;  %v9468_v57 = vld [vmem:[%s11609_s3 + $0x90] sm:$0xff]  ;;  %v9473_v30 = vld [vmem:[%s11609_s3 + $0xb8] sm:$0xff] }
 0x732   : > { %12420 = vst [vmem:[#allocation91_spill] sm:$0xff] %v9459_v61  ;;  %12421 = vst [vmem:[#allocation92_spill] sm:$0xff] %v9468_v57  ;;  %v9487_v34 = vld [vmem:[%s11609_s3 + $0xc8] sm:$0xff] }
 0x733   : > { %3599 = vadd.xlane.f32.xlu0 %v3571_v21  ;;  %v3573_v54 = vmul.f32 %v9437_v63, %v9445_v18  ;;  %v3629_v21 = vmul.f32 %v9459_v61, %v9215_v4  ;;  %12422 = vst [vmem:[#allocation93_spill] sm:$0xff] %v9473_v30  ;;  %v9482_v61 = vld [vmem:[%s11609_s3 + $0xa0] sm:$0xff]  ;;  %12424 = vst [vmem:[#allocation27_spill] sm:$0xff] %v9487_v34 }
 0x734   : > { %12423 = vst [vmem:[#allocation94_spill] sm:$0xff] %v9482_v61 }
 0x735   : > { %3646 = vadd.xlane.f32.xlu1 %v3627_v24  ;;  %v3631_v24 = vmul.f32 %v9473_v30, %v9248_v5  ;;  %v9496_v30 = vld [vmem:[%s11609_s3 + $0xb0] sm:$0xff] }
 0x736   : > { %12425 = vst [vmem:[#allocation19_spill] sm:$0xff] %v9496_v30 }
 0x737   : > { %3603 = vadd.xlane.f32.xlu0 %v3573_v54  ;;  %v3626_v54 = vmul.f32 %v9468_v57, %v9218_v41  ;;  %v9501_v57 = vld [vmem:[%s11609_s3 + $0xd8] sm:$0xff] }
 0x738   : > { %12426 = vst [vmem:[#allocation21_spill] sm:$0xff] %v9501_v57 }
 0x739   : > { %3650 = vadd.xlane.f32.xlu1 %v3629_v21  ;;  %v3633_v21 = vmul.f32 %v9487_v34, %v9303_v58  ;;  %v9510_v34 = vld [vmem:[%s11609_s3 + $0xc0] sm:$0xff] }
 0x73a   : > { %12427 = vst [vmem:[#allocation20_spill] sm:$0xff] %v9510_v34 }
 0x73b   : > { %3640 = vadd.xlane.f32.xlu0 %v3624_v44  ;;  %v3628_v44 = vmul.f32 %v9482_v61, %v9273_v12  ;;  %v9515_v61 = vld [vmem:[%s11609_s3 + $0xe8] sm:$0xff] }
 0x73c   : > { %12428 = vst [vmem:[#allocation31_spill] sm:$0xff] %v9515_v61 }
 0x73d   : > { %3654 = vadd.xlane.f32.xlu1 %v3631_v24  ;;  %v3635_v24 = vmul.f32 %v9501_v57, %v9342_v2  ;;  %v9524_v57 = vld [vmem:[%s11609_s3 + $0xd0] sm:$0xff] }
 0x73e   : > { %12429 = vst [vmem:[#allocation51_spill] sm:$0xff] %v9524_v57 }
 0x73f   : > { %3644 = vadd.xlane.f32.xlu0 %v3626_v54  ;;  %v3630_v54 = vmul.f32 %v9496_v30, %v9325_v36  ;;  %v9529_v30 = vld [vmem:[%s11609_s3 + $0xf8] sm:$0xff] }
 0x740   : > { %12430 = vst [vmem:[#allocation11_spill] sm:$0xff] %v9529_v30 }
 0x741   : > { %3658 = vadd.xlane.f32.xlu1 %v3633_v21  ;;  %v3637_v21 = vmul.f32 %v9515_v61, %v9369_v6  ;;  %v9538_v61 = vld [vmem:[%s11609_s3 + $0xe0] sm:$0xff] }
 0x742   : > { %12431 = vst [vmem:[#allocation18_spill] sm:$0xff] %v9538_v61 }
 0x743   : > { %3648 = vadd.xlane.f32.xlu0 %v3628_v44  ;;  %v3632_v44 = vmul.f32 %v9510_v34, %v9350_v53  ;;  %v9543_v34 = vld [vmem:[%s11609_s3 + $0x108] sm:$0xff] }
 0x744   : > { %12432 = vst [vmem:[#allocation14_spill] sm:$0xff] %v9543_v34 }
 0x745   : > { %3662 = vadd.xlane.f32.xlu1 %v3635_v24  ;;  %v3639_v24 = vmul.f32 %v9529_v30, %v9410_v7  ;;  %v9552_v30 = vld [vmem:[%s11609_s3 + $0xf0] sm:$0xff] }
 0x746   : > { %12433 = vst [vmem:[#allocation34_spill] sm:$0xff] %v9552_v30 }
 0x747   : > { %3652 = vadd.xlane.f32.xlu0 %v3630_v54  ;;  %v3634_v54 = vmul.f32 %v9524_v57, %v9386_v9  ;;  %v9557_v57 = vld [vmem:[%s11609_s3 + $0x118] sm:$0xff] }
 0x748   : > { %12434 = vst [vmem:[#allocation12_spill] sm:$0xff] %v9557_v57 }
 0x749   : > { %3666 = vadd.xlane.f32.xlu1 %v3637_v21  ;;  %v3690_v21 = vmul.f32 %v9543_v34, %v9199_v55  ;;  %v9566_v34 = vld [vmem:[%s11609_s3 + $0x100] sm:$0xff] }
 0x74a   : > { %12435 = vst [vmem:[#allocation23_spill] sm:$0xff] %v9566_v34 }
 0x74b   : > { %3656 = vadd.xlane.f32.xlu0 %v3632_v44  ;;  %v3636_v44 = vmul.f32 %v9538_v61, %v9428_v42  ;;  %v9571_v61 = vld [vmem:[%s11609_s3 + $0x128] sm:$0xff] }
 0x74c   : > { %12436 = vst [vmem:[#allocation50_spill] sm:$0xff] %v9571_v61 }
 0x74d   : > { %3670 = vadd.xlane.f32.xlu1 %v3639_v24  ;;  %v3692_v24 = vmul.f32 %v9557_v57, %v9187_v15  ;;  %v9580_v57 = vld [vmem:[%s11609_s3 + $0x110] sm:$0xff] }
 0x74e   : > { %12437 = vst [vmem:[#allocation24_spill] sm:$0xff] %v9580_v57 }
 0x74f   : > { %3660 = vadd.xlane.f32.xlu0 %v3634_v54  ;;  %v3638_v54 = vmul.f32 %v9552_v30, %v9445_v18  ;;  %v9585_v30 = vld [vmem:[%s11609_s3 + $0x138] sm:$0xff] }
 0x750   : > { %12438 = vst [vmem:[#allocation95_spill] sm:$0xff] %v9585_v30 }
 0x751   : > { %3707 = vadd.xlane.f32.xlu1 %v3690_v21  ;;  %v3694_v21 = vmul.f32 %v9571_v61, %v9215_v4  ;;  %v9594_v61 = vld [vmem:[%s11609_s3 + $0x120] sm:$0xff] }
 0x752   : > { %12439 = vst [vmem:[#allocation37_spill] sm:$0xff] %v9594_v61 }
 0x753   : > { %3664 = vadd.xlane.f32.xlu0 %v3636_v44  ;;  %v3689_v44 = vmul.f32 %v9566_v34, %v9171_v45  ;;  %v9599_v34 = vld [vmem:[%s11609_s3 + $0x148] sm:$0xff] }
 0x754   : > { %12440 = vst [vmem:[#allocation35_spill] sm:$0xff] %v9599_v34 }
 0x755   : > { %3711 = vadd.xlane.f32.xlu1 %v3692_v24  ;;  %v3696_v24 = vmul.f32 %v9585_v30, %v9248_v5  ;;  %v9608_v30 = vld [vmem:[%s11609_s3 + $0x130] sm:$0xff] }
 0x756   : > { %12441 = vst [vmem:[#allocation33_spill] sm:$0xff] %v9608_v30 }
 0x757   : > { %3668 = vadd.xlane.f32.xlu0 %v3638_v54  ;;  %v3691_v54 = vmul.f32 %v9580_v57, %v9218_v41  ;;  %v9613_v57 = vld [vmem:[%s11609_s3 + $0x158] sm:$0xff] }
 0x758   : > { %12442 = vst [vmem:[#allocation25_spill] sm:$0xff] %v9613_v57 }
 0x759   : > { %3715 = vadd.xlane.f32.xlu1 %v3694_v21  ;;  %v3698_v21 = vmul.f32 %v9599_v34, %v9303_v58  ;;  %v3700_v34 = vmul.f32 %v9613_v57, %v9342_v2 }
 0x75b   : > { %3705 = vadd.xlane.f32.xlu0 %v3689_v44  ;;  %v3693_v44 = vmul.f32 %v9594_v61, %v9273_v12  ;;  %v9626_v61 = vld [vmem:[%s11609_s3 + $0x140] sm:$0xff] }
 0x75c   : > { %12443 = vst [vmem:[#allocation53_spill] sm:$0xff] %v9626_v61  ;;  %v3697_v57 = vmul.f32 %v9626_v61, %v9350_v53  ;;  %v9664_v61 = vadd.f32 %v9073_v25, %v8902_v10  ;;  %v9688_v25 = vadd.f32 %v9093_v51, %v8919_v28 }
 0x75d   : > { %3719 = vadd.xlane.f32.xlu1 %v3696_v24  ;;  %v3695_v24 = vmul.f32 %v9608_v30, %v9325_v36  ;;  %v3702_v30 = vmul.f32 %v9631_v1, %v9369_v6 }
 0x75f   : > { %3709 = vadd.xlane.f32.xlu0 %v3691_v54  ;;  %v9617_v54 = vadd.f32 %v9053_v56, %v8893_v0  ;;  %v9635_v0 = vadd.f32 %v9039_v40, %v8911_v35  ;;  %v9649_v56 = vld [vmem:[%s11609_s3 + $0x150] sm:$0xff]  ;;  %v9654_v35 = vld [vmem:[%s11609_s3 + $0x178] sm:$0xff] }
 0x760   : > { %12445 = vst [vmem:[#allocation52_spill] sm:$0xff] %v9649_v56  ;;  %12446 = vst [vmem:[#allocation54_spill] sm:$0xff] %v9654_v35  ;;  %v3704_v40 = vmul.f32 %v9654_v35, %v9410_v7 }
 0x761   : > { %3723 = vadd.xlane.f32.xlu1 %v3698_v21  ;;  %v9640_v21 = vadd.f32 %v9024_v32, %v8883_v14  ;;  %v3699_v32 = vmul.f32 %v9649_v56, %v9386_v9  ;;  %v3924_v56 = vsub.f32 0.0, %v9664_v61 }
 0x763   : > { %3713 = vadd.xlane.f32.xlu0 %v3693_v44  ;;  %v3923_v44 = vsub.f32 0.0, %v9617_v54  ;;  %v3922_v1 = vsub.f32 0.0, %v9640_v21 }
 0x765   : > { %3727 = vadd.xlane.f32.xlu1 %v3700_v34  ;;  %v3925_v34 = vsub.f32 0.0, %v9635_v0  ;;  %v3940_v14 = vmul.f32 1.442695, %v3923_v44  ;;  %v9673_v44 = vld [vmem:[%s11609_s3 + $0x160] sm:$0xff]  ;;  %v3938_v35 = vmul.f32 1.442695, %v3922_v1  ;;  %v9707_v1 = vadd.f32 %v9104_v31, %v8959_v23 }
 0x766   : > { %v9721_v23 = vld [vmem:[%s11609_s3 + $0x180] sm:$0xff] }
 0x767   : > { %3717 = vadd.xlane.f32.xlu0 %v3695_v24  ;;  %v9659_v24 = vadd.f32 %v9055_v3, %v8925_v48  ;;  %v9678_v48 = vld [vmem:[%s11609_s3 + $0x188] sm:$0xff]  ;;  %5955 = vpow2.f32 %v3940_v14  ;;  %v3701_v3 = vmul.f32 %v9673_v44, %v9428_v42  ;;  %v3926_v14 = vsub.f32 0.0, %v9688_v25  ;;  %12450 = vst [vmem:[#allocation59_spill] sm:$0xff] %v9721_v23 }
 0x768   : > { %12447 = vst [vmem:[#allocation60_spill] sm:$0xff] %v9678_v48 }
 0x769   : > { %3731 = vadd.xlane.f32.xlu1 %v3702_v30  ;;  %v3927_v10 = vsub.f32 0.0, %v9659_v24  ;;  %v9683_v30 = vadd.f32 %v9075_v19, %v8951_v26  ;;  %v9697_v26 = vld [vmem:[%s11609_s3 + $0x170] sm:$0xff] }
 0x76a   : > { %12448 = vst [vmem:[#allocation65_spill] sm:$0xff] %v9697_v26 }
 0x76b   : > { %3721 = vadd.xlane.f32.xlu0 %v3697_v57  ;;  %v3944_v57 = vmul.f32 1.442695, %v3925_v34  ;;  %v3755_v34 = vmul.f32 %v9678_v48, %v9199_v55  ;;  %v3929_v28 = vsub.f32 0.0, %v9683_v30  ;;  %v3942_v55 = vmul.f32 1.442695, %v3924_v56  ;;  %v9726_v56 = vld [vmem:[%s11609_s3 + $0x1a8] sm:$0xff] }
 0x76c   : > { %v9712_v48 = vadd.f32 %v9112_v37, %v8946_v49  ;;  %12451 = vst [vmem:[#allocation58_spill] sm:$0xff] %v9726_v56  ;;  %v3931_v49 = vsub.f32 0.0, %v9707_v1 }
 0x76d   : > { %3735 = vadd.xlane.f32.xlu1 %v3704_v40  ;;  %5957 = vpow2.f32 %v3944_v57  ;;  %v3948_v40 = vmul.f32 1.442695, %v3927_v10  ;;  %v3703_v57 = vmul.f32 %v9697_v26, %v9445_v18  ;;  %v3754_v26 = vmul.f32 %v9721_v23, %v9171_v45 }
 0x76e   : > { %5959 = vpow2.f32 %v3938_v35  ;;  %v9731_v35 = vadd.f32 %v9126_v20, %v8967_v13  ;;  %v9745_v13 = vld [vmem:[%s11609_s3 + $0x190] sm:$0xff]  ;;  %v9764_v23 = vadd.f32 %v9164_v16, %v8963_v39 }
 0x76f   : > { %3725 = vadd.xlane.f32.xlu0 %v3699_v32  ;;  %v9702_v32 = vld [vmem:[%s11609_s3 + $0x198] sm:$0xff]  ;;  %5961 = vpow2.f32 %v3948_v40  ;;  %v3759_v40 = vmul.f32 %v9726_v56, %v9215_v4  ;;  %v9755_v4 = vadd.f32 %v9149_v62, %v8975_v50  ;;  %v9769_v50 = vld [vmem:[%s11609_s3 + $0x1a0] sm:$0xff] }
 0x770   : > { %12449 = vst [vmem:[#allocation76_spill] sm:$0xff] %v9702_v32  ;;  %v3757_v10 = vmul.f32 %v9702_v32, %v9187_v15  ;;  %5963 = vpow2.f32 %v3942_v55  ;;  %v3928_v32 = vsub.f32 0.0, %v9712_v48  ;;  %v9750_v55 = vld [vmem:[%s11609_s3 + $0x1b8] sm:$0xff]  ;;  %v3933_v45 = vsub.f32 0.0, %v9731_v35  ;;  %12453 = vst [vmem:[#allocation62_spill] sm:$0xff] %v9769_v50 }
 0x771   : > { %3772 = vadd.xlane.f32.xlu1 %v3755_v34  ;;  %v5956_v15 = vpop.eup %5955  ;;  %v3946_v34 = vmul.f32 1.442695, %v3926_v14  ;;  %12452 = vst [vmem:[#allocation66_spill] sm:$0xff] %v9750_v55  ;;  %v3956_v14 = vmul.f32 1.442695, %v3931_v49  ;;  %v3761_v56 = vmul.f32 %v9750_v55, %v9248_v5  ;;  %v3935_v5 = vsub.f32 0.0, %v9755_v4 }
 0x772   : > { %v3932_v55 = vsub.f32 0.0, %v9764_v23 }
 0x773   : > { %3729 = vadd.xlane.f32.xlu0 %v3701_v3  ;;  %v3952_v3 = vmul.f32 1.442695, %v3929_v28  ;;  %v9740_v28 = vadd.f32 %v9132_v29, %v8955_v38  ;;  %v3971_v38 = vadd.f32 1.0, %v5956_v15  ;;  %v3756_v29 = vmul.f32 %v9745_v13, %v9218_v41 }
 0x774   : > { %v3960_v41 = vmul.f32 1.442695, %v3933_v45 }
 0x775   : > { %3776 = vadd.xlane.f32.xlu1 %v3757_v10  ;;  %5965 = vpow2.f32 %v3952_v3  ;;  %v3950_v10 = vmul.f32 1.442695, %v3928_v32  ;;  %v3930_v49 = vsub.f32 0.0, %v9740_v28  ;;  %v9779_v32 = vadd.f32 %v9204_v59, %v8983_v17  ;;  %v9789_v17 = vld [vmem:[%s11609_s3 + $0x1b0] sm:$0xff] }
 0x776   : > { %5967 = vpow2.f32 %v3946_v34  ;;  %12455 = vst [vmem:[#allocation79_spill] sm:$0xff] %v9789_v17 }
 0x777   : > { %3733 = vadd.xlane.f32.xlu0 %v3703_v57  ;;  %v5958_v57 = vpop.eup %5957  ;;  %5969 = vpow2.f32 %v3956_v14  ;;  %v3954_v16 = vmul.f32 1.442695, %v3930_v49 }
 0x778   : > { %v5960_v3 = vpop.eup %5959  ;;  %v3973_v39 = vadd.f32 1.0, %v5958_v57  ;;  %5971 = vrcp.f32 %v3971_v38 }
 0x779   : > { %3780 = vadd.xlane.f32.xlu1 %v3759_v40  ;;  %v5962_v15 = vpop.eup %5961  ;;  %v3970_v34 = vadd.f32 1.0, %v5960_v3  ;;  %5973 = vpow2.f32 %v3950_v10  ;;  %v3758_v40 = vmul.f32 %v9769_v50, %v9273_v12  ;;  %v3937_v12 = vsub.f32 0.0, %v9779_v32  ;;  %v12506_v50 = vld [vmem:[#allocation10_spill] sm:$0xff] }
 0x77a   : > { %v5964_v45 = vpop.eup %5963  ;;  %5975 = vpow2.f32 %v3960_v41  ;;  %v3975_v38 = vadd.f32 1.0, %v5962_v15  ;;  %v3760_v3 = vmul.f32 %v9789_v17, %v9325_v36  ;;  %v3958_v41 = vmul.f32 1.442695, %v3932_v55 }
 0x77b   : > { %3770 = vadd.xlane.f32.xlu0 %v3754_v26  ;;  %v9774_v26 = vld [vmem:[%s11609_s3 + $0x1c8] sm:$0xff]  ;;  %5977 = vrcp.f32 %v3973_v39  ;;  %v3972_v10 = vadd.f32 1.0, %v5964_v45  ;;  %v3968_v15 = vmul.f32 1.442695, %v3937_v12 }
 0x77c   : > { %12454 = vst [vmem:[#allocation77_spill] sm:$0xff] %v9774_v26  ;;  %v3763_v14 = vmul.f32 %v9774_v26, %v9303_v58  ;;  %v9799_v58 = vadd.f32 %v9226_v43, %v8971_v22  ;;  %5979 = vrcp.f32 %v3970_v34  ;;  %v9808_v22 = vld [vmem:[%s11609_s3 + $0x1c0] sm:$0xff] }
 0x77d   : > { %3784 = vadd.xlane.f32.xlu1 %v3761_v56  ;;  %v3964_v56 = vmul.f32 1.442695, %v3935_v5  ;;  %5981 = vpow2.f32 %v3954_v16  ;;  %12457 = vst [vmem:[#allocation32_spill] sm:$0xff] %v9808_v22  ;;  %v9813_v5 = vld [vmem:[%s11609_s3 + $0x1e8] sm:$0xff]  ;;  %v3762_v34 = vmul.f32 %v9808_v22, %v9350_v53 }
 0x77e   : > { %12458 = vst [vmem:[#allocation61_spill] sm:$0xff] %v9813_v5  ;;  %v3934_v36 = vsub.f32 0.0, %v9799_v58 }
 0x77f   : > { %3774 = vadd.xlane.f32.xlu0 %v3756_v29  ;;  %v9794_v29 = vld [vmem:[%s11609_s3 + $0x1d8] sm:$0xff]  ;;  %v5966_v57 = vpop.eup %5965  ;;  %5983 = vpow2.f32 %v3964_v56 }
 0x780   : > { %12456 = vst [vmem:[#allocation57_spill] sm:$0xff] %v9794_v29  ;;  %v3765_v49 = vmul.f32 %v9794_v29, %v9342_v2  ;;  %v5968_v39 = vpop.eup %5967  ;;  %v9818_v2 = vadd.f32 %v9276_v33, %v8979_v8  ;;  %5985 = vrcp.f32 %v3975_v38  ;;  %v3977_v16 = vadd.f32 1.0, %v5966_v57  ;;  %v9827_v8 = vld [vmem:[%s11609_s3 + $0x1d0] sm:$0xff]  ;;  %v9832_v56 = vld [vmem:[%s11609_s3 + $0x1f8] sm:$0xff] }
 0x781   : > { %3788 = vadd.xlane.f32.xlu1 %v3763_v14  ;;  %v5970_v55 = vpop.eup %5969  ;;  %5987 = vrcp.f32 %v3972_v10  ;;  %v3974_v45 = vadd.f32 1.0, %v5968_v39  ;;  %12459 = vst [vmem:[#allocation30_spill] sm:$0xff] %v9827_v8  ;;  %12460 = vst [vmem:[#allocation55_spill] sm:$0xff] %v9832_v56  ;;  %v3962_v38 = vmul.f32 1.442695, %v3934_v36 }
 0x782   : > { %v5972_v14 = vpop.eup %5971  ;;  %5989 = vpow2.f32 %v3958_v41  ;;  %v3936_v53 = vsub.f32 0.0, %v9818_v2 }
 0x783   : > { %3778 = vadd.xlane.f32.xlu0 %v3758_v40  ;;  %v3767_v40 = vmul.f32 %v9813_v5, %v9369_v6  ;;  %v5974_v12 = vpop.eup %5973  ;;  %5991 = vpow2.f32 %v3968_v15  ;;  %v3979_v6 = vadd.f32 1.0, %v5970_v55  ;;  %v9836_v10 = vmul.f32 %v5972_v14, %v9617_v54  ;;  %v9845_v15 = vld [vmem:[%s11609_s3 + $0x1e0] sm:$0xff]  ;;  %v12487_v5 = vld [vmem:[#allocation51_spill] sm:$0xff] }
 0x784   : > { %5993 = vrcp.f32 %v3977_v16  ;;  %v5976_v57 = vpop.eup %5975  ;;  %v3976_v39 = vadd.f32 1.0, %v5974_v12  ;;  %12461 = vst [vmem:[#allocation86_spill] sm:$0xff] %v9845_v15  ;;  %v3966_v16 = vmul.f32 1.442695, %v3936_v53 }
 0x785   : > { %3792 = vadd.xlane.f32.xlu1 %v3765_v49  ;;  %v3769_v49 = vmul.f32 %v9832_v56, %v9410_v7  ;;  %v5978_v41 = vpop.eup %5977  ;;  %5995 = vrcp.f32 %v3974_v45  ;;  %v3981_v55 = vadd.f32 1.0, %v5976_v57  ;;  %v3766_v7 = vmul.f32 %v9845_v15, %v9428_v42  ;;  %v9857_v45 = vld [vmem:[%s11609_s3 + $0x1f0] sm:$0xff] }
 0x786   : > { %v5980_v36 = vpop.eup %5979  ;;  %5997 = vpow2.f32 %v3962_v38  ;;  %12462 = vst [vmem:[#allocation22_spill] sm:$0xff] %v9857_v45  ;;  %v12485_v56 = vld [vmem:[#allocation31_spill] sm:$0xff] }
 0x787   : > { %3782 = vadd.xlane.f32.xlu0 %v3760_v3  ;;  %v3764_v3 = vmul.f32 %v9827_v8, %v9386_v9  ;;  %v5982_v54 = vpop.eup %5981  ;;  %5999 = vrcp.f32 %v3979_v6 }
 0x788   : > { %6001 = vrcp.f32 %v3976_v39  ;;  %v3978_v53 = vadd.f32 1.0, %v5982_v54 }
 0x789   : > { %3796 = vadd.xlane.f32.xlu1 %v3767_v40  ;;  %v5984_v9 = vpop.eup %5983  ;;  %v4019_v40 = vmul.f32 %v9836_v10, %v9209_v11  ;;  %6003 = vpow2.f32 %v3966_v16  ;;  %v9862_v11 = vmul.f32 %v5980_v36, %v9640_v21 }
 0x78a   : > { %v5986_v14 = vpop.eup %5985  ;;  %6005 = vrcp.f32 %v3981_v55  ;;  %v3983_v42 = vadd.f32 1.0, %v5984_v9 }
 0x78b   : > { %3786 = vadd.xlane.f32.xlu0 %v3762_v34  ;;  %v9848_v34 = vmul.f32 %v5978_v41, %v9635_v0  ;;  %v5988_v38 = vpop.eup %5987  ;;  %v9865_v57 = vmul.f32 %v5986_v14, %v9659_v24  ;;  %6007 = vrcp.f32 %v3978_v53 }
 0x78c   : > { %v9859_v12 = vpop.xlane.xlu1 %3575  ;;  %v5990_v0 = vpop.eup %5989  ;;  %6009 = vrcp.f32 %v3983_v42  ;;  %v9874_v24 = vmul.f32 %v5988_v38, %v9664_v61 }
 0x78d   : > { %3800 = vadd.xlane.f32.xlu1 %v3769_v49  ;;  %v5992_v6 = vpop.eup %5991  ;;  %v4021_v49 = vmul.f32 %v9848_v34, %v9196_v46  ;;  %v3980_v39 = vadd.f32 1.0, %v5990_v0  ;;  %v4023_v9 = vmul.f32 %v9865_v57, %v9231_v27  ;;  %v12464_v0 = vld [vmem:[#allocation49_spill] sm:$0xff]  ;;  %v12465_v27 = vld [vmem:[#allocation70_spill] sm:$0xff] }
 0x78e   : > { %v5994_v41 = vpop.eup %5993  ;;  %v3985_v54 = vadd.f32 1.0, %v5992_v6  ;;  %v4020_v42 = vmul.f32 %v9874_v24, %v12464_v0 }
 0x78f   : > { %3790 = vadd.xlane.f32.xlu0 %v3764_v3  ;;  %v3768_v3 = vmul.f32 %v9857_v45, %v9445_v18  ;;  %v5996_v16 = vpop.eup %5995  ;;  %v9877_v36 = vmul.f32 %v5994_v41, %v9683_v30  ;;  %v12463_v18 = vld [vmem:[#allocation46_spill] sm:$0xff]  ;;  %6011 = vrcp.f32 %v3980_v39 }
 0x790   : > { %v9871_v55 = vpop.xlane.xlu1 %3581  ;;  %v5998_v21 = vpop.eup %5997  ;;  %v4018_v46 = vmul.f32 %v9862_v11, %v12463_v18  ;;  %6013 = vrcp.f32 %v3985_v54  ;;  %v9886_v38 = vmul.f32 %v5996_v16, %v9688_v25  ;;  %v12466_v16 = vld [vmem:[#allocation69_spill] sm:$0xff] }
 0x791   : > { %4036 = vadd.xlane.f32.xlu1 %v4019_v40  ;;  %v3982_v14 = vadd.f32 1.0, %v5998_v21  ;;  %v4025_v6 = vmul.f32 %v9877_v36, %v12465_v27  ;;  %v12467_v21 = vld [vmem:[#allocation72_spill] sm:$0xff] }
 0x792   : > { %v9883_v53 = vpop.xlane.xlu0 %3577  ;;  %v4022_v54 = vmul.f32 %v9886_v38, %v12466_v16  ;;  %v12471_v16 = vld [vmem:[#allocation75_spill] sm:$0xff] }
 0x793   : > { %3794 = vadd.xlane.f32.xlu0 %v3766_v7  ;;  %v6000_v7 = vpop.eup %5999  ;;  %6015 = vrcp.f32 %v3982_v14 }
 0x794   : > { %v6002_v40 = vpop.eup %6001  ;;  %v9889_v30 = vmul.f32 %v6000_v7, %v9707_v1 }
 0x795   : > { %4040 = vadd.xlane.f32.xlu1 %v4021_v49  ;;  %v6004_v61 = vpop.eup %6003  ;;  %v9895_v49 = vpop.xlane.xlu1 %3585  ;;  %v9898_v25 = vmul.f32 %v6002_v40, %v9712_v48 }
 0x796   : > { %v3984_v41 = vadd.f32 1.0, %v6004_v61  ;;  %v4027_v18 = vmul.f32 %v9889_v30, %v12467_v21 }
 0x797   : > { %3798 = vadd.xlane.f32.xlu0 %v3768_v3  ;;  %v6006_v3 = vpop.eup %6005  ;;  %v4024_v40 = vmul.f32 %v9898_v25, %v9318_v60 }
 0x798   : > { %v6008_v39 = vpop.eup %6007  ;;  %v9901_v1 = vmul.f32 %v6006_v3, %v9731_v35  ;;  %6017 = vrcp.f32 %v3984_v41 }
 0x799   : > { %4044 = vadd.xlane.f32.xlu1 %v4023_v9  ;;  %v9907_v9 = vpop.xlane.xlu0 %3579  ;;  %v9909_v7 = vpop.xlane.xlu1 %3589  ;;  %v9912_v48 = vmul.f32 %v6008_v39, %v9740_v28  ;;  %v12470_v39 = vld [vmem:[#allocation74_spill] sm:$0xff] }
 0x79a   : > { %v4029_v61 = vmul.f32 %v9901_v1, %v9335_v52 }
 0x79b   : > { %4034 = vadd.xlane.f32.xlu0 %v4018_v46  ;;  %v6010_v46 = vpop.eup %6009  ;;  %12468 = vst [vmem:[#allocation78_spill] sm:$0xff] %v9912_v48 }
 0x79c   : > { %v6012_v14 = vpop.eup %6011  ;;  %v9915_v35 = vmul.f32 %v6010_v46, %v9755_v4  ;;  %v4026_v4 = vmul.f32 %v9912_v48, %v9347_v47  ;;  %v12472_v46 = vld [vmem:[#allocation88_spill] sm:$0xff] }
 0x79d   : > { %4048 = vadd.xlane.f32.xlu1 %v4025_v6  ;;  %v6014_v0 = vpop.eup %6013  ;;  %v9924_v27 = vmul.f32 %v6012_v14, %v9764_v23  ;;  %v12469_v6 = vld [vmem:[#allocation73_spill] sm:$0xff]  ;;  %v12473_v14 = vld [vmem:[#allocation87_spill] sm:$0xff] }
 0x79e   : > { %v9927_v28 = vmul.f32 %v6014_v0, %v9779_v32  ;;  %v4031_v60 = vmul.f32 %v9915_v35, %v12469_v6  ;;  %v6016_v3 = vpop.eup %6015  ;;  %v4079_v8 = vmul.f32 %v12485_v56, %v9915_v35 }
 0x79f   : > { %4038 = vadd.xlane.f32.xlu0 %v4020_v42  ;;  %v9921_v42 = vpop.xlane.xlu0 %3583  ;;  %v9936_v52 = vmul.f32 %v6016_v3, %v9799_v58  ;;  %v4028_v23 = vmul.f32 %v9924_v27, %v12470_v39  ;;  %v12476_v39 = vld [vmem:[#allocation91_spill] sm:$0xff]  ;;  %v4076_v22 = vmul.f32 %v12487_v5, %v9924_v27  ;;  %v12490_v5 = vld [vmem:[#allocation18_spill] sm:$0xff] }
 0x7a0   : > { %v4033_v32 = vmul.f32 %v9927_v28, %v12471_v16 }
 0x7a1   : > { %4052 = vadd.xlane.f32.xlu1 %v4027_v18  ;;  %v4030_v58 = vmul.f32 %v9936_v52, %v12472_v46  ;;  %v12478_v46 = vld [vmem:[#allocation93_spill] sm:$0xff] }
 0x7a3   : > { %4042 = vadd.xlane.f32.xlu0 %v4022_v54  ;;  %v6018_v54 = vpop.eup %6017 }
 0x7a4   : > { %v9933_v41 = vpop.xlane.xlu1 %3593  ;;  %v9947_v18 = vmul.f32 %v6018_v54, %v9818_v2  ;;  %v12475_v2 = vld [vmem:[#allocation90_spill] sm:$0xff] }
 0x7a5   : > { %4056 = vadd.xlane.f32.xlu1 %v4029_v61  ;;  %v4066_v3 = vmul.f32 %v12475_v2, %v9862_v11 }
 0x7a6   : > { %v9942_v21 = vpop.xlane.xlu0 %3587  ;;  %v4032_v0 = vmul.f32 %v9947_v18, %v9437_v63  ;;  %v12477_v63 = vld [vmem:[#allocation92_spill] sm:$0xff] }
 0x7a7   : > { %4046 = vadd.xlane.f32.xlu0 %v4024_v40  ;;  %v4067_v40 = vmul.f32 %v12473_v14, %v9836_v10  ;;  %v4068_v54 = vmul.f32 %v12477_v63, %v9874_v24  ;;  %v12481_v63 = vld [vmem:[#allocation19_spill] sm:$0xff] }
 0x7a9   : > { %4060 = vadd.xlane.f32.xlu1 %v4031_v60  ;;  %v9944_v47 = vpop.xlane.xlu1 %3597 }
 0x7ab   : > { %4050 = vadd.xlane.f32.xlu0 %v4026_v4  ;;  %v12474_v4 = vld [vmem:[#allocation89_spill] sm:$0xff] }
 0x7ac   : > { %v9953_v61 = vpop.xlane.xlu0 %3591  ;;  %v4069_v6 = vmul.f32 %v12474_v4, %v9848_v34 }
 0x7ad   : > { %4064 = vadd.xlane.f32.xlu1 %v4033_v32 }
 0x7af   : > { %4054 = vadd.xlane.f32.xlu0 %v4028_v23  ;;  %v4071_v23 = vmul.f32 %v12476_v39, %v9865_v57 }
 0x7b1   : > { %4084 = vadd.xlane.f32.xlu1 %v4067_v40 }
 0x7b2   : > { %v9959_v60 = vpop.xlane.xlu1 %3601 }
 0x7b3   : > { %4058 = vadd.xlane.f32.xlu0 %v4030_v58  ;;  %v4073_v58 = vmul.f32 %v12478_v46, %v9877_v36  ;;  %v12482_v46 = vld [vmem:[#allocation21_spill] sm:$0xff] }
 0x7b4   : > { %v9965_v16 = vpop.xlane.xlu0 %3595 }
 0x7b5   : > { %4088 = vadd.xlane.f32.xlu1 %v4069_v6  ;;  %v12480_v6 = vld [vmem:[#allocation27_spill] sm:$0xff] }
 0x7b6   : > { %v4075_v2 = vmul.f32 %v12480_v6, %v9889_v30 }
 0x7b7   : > { %4062 = vadd.xlane.f32.xlu0 %v4032_v0  ;;  %v12479_v0 = vld [vmem:[#allocation94_spill] sm:$0xff] }
 0x7b8   : > { %v4070_v4 = vmul.f32 %v12479_v0, %v9886_v38 }
 0x7b9   : > { %4092 = vadd.xlane.f32.xlu1 %v4071_v23 }
 0x7ba   : > { %v9967_v32 = vpop.xlane.xlu1 %3605 }
 0x7bb   : > { %4082 = vadd.xlane.f32.xlu0 %v4066_v3 }
 0x7bd   : > { %4096 = vadd.xlane.f32.xlu1 %v4073_v58  ;;  %v4077_v58 = vmul.f32 %v12482_v46, %v9901_v1 }
 0x7be   : > { %v9975_v40 = vpop.xlane.xlu1 %3642 }
 0x7bf   : > { %4086 = vadd.xlane.f32.xlu0 %v4068_v54  ;;  %v4072_v54 = vmul.f32 %v12481_v63, %v9898_v25 }
 0x7c0   : > { %v9973_v14 = vpop.xlane.xlu0 %3599 }
 0x7c1   : > { %4100 = vadd.xlane.f32.xlu1 %v4075_v2  ;;  %v12484_v2 = vld [vmem:[#allocation20_spill] sm:$0xff] }
 0x7c2   : > { %v9985_v23 = vpop.xlane.xlu1 %3646  ;;  %v4074_v15 = vmul.f32 %v12484_v2, %v9912_v48  ;;  %v12488_v2 = vld [vmem:[#allocation11_spill] sm:$0xff] }
 0x7c3   : > { %4090 = vadd.xlane.f32.xlu0 %v4070_v4  ;;  %v4081_v33 = vmul.f32 %v12488_v2, %v9927_v28  ;;  %v12491_v2 = vld [vmem:[#allocation14_spill] sm:$0xff] }
 0x7c4   : > { %v9983_v39 = vpop.xlane.xlu0 %3603  ;;  %v4115_v17 = vmul.f32 %v12491_v2, %v9836_v10 }
 0x7c5   : > { %v9981_v3 = vpop.f32.mrb[0].mxu1  ;;  %4104 = vadd.xlane.f32.xlu1 %v4077_v58 }
 0x7c6   : > { %v9991_v45 = vpop.f32.mrb[1].mxu1  ;;  %v9997_v6 = vpop.xlane.xlu1 %3650 }
 0x7c7   : > { %12483 = vst [vmem:[#allocation67_spill] sm:$0xff] %v9991_v45  ;;  %4094 = vadd.xlane.f32.xlu0 %v4072_v54 }
 0x7c8   : > { %v9995_v4 = vpop.xlane.xlu0 %3640 }
 0x7c9   : > { %v9993_v0 = vpop.f32.mrb[2].mxu1  ;;  %4108 = vadd.xlane.f32.xlu1 %v4079_v8 }
 0x7ca   : > { %v10003_v63 = vpop.f32.mrb[3].mxu1  ;;  %v3655_v58 = vpop.xlane.xlu1 %3654 }
 0x7cb   : > { %12486 = vst [vmem:[#allocation80_spill] sm:$0xff] %v10003_v63  ;;  %4098 = vadd.xlane.f32.xlu0 %v4074_v15  ;;  %v10011_v45 = vsel %vm997_vm2, %v9909_v7, %v3655_v58  ;;  %v4078_v58 = vmul.f32 %v12490_v5, %v9936_v52  ;;  %v12494_v5 = vld [vmem:[#allocation12_spill] sm:$0xff] }
 0x7cc   : > { %v10007_v54 = vpop.xlane.xlu0 %3644  ;;  %v4117_v2 = vmul.f32 %v12494_v5, %v9848_v34 }
 0x7cd   : > { %v10005_v46 = vpop.f32.mrb[4].mxu1  ;;  %4112 = vadd.xlane.f32.xlu1 %v4081_v33 }
 0x7ce   : > { %v10017_v56 = vpop.f32.mrb[5].mxu1  ;;  %v3659_v63 = vpop.xlane.xlu1 %3658 }
 0x7cf   : > { %12489 = vst [vmem:[#allocation56_spill] sm:$0xff] %v10017_v56  ;;  %4102 = vadd.xlane.f32.xlu0 %v4076_v22  ;;  %v10025_v7 = vsel %vm997_vm2, %v9933_v41, %v3659_v63  ;;  %v12493_v63 = vld [vmem:[#allocation34_spill] sm:$0xff] }
 0x7d0   : > { %v3649_v15 = vpop.xlane.xlu0 %3648 }
 0x7d1   : > { %v3209_v8 = vpop.f32.mrb[6].mxu1  ;;  %v10021_v29 = vsel %vm997_vm2, %v9921_v42, %v3649_v15  ;;  %4132 = vadd.xlane.f32.xlu1 %v4115_v17  ;;  %v4080_v15 = vmul.f32 %v12493_v63, %v9947_v18  ;;  %v12497_v63 = vld [vmem:[#allocation50_spill] sm:$0xff] }
 0x7d2   : > { %v10031_v56 = vpop.f32.mrb[7].mxu1  ;;  %v3663_v43 = vpop.xlane.xlu1 %3662  ;;  %v4119_v5 = vmul.f32 %v12497_v63, %v9865_v57 }
 0x7d3   : > { %12492 = vst [vmem:[#allocation26_spill] sm:$0xff] %v10031_v56  ;;  %4106 = vadd.xlane.f32.xlu0 %v4078_v58  ;;  %v10041_v41 = vsel %vm997_vm2, %v9944_v47, %v3663_v43  ;;  %v12496_v47 = vld [vmem:[#allocation23_spill] sm:$0xff] }
 0x7d4   : > { %v3653_v22 = vpop.xlane.xlu0 %3652 }
 0x7d5   : > { %v10033_v33 = vpop.f32.mrb[8].mxu1  ;;  %v10037_v42 = vsel %vm997_vm2, %v9942_v21, %v3653_v22  ;;  %4136 = vadd.xlane.f32.xlu1 %v4117_v2  ;;  %v4114_v22 = vmul.f32 %v12496_v47, %v9862_v11  ;;  %v12500_v47 = vld [vmem:[#allocation95_spill] sm:$0xff] }
 0x7d6   : > { %v10047_v58 = vpop.f32.mrb[9].mxu1  ;;  %v3667_v59 = vpop.xlane.xlu1 %3666  ;;  %v4121_v63 = vmul.f32 %v12500_v47, %v9877_v36 }
 0x7d7   : > { %12495 = vst [vmem:[#allocation63_spill] sm:$0xff] %v10047_v58  ;;  %4110 = vadd.xlane.f32.xlu0 %v4080_v15  ;;  %v10055_v43 = vsel %vm997_vm2, %v9959_v60, %v3667_v59  ;;  %v12499_v60 = vld [vmem:[#allocation24_spill] sm:$0xff] }
 0x7d8   : > { %v3657_v56 = vpop.xlane.xlu0 %3656 }
 0x7d9   : > { %v3221_v17 = vpop.f32.mrb[10].mxu1  ;;  %v10051_v21 = vsel %vm997_vm2, %v9953_v61, %v3657_v56  ;;  %4140 = vadd.xlane.f32.xlu1 %v4119_v5  ;;  %v4116_v56 = vmul.f32 %v12499_v60, %v9874_v24  ;;  %v12503_v60 = vld [vmem:[#allocation37_spill] sm:$0xff] }
 0x7da   : > { %v10061_v58 = vpop.f32.mrb[11].mxu1  ;;  %v3671_v26 = vpop.xlane.xlu1 %3670  ;;  %v4118_v47 = vmul.f32 %v12503_v60, %v9886_v38 }
 0x7db   : > { %12498 = vst [vmem:[#allocation82_spill] sm:$0xff] %v10061_v58  ;;  %4130 = vadd.xlane.f32.xlu0 %v4114_v22  ;;  %v10071_v59 = vsel %vm997_vm2, %v9967_v32, %v3671_v26 }
 0x7dc   : > { %v3661_v2 = vpop.xlane.xlu0 %3660 }
 0x7dd   : > { %v10063_v15 = vpop.f32.mrb[12].mxu1  ;;  %v10067_v61 = vsel %vm997_vm2, %v9965_v16, %v3661_v2  ;;  %4144 = vadd.xlane.f32.xlu1 %v4121_v63  ;;  %v3803_v16 = vsel %vm997_vm2, %v9883_v53, %v9975_v40  ;;  %v10097_v53 = vadd.f32 %v12506_v50, %v9993_v0 }
 0x7de   : > { %v10077_v22 = vpop.f32.mrb[13].mxu1  ;;  %v3708_v58 = vpop.xlane.xlu1 %3707 }
 0x7df   : > { %12501 = vst [vmem:[#allocation84_spill] sm:$0xff] %v10077_v22  ;;  %4134 = vadd.xlane.f32.xlu0 %v4116_v56  ;;  %v10087_v32 = vsel %vm3818_vm7, %v3803_v16, %v3708_v58  ;;  %v12504_v56 = vld [vmem:[#allocation35_spill] sm:$0xff]  ;;  %12507 = vst [vmem:[#allocation68_spill] sm:$0xff] %v10097_v53 }
 0x7e0   : > { %v3665_v2 = vpop.xlane.xlu0 %3664  ;;  %12502 = vst [vmem:[#allocation64_spill] sm:$0xff] %v10087_v32  ;;  %v4123_v63 = vmul.f32 %v12504_v56, %v9889_v30 }
 0x7e1   : > { %v3233_v5 = vpop.f32.mrb[14].mxu1  ;;  %v10084_v26 = vsel %vm997_vm2, %v9973_v14, %v3665_v2  ;;  %v3805_v14 = vsel %vm997_vm2, %v9871_v55, %v9985_v23  ;;  %v12508_v2 = vld [vmem:[#allocation33_spill] sm:$0xff]  ;;  %v4328_v55 = vsub.f32 0.0, %v10097_v53  ;;  %v12512_v23 = vld [vmem:[#allocation38_spill] sm:$0xff] }
 0x7e2   : > { %v10093_v22 = vpop.f32.mrb[15].mxu1  ;;  %4148 = vadd.xlane.f32.xlu1 %v4123_v63  ;;  %v3712_v16 = vpop.xlane.xlu1 %3711  ;;  %v4120_v60 = vmul.f32 %v12508_v2, %v9898_v25  ;;  %v10123_v2 = vadd.f32 %v12512_v23, %v9981_v3 }
 0x7e3   : > { %12505 = vst [vmem:[#allocation83_spill] sm:$0xff] %v10093_v22  ;;  %4138 = vadd.xlane.f32.xlu0 %v4118_v47  ;;  %v10111_v0 = vsel %vm3818_vm7, %v3805_v14, %v3712_v16  ;;  %v12509_v47 = vld [vmem:[#allocation39_spill] sm:$0xff]  ;;  %v12510_v22 = vld [vmem:[#allocation25_spill] sm:$0xff]  ;;  %v3802_v14 = vsel %vm997_vm2, %v9859_v12, %v9995_v4  ;;  %v12515_v12 = vld [vmem:[#allocation40_spill] sm:$0xff] }
 0x7e4   : > { %v3669_v58 = vpop.xlane.xlu0 %3668  ;;  %v10114_v63 = vadd.f32 %v12509_v47, %v3209_v8  ;;  %v4125_v50 = vmul.f32 %v12510_v22, %v9901_v1  ;;  %v3807_v8 = vsel %vm997_vm2, %v9895_v49, %v9997_v6  ;;  %v12513_v16 = vld [vmem:[#allocation53_spill] sm:$0xff]  ;;  %v12514_v47 = vld [vmem:[#allocation36_spill] sm:$0xff]  ;;  %v10143_v4 = vadd.f32 %v12515_v12, %v3221_v17 }
 0x7e5   : > { %v10099_v40 = vpop.f32.mrb[16].mxu1  ;;  %v10108_v56 = vsel %vm997_vm2, %v9983_v39, %v3669_v58  ;;  %v4127_v3 = vmul.f32 %v12514_v47, %v9915_v35  ;;  %v4345_v6 = vmul.f32 1.442695, %v4328_v55  ;;  %v4327_v53 = vsub.f32 0.0, %v10123_v2  ;;  %v12519_v55 = vld [vmem:[#allocation54_spill] sm:$0xff] }
 0x7e6   : > { %v10118_v32 = vpop.f32.mrb[17].mxu1  ;;  %4152 = vadd.xlane.f32.xlu1 %v4125_v50  ;;  %v3716_v58 = vpop.xlane.xlu1 %3715 }
 0x7e7   : > { %12511 = vst [vmem:[#allocation81_spill] sm:$0xff] %v10118_v32  ;;  %4142 = vadd.xlane.f32.xlu0 %v4120_v60  ;;  %v4122_v32 = vmul.f32 %v12513_v16, %v9912_v48  ;;  %v4330_v60 = vsub.f32 0.0, %v10114_v63  ;;  %v10140_v23 = vsel %vm3818_vm7, %v3807_v8, %v3716_v58  ;;  %v12517_v16 = vld [vmem:[#allocation41_spill] sm:$0xff]  ;;  %6019 = vpow2.f32 %v4345_v6  ;;  %v12521_v6 = vld [vmem:[#allocation60_spill] sm:$0xff] }
 0x7e8   : > { %v3706_v22 = vpop.xlane.xlu0 %3705  ;;  %v10150_v48 = vadd.f32 %v12517_v16, %v10005_v46 }
 0x7e9   : > { %v3245_v39 = vpop.f32.mrb[18].mxu1  ;;  %v10137_v50 = vsel %vm3818_vm7, %v3802_v14, %v3706_v22  ;;  %v3804_v14 = vsel %vm997_vm2, %v9907_v9, %v10007_v54  ;;  %v12518_v22 = vld [vmem:[#allocation52_spill] sm:$0xff]  ;;  %v4349_v12 = vmul.f32 1.442695, %v4330_v60  ;;  %v10173_v9 = vadd.f32 %v9093_v51, %v10033_v33 }
 0x7ea   : > { %v10145_v49 = vpop.f32.mrb[19].mxu1  ;;  %4156 = vadd.xlane.f32.xlu1 %v4127_v3  ;;  %v3720_v17 = vpop.xlane.xlu1 %3719  ;;  %v4124_v58 = vmul.f32 %v12518_v22, %v9924_v27  ;;  %v4332_v3 = vsub.f32 0.0, %v10143_v4  ;;  %v4343_v54 = vmul.f32 1.442695, %v4327_v53  ;;  %v4329_v22 = vsub.f32 0.0, %v10150_v48 }
 0x7eb   : > { %12516 = vst [vmem:[#allocation16_spill] sm:$0xff] %v10145_v49  ;;  %4146 = vadd.xlane.f32.xlu0 %v4122_v32  ;;  %v4129_v49 = vmul.f32 %v12519_v55, %v9927_v28  ;;  %v10166_v32 = vsel %vm3818_vm7, %v10011_v45, %v3720_v17  ;;  %v10177_v60 = vadd.f32 %v9075_v19, %v3233_v5  ;;  %6021 = vpow2.f32 %v4349_v12 }
 0x7ec   : > { %v3710_v8 = vpop.xlane.xlu0 %3709  ;;  %v4126_v17 = vmul.f32 %v9673_v44, %v9936_v52  ;;  %v4163_v55 = vmul.f32 %v12521_v6, %v9836_v10  ;;  %v10184_v33 = vadd.f32 %v9104_v31, %v3245_v39  ;;  %v4353_v53 = vmul.f32 1.442695, %v4332_v3  ;;  %v12526_v31 = vld [vmem:[#allocation59_spill] sm:$0xff] }
 0x7ed   : > { %v10152_v47 = vpop.f32.mrb[20].mxu1  ;;  %v10162_v46 = vsel %vm3818_vm7, %v3804_v14, %v3710_v8  ;;  %v4331_v44 = vsub.f32 0.0, %v10173_v9  ;;  %6023 = vpow2.f32 %v4343_v54  ;;  %v4334_v10 = vsub.f32 0.0, %v10177_v60 }
 0x7ee   : > { %v10169_v16 = vpop.f32.mrb[21].mxu1  ;;  %4160 = vadd.xlane.f32.xlu1 %v4129_v49  ;;  %v3724_v8 = vpop.xlane.xlu1 %3723  ;;  %v4336_v54 = vsub.f32 0.0, %v10184_v33  ;;  %6025 = vpow2.f32 %v4353_v53 }
 0x7ef   : > { %12520 = vst [vmem:[#allocation13_spill] sm:$0xff] %v10169_v16  ;;  %4150 = vadd.xlane.f32.xlu0 %v4124_v58  ;;  %v10192_v5 = vsel %vm3818_vm7, %v10025_v7, %v3724_v8  ;;  %v4347_v16 = vmul.f32 1.442695, %v4329_v22  ;;  %v12523_v7 = vld [vmem:[#allocation65_spill] sm:$0xff]  ;;  %v12524_v8 = vld [vmem:[#allocation76_spill] sm:$0xff] }
 0x7f0   : > { %v3714_v45 = vpop.xlane.xlu0 %3713  ;;  %v4165_v6 = vmul.f32 %v12524_v8, %v9848_v34 }
 0x7f1   : > { %v3257_v14 = vpop.f32.mrb[22].mxu1  ;;  %v10188_v49 = vsel %vm3818_vm7, %v10021_v29, %v3714_v45  ;;  %v10202_v29 = vadd.f32 %v9112_v37, %v10063_v15  ;;  %v4128_v45 = vmul.f32 %v12523_v7, %v9947_v18  ;;  %v4351_v7 = vmul.f32 1.442695, %v4331_v44  ;;  %v6020_v53 = vpop.eup %6019 }
 0x7f2   : > { %v10194_v58 = vpop.f32.mrb[23].mxu1  ;;  %4180 = vadd.xlane.f32.xlu1 %v4163_v55  ;;  %v3728_v3 = vpop.xlane.xlu1 %3727  ;;  %v10218_v15 = vadd.f32 %v9126_v20, %v3257_v14  ;;  %6027 = vpow2.f32 %v4347_v16  ;;  %v4361_v20 = vmul.f32 1.442695, %v4336_v54 }
 0x7f3   : > { %12522 = vst [vmem:[#allocation85_spill] sm:$0xff] %v10194_v58  ;;  %4154 = vadd.xlane.f32.xlu0 %v4126_v17  ;;  %v10215_v17 = vsel %vm3818_vm7, %v10041_v41, %v3728_v3  ;;  %v4357_v58 = vmul.f32 1.442695, %v4334_v10  ;;  %v4333_v8 = vsub.f32 0.0, %v10202_v29  ;;  %v4162_v41 = vmul.f32 %v12526_v31, %v9862_v11  ;;  %v12527_v3 = vld [vmem:[#allocation58_spill] sm:$0xff] }
 0x7f4   : > { %v3718_v12 = vpop.xlane.xlu0 %3717  ;;  %v4167_v14 = vmul.f32 %v12527_v3, %v9865_v57  ;;  %v4338_v10 = vsub.f32 0.0, %v10218_v15  ;;  %6029 = vpow2.f32 %v4351_v7  ;;  %v4376_v11 = vadd.f32 1.0, %v6020_v53  ;;  %v12529_v57 = vld [vmem:[#allocation17_spill] sm:$0xff]  ;;  %v12530_v3 = vld [vmem:[#allocation66_spill] sm:$0xff] }
 0x7f5   : > { %v10198_v39 = vpop.f32.mrb[24].mxu1  ;;  %v10211_v22 = vsel %vm3818_vm7, %v10037_v42, %v3718_v12  ;;  %v6022_v31 = vpop.eup %6021  ;;  %6031 = vpow2.f32 %v4357_v58  ;;  %v10243_v54 = vadd.f32 %v12529_v57, %v10099_v40  ;;  %v4169_v7 = vmul.f32 %v12530_v3, %v9877_v36  ;;  %v12532_v36 = vld [vmem:[#allocation45_spill] sm:$0xff] }
 0x7f6   : > { %v10220_v55 = vpop.f32.mrb[25].mxu1  ;;  %4184 = vadd.xlane.f32.xlu1 %v4165_v6  ;;  %v3732_v12 = vpop.xlane.xlu1 %3731  ;;  %6033 = vpow2.f32 %v4361_v20  ;;  %v4365_v53 = vmul.f32 1.442695, %v4338_v10  ;;  %v4378_v20 = vadd.f32 1.0, %v6022_v31  ;;  %v12534_v31 = vld [vmem:[#allocation77_spill] sm:$0xff] }
 0x7f7   : > { %12525 = vst [vmem:[#allocation28_spill] sm:$0xff] %v10220_v55  ;;  %4158 = vadd.xlane.f32.xlu0 %v4128_v45  ;;  %v10233_v16 = vsel %vm3818_vm7, %v10055_v43, %v3732_v12  ;;  %v4355_v43 = vmul.f32 1.442695, %v4333_v8  ;;  %6035 = vrcp.f32 %v4376_v11  ;;  %v12535_v11 = vld [vmem:[#allocation47_spill] sm:$0xff] }
 0x7f8   : > { %v3722_v42 = vpop.xlane.xlu0 %3721 }
 0x7f9   : > { %v3269_v34 = vpop.f32.mrb[26].mxu1  ;;  %v10229_v44 = vsel %vm3818_vm7, %v10051_v21, %v3722_v42  ;;  %6037 = vpow2.f32 %v4355_v43 }
 0x7fa   : > { %v10237_v45 = vadd.f32 %v9149_v62, %v3269_v34  ;;  %v10239_v6 = vpop.f32.mrb[27].mxu1  ;;  %4188 = vadd.xlane.f32.xlu1 %v4167_v14  ;;  %v3736_v12 = vpop.xlane.xlu1 %3735  ;;  %v4164_v34 = vmul.f32 %v9745_v13, %v9874_v24  ;;  %v4335_v24 = vsub.f32 0.0, %v10243_v54  ;;  %6039 = vpow2.f32 %v4365_v53 }
 0x7fb   : > { %12528 = vst [vmem:[#allocation29_spill] sm:$0xff] %v10239_v6  ;;  %4178 = vadd.xlane.f32.xlu0 %v4162_v41  ;;  %v6024_v62 = vpop.eup %6023  ;;  %v10255_v40 = vsel %vm3818_vm7, %v10071_v59, %v3736_v12  ;;  %v12533_v59 = vld [vmem:[#allocation62_spill] sm:$0xff]  ;;  %6041 = vrcp.f32 %v4378_v20 }
 0x7fc   : > { %v3726_v42 = vpop.xlane.xlu0 %3725  ;;  %v4340_v8 = vsub.f32 0.0, %v10237_v45  ;;  %v6026_v13 = vpop.eup %6025  ;;  %v4166_v14 = vmul.f32 %v12533_v59, %v9886_v38  ;;  %v4359_v59 = vmul.f32 1.442695, %v4335_v24 }
 0x7fd   : > { %v3275_v21 = vpop.f32.mrb[28].mxu1  ;;  %v10251_v58 = vsel %vm3818_vm7, %v10067_v61, %v3726_v42  ;;  %v10263_v61 = vadd.f32 %v12532_v36, %v10152_v47  ;;  %v4375_v42 = vadd.f32 1.0, %v6024_v62  ;;  %v12536_v47 = vld [vmem:[#allocation64_spill] sm:$0xff]  ;;  %v4380_v43 = vadd.f32 1.0, %v6026_v13  ;;  %v12540_v13 = vld [vmem:[#allocation57_spill] sm:$0xff] }
 0x7fe   : > { %v10258_v41 = vpop.f32.mrb[29].mxu1  ;;  %4192 = vadd.xlane.f32.xlu1 %v4169_v7  ;;  %v3773_v3 = vpop.xlane.xlu1 %3772  ;;  %v4369_v38 = vmul.f32 1.442695, %v4340_v8  ;;  %v4173_v24 = vmul.f32 %v12540_v13, %v9901_v1  ;;  %v12542_v13 = vld [vmem:[#allocation78_spill] sm:$0xff] }
 0x7ff   : > { %12531 = vst [vmem:[#allocation15_spill] sm:$0xff] %v10258_v41  ;;  %4182 = vadd.xlane.f32.xlu0 %v4164_v34  ;;  %v4171_v41 = vmul.f32 %v12534_v31, %v9889_v30  ;;  %v6028_v34 = vpop.eup %6027  ;;  %v3837_v55 = vsel %vm3835_vm8, %v12536_v47, %v3773_v3  ;;  %v4337_v30 = vsub.f32 0.0, %v10263_v61  ;;  %6043 = vrcp.f32 %v4375_v42  ;;  %v12539_v47 = vld [vmem:[#allocation79_spill] sm:$0xff] }
 0x800   : > { %v3730_v12 = vpop.xlane.xlu0 %3729  ;;  %v4377_v3 = vadd.f32 1.0, %v6028_v34  ;;  %v4168_v20 = vmul.f32 %v12539_v47, %v9898_v25  ;;  %6045 = vpow2.f32 %v4369_v38 }
 0x801   : > { %v3281_v10 = vpop.f32.mrb[30].mxu1  ;;  %v10274_v7 = vsel %vm3818_vm7, %v10084_v26, %v3730_v12  ;;  %v6030_v12 = vpop.eup %6029  ;;  %6047 = vrcp.f32 %v4380_v43  ;;  %v4363_v25 = vmul.f32 1.442695, %v4337_v30 }
 0x802   : > { %v10270_v6 = vadd.f32 %v12535_v11, %v3281_v10  ;;  %v10278_v62 = vpop.f32.mrb[31].mxu1  ;;  %4196 = vadd.xlane.f32.xlu1 %v4171_v41  ;;  %v12538_v10 = vld [vmem:[#allocation48_spill] sm:$0xff]  ;;  %v3777_v8 = vpop.xlane.xlu1 %3776  ;;  %6049 = vpow2.f32 %v4359_v59  ;;  %v4379_v43 = vadd.f32 1.0, %v6030_v12 }
 0x803   : > { %12537 = vst [vmem:[#allocation46_spill] sm:$0xff] %v10278_v62  ;;  %4186 = vadd.xlane.f32.xlu0 %v4166_v14  ;;  %v10283_v31 = vadd.f32 %v12538_v10, %v10198_v39  ;;  %v6032_v11 = vpop.eup %6031  ;;  %v3839_v39 = vsel %vm3835_vm8, %v10111_v0, %v3777_v8  ;;  %v12541_v14 = vld [vmem:[#allocation71_spill] sm:$0xff]  ;;  %6051 = vrcp.f32 %v4377_v3  ;;  %v12543_v0 = vld [vmem:[#allocation32_spill] sm:$0xff] }
 0x804   : > { %v4342_v26 = vsub.f32 0.0, %v10270_v6  ;;  %v3734_v53 = vpop.xlane.xlu0 %3733  ;;  %v10297_v42 = vadd.f32 %v12541_v14, %v3275_v21  ;;  %v6034_v34 = vpop.eup %6033  ;;  %v4170_v38 = vmul.f32 %v12543_v0, %v12542_v13  ;;  %v12544_v21 = vld [vmem:[#allocation61_spill] sm:$0xff] }
 0x805   : > { %v10292_v41 = vsel %vm3818_vm7, %v10108_v56, %v3734_v53  ;;  %v4339_v1 = vsub.f32 0.0, %v10283_v31  ;;  %v4382_v56 = vadd.f32 1.0, %v6032_v11  ;;  %v4175_v8 = vmul.f32 %v12544_v21, %v9915_v35  ;;  %v6036_v14 = vpop.eup %6035 }
 0x806   : > { %v4373_v62 = vmul.f32 1.442695, %v4342_v26  ;;  %4200 = vadd.xlane.f32.xlu1 %v4173_v24  ;;  %v3781_v47 = vpop.xlane.xlu1 %3780  ;;  %v4341_v26 = vsub.f32 0.0, %v10297_v42  ;;  %v6038_v3 = vpop.eup %6037  ;;  %v4384_v11 = vadd.f32 1.0, %v6034_v34  ;;  %v12546_v34 = vld [vmem:[#allocation30_spill] sm:$0xff] }
 0x807   : > { %4190 = vadd.xlane.f32.xlu0 %v4168_v20  ;;  %v3841_v30 = vsel %vm3835_vm8, %v10140_v23, %v3781_v47  ;;  %v3854_v20 = vsel %vm3852_vm9, %v3837_v55, 0.0  ;;  %v6040_v13 = vpop.eup %6039  ;;  %v4367_v0 = vmul.f32 1.442695, %v4339_v1  ;;  %v4172_v21 = vmul.f32 %v12546_v34, %v9924_v27  ;;  %v12547_v55 = vld [vmem:[#allocation55_spill] sm:$0xff]  ;;  %v12548_v27 = vld [vmem:[#allocation86_spill] sm:$0xff] }
 0x808   : > { %v3771_v53 = vpop.xlane.xlu0 %3770  ;;  %6053 = vpow2.f32 %v4373_v62  ;;  %v6042_v12 = vpop.eup %6041  ;;  %v4371_v1 = vmul.f32 1.442695, %v4341_v26  ;;  %v12549_v34 = vld [vmem:[#allocation22_spill] sm:$0xff] }
 0x809   : > { %v3836_v59 = vsel %vm3835_vm8, %v10137_v50, %v3771_v53  ;;  %6055 = vpow2.f32 %v4363_v25  ;;  %v12545_v50 = vld [vmem:[#allocation68_spill] sm:$0xff] }
 0x80a   : > { %v3853_v24 = vsel %vm3852_vm9, %v3836_v59, 0.0  ;;  %4204 = vadd.xlane.f32.xlu1 %v4175_v8  ;;  %v10312_v53 = vmul.f32 %v6036_v14, %v12545_v50  ;;  %6057 = vrcp.f32 %v4382_v56  ;;  %v3785_v47 = vpop.xlane.xlu1 %3784  ;;  %v4177_v59 = vmul.f32 %v12547_v55, %v9927_v28 }
 0x80b   : > { %v3855_v35 = vadd.f32 %v3854_v20, %v3853_v24  ;;  %4194 = vadd.xlane.f32.xlu0 %v4170_v38  ;;  %6059 = vrcp.f32 %v4379_v43  ;;  %v3843_v25 = vsel %vm3835_vm8, %v10166_v32, %v3785_v47  ;;  %v6044_v38 = vpop.eup %6043  ;;  %v4386_v14 = vadd.f32 1.0, %v6040_v13  ;;  %v10332_v13 = vld [vmem:[%s11609_s3 + $0x8] sm:$0xff] }
 0x80c   : > { %v3775_v23 = vpop.xlane.xlu0 %3774  ;;  %6061 = vrcp.f32 %v4384_v11  ;;  %v6046_v8 = vpop.eup %6045  ;;  %v4174_v28 = vmul.f32 %v12548_v27, %v9936_v52  ;;  %v4381_v24 = vadd.f32 1.0, %v6038_v3  ;;  %v3858_v32 = vsel %vm3852_vm9, %v3839_v39, 0.0 }
 0x80d   : > { %v3838_v62 = vsel %vm3835_vm8, %v10162_v46, %v3775_v23  ;;  %6063 = vpow2.f32 %v4367_v0  ;;  %v6048_v43 = vpop.eup %6047  ;;  %v10326_v46 = vmul.f32 %v6042_v12, %v10114_v63  ;;  %v4388_v3 = vadd.f32 1.0, %v6046_v8 }
 0x80e   : > { %v3856_v56 = vsel %vm3852_vm9, %v3838_v62, 0.0  ;;  %4208 = vadd.xlane.f32.xlu1 %v4177_v59  ;;  %v3789_v11 = vpop.xlane.xlu1 %3788  ;;  %v6050_v0 = vpop.eup %6049  ;;  %6065 = vpow2.f32 %v4371_v1  ;;  %v10342_v23 = vmul.f32 %v6044_v38, %v10123_v2  ;;  %v10347_v55 = vmul.f32 %v6048_v43, %v10143_v4 }
 0x80f   : > { %v3857_v20 = vadd.f32 %v3856_v56, %v3855_v35  ;;  %4198 = vadd.xlane.f32.xlu0 %v4172_v21  ;;  %v4424_v35 = vmul.f32 %v10332_v13, %v10312_v53  ;;  %v3845_v63 = vsel %vm3835_vm8, %v10192_v5, %v3789_v11  ;;  %v6052_v39 = vpop.eup %6051  ;;  %6067 = vrcp.f32 %v4386_v14 }
 0x810   : > { %v3779_v26 = vpop.xlane.xlu0 %3778  ;;  %v4176_v21 = vmul.f32 %v12549_v34, %v9947_v18  ;;  %6069 = vrcp.f32 %v4381_v24  ;;  %v4383_v5 = vadd.f32 1.0, %v6050_v0  ;;  %v3862_v59 = vsel %vm3852_vm9, %v3841_v30, 0.0  ;;  %v10357_v18 = vld [vmem:[%s11609_s3 + $0x18] sm:$0xff] }
 0x811   : > { %v3840_v52 = vsel %vm3835_vm8, %v10188_v49, %v3779_v26  ;;  %v3859_v50 = vadd.f32 %v3858_v32, %v3857_v20  ;;  %v4426_v4 = vmul.f32 %v10357_v18, %v10326_v46  ;;  %6071 = vrcp.f32 %v4388_v3 }
 0x812   : > { %v3860_v12 = vsel %vm3852_vm9, %v3840_v52, 0.0  ;;  %4441 = vadd.xlane.f32.xlu1 %v4424_v35  ;;  %v6054_v49 = vpop.eup %6053  ;;  %v3793_v1 = vpop.xlane.xlu1 %3792  ;;  %6073 = vrcp.f32 %v4383_v5  ;;  %v3866_v26 = vsel %vm3852_vm9, %v3843_v25, 0.0 }
 0x813   : > { %v3861_v47 = vadd.f32 %v3860_v12, %v3859_v50  ;;  %4202 = vadd.xlane.f32.xlu0 %v4174_v28  ;;  %v6056_v14 = vpop.eup %6055  ;;  %v3847_v56 = vsel %vm3835_vm8, %v10215_v17, %v3793_v1  ;;  %v4390_v20 = vadd.f32 1.0, %v6054_v49  ;;  %v10368_v17 = vld [vmem:[%s11609_s3] sm:$0xff] }
 0x814   : > { %v3783_v62 = vpop.xlane.xlu0 %3782  ;;  %v6058_v8 = vpop.eup %6057  ;;  %v4423_v43 = vmul.f32 %v10368_v17, %v10342_v23  ;;  %v4385_v32 = vadd.f32 1.0, %v6056_v14 }
 0x815   : > { %v3842_v2 = vsel %vm3835_vm8, %v10211_v22, %v3783_v62  ;;  %v3863_v38 = vadd.f32 %v3862_v59, %v3861_v47  ;;  %v6060_v27 = vpop.eup %6059  ;;  %v10363_v22 = vmul.f32 %v6052_v39, %v10150_v48  ;;  %v10376_v48 = vld [vmem:[%s11609_s3 + $0x28] sm:$0xff]  ;;  %v10381_v50 = vmul.f32 %v6058_v8, %v10177_v60  ;;  %v10394_v60 = vld [vmem:[%s11609_s3 + $0x10] sm:$0xff] }
 0x816   : > { %v3864_v30 = vsel %vm3852_vm9, %v3842_v2, 0.0  ;;  %4445 = vadd.xlane.f32.xlu1 %v4426_v4  ;;  %v6062_v24 = vpop.eup %6061  ;;  %v3797_v35 = vpop.xlane.xlu1 %3796  ;;  %12550 = vst [vmem:[#allocation49_spill] sm:$0xff] %v10376_v48  ;;  %v4428_v0 = vmul.f32 %v10376_v48, %v10347_v55  ;;  %6075 = vrcp.f32 %v4390_v20  ;;  %v10821_v48 = vld [vmem:[%s11609_s3 + $0x150] sm:$0xff] }
 0x817   : > { %v3865_v28 = vadd.f32 %v3864_v30, %v3863_v38  ;;  %4206 = vadd.xlane.f32.xlu0 %v4176_v21  ;;  %v6064_v52 = vpop.eup %6063  ;;  %v3849_v25 = vsel %vm3835_vm8, %v10233_v16, %v3797_v35  ;;  %v10389_v34 = vmul.f32 %v6062_v24, %v10184_v33  ;;  %v10399_v16 = vmul.f32 %v6060_v27, %v10173_v9  ;;  %v10409_v38 = vld [vmem:[%s11609_s3 + $0x38] sm:$0xff] }
 0x818   : > { %v3787_v11 = vpop.xlane.xlu0 %3786  ;;  %v6066_v47 = vpop.eup %6065  ;;  %6077 = vrcp.f32 %v4385_v32  ;;  %v4387_v5 = vadd.f32 1.0, %v6064_v52  ;;  %v3870_v33 = vsel %vm3852_vm9, %v3845_v63, 0.0  ;;  %12551 = vst [vmem:[#allocation70_spill] sm:$0xff] %v10409_v38  ;;  %v4430_v9 = vmul.f32 %v10409_v38, %v10381_v50  ;;  %12578 = vst [vmem:[#allocation34_spill] sm:$0xff] %v10821_v48 }
 0x819   : > { %v3844_v39 = vsel %vm3835_vm8, %v10229_v44, %v3787_v11  ;;  %v3867_v3 = vadd.f32 %v3866_v26, %v3865_v28  ;;  %v4425_v44 = vmul.f32 %v10394_v60, %v10363_v22  ;;  %v6068_v49 = vpop.eup %6067  ;;  %v4389_v8 = vadd.f32 1.0, %v6066_v47  ;;  %v10432_v11 = vld [vmem:[%s11609_s3 + $0x20] sm:$0xff] }
 0x81a   : > { %v3868_v12 = vsel %vm3852_vm9, %v3844_v39, 0.0  ;;  %4449 = vadd.xlane.f32.xlu1 %v4428_v0  ;;  %v3801_v62 = vpop.xlane.xlu1 %3800  ;;  %v6070_v4 = vpop.eup %6069  ;;  %v10415_v30 = vmul.f32 %v6068_v49, %v10218_v15  ;;  %6079 = vrcp.f32 %v4387_v5  ;;  %v3874_v28 = vsel %vm3852_vm9, %v3847_v56, 0.0  ;;  %v10455_v5 = vld [vmem:[%s11609_s3 + $0x30] sm:$0xff] }
 0x81b   : > { %v3869_v21 = vadd.f32 %v3868_v12, %v3867_v3  ;;  %4439 = vadd.xlane.f32.xlu0 %v4423_v43  ;;  %v3851_v2 = vsel %vm3835_vm8, %v10255_v40, %v3801_v62  ;;  %v6186_v40 = vld [vmem:[%s11609_s3 + $0x48] sm:$0xff]  ;;  %v6072_v27 = vpop.eup %6071  ;;  %v10425_v32 = vmul.f32 %v6070_v4, %v10202_v29  ;;  %v4427_v35 = vmul.f32 %v10432_v11, %v10399_v16 }
 0x81c   : > { %v3791_v59 = vpop.xlane.xlu0 %3790  ;;  %v4432_v20 = vmul.f32 %v6186_v40, %v10389_v34  ;;  %v6074_v0 = vpop.eup %6073  ;;  %6081 = vrcp.f32 %v4389_v8  ;;  %v10438_v52 = vmul.f32 %v6072_v27, %v10237_v45  ;;  %v3878_v12 = vsel %vm3852_vm9, %v3849_v25, 0.0  ;;  %12552 = vst [vmem:[#allocation69_spill] sm:$0xff] %v10455_v5 }
 0x81d   : > { %v3846_v1 = vsel %vm3835_vm8, %v10251_v58, %v3791_v59  ;;  %v3871_v14 = vadd.f32 %v3870_v33, %v3869_v21  ;;  %v4429_v33 = vmul.f32 %v10455_v5, %v10425_v32 }
 0x81e   : > { %v3872_v63 = vsel %vm3852_vm9, %v3846_v1, 0.0  ;;  %4453 = vadd.xlane.f32.xlu1 %v4430_v9  ;;  %v10422_v24 = vpop.xlane.xlu1 %4036 }
 0x81f   : > { %v3873_v58 = vadd.f32 %v3872_v63, %v3871_v14  ;;  %4443 = vadd.xlane.f32.xlu0 %v4425_v44  ;;  %v10448_v44 = vmul.f32 %v6074_v0, %v10243_v54  ;;  %v3882_v14 = vsel %vm3852_vm9, %v3851_v2, 0.0  ;;  %v10480_v63 = vld [vmem:[%s11609_s3 + $0x40] sm:$0xff]  ;;  %v6192_v2 = vld [vmem:[%s11609_s3 + $0x78] sm:$0xff] }
 0x820   : > { %v3795_v43 = vpop.xlane.xlu0 %3794  ;;  %v6076_v3 = vpop.eup %6075  ;;  %12553 = vst [vmem:[#allocation72_spill] sm:$0xff] %v10480_v63 }
 0x821   : > { %v3848_v15 = vsel %vm3835_vm8, %v10274_v7, %v3795_v43  ;;  %v3875_v26 = vadd.f32 %v3874_v28, %v3873_v58  ;;  %v6188_v7 = vld [vmem:[%s11609_s3 + $0x58] sm:$0xff]  ;;  %v10461_v62 = vmul.f32 %v6076_v3, %v10270_v6  ;;  %v4431_v58 = vmul.f32 %v10480_v63, %v10448_v44 }
 0x822   : > { %v3876_v56 = vsel %vm3852_vm9, %v3848_v15, 0.0  ;;  %4457 = vadd.xlane.f32.xlu1 %v4432_v20  ;;  %v4434_v39 = vmul.f32 %v6188_v7, %v10415_v30  ;;  %v10445_v21 = vpop.xlane.xlu1 %4040  ;;  %v6078_v59 = vpop.eup %6077  ;;  %v10498_v15 = vld [vmem:[%s11609_s3 + $0x50] sm:$0xff]  ;;  %v10516_v7 = vld [vmem:[%s11609_s3 + $0x88] sm:$0xff] }
 0x823   : > { %v3877_v29 = vadd.f32 %v3876_v56, %v3875_v26  ;;  %4447 = vadd.xlane.f32.xlu0 %v4427_v35  ;;  %v10473_v8 = vmul.f32 %v6078_v59, %v10263_v61  ;;  %v4438_v61 = vmul.f32 %v6192_v2, %v10461_v62  ;;  %12554 = vst [vmem:[#allocation73_spill] sm:$0xff] %v10498_v15 }
 0x824   : > { %v3799_v47 = vpop.xlane.xlu0 %3798  ;;  %v6080_v40 = vpop.eup %6079 }
 0x825   : > { %v3850_v45 = vsel %vm3835_vm8, %v10292_v41, %v3799_v47  ;;  %v3879_v49 = vadd.f32 %v3878_v12, %v3877_v29  ;;  %v6190_v41 = vld [vmem:[%s11609_s3 + $0x68] sm:$0xff]  ;;  %v10493_v43 = vmul.f32 %v6080_v40, %v10283_v31  ;;  %v4433_v26 = vmul.f32 %v10498_v15, %v10473_v8  ;;  %v6194_v31 = vld [vmem:[%s11609_s3 + $0x60] sm:$0xff]  ;;  %v10560_v40 = vld [vmem:[%s11609_s3 + $0x90] sm:$0xff] }
 0x826   : > { %v3880_v25 = vsel %vm3852_vm9, %v3850_v45, 0.0  ;;  %4461 = vadd.xlane.f32.xlu1 %v4434_v39  ;;  %v4436_v1 = vmul.f32 %v6190_v41, %v10438_v52  ;;  %v10470_v4 = vpop.xlane.xlu1 %4044  ;;  %v6082_v20 = vpop.eup %6081  ;;  %v6196_v39 = vld [vmem:[%s11609_s3 + $0x70] sm:$0xff]  ;;  %v10531_v45 = vld [vmem:[%s11609_s3 + $0x98] sm:$0xff]  ;;  %v10549_v41 = vld [vmem:[%s11609_s3 + $0xa8] sm:$0xff]  ;;  %v4473_v2 = vmul.f32 %v10560_v40, %v10363_v22 }
 0x827   : > { %v3881_v54 = vadd.f32 %v3880_v25, %v3879_v49  ;;  %4451 = vadd.xlane.f32.xlu0 %v4429_v33  ;;  %v10503_v35 = vmul.f32 %v6082_v20, %v10297_v42  ;;  %v4435_v29 = vmul.f32 %v6194_v31, %v10493_v43  ;;  %v4472_v42 = vmul.f32 %v10516_v7, %v10312_v53  ;;  %v10542_v25 = vld [vmem:[%s11609_s3 + $0x80] sm:$0xff] }
 0x828   : > { %v10468_v9 = vpop.xlane.xlu0 %4034  ;;  %12555 = vst [vmem:[#allocation74_spill] sm:$0xff] %v10531_v45  ;;  %v4474_v49 = vmul.f32 %v10531_v45, %v10326_v46  ;;  %12556 = vst [vmem:[#allocation75_spill] sm:$0xff] %v10549_v41  ;;  %v10622_v15 = vld [vmem:[%s11609_s3 + $0xc0] sm:$0xff] }
 0x829   : > { %v10475_v6 = vadd.f32 %v3882_v14, %v3881_v54  ;;  %v4437_v3 = vmul.f32 %v6196_v39, %v10503_v35  ;;  %v4471_v54 = vmul.f32 %v10542_v25, %v10342_v23  ;;  %12562 = vst [vmem:[#allocation92_spill] sm:$0xff] %v10622_v15 }
 0x82a   : > { %4465 = vadd.xlane.f32.xlu1 %v4436_v1  ;;  %v10490_v28 = vpop.xlane.xlu1 %4048  ;;  %v4476_v1 = vmul.f32 %v10549_v41, %v10347_v55 }
 0x82b   : > { %4455 = vadd.xlane.f32.xlu0 %v4431_v58 }
 0x82c   : > { %v10488_v27 = vpop.xlane.xlu0 %4038 }
 0x82e   : > { %4469 = vadd.xlane.f32.xlu1 %v4438_v61  ;;  %v10507_v56 = vpop.xlane.xlu1 %4052  ;;  %v10567_v61 = vld [vmem:[%s11609_s3 + $0xb8] sm:$0xff] }
 0x82f   : > { %4459 = vadd.xlane.f32.xlu0 %v4433_v26  ;;  %12557 = vst [vmem:[#allocation88_spill] sm:$0xff] %v10567_v61  ;;  %v4478_v20 = vmul.f32 %v10567_v61, %v10381_v50 }
 0x830   : > { %v10505_v0 = vpop.xlane.xlu0 %4042 }
 0x832   : > { %4489 = vadd.xlane.f32.xlu1 %v4472_v42  ;;  %v10526_v47 = vpop.xlane.xlu1 %4056  ;;  %v10580_v42 = vld [vmem:[%s11609_s3 + $0xa0] sm:$0xff] }
 0x833   : > { %4463 = vadd.xlane.f32.xlu0 %v4435_v29  ;;  %12558 = vst [vmem:[#allocation87_spill] sm:$0xff] %v10580_v42  ;;  %v4475_v39 = vmul.f32 %v10580_v42, %v10399_v16 }
 0x834   : > { %v10524_v12 = vpop.xlane.xlu0 %4046 }
 0x836   : > { %4493 = vadd.xlane.f32.xlu1 %v4474_v49  ;;  %v10537_v59 = vpop.xlane.xlu1 %4060 }
 0x837   : > { %4467 = vadd.xlane.f32.xlu0 %v4437_v3  ;;  %v10587_v3 = vld [vmem:[%s11609_s3 + $0xc8] sm:$0xff] }
 0x838   : > { %v10535_v33 = vpop.xlane.xlu0 %4050  ;;  %12559 = vst [vmem:[#allocation89_spill] sm:$0xff] %v10587_v3  ;;  %v4480_v49 = vmul.f32 %v10587_v3, %v10389_v34 }
 0x83a   : > { %4497 = vadd.xlane.f32.xlu1 %v4476_v1  ;;  %v10555_v58 = vpop.xlane.xlu1 %4064 }
 0x83b   : > { %4487 = vadd.xlane.f32.xlu0 %v4471_v54 }
 0x83c   : > { %v10553_v14 = vpop.xlane.xlu0 %4054 }
 0x83e   : > { %4501 = vadd.xlane.f32.xlu1 %v4478_v20  ;;  %v4085_v31 = vpop.xlane.xlu1 %4084 }
 0x83f   : > { %4491 = vadd.xlane.f32.xlu0 %v4473_v2  ;;  %v10575_v29 = vsel %vm997_vm2, %v10422_v24, %v4085_v31  ;;  %v10600_v2 = vld [vmem:[%s11609_s3 + $0xb0] sm:$0xff]  ;;  %v10607_v31 = vld [vmem:[%s11609_s3 + $0xd8] sm:$0xff] }
 0x840   : > { %v10571_v26 = vpop.xlane.xlu0 %4058  ;;  %12560 = vst [vmem:[#allocation90_spill] sm:$0xff] %v10600_v2  ;;  %v4477_v20 = vmul.f32 %v10600_v2, %v10425_v32  ;;  %12561 = vst [vmem:[#allocation91_spill] sm:$0xff] %v10607_v31  ;;  %v10723_v2 = vld [vmem:[%s11609_s3 + $0x110] sm:$0xff] }
 0x841   : > { %v4521_v38 = vmul.f32 %v10723_v2, %v10363_v22 }
 0x842   : > { %4505 = vadd.xlane.f32.xlu1 %v4480_v49  ;;  %v4089_v54 = vpop.xlane.xlu1 %4088 }
 0x843   : > { %4495 = vadd.xlane.f32.xlu0 %v4475_v39  ;;  %v10595_v1 = vsel %vm997_vm2, %v10445_v21, %v4089_v54  ;;  %v4482_v39 = vmul.f32 %v10607_v31, %v10415_v30  ;;  %v4479_v31 = vmul.f32 %v10622_v15, %v10448_v44  ;;  %v10641_v15 = vld [vmem:[%s11609_s3 + $0xd0] sm:$0xff] }
 0x844   : > { %v10591_v24 = vpop.xlane.xlu0 %4062  ;;  %12563 = vst [vmem:[#allocation93_spill] sm:$0xff] %v10641_v15 }
 0x846   : > { %4509 = vadd.xlane.f32.xlu1 %v4482_v39  ;;  %v4093_v49 = vpop.xlane.xlu1 %4092 }
 0x847   : > { %4499 = vadd.xlane.f32.xlu0 %v4477_v20  ;;  %v10617_v3 = vsel %vm997_vm2, %v10470_v4, %v4093_v49  ;;  %v6207_v20 = vld [vmem:[%s11609_s3 + $0xe8] sm:$0xff] }
 0x848   : > { %v4083_v21 = vpop.xlane.xlu0 %4082  ;;  %v4484_v39 = vmul.f32 %v6207_v20, %v10438_v52  ;;  %v4481_v20 = vmul.f32 %v10641_v15, %v10473_v8  ;;  %v10660_v15 = vld [vmem:[%s11609_s3 + $0xe0] sm:$0xff] }
 0x849   : > { %v10613_v54 = vsel %vm997_vm2, %v10468_v9, %v4083_v21  ;;  %12564 = vst [vmem:[#allocation94_spill] sm:$0xff] %v10660_v15 }
 0x84a   : > { %4513 = vadd.xlane.f32.xlu1 %v4484_v39  ;;  %v4097_v21 = vpop.xlane.xlu1 %4096 }
 0x84b   : > { %4503 = vadd.xlane.f32.xlu0 %v4479_v31  ;;  %v10636_v49 = vsel %vm997_vm2, %v10490_v28, %v4097_v21  ;;  %v6209_v31 = vld [vmem:[%s11609_s3 + $0xf8] sm:$0xff] }
 0x84c   : > { %v4087_v9 = vpop.xlane.xlu0 %4086  ;;  %v4486_v39 = vmul.f32 %v6209_v31, %v10461_v62  ;;  %v4483_v31 = vmul.f32 %v10660_v15, %v10493_v43  ;;  %v6212_v15 = vld [vmem:[%s11609_s3 + $0xf0] sm:$0xff] }
 0x84d   : > { %v10632_v4 = vsel %vm997_vm2, %v10488_v27, %v4087_v9  ;;  %v4485_v61 = vmul.f32 %v6212_v15, %v10503_v35  ;;  %v10701_v15 = vld [vmem:[%s11609_s3 + $0x100] sm:$0xff] }
 0x84e   : > { %4517 = vadd.xlane.f32.xlu1 %v4486_v39  ;;  %v4101_v9 = vpop.xlane.xlu1 %4100  ;;  %v4519_v63 = vmul.f32 %v10701_v15, %v10342_v23 }
 0x84f   : > { %4507 = vadd.xlane.f32.xlu0 %v4481_v20  ;;  %v10655_v21 = vsel %vm997_vm2, %v10507_v56, %v4101_v9  ;;  %v10667_v20 = vld [vmem:[%s11609_s3 + $0x108] sm:$0xff] }
 0x850   : > { %v4091_v27 = vpop.xlane.xlu0 %4090 }
 0x851   : > { %v10651_v28 = vsel %vm997_vm2, %v10505_v0, %v4091_v27  ;;  %v4520_v0 = vmul.f32 %v10667_v20, %v10312_v53 }
 0x852   : > { %v4105_v39 = vpop.xlane.xlu1 %4104 }
 0x853   : > { %4511 = vadd.xlane.f32.xlu0 %v4483_v31  ;;  %4537 = vadd.xlane.f32.xlu1 %v4520_v0  ;;  %v10677_v9 = vsel %vm997_vm2, %v10526_v47, %v4105_v39  ;;  %v10686_v31 = vld [vmem:[%s11609_s3 + $0x118] sm:$0xff] }
 0x854   : > { %v4095_v56 = vpop.xlane.xlu0 %4094  ;;  %12565 = vst [vmem:[#allocation27_spill] sm:$0xff] %v10686_v31  ;;  %v4522_v0 = vmul.f32 %v10686_v31, %v10326_v46 }
 0x855   : > { %v10673_v27 = vsel %vm997_vm2, %v10524_v12, %v4095_v56 }
 0x856   : > { %v4109_v56 = vpop.xlane.xlu1 %4108 }
 0x857   : > { %4515 = vadd.xlane.f32.xlu0 %v4485_v61  ;;  %4541 = vadd.xlane.f32.xlu1 %v4522_v0  ;;  %v10696_v39 = vsel %vm997_vm2, %v10537_v59, %v4109_v56  ;;  %v10708_v61 = vld [vmem:[%s11609_s3 + $0x128] sm:$0xff] }
 0x858   : > { %v4099_v12 = vpop.xlane.xlu0 %4098  ;;  %12566 = vst [vmem:[#allocation19_spill] sm:$0xff] %v10708_v61 }
 0x859   : > { %v10692_v47 = vsel %vm997_vm2, %v10535_v33, %v4099_v12  ;;  %v4524_v33 = vmul.f32 %v10708_v61, %v10347_v55  ;;  %v10745_v61 = vld [vmem:[%s11609_s3 + $0x120] sm:$0xff] }
 0x85a   : > { %v4113_v0 = vpop.xlane.xlu1 %4112  ;;  %12568 = vst [vmem:[#allocation20_spill] sm:$0xff] %v10745_v61 }
 0x85b   : > { %4535 = vadd.xlane.f32.xlu0 %v4519_v63  ;;  %4545 = vadd.xlane.f32.xlu1 %v4524_v33  ;;  %v10718_v56 = vsel %vm997_vm2, %v10555_v58, %v4113_v0  ;;  %v10730_v63 = vld [vmem:[%s11609_s3 + $0x138] sm:$0xff] }
 0x85c   : > { %v4103_v59 = vpop.xlane.xlu0 %4102  ;;  %12567 = vst [vmem:[#allocation21_spill] sm:$0xff] %v10730_v63 }
 0x85d   : > { %v10714_v12 = vsel %vm997_vm2, %v10553_v14, %v4103_v59  ;;  %v4526_v14 = vmul.f32 %v10730_v63, %v10381_v50  ;;  %v4523_v63 = vmul.f32 %v10745_v61, %v10399_v16 }
 0x85e   : > { %v4133_v33 = vpop.xlane.xlu1 %4132 }
 0x85f   : > { %4539 = vadd.xlane.f32.xlu0 %v4521_v38  ;;  %4549 = vadd.xlane.f32.xlu1 %v4526_v14  ;;  %v10740_v0 = vsel %vm3818_vm7, %v10575_v29, %v4133_v33  ;;  %v10752_v38 = vld [vmem:[%s11609_s3 + $0x148] sm:$0xff]  ;;  %v12570_v14 = vld [vmem:[#allocation80_spill] sm:$0xff] }
 0x860   : > { %v4107_v58 = vpop.xlane.xlu0 %4106  ;;  %12569 = vst [vmem:[#allocation31_spill] sm:$0xff] %v10752_v38 }
 0x861   : > { %v10736_v59 = vsel %vm997_vm2, %v10571_v26, %v4107_v58  ;;  %v4528_v26 = vmul.f32 %v10752_v38, %v10389_v34  ;;  %v12571_v58 = vld [vmem:[#allocation10_spill] sm:$0xff]  ;;  %v10771_v38 = vld [vmem:[%s11609_s3 + $0x130] sm:$0xff] }
 0x862   : > { %v10758_v29 = vadd.f32 %v12571_v58, %v12570_v14  ;;  %v4137_v41 = vpop.xlane.xlu1 %4136  ;;  %12572 = vst [vmem:[#allocation51_spill] sm:$0xff] %v10771_v38  ;;  %v4525_v14 = vmul.f32 %v10771_v38, %v10425_v32  ;;  %v12575_v58 = vld [vmem:[#allocation38_spill] sm:$0xff] }
 0x863   : > { %4543 = vadd.xlane.f32.xlu0 %v4523_v63  ;;  %4553 = vadd.xlane.f32.xlu1 %v4528_v26  ;;  %v10766_v5 = vsel %vm3818_vm7, %v10595_v1, %v4137_v41  ;;  %v10778_v63 = vld [vmem:[%s11609_s3 + $0x158] sm:$0xff]  ;;  %v12574_v26 = vld [vmem:[#allocation67_spill] sm:$0xff] }
 0x864   : > { %v4111_v33 = vpop.xlane.xlu0 %4110  ;;  %12573 = vst [vmem:[#allocation11_spill] sm:$0xff] %v10778_v63  ;;  %v10784_v41 = vadd.f32 %v12575_v58, %v12574_v26  ;;  %v4733_v1 = vsub.f32 0.0, %v10758_v29 }
 0x865   : > { %v10762_v10 = vsel %vm997_vm2, %v10591_v24, %v4111_v33  ;;  %v4530_v24 = vmul.f32 %v10778_v63, %v10415_v30  ;;  %v10798_v63 = vld [vmem:[%s11609_s3 + $0x140] sm:$0xff] }
 0x866   : > { %v4141_v61 = vpop.xlane.xlu1 %4140  ;;  %12576 = vst [vmem:[#allocation18_spill] sm:$0xff] %v10798_v63  ;;  %v4527_v26 = vmul.f32 %v10798_v63, %v10448_v44 }
 0x867   : > { %4547 = vadd.xlane.f32.xlu0 %v4525_v14  ;;  %4557 = vadd.xlane.f32.xlu1 %v4530_v24  ;;  %v10793_v42 = vsel %vm3818_vm7, %v10617_v3, %v4141_v61  ;;  %v10805_v14 = vld [vmem:[%s11609_s3 + $0x168] sm:$0xff]  ;;  %v4732_v24 = vsub.f32 0.0, %v10784_v41  ;;  %v4750_v3 = vmul.f32 1.442695, %v4733_v1  ;;  %v4529_v1 = vmul.f32 %v10821_v48, %v10473_v8 }
 0x868   : > { %v4131_v33 = vpop.xlane.xlu0 %4130  ;;  %12577 = vst [vmem:[#allocation14_spill] sm:$0xff] %v10805_v14 }
 0x869   : > { %v10789_v38 = vsel %vm3818_vm7, %v10613_v54, %v4131_v33  ;;  %v4532_v54 = vmul.f32 %v10805_v14, %v10438_v52  ;;  %6083 = vpow2.f32 %v4750_v3 }
 0x86a   : > { %v4145_v58 = vpop.xlane.xlu1 %4144 }
 0x86b   : > { %4551 = vadd.xlane.f32.xlu0 %v4527_v26  ;;  %4561 = vadd.xlane.f32.xlu1 %v4532_v54  ;;  %v10816_v63 = vsel %vm3818_vm7, %v10636_v49, %v4145_v58  ;;  %v10828_v26 = vld [vmem:[%s11609_s3 + $0x178] sm:$0xff]  ;;  %v4748_v54 = vmul.f32 1.442695, %v4732_v24  ;;  %v10847_v24 = vld [vmem:[%s11609_s3 + $0x160] sm:$0xff] }
 0x86c   : > { %v4135_v61 = vpop.xlane.xlu0 %4134  ;;  %12579 = vst [vmem:[#allocation12_spill] sm:$0xff] %v10828_v26  ;;  %v12580_v49 = vld [vmem:[#allocation56_spill] sm:$0xff]  ;;  %12582 = vst [vmem:[#allocation23_spill] sm:$0xff] %v10847_v24  ;;  %v4531_v3 = vmul.f32 %v10847_v24, %v10493_v43 }
 0x86d   : > { %v10812_v33 = vsel %vm3818_vm7, %v10632_v4, %v4135_v61  ;;  %v4534_v4 = vmul.f32 %v10828_v26, %v10461_v62  ;;  %v12581_v61 = vld [vmem:[#allocation41_spill] sm:$0xff]  ;;  %6085 = vpow2.f32 %v4748_v54  ;;  %v10877_v54 = vld [vmem:[%s11609_s3 + $0x198] sm:$0xff] }
 0x86e   : > { %v10834_v58 = vadd.f32 %v12581_v61, %v12580_v49  ;;  %v10870_v61 = vld [vmem:[%s11609_s3 + $0x170] sm:$0xff]  ;;  %12584 = vst [vmem:[#allocation24_spill] sm:$0xff] %v10877_v54 }
 0x86f   : > { %4555 = vadd.xlane.f32.xlu0 %v4529_v1  ;;  %4565 = vadd.xlane.f32.xlu1 %v4534_v4  ;;  %v4149_v31 = vpop.xlane.xlu1 %4148  ;;  %v10854_v1 = vld [vmem:[%s11609_s3 + $0x188] sm:$0xff]  ;;  %12583 = vst [vmem:[#allocation50_spill] sm:$0xff] %v10870_v61 }
 0x870   : > { %v4139_v14 = vpop.xlane.xlu0 %4138  ;;  %v10842_v45 = vsel %vm3818_vm7, %v10655_v21, %v4149_v31  ;;  %v4734_v21 = vsub.f32 0.0, %v10834_v58 }
 0x871   : > { %v10838_v48 = vsel %vm3818_vm7, %v10651_v28, %v4139_v14  ;;  %v4568_v28 = vmul.f32 %v10854_v1, %v10312_v53  ;;  %v4533_v53 = vmul.f32 %v10870_v61, %v10503_v35 }
 0x873   : > { %4559 = vadd.xlane.f32.xlu0 %v4531_v3  ;;  %4585 = vadd.xlane.f32.xlu1 %v4568_v28  ;;  %v4153_v14 = vpop.xlane.xlu1 %4152  ;;  %v4752_v3 = vmul.f32 1.442695, %v4734_v21  ;;  %v12585_v28 = vld [vmem:[#allocation26_spill] sm:$0xff] }
 0x874   : > { %v4143_v31 = vpop.xlane.xlu0 %4142  ;;  %v10865_v49 = vsel %vm3818_vm7, %v10677_v9, %v4153_v14  ;;  %v12586_v9 = vld [vmem:[#allocation39_spill] sm:$0xff]  ;;  %v6084_v14 = vpop.eup %6083 }
 0x875   : > { %v10861_v4 = vsel %vm3818_vm7, %v10673_v27, %v4143_v31  ;;  %v4570_v27 = vmul.f32 %v10877_v54, %v10326_v46  ;;  %v10883_v31 = vadd.f32 %v12586_v9, %v12585_v28  ;;  %v10896_v46 = vld [vmem:[%s11609_s3 + $0x180] sm:$0xff]  ;;  %6087 = vpow2.f32 %v4752_v3 }
 0x876   : > { %v4567_v21 = vmul.f32 %v10896_v46, %v10342_v23 }
 0x877   : > { %4563 = vadd.xlane.f32.xlu0 %v4533_v53  ;;  %4589 = vadd.xlane.f32.xlu1 %v4570_v27  ;;  %v4157_v24 = vpop.xlane.xlu1 %4156  ;;  %v10903_v53 = vld [vmem:[%s11609_s3 + $0x1a8] sm:$0xff] }
 0x878   : > { %v4147_v26 = vpop.xlane.xlu0 %4146  ;;  %v10891_v36 = vsel %vm3818_vm7, %v10696_v39, %v4157_v24  ;;  %12587 = vst [vmem:[#allocation95_spill] sm:$0xff] %v10903_v53  ;;  %v4735_v39 = vsub.f32 0.0, %v10883_v31  ;;  %v6086_v24 = vpop.eup %6085 }
 0x879   : > { %v10887_v61 = vsel %vm3818_vm7, %v10692_v47, %v4147_v26  ;;  %v4572_v47 = vmul.f32 %v10903_v53, %v10347_v55  ;;  %v4781_v26 = vadd.f32 1.0, %v6084_v14  ;;  %v10919_v55 = vld [vmem:[%s11609_s3 + $0x190] sm:$0xff]  ;;  %v10926_v14 = vld [vmem:[%s11609_s3 + $0x1b8] sm:$0xff] }
 0x87a   : > { %v4569_v3 = vmul.f32 %v10919_v55, %v10363_v22 }
 0x87b   : > { %4583 = vadd.xlane.f32.xlu0 %v4567_v21  ;;  %4593 = vadd.xlane.f32.xlu1 %v4572_v47  ;;  %v4161_v28 = vpop.xlane.xlu1 %4160  ;;  %v4754_v21 = vmul.f32 1.442695, %v4735_v39  ;;  %v12588_v47 = vld [vmem:[#allocation63_spill] sm:$0xff]  ;;  %6089 = vrcp.f32 %v4781_v26  ;;  %v10950_v39 = vld [vmem:[%s11609_s3 + $0x1c8] sm:$0xff] }
 0x87c   : > { %v4151_v27 = vpop.xlane.xlu0 %4150  ;;  %v10914_v9 = vsel %vm3818_vm7, %v10718_v56, %v4161_v28  ;;  %v10932_v56 = vadd.f32 %v9093_v51, %v12588_v47  ;;  %12589 = vst [vmem:[#allocation37_spill] sm:$0xff] %v10950_v39 }
 0x87d   : > { %v10910_v23 = vsel %vm3818_vm7, %v10714_v12, %v4151_v27  ;;  %v4574_v12 = vmul.f32 %v10926_v14, %v10381_v50  ;;  %v4780_v27 = vadd.f32 1.0, %v6086_v24  ;;  %v10943_v50 = vld [vmem:[%s11609_s3 + $0x1a0] sm:$0xff]  ;;  %6091 = vpow2.f32 %v4754_v21  ;;  %v10971_v21 = vld [vmem:[%s11609_s3 + $0x1d8] sm:$0xff] }
 0x87e   : > { %v4571_v51 = vmul.f32 %v10943_v50, %v10399_v16  ;;  %v4736_v26 = vsub.f32 0.0, %v10932_v56  ;;  %12590 = vst [vmem:[#allocation35_spill] sm:$0xff] %v10971_v21 }
 0x87f   : > { %4587 = vadd.xlane.f32.xlu0 %v4569_v3  ;;  %4597 = vadd.xlane.f32.xlu1 %v4574_v12  ;;  %v4181_v53 = vpop.xlane.xlu1 %4180  ;;  %6093 = vrcp.f32 %v4780_v27  ;;  %v12591_v27 = vld [vmem:[#allocation82_spill] sm:$0xff] }
 0x880   : > { %v4155_v28 = vpop.xlane.xlu0 %4154  ;;  %v4243_v54 = vsel %vm3835_vm8, %v10740_v0, %v4181_v53  ;;  %v6088_v0 = vpop.eup %6087  ;;  %v4756_v47 = vmul.f32 1.442695, %v4736_v26 }
 0x881   : > { %v10936_v22 = vsel %vm3818_vm7, %v10736_v59, %v4155_v28  ;;  %v4576_v59 = vmul.f32 %v10950_v39, %v10389_v34  ;;  %v10964_v34 = vld [vmem:[%s11609_s3 + $0x1b0] sm:$0xff]  ;;  %v12592_v28 = vld [vmem:[#allocation40_spill] sm:$0xff] }
 0x882   : > { %v4573_v12 = vmul.f32 %v10964_v34, %v10425_v32  ;;  %6095 = vpow2.f32 %v4756_v47 }
 0x883   : > { %4591 = vadd.xlane.f32.xlu0 %v4571_v51  ;;  %4601 = vadd.xlane.f32.xlu1 %v4576_v59  ;;  %v4185_v24 = vpop.xlane.xlu1 %4184  ;;  %v4782_v51 = vadd.f32 1.0, %v6088_v0  ;;  %v10993_v0 = vld [vmem:[%s11609_s3 + $0x1e8] sm:$0xff] }
 0x884   : > { %v4159_v53 = vpop.xlane.xlu0 %4158  ;;  %v4245_v3 = vsel %vm3835_vm8, %v10766_v5, %v4185_v24  ;;  %v10977_v5 = vadd.f32 %v12592_v28, %v12591_v27 }
 0x885   : > { %v10957_v16 = vsel %vm3818_vm7, %v10762_v10, %v4159_v53  ;;  %v4578_v10 = vmul.f32 %v10971_v21, %v10415_v30  ;;  %v6090_v24 = vpop.eup %6089  ;;  %v10986_v30 = vld [vmem:[%s11609_s3 + $0x1c0] sm:$0xff]  ;;  %6097 = vrcp.f32 %v4782_v51 }
 0x886   : > { %v4575_v26 = vmul.f32 %v10986_v30, %v10448_v44  ;;  %v11001_v28 = vmul.f32 %v6090_v24, %v10758_v29  ;;  %v11017_v29 = vld [vmem:[%s11609_s3 + $0x1f8] sm:$0xff] }
 0x887   : > { %4595 = vadd.xlane.f32.xlu0 %v4573_v12  ;;  %4605 = vadd.xlane.f32.xlu1 %v4578_v10  ;;  %v4189_v53 = vpop.xlane.xlu1 %4188  ;;  %v4580_v12 = vmul.f32 %v10993_v0, %v10438_v52  ;;  %v6092_v44 = vpop.eup %6091  ;;  %v4582_v24 = vmul.f32 %v11017_v29, %v10461_v62  ;;  %v11033_v62 = vld [vmem:[%s11609_s3 + $0x1e0] sm:$0xff] }
 0x888   : > { %v4179_v59 = vpop.xlane.xlu0 %4178  ;;  %v4247_v39 = vsel %vm3835_vm8, %v10793_v42, %v4189_v53  ;;  %v4259_v42 = vsel %vm3852_vm9, %v4243_v54, 0.0  ;;  %v11010_v54 = vld [vmem:[%s11609_s3 + $0x1d0] sm:$0xff] }
 0x889   : > { %v4242_v32 = vsel %vm3835_vm8, %v10789_v38, %v4179_v59  ;;  %v4737_v38 = vsub.f32 0.0, %v10977_v5  ;;  %v6094_v21 = vpop.eup %6093  ;;  %v4577_v51 = vmul.f32 %v11010_v54, %v10473_v8 }
 0x88a   : > { %v4258_v10 = vsel %vm3852_vm9, %v4242_v32, 0.0  ;;  %v12593_v32 = vld [vmem:[#allocation84_spill] sm:$0xff]  ;;  %v11027_v8 = vmul.f32 %v6094_v21, %v10784_v41 }
 0x88b   : > { %v4260_v27 = vadd.f32 %v4259_v42, %v4258_v10  ;;  %4599 = vadd.xlane.f32.xlu0 %v4575_v26  ;;  %4609 = vadd.xlane.f32.xlu1 %v4580_v12  ;;  %v4193_v53 = vpop.xlane.xlu1 %4192  ;;  %v4783_v12 = vadd.f32 1.0, %v6092_v44  ;;  %v4263_v10 = vsel %vm3852_vm9, %v4245_v3, 0.0  ;;  %v4829_v3 = vmul.f32 %v10332_v13, %v11001_v28 }
 0x88c   : > { %v4183_v59 = vpop.xlane.xlu0 %4182  ;;  %v4249_v47 = vsel %vm3835_vm8, %v10816_v63, %v4193_v53  ;;  %v11023_v63 = vadd.f32 %v9112_v37, %v12593_v32  ;;  %v4579_v37 = vmul.f32 %v11033_v62, %v10493_v43  ;;  %v6096_v43 = vpop.eup %6095 }
 0x88d   : > { %v4244_v52 = vsel %vm3835_vm8, %v10812_v33, %v4183_v59  ;;  %v4758_v33 = vmul.f32 1.442695, %v4737_v38 }
 0x88e   : > { %v4261_v26 = vsel %vm3852_vm9, %v4244_v52, 0.0  ;;  %v4738_v21 = vsub.f32 0.0, %v11023_v63 }
 0x88f   : > { %v4262_v42 = vadd.f32 %v4261_v26, %v4260_v27  ;;  %4603 = vadd.xlane.f32.xlu0 %v4577_v51  ;;  %4613 = vadd.xlane.f32.xlu1 %v4582_v24  ;;  %v4197_v53 = vpop.xlane.xlu1 %4196  ;;  %6099 = vpow2.f32 %v4758_v33  ;;  %v4267_v51 = vsel %vm3852_vm9, %v4247_v39, 0.0  ;;  %v6098_v33 = vpop.eup %6097  ;;  %v4876_v39 = vmul.f32 %v10542_v25, %v11027_v8 }
 0x890   : > { %v4187_v59 = vpop.xlane.xlu0 %4186  ;;  %v4251_v41 = vsel %vm3835_vm8, %v10842_v45, %v4197_v53  ;;  %6101 = vrcp.f32 %v4783_v12  ;;  %v11049_v45 = vld [vmem:[%s11609_s3 + $0x1f0] sm:$0xff]  ;;  %v4828_v25 = vmul.f32 %v10368_v17, %v11027_v8 }
 0x891   : > { %v4246_v38 = vsel %vm3835_vm8, %v10838_v48, %v4187_v59  ;;  %v4264_v27 = vadd.f32 %v4263_v10, %v4262_v42  ;;  %v4581_v13 = vmul.f32 %v11049_v45, %v10503_v35  ;;  %v4760_v42 = vmul.f32 1.442695, %v4738_v21  ;;  %v12594_v10 = vld [vmem:[#allocation83_spill] sm:$0xff] }
 0x892   : > { %v4265_v44 = vsel %vm3852_vm9, %v4246_v38, 0.0  ;;  %v11061_v59 = vadd.f32 %v9075_v19, %v12594_v10  ;;  %v4271_v38 = vsel %vm3852_vm9, %v4249_v47, 0.0  ;;  %v3884_v10 = vrot.slane %v10475_v6, 4 }
 0x893   : > { %v4266_v52 = vadd.f32 %v4265_v44, %v4264_v27  ;;  %4607 = vadd.xlane.f32.xlu0 %v4579_v37  ;;  %4846 = vadd.xlane.f32.xlu1 %v4829_v3  ;;  %v4201_v24 = vpop.xlane.xlu1 %4200  ;;  %v4784_v37 = vadd.f32 1.0, %v6096_v43  ;;  %v4924_v44 = vmul.f32 %v10701_v15, %v11027_v8  ;;  %6103 = vpow2.f32 %v4760_v42 }
 0x894   : > { %v4191_v48 = vpop.xlane.xlu0 %4190  ;;  %v4253_v12 = vsel %vm3835_vm8, %v10865_v49, %v4201_v24  ;;  %v4275_v43 = vsel %vm3852_vm9, %v4251_v41, 0.0 }
 0x895   : > { %v4248_v32 = vsel %vm3835_vm8, %v10861_v4, %v4191_v48  ;;  %v4268_v26 = vadd.f32 %v4267_v51, %v4266_v52  ;;  %v11065_v4 = vmul.f32 %v6098_v33, %v10834_v58  ;;  %v4739_v58 = vsub.f32 0.0, %v11061_v59 }
 0x896   : > { %v4269_v53 = vsel %vm3852_vm9, %v4248_v32, 0.0  ;;  %6105 = vrcp.f32 %v4784_v37 }
 0x897   : > { %v4270_v35 = vadd.f32 %v4269_v53, %v4268_v26  ;;  %4611 = vadd.xlane.f32.xlu0 %v4581_v13  ;;  %4892 = vadd.xlane.f32.xlu1 %v4876_v39  ;;  %v4205_v27 = vpop.xlane.xlu1 %4204  ;;  %v4878_v33 = vmul.f32 %v10560_v40, %v11065_v4  ;;  %v4762_v32 = vmul.f32 1.442695, %v4739_v58  ;;  %v12595_v26 = vld [vmem:[#allocation81_spill] sm:$0xff] }
 0x898   : > { %v4195_v49 = vpop.xlane.xlu0 %4194  ;;  %v4255_v21 = vsel %vm3835_vm8, %v10891_v36, %v4205_v27  ;;  %v4830_v36 = vmul.f32 %v10394_v60, %v11065_v4  ;;  %v11089_v41 = vadd.f32 %v12529_v57, %v12595_v26 }
 0x899   : > { %v4250_v19 = vsel %vm3835_vm8, %v10887_v61, %v4195_v49  ;;  %v4272_v3 = vadd.f32 %v4271_v38, %v4270_v35  ;;  %v6100_v17 = vpop.eup %6099  ;;  %v4877_v35 = vmul.f32 %v10516_v7, %v11001_v28  ;;  %v4973_v38 = vmul.f32 %v10854_v1, %v11001_v28 }
 0x89a   : > { %v4273_v47 = vsel %vm3852_vm9, %v4250_v19, 0.0  ;;  %v6102_v48 = vpop.eup %6101  ;;  %v4785_v42 = vadd.f32 1.0, %v6100_v17  ;;  %6107 = vpow2.f32 %v4762_v32  ;;  %v4925_v7 = vmul.f32 %v10667_v20, %v11001_v28  ;;  %v12596_v17 = vld [vmem:[#allocation16_spill] sm:$0xff] }
 0x89b   : > { %v4274_v52 = vadd.f32 %v4273_v47, %v4272_v3  ;;  %4844 = vadd.xlane.f32.xlu0 %v4828_v25  ;;  %4940 = vadd.xlane.f32.xlu1 %v4924_v44  ;;  %v4209_v51 = vpop.xlane.xlu1 %4208  ;;  %v4283_v25 = vsel %vm3852_vm9, %v4255_v21, 0.0  ;;  %v3885_v1 = vadd.f32 %v3884_v10, %v10475_v6  ;;  %v12598_v10 = vld [vmem:[#allocation13_spill] sm:$0xff] }
 0x89c   : > { %v4199_v61 = vpop.xlane.xlu0 %4198  ;;  %v4257_v13 = vsel %vm3835_vm8, %v10914_v9, %v4209_v51  ;;  %v4279_v9 = vsel %vm3852_vm9, %v4253_v12, 0.0  ;;  %6109 = vrcp.f32 %v4785_v42 }
 0x89d   : > { %v4252_v15 = vsel %vm3835_vm8, %v10910_v23, %v4199_v61  ;;  %v4276_v24 = vadd.f32 %v4275_v43, %v4274_v52  ;;  %v11093_v23 = vmul.f32 %v6102_v48, %v10883_v31  ;;  %v4740_v31 = vsub.f32 0.0, %v11089_v41  ;;  %v6104_v27 = vpop.eup %6103  ;;  %v12597_v43 = vld [vmem:[#allocation42_spill] sm:$0xff] }
 0x89e   : > { %v4277_v39 = vsel %vm3852_vm9, %v4252_v15, 0.0  ;;  %v11119_v21 = vadd.f32 %v12597_v43, %v12596_v17  ;;  %v4786_v6 = vadd.f32 1.0, %v6104_v27  ;;  %v4972_v15 = vmul.f32 %v10896_v46, %v11027_v8 }
 0x89f   : > { %v4278_v60 = vadd.f32 %v4277_v39, %v4276_v24  ;;  %4848 = vadd.xlane.f32.xlu0 %v4830_v36  ;;  %4896 = vadd.xlane.f32.xlu1 %v4878_v33  ;;  %v11097_v40 = vpop.xlane.xlu1 %4441  ;;  %v4831_v47 = vmul.f32 %v10357_v18, %v11093_v23  ;;  %v4764_v52 = vmul.f32 1.442695, %v4740_v31  ;;  %v3886_v18 = vrot.slane %v3885_v1, 2 }
 0x8a0   : > { %v4203_v53 = vpop.xlane.xlu0 %4202  ;;  %v6106_v3 = vpop.eup %6105  ;;  %v4974_v24 = vmul.f32 %v10919_v55, %v11065_v4  ;;  %v4741_v33 = vsub.f32 0.0, %v11119_v21  ;;  %v4926_v46 = vmul.f32 %v10723_v2, %v11065_v4 }
 0x8a1   : > { %v4254_v57 = vsel %vm3835_vm8, %v10936_v22, %v4203_v53  ;;  %v4280_v37 = vadd.f32 %v4279_v9, %v4278_v60  ;;  %v11123_v20 = vmul.f32 %v6106_v3, %v10932_v56  ;;  %6111 = vpow2.f32 %v4764_v52  ;;  %v12599_v9 = vld [vmem:[#allocation45_spill] sm:$0xff] }
 0x8a2   : > { %v4281_v49 = vsel %vm3852_vm9, %v4254_v57, 0.0  ;;  %6113 = vrcp.f32 %v4786_v6  ;;  %v3887_v42 = vadd.f32 %v3886_v18, %v3885_v1  ;;  %v4766_v8 = vmul.f32 1.442695, %v4741_v33  ;;  %v12603_v52 = vld [vmem:[#allocation49_spill] sm:$0xff]  ;;  %v12605_v6 = vld [vmem:[#allocation43_spill] sm:$0xff] }
 0x8a3   : > { %v4282_v12 = vadd.f32 %v4281_v49, %v4280_v37  ;;  %4894 = vadd.xlane.f32.xlu0 %v4877_v35  ;;  %4990 = vadd.xlane.f32.xlu1 %v4973_v38  ;;  %v11108_v19 = vpop.xlane.xlu1 %4445  ;;  %v4832_v55 = vmul.f32 %v10432_v11, %v11123_v20  ;;  %v11145_v53 = vadd.f32 %v12599_v9, %v12598_v10  ;;  %v12600_v11 = vld [vmem:[#allocation74_spill] sm:$0xff]  ;;  %v12606_v33 = vld [vmem:[#allocation87_spill] sm:$0xff] }
 0x8a4   : > { %v4207_v22 = vpop.xlane.xlu0 %4206  ;;  %v6108_v32 = vpop.eup %6107  ;;  %v3888_v2 = vrot.slane %v3887_v42, 1  ;;  %v4879_v49 = vmul.f32 %v12600_v11, %v11093_v23  ;;  %6115 = vpow2.f32 %v4766_v8  ;;  %v12608_v8 = vld [vmem:[#allocation69_spill] sm:$0xff] }
 0x8a5   : > { %v4256_v44 = vsel %vm3835_vm8, %v10957_v16, %v4207_v22  ;;  %v4284_v58 = vadd.f32 %v4283_v25, %v4282_v12  ;;  %v4287_v16 = vsel %vm3852_vm9, %v4257_v13, 0.0  ;;  %v4787_v35 = vadd.f32 1.0, %v6108_v32  ;;  %v12601_v12 = vld [vmem:[#allocation24_spill] sm:$0xff] }
 0x8a6   : > { %v4285_v61 = vsel %vm3852_vm9, %v4256_v44, 0.0  ;;  %v6110_v39 = vpop.eup %6109  ;;  %v4975_v27 = vmul.f32 %v12601_v12, %v11093_v23  ;;  %v4742_v25 = vsub.f32 0.0, %v11145_v53  ;;  %v3889_v1 = vadd.f32 %v3888_v2, %v3887_v42 }
 0x8a7   : > { %v4286_v51 = vadd.f32 %v4285_v61, %v4284_v58  ;;  %4942 = vadd.xlane.f32.xlu0 %v4925_v7  ;;  %4850 = vadd.xlane.f32.xlu1 %v4831_v47  ;;  %v11128_v36 = vpop.xlane.xlu1 %4449  ;;  %v11148_v37 = vmul.f32 %v6110_v39, %v10977_v5  ;;  %6117 = vrcp.f32 %v4787_v35  ;;  %v12602_v58 = vld [vmem:[#allocation27_spill] sm:$0xff]  ;;  %v4976_v32 = vmul.f32 %v10943_v50, %v11123_v20  ;;  %v12609_v35 = vld [vmem:[#allocation28_spill] sm:$0xff] }
 0x8a8   : > { %v11126_v28 = vpop.xlane.xlu0 %4439  ;;  %v4927_v47 = vmul.f32 %v12602_v58, %v11093_v23  ;;  %v4768_v61 = vmul.f32 1.442695, %v4742_v25  ;;  %v12610_v50 = vld [vmem:[#allocation48_spill] sm:$0xff] }
 0x8a9   : > { %v4288_v48 = vadd.f32 %v4287_v16, %v4286_v51  ;;  %v4833_v17 = vmul.f32 %v12603_v52, %v11148_v37  ;;  %v12604_v51 = vld [vmem:[#allocation85_spill] sm:$0xff]  ;;  %v11192_v2 = vadd.f32 %v12610_v50, %v12609_v35  ;;  %v12613_v52 = vld [vmem:[#allocation19_spill] sm:$0xff] }
 0x8aa   : > { %v11169_v16 = vadd.f32 %v12605_v6, %v12604_v51  ;;  %6119 = vpow2.f32 %v4768_v61  ;;  %v12615_v6 = vld [vmem:[#allocation29_spill] sm:$0xff]  ;;  %v12618_v50 = vld [vmem:[#allocation51_spill] sm:$0xff] }
 0x8ab   : > { %v4289_v56 = vrot.slane %v4288_v48, 4  ;;  %4988 = vadd.xlane.f32.xlu0 %v4972_v15  ;;  %4992 = vadd.xlane.f32.xlu1 %v4974_v24  ;;  %v11137_v26 = vpop.xlane.xlu1 %4453  ;;  %v6112_v5 = vpop.eup %6111 }
 0x8ac   : > { %v11135_v13 = vpop.xlane.xlu0 %4443  ;;  %v6114_v43 = vpop.eup %6113  ;;  %v4788_v18 = vadd.f32 1.0, %v6112_v5  ;;  %v4743_v39 = vsub.f32 0.0, %v11169_v16 }
 0x8ad   : > { %v4290_v60 = vadd.f32 %v4289_v56, %v4288_v48  ;;  %v4818_v23 = vmul.f32 %v6114_v43, %v11023_v63  ;;  %v4880_v56 = vmul.f32 %v12606_v33, %v11123_v20  ;;  %v12614_v43 = vld [vmem:[#allocation70_spill] sm:$0xff] }
 0x8ae   : > { %6121 = vrcp.f32 %v4788_v18  ;;  %v6116_v42 = vpop.eup %6115  ;;  %v12616_v18 = vld [vmem:[#allocation44_spill] sm:$0xff] }
 0x8af   : > { %v4291_v57 = vrot.slane %v4290_v60, 2  ;;  %4944 = vadd.xlane.f32.xlu0 %v4926_v46  ;;  %4852 = vadd.xlane.f32.xlu1 %v4832_v55  ;;  %v11152_v31 = vpop.xlane.xlu1 %4457  ;;  %v12607_v55 = vld [vmem:[#allocation20_spill] sm:$0xff]  ;;  %v4834_v10 = vmul.f32 %v12608_v8, %v4818_v23  ;;  %v11220_v33 = vadd.f32 %v12616_v18, %v12615_v6  ;;  %v4978_v8 = vmul.f32 %v10964_v34, %v4818_v23 }
 0x8b0   : > { %v11150_v38 = vpop.xlane.xlu0 %4447  ;;  %v4928_v63 = vmul.f32 %v12607_v55, %v11123_v20  ;;  %v12619_v34 = vld [vmem:[#allocation72_spill] sm:$0xff] }
 0x8b1   : > { %v4292_v4 = vadd.f32 %v4291_v57, %v4290_v60  ;;  %v6118_v9 = vpop.eup %6117  ;;  %v4770_v57 = vmul.f32 1.442695, %v4743_v39 }
 0x8b2   : > { %v11197_v12 = vmul.f32 %v6118_v9, %v11061_v59 }
 0x8b3   : > { %v4293_v22 = vrot.slane %v4292_v4, 1  ;;  %4898 = vadd.xlane.f32.xlu0 %v4879_v49  ;;  %4994 = vadd.xlane.f32.xlu1 %v4975_v27  ;;  %v11161_v3 = vpop.xlane.xlu1 %4461  ;;  %v12611_v27 = vld [vmem:[#allocation75_spill] sm:$0xff]  ;;  %6123 = vpow2.f32 %v4770_v57 }
 0x8b4   : > { %v11159_v7 = vpop.xlane.xlu0 %4451  ;;  %v4881_v20 = vmul.f32 %v12611_v27, %v11148_v37  ;;  %v4835_v61 = vmul.f32 %v12614_v43, %v11197_v12 }
 0x8b5   : > { %v4294_v44 = vadd.f32 %v4293_v22, %v4292_v4  ;;  %v4789_v4 = vadd.f32 1.0, %v6116_v42  ;;  %v12612_v22 = vld [vmem:[#allocation95_spill] sm:$0xff]  ;;  %v12617_v42 = vld [vmem:[#allocation90_spill] sm:$0xff] }
 0x8b6   : > { %v4977_v5 = vmul.f32 %v12612_v22, %v11148_v37  ;;  %v4882_v55 = vmul.f32 %v12617_v42, %v4818_v23  ;;  %v12621_v22 = vld [vmem:[#allocation71_spill] sm:$0xff]  ;;  %v12624_v42 = vld [vmem:[#allocation46_spill] sm:$0xff] }
 0x8b7   : > { %v11171_v48 = vsel %vm5105_vm10, %v3889_v1, %v4294_v44  ;;  %4946 = vadd.xlane.f32.xlu0 %v4927_v47  ;;  %4854 = vadd.xlane.f32.xlu1 %v4833_v17  ;;  %v11175_v24 = vpop.xlane.xlu1 %4465  ;;  %v4744_v1 = vsub.f32 0.0, %v11192_v2  ;;  %6125 = vrcp.f32 %v4789_v4  ;;  %v6120_v44 = vpop.eup %6119  ;;  %v4929_v17 = vmul.f32 %v12613_v52, %v11148_v37 }
 0x8b8   : > { %v11173_v15 = vpop.xlane.xlu0 %4455  ;;  %v6122_v47 = vpop.eup %6121  ;;  %v4930_v4 = vmul.f32 %v12618_v50, %v4818_v23 }
 0x8b9   : > { %v4772_v51 = vmul.f32 1.442695, %v4744_v1 }
 0x8bb   : > { %4900 = vadd.xlane.f32.xlu0 %v4880_v56  ;;  %4996 = vadd.xlane.f32.xlu1 %v4976_v32  ;;  %v11185_v46 = vpop.xlane.xlu1 %4469  ;;  %v4790_v56 = vadd.f32 1.0, %v6120_v44  ;;  %v11223_v32 = vmul.f32 %v6122_v47, %v11089_v41  ;;  %6127 = vpow2.f32 %v4772_v51 }
 0x8bc   : > { %v11183_v60 = vpop.xlane.xlu0 %4459 }
 0x8bd   : > { %6129 = vrcp.f32 %v4790_v56  ;;  %v6124_v41 = vpop.eup %6123  ;;  %v6244_v56 = vld [vmem:[%s11609_s3 + $0x48] sm:$0xff]  ;;  %v4980_v50 = vmul.f32 %v10986_v30, %v11223_v32 }
 0x8be   : > { %v4791_v1 = vadd.f32 1.0, %v6124_v41 }
 0x8bf   : > { %4948 = vadd.xlane.f32.xlu0 %v4928_v63  ;;  %4856 = vadd.xlane.f32.xlu1 %v4834_v10  ;;  %v4490_v49 = vpop.xlane.xlu1 %4489  ;;  %v4745_v10 = vsub.f32 0.0, %v11220_v33 }
 0x8c0   : > { %v11194_v11 = vpop.xlane.xlu0 %4463  ;;  %v11203_v25 = vsel %vm997_vm2, %v11097_v40, %v4490_v49  ;;  %v4836_v49 = vmul.f32 %v12619_v34, %v11223_v32 }
 0x8c1   : > { %v6126_v35 = vpop.eup %6125  ;;  %v4774_v27 = vmul.f32 1.442695, %v4745_v10 }
 0x8c3   : > { %4902 = vadd.xlane.f32.xlu0 %v4881_v20  ;;  %4998 = vadd.xlane.f32.xlu1 %v4977_v5  ;;  %v4494_v59 = vpop.xlane.xlu1 %4493  ;;  %v12620_v20 = vld [vmem:[#allocation15_spill] sm:$0xff]  ;;  %6131 = vpow2.f32 %v4774_v27 }
 0x8c4   : > { %v11208_v58 = vpop.xlane.xlu0 %4467  ;;  %v11214_v40 = vsel %vm997_vm2, %v11108_v19, %v4494_v59  ;;  %v11249_v5 = vadd.f32 %v12621_v22, %v12620_v20  ;;  %v12622_v59 = vld [vmem:[#allocation88_spill] sm:$0xff]  ;;  %6133 = vrcp.f32 %v4791_v1  ;;  %v12628_v22 = vld [vmem:[#allocation73_spill] sm:$0xff] }
 0x8c5   : > { %v4883_v47 = vmul.f32 %v12622_v59, %v11197_v12  ;;  %v6128_v43 = vpop.eup %6127 }
 0x8c7   : > { %4950 = vadd.xlane.f32.xlu0 %v4929_v17  ;;  %4858 = vadd.xlane.f32.xlu1 %v4835_v61  ;;  %v4498_v37 = vpop.xlane.xlu1 %4497  ;;  %v4979_v17 = vmul.f32 %v10926_v14, %v11197_v12  ;;  %v6130_v51 = vpop.eup %6129 }
 0x8c8   : > { %v4488_v39 = vpop.xlane.xlu0 %4487  ;;  %v11232_v63 = vsel %vm997_vm2, %v11128_v36, %v4498_v37 }
 0x8c9   : > { %v11227_v19 = vsel %vm997_vm2, %v11126_v28, %v4488_v39 }
 0x8cb   : > { %4904 = vadd.xlane.f32.xlu0 %v4882_v55  ;;  %5000 = vadd.xlane.f32.xlu1 %v4978_v8  ;;  %v4502_v57 = vpop.xlane.xlu1 %4501  ;;  %v12625_v55 = vld [vmem:[#allocation47_spill] sm:$0xff] }
 0x8cc   : > { %v4492_v9 = vpop.xlane.xlu0 %4491  ;;  %v11243_v36 = vsel %vm997_vm2, %v11137_v26, %v4502_v57  ;;  %v11283_v8 = vadd.f32 %v12625_v55, %v12624_v42 }
 0x8cd   : > { %v11238_v28 = vsel %vm997_vm2, %v11135_v13, %v4492_v9  ;;  %v11252_v13 = vmul.f32 %v6126_v35, %v11119_v21  ;;  %v4746_v21 = vsub.f32 0.0, %v11249_v5  ;;  %v12626_v9 = vld [vmem:[#allocation92_spill] sm:$0xff] }
 0x8ce   : > { %v4884_v57 = vmul.f32 %v12626_v9, %v11223_v32 }
 0x8cf   : > { %4952 = vadd.xlane.f32.xlu0 %v4930_v4  ;;  %4860 = vadd.xlane.f32.xlu1 %v4836_v49  ;;  %v4506_v23 = vpop.xlane.xlu1 %4505  ;;  %v4837_v39 = vmul.f32 %v6244_v56, %v11252_v13  ;;  %v4776_v37 = vmul.f32 1.442695, %v4746_v21  ;;  %v6132_v4 = vpop.eup %6131 }
 0x8d0   : > { %v4496_v44 = vpop.xlane.xlu0 %4495  ;;  %v11262_v52 = vsel %vm997_vm2, %v11152_v31, %v4506_v23  ;;  %v12623_v31 = vld [vmem:[#allocation21_spill] sm:$0xff]  ;;  %v6134_v49 = vpop.eup %6133  ;;  %v4793_v23 = vadd.f32 1.0, %v6132_v4  ;;  %v12633_v4 = vld [vmem:[#allocation34_spill] sm:$0xff] }
 0x8d1   : > { %v11256_v26 = vsel %vm997_vm2, %v11150_v38, %v4496_v44  ;;  %v4931_v18 = vmul.f32 %v12623_v31, %v11197_v12  ;;  %v11286_v12 = vmul.f32 %v6130_v51, %v11145_v53  ;;  %6135 = vpow2.f32 %v4776_v37 }
 0x8d2   : > { %v4747_v53 = vsub.f32 0.0, %v11283_v8  ;;  %v4823_v59 = vmul.f32 %v6134_v49, %v11169_v16 }
 0x8d3   : > { %4906 = vadd.xlane.f32.xlu0 %v4883_v47  ;;  %5002 = vadd.xlane.f32.xlu1 %v4979_v17  ;;  %v4510_v38 = vpop.xlane.xlu1 %4509  ;;  %v4838_v1 = vmul.f32 %v12628_v22, %v11286_v12  ;;  %v4982_v9 = vmul.f32 %v11010_v54, %v11286_v12  ;;  %v6246_v54 = vld [vmem:[%s11609_s3 + $0x60] sm:$0xff] }
 0x8d4   : > { %v4500_v61 = vpop.xlane.xlu0 %4499  ;;  %v11275_v14 = vsel %vm997_vm2, %v11161_v3, %v4510_v38  ;;  %v4778_v44 = vmul.f32 1.442695, %v4747_v53 }
 0x8d5   : > { %v11269_v6 = vsel %vm997_vm2, %v11159_v7, %v4500_v61  ;;  %v4792_v7 = vadd.f32 1.0, %v6128_v43  ;;  %v12630_v43 = vld [vmem:[#allocation37_spill] sm:$0xff] }
 0x8d6   : > { %v4981_v61 = vmul.f32 %v12630_v43, %v11252_v13 }
 0x8d7   : > { %4954 = vadd.xlane.f32.xlu0 %v4931_v18  ;;  %4862 = vadd.xlane.f32.xlu1 %v4837_v39  ;;  %v4514_v3 = vpop.xlane.xlu1 %4513  ;;  %6137 = vrcp.f32 %v4792_v7  ;;  %v12631_v18 = vld [vmem:[#allocation31_spill] sm:$0xff]  ;;  %v6245_v39 = vld [vmem:[%s11609_s3 + $0x58] sm:$0xff] }
 0x8d8   : > { %v4504_v10 = vpop.xlane.xlu0 %4503  ;;  %v11296_v35 = vsel %vm997_vm2, %v11175_v24, %v4514_v3  ;;  %v12627_v24 = vld [vmem:[#allocation18_spill] sm:$0xff]  ;;  %6139 = vpow2.f32 %v4778_v44  ;;  %v4933_v56 = vmul.f32 %v12631_v18, %v11252_v13  ;;  %v4839_v37 = vmul.f32 %v6245_v39, %v4823_v59  ;;  %v12635_v44 = vld [vmem:[#allocation35_spill] sm:$0xff] }
 0x8d9   : > { %v11290_v41 = vsel %vm997_vm2, %v11173_v15, %v4504_v10  ;;  %v4932_v20 = vmul.f32 %v12627_v24, %v11223_v32  ;;  %v12629_v32 = vld [vmem:[#allocation89_spill] sm:$0xff]  ;;  %6141 = vrcp.f32 %v4793_v23  ;;  %v4983_v23 = vmul.f32 %v12635_v44, %v4823_v59 }
 0x8da   : > { %v4885_v21 = vmul.f32 %v12629_v32, %v11252_v13  ;;  %v12632_v13 = vld [vmem:[#allocation93_spill] sm:$0xff] }
 0x8db   : > { %4908 = vadd.xlane.f32.xlu0 %v4884_v57  ;;  %5004 = vadd.xlane.f32.xlu1 %v4980_v50  ;;  %v4518_v15 = vpop.xlane.xlu1 %4517  ;;  %v6136_v16 = vpop.eup %6135 }
 0x8dc   : > { %v4508_v34 = vpop.xlane.xlu0 %4507  ;;  %v11309_v30 = vsel %vm997_vm2, %v11185_v46, %v4518_v15  ;;  %v4794_v42 = vadd.f32 1.0, %v6136_v16 }
 0x8dd   : > { %v11303_v27 = vsel %vm997_vm2, %v11183_v60, %v4508_v34  ;;  %v4934_v34 = vmul.f32 %v12633_v4, %v11286_v12 }
 0x8de   : > { %6143 = vrcp.f32 %v4794_v42  ;;  %v12638_v42 = vld [vmem:[#allocation23_spill] sm:$0xff] }
 0x8df   : > { %4956 = vadd.xlane.f32.xlu0 %v4932_v20  ;;  %4864 = vadd.xlane.f32.xlu1 %v4838_v1 }
 0x8e0   : > { %v4512_v47 = vpop.xlane.xlu0 %4511  ;;  %v4538_v17 = vpop.xlane.xlu1 %4537 }
 0x8e1   : > { %v11316_v60 = vsel %vm997_vm2, %v11194_v11, %v4512_v47  ;;  %v11322_v46 = vsel %vm3818_vm7, %v11203_v25, %v4538_v17  ;;  %v6138_v31 = vpop.eup %6137 }
 0x8e2   : > { %v4824_v55 = vmul.f32 %v6138_v31, %v11192_v2  ;;  %v6140_v2 = vpop.eup %6139 }
 0x8e3   : > { %4910 = vadd.xlane.f32.xlu0 %v4885_v21  ;;  %5006 = vadd.xlane.f32.xlu1 %v4981_v61  ;;  %v6142_v53 = vpop.eup %6141  ;;  %v4795_v49 = vadd.f32 1.0, %v6140_v2 }
 0x8e4   : > { %v4516_v38 = vpop.xlane.xlu0 %4515  ;;  %v4542_v51 = vpop.xlane.xlu1 %4541  ;;  %v4840_v15 = vmul.f32 %v6246_v54, %v4824_v55  ;;  %v4825_v24 = vmul.f32 %v6142_v53, %v11220_v33  ;;  %v4984_v18 = vmul.f32 %v11033_v62, %v4824_v55 }
 0x8e5   : > { %v11328_v11 = vsel %vm997_vm2, %v11208_v58, %v4516_v38  ;;  %v11334_v25 = vsel %vm3818_vm7, %v11214_v40, %v4542_v51  ;;  %v4886_v40 = vmul.f32 %v12632_v13, %v11286_v12  ;;  %v12634_v12 = vld [vmem:[#allocation91_spill] sm:$0xff]  ;;  %6145 = vrcp.f32 %v4795_v49 }
 0x8e6   : > { %v4887_v1 = vmul.f32 %v12634_v12, %v4823_v59  ;;  %v4985_v2 = vmul.f32 %v10993_v0, %v4825_v24  ;;  %v6251_v49 = vld [vmem:[%s11609_s3 + $0xf0] sm:$0xff] }
 0x8e7   : > { %4958 = vadd.xlane.f32.xlu0 %v4933_v56  ;;  %4866 = vadd.xlane.f32.xlu1 %v4839_v37 }
 0x8e8   : > { %v4536_v7 = vpop.xlane.xlu0 %4535  ;;  %v4546_v58 = vpop.xlane.xlu1 %4545 }
 0x8e9   : > { %v11342_v10 = vsel %vm3818_vm7, %v11227_v19, %v4536_v7  ;;  %v11348_v3 = vsel %vm3818_vm7, %v11232_v63, %v4546_v58  ;;  %v6144_v33 = vpop.eup %6143 }
 0x8ea   : > { %v4826_v16 = vmul.f32 %v6144_v33, %v11249_v5 }
 0x8eb   : > { %4912 = vadd.xlane.f32.xlu0 %v4886_v40  ;;  %5008 = vadd.xlane.f32.xlu1 %v4982_v9 }
 0x8ec   : > { %v4540_v57 = vpop.xlane.xlu0 %4539  ;;  %v4550_v50 = vpop.xlane.xlu1 %4549 }
 0x8ed   : > { %v11354_v19 = vsel %vm3818_vm7, %v11238_v28, %v4540_v57  ;;  %v11360_v63 = vsel %vm3818_vm7, %v11243_v36, %v4550_v50 }
 0x8ef   : > { %4960 = vadd.xlane.f32.xlu0 %v4934_v34  ;;  %4868 = vadd.xlane.f32.xlu1 %v4840_v15  ;;  %v6146_v37 = vpop.eup %6145  ;;  %v6250_v34 = vld [vmem:[%s11609_s3 + $0x78] sm:$0xff] }
 0x8f0   : > { %v4544_v20 = vpop.xlane.xlu0 %4543  ;;  %v4554_v28 = vpop.xlane.xlu1 %4553  ;;  %v4827_v58 = vmul.f32 %v6146_v37, %v11283_v8 }
 0x8f1   : > { %v11368_v22 = vsel %vm3818_vm7, %v11256_v26, %v4544_v20  ;;  %v11373_v36 = vsel %vm3818_vm7, %v11262_v52, %v4554_v28  ;;  %v12636_v26 = vld [vmem:[#allocation11_spill] sm:$0xff]  ;;  %v6247_v52 = vld [vmem:[%s11609_s3 + $0x68] sm:$0xff]  ;;  %v4986_v20 = vmul.f32 %v11049_v45, %v4826_v16 }
 0x8f2   : > { %v4935_v21 = vmul.f32 %v12636_v26, %v4823_v59  ;;  %v4841_v61 = vmul.f32 %v6247_v52, %v4825_v24  ;;  %v12637_v59 = vld [vmem:[#allocation94_spill] sm:$0xff]  ;;  %v4987_v33 = vmul.f32 %v11017_v29, %v4827_v58 }
 0x8f3   : > { %4914 = vadd.xlane.f32.xlu0 %v4887_v1  ;;  %5010 = vadd.xlane.f32.xlu1 %v4983_v23  ;;  %v4888_v31 = vmul.f32 %v12637_v59, %v4824_v55  ;;  %v12640_v23 = vld [vmem:[#allocation50_spill] sm:$0xff] }
 0x8f4   : > { %v4548_v47 = vpop.xlane.xlu0 %4547  ;;  %v4558_v17 = vpop.xlane.xlu1 %4557 }
 0x8f5   : > { %v11378_v32 = vsel %vm3818_vm7, %v11269_v6, %v4548_v47  ;;  %v11383_v43 = vsel %vm3818_vm7, %v11275_v14, %v4558_v17  ;;  %v4938_v47 = vmul.f32 %v12640_v23, %v4826_v16 }
 0x8f7   : > { %4962 = vadd.xlane.f32.xlu0 %v4935_v21  ;;  %4870 = vadd.xlane.f32.xlu1 %v4841_v61 }
 0x8f8   : > { %v4552_v38 = vpop.xlane.xlu0 %4551  ;;  %v4562_v51 = vpop.xlane.xlu1 %4561 }
 0x8f9   : > { %v11391_v6 = vsel %vm3818_vm7, %v11290_v41, %v4552_v38  ;;  %v11396_v14 = vsel %vm3818_vm7, %v11296_v35, %v4562_v51  ;;  %v4936_v41 = vmul.f32 %v12638_v42, %v4824_v55  ;;  %v6248_v35 = vld [vmem:[%s11609_s3 + $0x70] sm:$0xff] }
 0x8fa   : > { %v4842_v62 = vmul.f32 %v6248_v35, %v4826_v16 }
 0x8fb   : > { %4916 = vadd.xlane.f32.xlu0 %v4888_v31  ;;  %5012 = vadd.xlane.f32.xlu1 %v4984_v18 }
 0x8fc   : > { %v4556_v56 = vpop.xlane.xlu0 %4555  ;;  %v4566_v39 = vpop.xlane.xlu1 %4565 }
 0x8fd   : > { %v11401_v5 = vsel %vm3818_vm7, %v11303_v27, %v4556_v56  ;;  %v11406_v7 = vsel %vm3818_vm7, %v11309_v30, %v4566_v39  ;;  %v6249_v30 = vld [vmem:[%s11609_s3 + $0xe8] sm:$0xff]  ;;  %v12641_v39 = vld [vmem:[#allocation12_spill] sm:$0xff] }
 0x8fe   : > { %v4889_v55 = vmul.f32 %v6249_v30, %v4825_v24  ;;  %v4939_v37 = vmul.f32 %v12641_v39, %v4827_v58 }
 0x8ff   : > { %4964 = vadd.xlane.f32.xlu0 %v4936_v41  ;;  %4872 = vadd.xlane.f32.xlu1 %v4842_v62 }
 0x900   : > { %v4560_v13 = vpop.xlane.xlu0 %4559  ;;  %v4586_v40 = vpop.xlane.xlu1 %4585 }
 0x901   : > { %v11414_v27 = vsel %vm3818_vm7, %v11316_v60, %v4560_v13  ;;  %v4648_v9 = vsel %vm3835_vm8, %v11322_v46, %v4586_v40  ;;  %v12639_v60 = vld [vmem:[#allocation14_spill] sm:$0xff]  ;;  %v4843_v46 = vmul.f32 %v6250_v34, %v4827_v58 }
 0x902   : > { %v4937_v53 = vmul.f32 %v12639_v60, %v4825_v24  ;;  %v4664_v54 = vsel %vm3852_vm9, %v4648_v9, 0.0  ;;  %v4890_v24 = vmul.f32 %v6251_v49, %v4826_v16  ;;  %v6252_v16 = vld [vmem:[%s11609_s3 + $0xf8] sm:$0xff] }
 0x903   : > { %4918 = vadd.xlane.f32.xlu0 %v4889_v55  ;;  %5014 = vadd.xlane.f32.xlu1 %v4985_v2 }
 0x904   : > { %v4564_v57 = vpop.xlane.xlu0 %4563  ;;  %v4590_v8 = vpop.xlane.xlu1 %4589 }
 0x905   : > { %v11424_v50 = vsel %vm3818_vm7, %v11328_v11, %v4564_v57  ;;  %v4650_v4 = vsel %vm3835_vm8, %v11334_v25, %v4590_v8 }
 0x906   : > { %v4668_v45 = vsel %vm3852_vm9, %v4650_v4, 0.0 }
 0x907   : > { %4966 = vadd.xlane.f32.xlu0 %v4937_v53  ;;  %4874 = vadd.xlane.f32.xlu1 %v4843_v46 }
 0x908   : > { %v4584_v0 = vpop.xlane.xlu0 %4583  ;;  %v4594_v15 = vpop.xlane.xlu1 %4593 }
 0x909   : > { %v4647_v11 = vsel %vm3835_vm8, %v11342_v10, %v4584_v0  ;;  %v4652_v25 = vsel %vm3835_vm8, %v11348_v3, %v4594_v15 }
 0x90a   : > { %v4663_v28 = vsel %vm3852_vm9, %v4647_v11, 0.0  ;;  %v4672_v51 = vsel %vm3852_vm9, %v4652_v25, 0.0 }
 0x90b   : > { %4920 = vadd.xlane.f32.xlu0 %v4890_v24  ;;  %v4665_v12 = vadd.f32 %v4664_v54, %v4663_v28  ;;  %5016 = vadd.xlane.f32.xlu1 %v4986_v20 }
 0x90c   : > { %v4588_v1 = vpop.xlane.xlu0 %4587  ;;  %v4598_v44 = vpop.xlane.xlu1 %4597 }
 0x90d   : > { %v4649_v10 = vsel %vm3835_vm8, %v11354_v19, %v4588_v1  ;;  %v4654_v17 = vsel %vm3835_vm8, %v11360_v63, %v4598_v44  ;;  %v4891_v63 = vmul.f32 %v6252_v16, %v4827_v58 }
 0x90e   : > { %v4666_v3 = vsel %vm3852_vm9, %v4649_v10, 0.0 }
 0x90f   : > { %v4667_v26 = vadd.f32 %v4666_v3, %v4665_v12  ;;  %4968 = vadd.xlane.f32.xlu0 %v4938_v47  ;;  %5018 = vadd.xlane.f32.xlu1 %v4987_v33 }
 0x910   : > { %v4592_v21 = vpop.xlane.xlu0 %4591  ;;  %v4602_v52 = vpop.xlane.xlu1 %4601 }
 0x911   : > { %v4669_v61 = vadd.f32 %v4668_v45, %v4667_v26  ;;  %v4651_v19 = vsel %vm3835_vm8, %v11368_v22, %v4592_v21  ;;  %v4656_v29 = vsel %vm3835_vm8, %v11373_v36, %v4602_v52  ;;  %v4676_v36 = vsel %vm3852_vm9, %v4654_v17, 0.0 }
 0x912   : > { %v4670_v38 = vsel %vm3852_vm9, %v4651_v19, 0.0  ;;  %v4680_v55 = vsel %vm3852_vm9, %v4656_v29, 0.0 }
 0x913   : > { %v4671_v59 = vadd.f32 %v4670_v38, %v4669_v61  ;;  %4922 = vadd.xlane.f32.xlu0 %v4891_v63 }
 0x914   : > { %v4596_v31 = vpop.xlane.xlu0 %4595  ;;  %v4606_v18 = vpop.xlane.xlu1 %4605 }
 0x915   : > { %v4673_v56 = vadd.f32 %v4672_v51, %v4671_v59  ;;  %v4653_v22 = vsel %vm3835_vm8, %v11378_v32, %v4596_v31  ;;  %v4658_v42 = vsel %vm3835_vm8, %v11383_v43, %v4606_v18 }
 0x916   : > { %v4674_v41 = vsel %vm3852_vm9, %v4653_v22, 0.0 }
 0x917   : > { %v4675_v35 = vadd.f32 %v4674_v41, %v4673_v56  ;;  %4970 = vadd.xlane.f32.xlu0 %v4939_v37 }
 0x918   : > { %v4600_v62 = vpop.xlane.xlu0 %4599  ;;  %v4610_v13 = vpop.xlane.xlu1 %4609 }
 0x919   : > { %v4677_v40 = vadd.f32 %v4676_v36, %v4675_v35  ;;  %v4655_v30 = vsel %vm3835_vm8, %v11391_v6, %v4600_v62  ;;  %v4660_v32 = vsel %vm3835_vm8, %v11396_v14, %v4610_v13  ;;  %v4684_v6 = vsel %vm3852_vm9, %v4658_v42, 0.0 }
 0x91a   : > { %v4678_v58 = vsel %vm3852_vm9, %v4655_v30, 0.0  ;;  %v4688_v15 = vsel %vm3852_vm9, %v4660_v32, 0.0 }
 0x91b   : > { %v4679_v43 = vadd.f32 %v4678_v58, %v4677_v40 }
 0x91c   : > { %v4604_v9 = vpop.xlane.xlu0 %4603  ;;  %v4614_v2 = vpop.xlane.xlu1 %4613 }
 0x91d   : > { %v4681_v57 = vadd.f32 %v4680_v55, %v4679_v43  ;;  %v4657_v8 = vsel %vm3835_vm8, %v11401_v5, %v4604_v9  ;;  %v4662_v60 = vsel %vm3835_vm8, %v11406_v7, %v4614_v2 }
 0x91e   : > { %v4682_v53 = vsel %vm3852_vm9, %v4657_v8, 0.0  ;;  %v4692_v20 = vsel %vm3852_vm9, %v4662_v60, 0.0 }
 0x91f   : > { %v4683_v4 = vadd.f32 %v4682_v53, %v4681_v57 }
 0x920   : > { %v4608_v14 = vpop.xlane.xlu0 %4607  ;;  %v4847_v34 = vpop.xlane.xlu1 %4846 }
 0x921   : > { %v4685_v46 = vadd.f32 %v4684_v6, %v4683_v4  ;;  %v4659_v0 = vsel %vm3835_vm8, %v11414_v27, %v4608_v14 }
 0x922   : > { %v4686_v54 = vsel %vm3852_vm9, %v4659_v0, 0.0 }
 0x923   : > { %v4687_v11 = vadd.f32 %v4686_v54, %v4685_v46 }
 0x924   : > { %v4612_v5 = vpop.xlane.xlu0 %4611  ;;  %v4893_v49 = vpop.xlane.xlu1 %4892 }
 0x925   : > { %v4689_v24 = vadd.f32 %v4688_v15, %v4687_v11  ;;  %v4661_v7 = vsel %vm3835_vm8, %v11424_v50, %v4612_v5 }
 0x926   : > { %v4690_v25 = vsel %vm3852_vm9, %v4661_v7, 0.0 }
 0x927   : > { %v4691_v28 = vadd.f32 %v4690_v25, %v4689_v24 }
 0x928   : > { %v4845_v12 = vpop.xlane.xlu0 %4844  ;;  %v4941_v1 = vpop.xlane.xlu1 %4940 }
 0x929   : > { %v4693_v44 = vadd.f32 %v4692_v20, %v4691_v28  ;;  %v5020_v27 = vsel %vm997_vm2, %v4845_v12, %v4893_v49 }
 0x92a   : > { %v5036_v10 = vsel %vm3818_vm7, %v5020_v27, %v4941_v1 }
 0x92b   : > { %v4694_v23 = vrot.slane %v4693_v44, 4 }
 0x92c   : > { %v4849_v47 = vpop.xlane.xlu0 %4848  ;;  %v4897_v17 = vpop.xlane.xlu1 %4896 }
 0x92d   : > { %v4695_v33 = vadd.f32 %v4694_v23, %v4693_v44  ;;  %v5022_v3 = vsel %vm997_vm2, %v4849_v47, %v4897_v17 }
 0x92f   : > { %v4696_v45 = vrot.slane %v4695_v33, 2 }
 0x930   : > { %v4895_v50 = vpop.xlane.xlu0 %4894  ;;  %v4991_v26 = vpop.xlane.xlu1 %4990 }
 0x931   : > { %v4697_v21 = vadd.f32 %v4696_v45, %v4695_v33  ;;  %v5021_v52 = vsel %vm997_vm2, %v4847_v34, %v4895_v50 }
 0x933   : > { %v4698_v61 = vrot.slane %v4697_v21, 1 }
 0x934   : > { %v4943_v19 = vpop.xlane.xlu0 %4942  ;;  %v4851_v16 = vpop.xlane.xlu1 %4850 }
 0x935   : > { %v4699_v63 = vadd.f32 %v4698_v61, %v4697_v21  ;;  %v5037_v29 = vsel %vm3818_vm7, %v5021_v52, %v4943_v19 }
 0x936   : > { %v5053_v38 = vsel %vm3835_vm8, %v5037_v29, %v4991_v26 }
 0x937   : > { %v11493_v51 = vsel %vm5107_vm11, %v11171_v48, %v4699_v63  ;;  %v5069_v31 = vsel %vm3852_vm9, %v5053_v38, 0.0 }
 0x938   : > { %v4989_v59 = vpop.xlane.xlu0 %4988  ;;  %v4993_v18 = vpop.xlane.xlu1 %4992 }
 0x939   : > { %v5052_v56 = vsel %vm3835_vm8, %v5036_v10, %v4989_v59 }
 0x93a   : > { %v5068_v22 = vsel %vm3852_vm9, %v5052_v56, 0.0 }
 0x93b   : > { %v5070_v39 = vadd.f32 %v5069_v31, %v5068_v22 }
 0x93c   : > { %v4945_v37 = vpop.xlane.xlu0 %4944  ;;  %v4853_v42 = vpop.xlane.xlu1 %4852 }
 0x93d   : > { %v5038_v41 = vsel %vm3818_vm7, %v5022_v3, %v4945_v37 }
 0x93e   : > { %v5054_v36 = vsel %vm3835_vm8, %v5038_v41, %v4993_v18 }
 0x93f   : > { %v5071_v35 = vsel %vm3852_vm9, %v5054_v36, 0.0 }
 0x940   : > { %v4899_v62 = vpop.xlane.xlu0 %4898  ;;  %v5072_v48 = vadd.f32 %v5071_v35, %v5070_v39  ;;  %v4995_v13 = vpop.xlane.xlu1 %4994 }
 0x941   : > { %v5023_v40 = vsel %vm997_vm2, %v4851_v16, %v4899_v62 }
 0x944   : > { %v4947_v30 = vpop.xlane.xlu0 %4946  ;;  %v4855_v32 = vpop.xlane.xlu1 %4854 }
 0x945   : > { %v5039_v58 = vsel %vm3818_vm7, %v5023_v40, %v4947_v30 }
 0x946   : > { %v5055_v55 = vsel %vm3835_vm8, %v5039_v58, %v4995_v13 }
 0x947   : > { %v5073_v43 = vsel %vm3852_vm9, %v5055_v55, 0.0 }
 0x948   : > { %v4901_v9 = vpop.xlane.xlu0 %4900  ;;  %v5074_v2 = vadd.f32 %v5073_v43, %v5072_v48  ;;  %v4997_v57 = vpop.xlane.xlu1 %4996 }
 0x949   : > { %v5024_v8 = vsel %vm997_vm2, %v4853_v42, %v4901_v9 }
 0x94c   : > { %v4949_v60 = vpop.xlane.xlu0 %4948  ;;  %v4857_v53 = vpop.xlane.xlu1 %4856 }
 0x94d   : > { %v5040_v6 = vsel %vm3818_vm7, %v5024_v8, %v4949_v60 }
 0x94e   : > { %v5056_v4 = vsel %vm3835_vm8, %v5040_v6, %v4997_v57 }
 0x94f   : > { %v5075_v14 = vsel %vm3852_vm9, %v5056_v4, 0.0 }
 0x950   : > { %v4903_v34 = vpop.xlane.xlu0 %4902  ;;  %v5076_v46 = vadd.f32 %v5075_v14, %v5074_v2  ;;  %v4999_v0 = vpop.xlane.xlu1 %4998 }
 0x951   : > { %v5025_v54 = vsel %vm997_vm2, %v4855_v32, %v4903_v34 }
 0x954   : > { %v4951_v15 = vpop.xlane.xlu0 %4950  ;;  %v4859_v11 = vpop.xlane.xlu1 %4858 }
 0x955   : > { %v5041_v5 = vsel %vm3818_vm7, %v5025_v54, %v4951_v15 }
 0x956   : > { %v5057_v49 = vsel %vm3835_vm8, %v5041_v5, %v4999_v0 }
 0x957   : > { %v5077_v24 = vsel %vm3852_vm9, %v5057_v49, 0.0 }
 0x958   : > { %v4905_v7 = vpop.xlane.xlu0 %4904  ;;  %v5078_v25 = vadd.f32 %v5077_v24, %v5076_v46  ;;  %v5001_v20 = vpop.xlane.xlu1 %5000 }
 0x959   : > { %v5026_v22 = vsel %vm997_vm2, %v4857_v53, %v4905_v7 }
 0x95c   : > { %v4953_v28 = vpop.xlane.xlu0 %4952  ;;  %v4861_v12 = vpop.xlane.xlu1 %4860 }
 0x95d   : > { %v5042_v39 = vsel %vm3818_vm7, %v5026_v22, %v4953_v28 }
 0x95e   : > { %v5058_v42 = vsel %vm3835_vm8, %v5042_v39, %v5001_v20 }
 0x95f   : > { %v5079_v13 = vsel %vm3852_vm9, %v5058_v42, 0.0  ;;  %v5297_v42 = vld [vmem:[%s11610_s4] ss:$0 sm:$0xff] }
 0x960   : > { %v4907_v1 = vpop.xlane.xlu0 %4906  ;;  %v5003_v44 = vpop.xlane.xlu1 %5002  ;;  %v5080_v9 = vadd.f32 %v5079_v13, %v5078_v25 }
 0x961   : > { %v5027_v37 = vsel %vm997_vm2, %v4859_v11, %v4907_v1 }
 0x964   : > { %v4955_v27 = vpop.xlane.xlu0 %4954  ;;  %v4863_v10 = vpop.xlane.xlu1 %4862 }
 0x965   : > { %v5043_v36 = vsel %vm3818_vm7, %v5027_v37, %v4955_v27 }
 0x966   : > { %v5059_v48 = vsel %vm3835_vm8, %v5043_v36, %v5003_v44 }
 0x967   : > { %v5081_v55 = vsel %vm3852_vm9, %v5059_v48, 0.0 }
 0x968   : > { %v4909_v23 = vpop.xlane.xlu0 %4908  ;;  %v5005_v47 = vpop.xlane.xlu1 %5004  ;;  %v5082_v6 = vadd.f32 %v5081_v55, %v5080_v9 }
 0x969   : > { %v5028_v62 = vsel %vm997_vm2, %v4861_v12, %v4909_v23 }
 0x96c   : > { %v4957_v17 = vpop.xlane.xlu0 %4956  ;;  %v4865_v33 = vpop.xlane.xlu1 %4864 }
 0x96d   : > { %v5044_v40 = vsel %vm3818_vm7, %v5028_v62, %v4957_v17 }
 0x96e   : > { %v5060_v32 = vsel %vm3835_vm8, %v5044_v40, %v5005_v47 }
 0x96f   : > { %v5083_v8 = vsel %vm3852_vm9, %v5060_v32, 0.0 }
 0x970   : > { %v4911_v3 = vpop.xlane.xlu0 %4910  ;;  %v5007_v45 = vpop.xlane.xlu1 %5006  ;;  %v5084_v54 = vadd.f32 %v5083_v8, %v5082_v6 }
 0x971   : > { %v5029_v30 = vsel %vm997_vm2, %v4863_v10, %v4911_v3 }
 0x974   : > { %v4959_v50 = vpop.xlane.xlu0 %4958  ;;  %v4867_v26 = vpop.xlane.xlu1 %4866 }
 0x975   : > { %v5045_v43 = vsel %vm3818_vm7, %v5029_v30, %v4959_v50 }
 0x976   : > { %v5061_v57 = vsel %vm3835_vm8, %v5045_v43, %v5007_v45 }
 0x977   : > { %v5085_v46 = vsel %vm3852_vm9, %v5061_v57, 0.0 }
 0x978   : > { %v4913_v21 = vpop.xlane.xlu0 %4912  ;;  %v5009_v52 = vpop.xlane.xlu1 %5008  ;;  %v5086_v24 = vadd.f32 %v5085_v46, %v5084_v54 }
 0x979   : > { %v5030_v2 = vsel %vm997_vm2, %v4865_v33, %v4913_v21 }
 0x97c   : > { %v4961_v61 = vpop.xlane.xlu0 %4960  ;;  %v4869_v19 = vpop.xlane.xlu1 %4868 }
 0x97d   : > { %v5046_v60 = vsel %vm3818_vm7, %v5030_v2, %v4961_v61 }
 0x97e   : > { %v5062_v14 = vsel %vm3835_vm8, %v5046_v60, %v5009_v52 }
 0x97f   : > { %v5087_v5 = vsel %vm3852_vm9, %v5062_v14, 0.0 }
 0x980   : > { %v4915_v16 = vpop.xlane.xlu0 %4914  ;;  %v5011_v63 = vpop.xlane.xlu1 %5010  ;;  %v5088_v44 = vadd.f32 %v5087_v5, %v5086_v24 }
 0x981   : > { %v5031_v4 = vsel %vm997_vm2, %v4867_v26, %v4915_v16 }
 0x984   : > { %v4963_v29 = vpop.xlane.xlu0 %4962  ;;  %v4871_v38 = vpop.xlane.xlu1 %4870 }
 0x985   : > { %v5047_v0 = vsel %vm3818_vm7, %v5031_v4, %v4963_v29 }
 0x986   : > { %v5063_v11 = vsel %vm3835_vm8, %v5047_v0, %v5011_v63 }
 0x987   : > { %v5089_v28 = vsel %vm3852_vm9, %v5063_v11, 0.0 }
 0x988   : > { %v4917_v59 = vpop.xlane.xlu0 %4916  ;;  %v5013_v31 = vpop.xlane.xlu1 %5012  ;;  %v5090_v17 = vadd.f32 %v5089_v28, %v5088_v44 }
 0x989   : > { %v5032_v15 = vsel %vm997_vm2, %v4869_v19, %v4917_v59 }
 0x98c   : > { %v4965_v18 = vpop.xlane.xlu0 %4964  ;;  %v4873_v56 = vpop.xlane.xlu1 %4872 }
 0x98d   : > { %v5048_v49 = vsel %vm3818_vm7, %v5032_v15, %v4965_v18 }
 0x98e   : > { %v5064_v25 = vsel %vm3835_vm8, %v5048_v49, %v5013_v31 }
 0x98f   : > { %v5091_v23 = vsel %vm3852_vm9, %v5064_v25, 0.0 }
 0x990   : > { %v4919_v41 = vpop.xlane.xlu0 %4918  ;;  %v5015_v35 = vpop.xlane.xlu1 %5014  ;;  %v5092_v50 = vadd.f32 %v5091_v23, %v5090_v17 }
 0x991   : > { %v5033_v7 = vsel %vm997_vm2, %v4871_v38, %v4919_v41 }
 0x994   : > { %v4967_v58 = vpop.xlane.xlu0 %4966  ;;  %v4875_v53 = vpop.xlane.xlu1 %4874 }
 0x995   : > { %v5049_v12 = vsel %vm3818_vm7, %v5033_v7, %v4967_v58 }
 0x996   : > { %v5065_v10 = vsel %vm3835_vm8, %v5049_v12, %v5015_v35 }
 0x997   : > { %v5093_v45 = vsel %vm3852_vm9, %v5065_v10, 0.0 }
 0x998   : > { %v4921_v34 = vpop.xlane.xlu0 %4920  ;;  %v5017_v1 = vpop.xlane.xlu1 %5016  ;;  %v5094_v52 = vadd.f32 %v5093_v45, %v5092_v50 }
 0x999   : > { %v5034_v27 = vsel %vm997_vm2, %v4873_v56, %v4921_v34 }
 0x99c   : > { %v4969_v20 = vpop.xlane.xlu0 %4968  ;;  %v5019_v21 = vpop.xlane.xlu1 %5018 }
 0x99d   : > { %v5050_v47 = vsel %vm3818_vm7, %v5034_v27, %v4969_v20 }
 0x99e   : > { %v5066_v3 = vsel %vm3835_vm8, %v5050_v47, %v5017_v1 }
 0x99f   : > { %v5095_v26 = vsel %vm3852_vm9, %v5066_v3, 0.0 }
 0x9a0   : > { %v4923_v33 = vpop.xlane.xlu0 %4922  ;;  %v5096_v63 = vadd.f32 %v5095_v26, %v5094_v52 }
 0x9a1   : > { %v5035_v61 = vsel %vm997_vm2, %v4875_v53, %v4923_v33 }
 0x9a4   : > { %v4971_v19 = vpop.xlane.xlu0 %4970 }
 0x9a5   : > { %v5051_v16 = vsel %vm3818_vm7, %v5035_v61, %v4971_v19 }
 0x9a6   : > { %v5067_v29 = vsel %vm3835_vm8, %v5051_v16, %v5019_v21 }
 0x9a7   : > { %v5097_v38 = vsel %vm3852_vm9, %v5067_v29, 0.0 }
 0x9a8   : > { %v5098_v59 = vadd.f32 %v5097_v38, %v5096_v63 }
 0x9aa   : > { %v5099_v31 = vrot.slane %v5098_v59, 4 }
 0x9ac   : > { %v5100_v18 = vadd.f32 %v5099_v31, %v5098_v59 }
 0x9ae   : > { %v5101_v56 = vrot.slane %v5100_v18, 2 }
 0x9b0   : > { %v5102_v22 = vadd.f32 %v5101_v56, %v5100_v18 }
 0x9b2   : > { %v5103_v39 = vrot.slane %v5102_v22, 1 }
 0x9b4   : > { %v5104_v37 = vadd.f32 %v5103_v39, %v5102_v22 }
 0x9b6   : > { %v5110_v41 = vsel %vm5109_vm12, %v11493_v51, %v5104_v37 }
 0x9b7   : > { %v5117_v36 = vadd.f32 %v5297_v42, %v5110_v41 }
 0x9b9   : > { %5119 = vst.msk [vmem:[%s243_s14] sm:$0xf] %vm5118_vm13, %v5117_v36 }
 0x9ba   : > { %6296 = shalt.err (!%p6293_p2)
}
 0x9bb   : > { %s6297_s23 = scalar_lea.hbm %s11562_s7, 64  ;;  %s6301_s17 = scalar_lea.hbm %s11611_s5, 128 }
 0x9bc   : > { %p6298_p4 = scmp.ne.s32.totalorder %s11562_s7, %s6297_s23  ;;  %p6302_p9 = scmp.lt.u32.totalorder %s11562_s7, %s11611_s5 }
 0x9bd   : > { %p6303_p1 = scmp.lt.u32.totalorder %s6301_s17, %s6297_s23  ;;  %p6305_p6 = scmp.lt.u32.totalorder %s6297_s23, %s11562_s7 }
 0x9be   : > { %p6299_p5 = pnand %p6298_p4, %p12642_p11 }
 0x9bf   : > { %p6304_p3 = por %p6303_p1, %p6302_p9 }
 0x9c0   : > { %p6300_p7 = pneg %p6299_p5 }
 0x9c1   : > { %p6306_p12 = por %p6305_p6, %p6304_p3 }
 0x9c3   : > { %p6307_p13 = pnand %p6306_p12, %p6300_p7 }
 0x9c5   : > { %6310 = shalt.err (!%p6307_p13)
}
 0x9c6   : > { %5530 = dma.vmem_to_hbm [thread:$0]  (%p12642_p11), %s11564_s28, 64, %s11562_s7, %s5121_s15  }
 0x9c7 PF: > { %s5146_s12 = sand.u32 1, %s6337_s18   ;;  %p12643_p8 = scmp.ne.s32.totalorder %s11952_s6, 0 }
 0x9c8   : > { %p12644_p10 = scmp.ge.s32.totalorder %s6349_s21, 2  ;;  %s5147_s14 = scalar_lea.sflag [#allocation6], %s5146_s12 }
 0x9ca   : > { %p5537_p0 = pnand %p12644_p10, %p12643_p8 }
 0x9cc   : > { %6332 = dma.done.wait (!%p5537_p0), %s5147_s14, 64  }
 0x9cd   : > { %6334 = vsyncadd (!%p5537_p0), %s5147_s14, 4294967232  ;;  %p18_p2 = scmp.ge.s32.totalorder %s6421_s24, 4   ;;  %s12645_s18 = smov %s6341_s19 }
 0x9ce   : > { %s12646_s19 = smov %s6345_s20  ;;  %s12647_s20 = smov %s6433_s27 }
 0x9cf   : > { %s12648_s21 = smov %s6421_s24  ;;  %20 = sbr.rel (!%p18_p2) target bundleno = 5 (0x5), region = 91 }
 0x9d6   :  { %5152 = vsyncpa [#allocation5], 1 }
 0x9d7   :  { %5154 = vsyncpa [#allocation5 + $0x1], 1 }
 0x9d8   :  { %5155 = vsyncpa [#allocation6], 1 }
 0x9d9   :  { %5157 = vsyncpa [#allocation6 + $0x1], 1 }

</bundles_post_ra>
